<compile_context>
chip_gen: v5e
topology: v5e:2x2
jax: 0.10.0
libtpu: 0.0.40
codegen_flags: <defaults>
</compile_context>

<pallas_src>
import math
import numpy as np

import jax
import jax.numpy as jnp
from jax.experimental import pallas as pl
from jax.experimental.pallas import tpu as pltpu

# ------------------------- config (EnhancedCTMConfig) -------------------------
OUTPUT_DIM = 256                     # config.byte_embedding_dim
GRAN_DIM = OUTPUT_DIM // 4           # per-granularity feature dim (64)
NUM_HEADS = 4
HEAD_DIM = GRAN_DIM // NUM_HEADS     # 16
NUM_GRAN = 4
GH = NUM_GRAN * NUM_HEADS            # 16 (query granularity x head)

_CPARAMS_FEAT = pltpu.CompilerParams(
    dimension_semantics=("parallel",),
    vmem_limit_bytes=40 * 1024 * 1024,   # conservative for v7x's 64 MiB physical VMEM
)
_CPARAMS_ATTN = pltpu.CompilerParams(
    dimension_semantics=("parallel",),
    vmem_limit_bytes=32 * 1024 * 1024,
)


# ============================ small helpers ===================================
def _row_tile(m, tmax=512):
    """Multiple-of-16 row tile, capped at tmax, aiming for >=4 grid steps
    (>=2 per v7x TensorCore) when m is large enough."""
    quarter = -(-m // 4)
    tm = min(tmax, max(16, ((quarter + 15) // 16) * 16))
    m_pad = ((m + tm - 1) // tm) * tm
    return tm, m_pad


def _const_spec(a):
    """Full-array (2D) block identical for every grid step (weights / constants)."""
    return pl.BlockSpec(a.shape, lambda b: (0, 0))


def adaptive_avg_pool_matrix(l_in, l_out):
    """Exact linear map of nn.AdaptiveAvgPool1d along the length axis: (l_in, l_out)."""
    m = np.zeros((l_in, l_out), np.float32)
    for i in range(l_out):
        s = (i * l_in) // l_out
        e = -((-(i + 1) * l_in) // l_out)          # ceil
        m[s:e, i] = 1.0 / (e - s)
    return m


def linear_interp_matrix(l_in, l_out):
    """Exact linear map of F.interpolate(mode='linear', align_corners=False)."""
    if l_in == l_out:
        return np.eye(l_in, dtype=np.float32)
    m = np.zeros((l_in, l_out), np.float32)
    scale = l_in / l_out
    for j in range(l_out):
        src = max(scale * (j + 0.5) - 0.5, 0.0)
        x0 = min(int(np.floor(src)), l_in - 1)
        x1 = min(x0 + 1, l_in - 1)
        lam = src - x0
        m[x0, j] += 1.0 - lam
        m[x1, j] += lam
    return m


# ====================== Kernel 1: fused feature extractor =====================
def _conv_path(x_ref, k1, w1_ref, b1_ref, k2, w2_ref, b2_ref, pool_ref, s_ref):
    """conv1(+ReLU) -> conv2(+ReLU) -> adaptive pool, all in VMEM.

    Each conv's k taps are lane-concatenated shifted windows feeding ONE merged
    (L, k*Cin)@(k*Cin, Cout) matmul.  conv2's real stride and the AdaptiveAvgPool1d are
    encoded in pool_ref (64, l2_full), linear in S.  Returns (64, Cout2) f32.
    """
    bf16 = jnp.bfloat16
    f32 = jnp.float32

    l1 = x_ref.shape[0] - k1 + 1
    if k1 == 1:
        win1 = x_ref[...]                                      # input already windowed
    else:
        win1 = jnp.concatenate([x_ref[pl.ds(j, l1), :] for j in range(k1)], axis=-1)
    h1 = jnp.maximum(jnp.dot(win1, w1_ref[...], preferred_element_type=f32)
                     + b1_ref[...], 0.0)                       # (l1, C1)
    c1 = h1.shape[1]

    # conv2 zero padding (p=1): write ONLY the two pad rows + the interior
    s_ref[pl.ds(0, 1), :] = jnp.zeros((1, c1), s_ref.dtype)
    s_ref[pl.ds(l1 + 1, 1), :] = jnp.zeros((1, c1), s_ref.dtype)
    s_ref[pl.ds(1, l1), :] = h1.astype(s_ref.dtype)

    l2f = l1 + 2 - k2 + 1
    win2 = jnp.concatenate([s_ref[pl.ds(j, l2f), :] for j in range(k2)], axis=-1)
    h2 = jnp.maximum(jnp.dot(win2, w2_ref[...], preferred_element_type=f32)
                     + b2_ref[...], 0.0)                       # (l2f, C2)

    # adaptive average pool to 64 bins (conv2 stride folded in as zero columns)
    return jnp.dot(pool_ref[...], h2.astype(bf16), preferred_element_type=f32)


def _feature_kernel(bitw_ref, bytex_ref, wordx_ref, blkx_ref,
                    bw1, bb1, bw2, bb2, bpool,
                    yw1, yb1, yw2, yb2, ypool,
                    ww1, wb1, ww2, wb2, wpool, wmix,
                    kw1, kb1, kw2, kb2, kw3, kb3,
                    ibb, iw, ik,
                    o_ref, s_bit, s_byte, s_word):
    bf16 = jnp.bfloat16
    f32 = jnp.float32

    p_bit = _conv_path(bitw_ref, 1, bw1, bb1, 4, bw2, bb2, bpool, s_bit)      # (64, 64)
    p_byte = _conv_path(bytex_ref, 4, yw1, yb1, 3, yw2, yb2, ypool, s_byte)   # (64, 64)
    p_word = _conv_path(wordx_ref, 3, ww1, wb1, 3, ww2, wb2, wpool, s_word)   # (64, 128)
    # TODO(synk): the reference word path emits a 128-dim feature that cannot be stacked
    # with the 64-dim granularities; reduce via a fixed channel-pair mean (0.5/0.5 matmul).
    p_word = jnp.dot(p_word.astype(bf16), wmix[...], preferred_element_type=f32)  # (64, 64)

    # block MLP (32 -> 256 -> 128 -> 64), fully fused
    xb = blkx_ref[...]                                                        # (n_blocks, 32)
    h = jnp.maximum(jnp.dot(xb, kw1[...], preferred_element_type=f32) + kb1[...], 0.0)
    h = jnp.maximum(jnp.dot(h.astype(bf16), kw2[...], preferred_element_type=f32)
                    + kb2[...], 0.0)
    h = jnp.dot(h.astype(bf16), kw3[...], preferred_element_type=f32) + kb3[...]

    # length interpolation to target: small (target, 64)/(target, n_blocks) matmuls
    f_bb = jnp.dot(ibb[...], jnp.concatenate([p_bit, p_byte], axis=-1).astype(bf16),
                   preferred_element_type=f32)                                # (S, 128)
    f_word = jnp.dot(iw[...], p_word.astype(bf16), preferred_element_type=f32)  # (S, 64)
    f_blk = jnp.dot(ik[...], h.astype(bf16), preferred_element_type=f32)        # (S, 64)

    # one lane-dense 256-wide store per batch element
    o_ref[...] = jnp.concatenate([f_bb, f_word, f_blk], axis=-1).astype(o_ref.dtype)


# ================= Kernel 2: granularity attention + fusion ===================
def _attn_fusion_kernel(x_ref, wqkv_ref, bqkv_ref, seg_ref, expm_ref,
                        w1_ref, b1_ref, w2_ref, b2_ref, ln_g_ref, ln_b_ref, o_ref):
    bf16 = jnp.bfloat16
    f32 = jnp.float32
    D = OUTPUT_DIM
    G = GRAN_DIM

    x = x_ref[...]                                                    # (tm, 256) bf16
    # merged QKV projection (block-diagonal per granularity): one MXU dispatch
    qkv = jnp.dot(x, wqkv_ref[...], preferred_element_type=f32) + bqkv_ref[...]
    q = qkv[:, 0:D].astype(bf16)
    k = qkv[:, D:2 * D].astype(bf16)
    v = qkv[:, 2 * D:3 * D].astype(bf16)

    # replications as lane tiling (no MXU work); layout: query granularity outer
    q_rep = jnp.concatenate([q[:, 0:G]] * 4 + [q[:, G:2 * G]] * 4
                            + [q[:, 2 * G:3 * G]] * 4 + [q[:, 3 * G:4 * G]] * 4,
                            axis=-1)                                  # (tm, 1024)
    k_rep = jnp.concatenate([k, k, k, k], axis=-1)                    # (tm, 1024)

    # all 16 (query gran x head x key gran) score segment-sums in ONE matmul
    s = jnp.dot(q_rep * k_rep, seg_ref[...],
                preferred_element_type=f32) * (1.0 / math.sqrt(HEAD_DIM))   # (tm, 64)

    # softmax over the 4 key granularities (4 contiguous 16-lane blocks)
    s0, s1, s2, s3 = s[:, 0:GH], s[:, GH:2 * GH], s[:, 2 * GH:3 * GH], s[:, 3 * GH:4 * GH]
    m = jnp.maximum(jnp.maximum(s0, s1), jnp.maximum(s2, s3))
    m4 = jnp.concatenate([m, m, m, m], axis=-1)
    e = jnp.exp(s - m4)
    denom = e[:, 0:GH] + e[:, GH:2 * GH] + e[:, 2 * GH:3 * GH] + e[:, 3 * GH:4 * GH]
    inv = pl.reciprocal(denom, approx=True)
    a = e * jnp.concatenate([inv, inv, inv, inv], axis=-1)            # softmax weights

    # expand weights to 16-lane head groups (one small matmul), V replicated by lane tiling
    a_exp = jnp.dot(a.astype(bf16), expm_ref[...], preferred_element_type=f32)   # (tm, 1024)
    v_rep = jnp.concatenate([v, v, v, v], axis=-1)                                # (tm, 1024)
    prod = a_exp.astype(bf16) * v_rep
    att_parts = []
    for gq in range(NUM_GRAN):
        base = gq * D
        att_parts.append(prod[:, base:base + G].astype(f32)
                         + prod[:, base + G:base + 2 * G].astype(f32)
                         + prod[:, base + 2 * G:base + 3 * G].astype(f32)
                         + prod[:, base + 3 * G:base + 4 * G].astype(f32))
    att = jnp.concatenate(att_parts, axis=-1).astype(bf16)            # (tm, 256)

    # fusion_network (with the attention out_proj folded into W1):
    # Linear 256->512 -> ReLU -> (Dropout = identity in eval) -> Linear 512->256 -> LayerNorm
    h = jnp.maximum(jnp.dot(att, w1_ref[...], preferred_element_type=f32) + b1_ref[...], 0.0)
    y = jnp.dot(h.astype(bf16), w2_ref[...], preferred_element_type=f32) + b2_ref[...]
    mu = jnp.mean(y, axis=-1, keepdims=True)
    var = jnp.mean(jnp.square(y - mu), axis=-1, keepdims=True)
    y = (y - mu) * jax.lax.rsqrt(var + 1e-5)
    o_ref[...] = (y * ln_g_ref[...] + ln_b_ref[...]).astype(o_ref.dtype)


# ================================ the module ==================================
class MultiGranularityBinaryProcessorPallas:
    def __init__(self, key):
        ks = iter(jax.random.split(key, 64))

        def wf(shape, s=0.05):
            return jax.random.normal(next(ks), shape, jnp.float32) * s

        def w16(shape, s=0.05):
            return wf(shape, s).astype(jnp.bfloat16)

        def bias(n, s=0.01):
            return wf((1, n), s)                     # f32 row vector

        # conv weights are stored pre-merged as (k*Cin, Cout) bf16 (tap-merged matmuls)
        # bit_processor: Conv1d(1,32,8,s1,p3) -> ReLU -> Conv1d(32,64,4,s2,p1) -> ReLU -> pool
        self.bit_w1, self.bit_b1 = w16((8, 32)), bias(32)
        self.bit_w2, self.bit_b2 = w16((4 * 32, 64)), bias(64)
        # byte_processor: Embedding(256,64) -> Conv1d(64,128,4,p1) -> Conv1d(128,64,3,p1) -> pool
        self.byte_emb = w16((256, 64), 0.1)
        self.byte_w1, self.byte_b1 = w16((4 * 64, 128)), bias(128)
        self.byte_w2, self.byte_b2 = w16((3 * 128, 64)), bias(64)
        # word_processor: Embedding(65536,128) -> Conv1d(128,256,3,p1) -> Conv1d(256,128,3,p1) -> pool
        self.word_emb = w16((65536, 128), 0.1)
        self.word_w1, self.word_b1 = w16((3 * 128, 256)), bias(256)
        self.word_w2, self.word_b2 = w16((3 * 256, 128)), bias(128)
        # 128 -> 64 channel-pair mean (see TODO in kernel)
        self.word_mix = jnp.asarray(
            np.kron(np.eye(GRAN_DIM, dtype=np.float32), np.full((2, 1), 0.5, np.float32)),
            jnp.bfloat16)
        # block_processor: Linear(32,256) -> ReLU -> Linear(256,128) -> ReLU -> Linear(128,64)
        self.blk_w1, self.blk_b1 = w16((32, 256)), bias(256)
        self.blk_w2, self.blk_b2 = w16((256, 128)), bias(128)
        self.blk_w3, self.blk_b3 = w16((128, GRAN_DIM)), bias(GRAN_DIM)

        # granularity_attention: MultiheadAttention(embed_dim=64, num_heads=4), shared
        # across the 4 granularity tokens -> block-diagonal projections over 256 lanes.
        wq, wk, wv, wo = (np.asarray(wf((GRAN_DIM, GRAN_DIM))) for _ in range(4))
        bq, bk, bv, bo = (np.asarray(wf((GRAN_DIM,), 0.01)) for _ in range(4))
        eye_g = np.eye(NUM_GRAN, dtype=np.float32)
        wqkv = np.concatenate([np.kron(eye_g, wq), np.kron(eye_g, wk),
                               np.kron(eye_g, wv)], axis=1)                    # (256, 768)
        bqkv = np.concatenate([np.tile(bq, NUM_GRAN), np.tile(bk, NUM_GRAN),
                               np.tile(bv, NUM_GRAN)])[None, :]                # (1, 768)

        # score segment-sum / softmax-weight-expansion 0/1 matrices
        # product lane index p = g*256 + g'*64 + h*16 + d ; score column c = g'*16 + g*4 + h
        seg = np.zeros((4 * OUTPUT_DIM, 4 * GH), np.float32)                   # (1024, 64)
        for g in range(NUM_GRAN):
            for gp in range(NUM_GRAN):
                for h in range(NUM_HEADS):
                    c = gp * GH + g * NUM_HEADS + h
                    base = g * OUTPUT_DIM + gp * GRAN_DIM + h * HEAD_DIM
                    seg[base:base + HEAD_DIM, c] = 1.0

        # fusion_network: Linear(256,512) -> ReLU -> Dropout -> Linear(512,256) -> LayerNorm,
        # with the attention out_proj (block-diag Wo) folded into the first Linear.
        fus_w1 = np.asarray(wf((OUTPUT_DIM, OUTPUT_DIM * 2)))
        fus_b1 = np.asarray(wf((1, OUTPUT_DIM * 2), 0.01))
        wo_blk = np.kron(eye_g, wo)                                            # (256, 256)
        wf1 = wo_blk @ fus_w1                                                  # (256, 512)
        bf1 = np.tile(bo, NUM_GRAN)[None, :] @ fus_w1 + fus_b1                 # (1, 512)
        fus_w2, fus_b2 = w16((OUTPUT_DIM * 2, OUTPUT_DIM)), bias(OUTPUT_DIM)
        ln_gamma = jnp.ones((1, OUTPUT_DIM), jnp.float32)
        ln_beta = jnp.zeros((1, OUTPUT_DIM), jnp.float32)

        bf = lambda a: jnp.asarray(a, jnp.bfloat16)
        self.attn_fusion_params = (
            bf(wqkv), jnp.asarray(bqkv, jnp.float32),
            bf(seg), bf(seg.T),
            bf(wf1), jnp.asarray(bf1, jnp.float32),
            fus_w2, fus_b2, ln_gamma, ln_beta)

    # ---------------------- fused feature extraction --------------------------
    def _features(self, bit_win, byte_x, word_x, blk_x, *, n_words, n_blocks, target):
        B = bit_win.shape[0]

        bit_l1 = bit_win.shape[1]                       # 8S - 1
        bit_l2f = bit_l1 + 2 - 4 + 1                    # 8S - 2 (stride-1 conv2 positions)
        bit_l2 = (bit_l1 + 2 - 4) // 2 + 1              # 4S - 1 (real stride-2 positions)
        byte_l1 = byte_x.shape[1] - 4 + 1               # S - 1
        byte_l2f = byte_l1 + 2 - 3 + 1                  # S - 1
        word_l1 = word_x.shape[1] - 3 + 1               # n_words
        word_l2f = word_l1 + 2 - 3 + 1                  # n_words

        def pool_T(l2, stride, l2f):
            """(64, l2f) adaptive-pool matrix with conv2's stride folded in as zero cols."""
            p = adaptive_avg_pool_matrix(l2, GRAN_DIM)  # (l2, 64)
            out = np.zeros((GRAN_DIM, l2f), np.float32)
            out[:, 0:stride * l2:stride] = p.T
            return jnp.asarray(out, jnp.bfloat16)

        bpool = pool_T(bit_l2, 2, bit_l2f)
        ypool = pool_T(byte_l2f, 1, byte_l2f)
        wpool = pool_T(word_l2f, 1, word_l2f)

        ibb = jnp.asarray(linear_interp_matrix(GRAN_DIM, target).T, jnp.bfloat16)
        iw = jnp.asarray((linear_interp_matrix(GRAN_DIM, n_words)
                          @ linear_interp_matrix(n_words, target)).T, jnp.bfloat16)
        ik = jnp.asarray(linear_interp_matrix(n_blocks, target).T, jnp.bfloat16)

        ins = [bit_win, byte_x, word_x, blk_x,
               self.bit_w1, self.bit_b1, self.bit_w2, self.bit_b2, bpool,
               self.byte_w1, self.byte_b1, self.byte_w2, self.byte_b2, ypool,
               self.word_w1, self.word_b1, self.word_w2, self.word_b2, wpool,
               self.word_mix,
               self.blk_w1, self.blk_b1, self.blk_w2, self.blk_b2,
               self.blk_w3, self.blk_b3,
               ibb, iw, ik]

        def batch_spec(a):
            return pl.BlockSpec((None,) + a.shape[1:], lambda b: (b, 0, 0))

        in_specs = [batch_spec(a) for a in ins[:4]] + [_const_spec(a) for a in ins[4:]]

        # TODO(synk): with small B and large S the batch-only grid leaves v7x cores with
        # <2 steps each; the adaptive pool is global over the sequence so a target-chunk
        # axis would recompute the convs -- left as a single batch axis.
        return pl.pallas_call(
            _feature_kernel,
            out_shape=jax.ShapeDtypeStruct((B, target, OUTPUT_DIM), jnp.bfloat16),
            grid_spec=pltpu.PrefetchScalarGridSpec(
                num_scalar_prefetch=0,
                grid=(B,),
                in_specs=in_specs,
                out_specs=pl.BlockSpec((None, target, OUTPUT_DIM), lambda b: (b, 0, 0)),
                scratch_shapes=[pltpu.VMEM((bit_l1 + 2, 32), jnp.bfloat16),
                                pltpu.VMEM((byte_l1 + 2, 128), jnp.bfloat16),
                                pltpu.VMEM((word_l1 + 2, 256), jnp.bfloat16)]),
            compiler_params=_CPARAMS_FEAT,
        )(*ins)

    # ------------------ fused attention + fusion_network ----------------------
    def _attention_fusion(self, x):
        m = x.shape[0]
        tm, m_pad = _row_tile(m)
        if m_pad != m:
            x = jnp.pad(x, ((0, m_pad - m), (0, 0)))
        params = self.attn_fusion_params
        in_specs = [pl.BlockSpec((tm, OUTPUT_DIM), lambda i: (i, 0))] + \
                   [_const_spec(a) for a in params]
        out = pl.pallas_call(
            _attn_fusion_kernel,
            out_shape=jax.ShapeDtypeStruct((m_pad, OUTPUT_DIM), jnp.bfloat16),
            grid_spec=pltpu.PrefetchScalarGridSpec(
                num_scalar_prefetch=0,
                grid=(m_pad // tm,),
                in_specs=in_specs,
                out_specs=pl.BlockSpec((tm, OUTPUT_DIM), lambda i: (i, 0))),
            compiler_params=_CPARAMS_ATTN,
        )(x, *params)
        return out[:m]

    # ------------------------------ forward ------------------------------------
    def __call__(self, byte_sequence):
        """byte_sequence: int32 (B, S) with values in [0, 255] -> (B, S, OUTPUT_DIM) bf16."""
        B, S = byte_sequence.shape
        target = S

        # ---- glue (XLA, fused under jit) ----
        # TODO(synk): reference forward() calls self.input_processors[0], which is never
        # defined in __init__; we use the defined bit_processor path instead, and the
        # list-input branch is likewise skipped.
        # bit path: lane-dense windowed bit stream so conv1 is one (l1,8)@(8,32) matmul.
        bits = jnp.stack([(byte_sequence >> i) & 1 for i in range(8)], axis=1)   # (B, 8, S)
        stream = bits.reshape(B, 8 * S).astype(jnp.bfloat16)
        streamp = jnp.pad(stream, ((0, 0), (3, 3)))                              # conv1 pad=3
        l1 = 8 * S - 1
        bit_win = jnp.stack([streamp[:, j:j + l1] for j in range(8)], axis=-1)   # (B, l1, 8)

        # byte path: embedding lookup + conv1 padding=1
        # TODO(synk): could move the 256-entry embedding in-kernel as a one-hot matmul to
        # avoid the HBM round trip of the embedded sequence.
        byte_x = jnp.take(self.byte_emb, byte_sequence, axis=0)                  # (B, S, 64)
        byte_x = jnp.pad(byte_x, ((0, 0), (1, 1), (0, 0)))

        words = byte_sequence
        if S % 2 == 1:
            words = jnp.pad(words, ((0, 0), (0, 1)))
        n_words = words.shape[1] // 2
        word_vals = words[:, 0::2] * 256 + words[:, 1::2]
        word_x = jnp.take(self.word_emb, word_vals, axis=0)                      # (B, nw, 128)
        word_x = jnp.pad(word_x, ((0, 0), (1, 1), (0, 0)))

        block_size = 4
        pad = (-S) % block_size
        blk = jnp.pad(byte_sequence, ((0, 0), (0, pad)))
        n_blocks = blk.shape[1] // block_size
        blocks = blk.reshape(B, n_blocks, block_size).astype(jnp.float32) / 255.0
        pos = jnp.broadcast_to(
            jnp.arange(block_size, dtype=jnp.float32) / block_size,
            (B, n_blocks, block_size))
        blk_x = jnp.concatenate([blocks, pos], axis=-1)
        blk_x = jnp.pad(blk_x, ((0, 0), (0, 0), (0, 32 - blk_x.shape[-1])))
        blk_x = blk_x.astype(jnp.bfloat16)

        # ---- kernel 1: all four granularities in one pallas_call -> (B, S, 256) bf16 ----
        feat = self._features(bit_win, byte_x, word_x, blk_x,
                              n_words=n_words, n_blocks=n_blocks, target=target)

        # ---- kernel 2: granularity attention + fusion_network, fused --------------------
        out = self._attention_fusion(feat.reshape(B * target, OUTPUT_DIM))
        return out.reshape(B, target, OUTPUT_DIM)


# ================================== main ======================================
if __name__ == "__main__":
    key = jax.random.PRNGKey(0)
    pkey, dkey = jax.random.split(key)
    model = MultiGranularityBinaryProcessorPallas(pkey)

    B, S = 2, 16
    byte_sequence = jax.random.randint(dkey, (B, S), 0, 256, dtype=jnp.int32)

    fwd = jax.jit(model.__call__)
    out = jax.block_until_ready(fwd(byte_sequence))

    assert out.shape == (B, S, OUTPUT_DIM), out.shape
    assert bool(jnp.all(jnp.isfinite(out.astype(jnp.float32))))
    print("KERNEL_OK")
</pallas_src>

<mosaic_0001>
module attributes {stable_mosaic.version = 11 : i64} {
  func.func @_feature_kernel(%arg0: i32, %arg1: memref<1x127x8xbf16, #tpu.memory_space<vmem>>, %arg2: memref<1x18x64xbf16, #tpu.memory_space<vmem>>, %arg3: memref<1x10x128xbf16, #tpu.memory_space<vmem>>, %arg4: memref<1x4x32xbf16, #tpu.memory_space<vmem>>, %arg5: memref<8x32xbf16, #tpu.memory_space<vmem>>, %arg6: memref<1x32xf32, #tpu.memory_space<vmem>>, %arg7: memref<128x64xbf16, #tpu.memory_space<vmem>>, %arg8: memref<1x64xf32, #tpu.memory_space<vmem>>, %arg9: memref<64x126xbf16, #tpu.memory_space<vmem>>, %arg10: memref<256x128xbf16, #tpu.memory_space<vmem>>, %arg11: memref<1x128xf32, #tpu.memory_space<vmem>>, %arg12: memref<384x64xbf16, #tpu.memory_space<vmem>>, %arg13: memref<1x64xf32, #tpu.memory_space<vmem>>, %arg14: memref<64x15xbf16, #tpu.memory_space<vmem>>, %arg15: memref<384x256xbf16, #tpu.memory_space<vmem>>, %arg16: memref<1x256xf32, #tpu.memory_space<vmem>>, %arg17: memref<768x128xbf16, #tpu.memory_space<vmem>>, %arg18: memref<1x128xf32, #tpu.memory_space<vmem>>, %arg19: memref<64x8xbf16, #tpu.memory_space<vmem>>, %arg20: memref<128x64xbf16, #tpu.memory_space<vmem>>, %arg21: memref<32x256xbf16, #tpu.memory_space<vmem>>, %arg22: memref<1x256xf32, #tpu.memory_space<vmem>>, %arg23: memref<256x128xbf16, #tpu.memory_space<vmem>>, %arg24: memref<1x128xf32, #tpu.memory_space<vmem>>, %arg25: memref<128x64xbf16, #tpu.memory_space<vmem>>, %arg26: memref<1x64xf32, #tpu.memory_space<vmem>>, %arg27: memref<16x64xbf16, #tpu.memory_space<vmem>>, %arg28: memref<16x64xbf16, #tpu.memory_space<vmem>>, %arg29: memref<16x4xbf16, #tpu.memory_space<vmem>>, %arg30: memref<1x16x256xbf16, #tpu.memory_space<vmem>>, %arg31: memref<129x32xbf16, #tpu.memory_space<vmem>>, %arg32: memref<17x128xbf16, #tpu.memory_space<vmem>>, %arg33: memref<10x256xbf16, #tpu.memory_space<vmem>>) attributes {dimension_semantics = [#tpu.dimension_semantics<parallel>], iteration_bounds = array<i64: 2>, scalar_prefetch = 0 : i64, scratch_operands = 3 : i64, tpu.core_type = #tpu.core_type<tc>, window_params = [{transform_indices = @transform_0, window_bounds = array<i64: 1, 127, 8>}, {transform_indices = @transform_1, window_bounds = array<i64: 1, 18, 64>}, {transform_indices = @transform_2, window_bounds = array<i64: 1, 10, 128>}, {transform_indices = @transform_3, window_bounds = array<i64: 1, 4, 32>}, {pipeline_mode = #tpu.pipeline_mode<synchronous>, transform_indices = @transform_4, window_bounds = array<i64: 8, 32>}, {pipeline_mode = #tpu.pipeline_mode<synchronous>, transform_indices = @transform_5, window_bounds = array<i64: 1, 32>}, {pipeline_mode = #tpu.pipeline_mode<synchronous>, transform_indices = @transform_6, window_bounds = array<i64: 128, 64>}, {pipeline_mode = #tpu.pipeline_mode<synchronous>, transform_indices = @transform_7, window_bounds = array<i64: 1, 64>}, {pipeline_mode = #tpu.pipeline_mode<synchronous>, transform_indices = @transform_8, window_bounds = array<i64: 64, 126>}, {pipeline_mode = #tpu.pipeline_mode<synchronous>, transform_indices = @transform_9, window_bounds = array<i64: 256, 128>}, {pipeline_mode = #tpu.pipeline_mode<synchronous>, transform_indices = @transform_10, window_bounds = array<i64: 1, 128>}, {pipeline_mode = #tpu.pipeline_mode<synchronous>, transform_indices = @transform_11, window_bounds = array<i64: 384, 64>}, {pipeline_mode = #tpu.pipeline_mode<synchronous>, transform_indices = @transform_12, window_bounds = array<i64: 1, 64>}, {pipeline_mode = #tpu.pipeline_mode<synchronous>, transform_indices = @transform_13, window_bounds = array<i64: 64, 15>}, {pipeline_mode = #tpu.pipeline_mode<synchronous>, transform_indices = @transform_14, window_bounds = array<i64: 384, 256>}, {pipeline_mode = #tpu.pipeline_mode<synchronous>, transform_indices = @transform_15, window_bounds = array<i64: 1, 256>}, {pipeline_mode = #tpu.pipeline_mode<synchronous>, transform_indices = @transform_16, window_bounds = array<i64: 768, 128>}, {pipeline_mode = #tpu.pipeline_mode<synchronous>, transform_indices = @transform_17, window_bounds = array<i64: 1, 128>}, {pipeline_mode = #tpu.pipeline_mode<synchronous>, transform_indices = @transform_18, window_bounds = array<i64: 64, 8>}, {pipeline_mode = #tpu.pipeline_mode<synchronous>, transform_indices = @transform_19, window_bounds = array<i64: 128, 64>}, {pipeline_mode = #tpu.pipeline_mode<synchronous>, transform_indices = @transform_20, window_bounds = array<i64: 32, 256>}, {pipeline_mode = #tpu.pipeline_mode<synchronous>, transform_indices = @transform_21, window_bounds = array<i64: 1, 256>}, {pipeline_mode = #tpu.pipeline_mode<synchronous>, transform_indices = @transform_22, window_bounds = array<i64: 256, 128>}, {pipeline_mode = #tpu.pipeline_mode<synchronous>, transform_indices = @transform_23, window_bounds = array<i64: 1, 128>}, {pipeline_mode = #tpu.pipeline_mode<synchronous>, transform_indices = @transform_24, window_bounds = array<i64: 128, 64>}, {pipeline_mode = #tpu.pipeline_mode<synchronous>, transform_indices = @transform_25, window_bounds = array<i64: 1, 64>}, {pipeline_mode = #tpu.pipeline_mode<synchronous>, transform_indices = @transform_26, window_bounds = array<i64: 16, 64>}, {pipeline_mode = #tpu.pipeline_mode<synchronous>, transform_indices = @transform_27, window_bounds = array<i64: 16, 64>}, {pipeline_mode = #tpu.pipeline_mode<synchronous>, transform_indices = @transform_28, window_bounds = array<i64: 16, 4>}, {transform_indices = @transform_29, window_bounds = array<i64: 1, 16, 256>}]} {
    %c0 = arith.constant 0 : index
    %c0_0 = arith.constant 0 : index
    %c0_1 = arith.constant 0 : index
    %0 = vector.load %arg1[%c0, %c0_0, %c0_1] : memref<1x127x8xbf16, #tpu.memory_space<vmem>>, vector<1x127x8xbf16>
    %1 = vector.shape_cast %0 : vector<1x127x8xbf16> to vector<127x8xbf16>
    %c0_2 = arith.constant 0 : index
    %c0_3 = arith.constant 0 : index
    %2 = vector.load %arg5[%c0_2, %c0_3] : memref<8x32xbf16, #tpu.memory_space<vmem>>, vector<8x32xbf16>
    %cst = arith.constant dense<0.000000e+00> : vector<127x32xf32>
    %3 = tpu.matmul %1, %2, %cst {dimension_numbers = #tpu.dot_dimension_numbers<[1], [0], [0], [1], [0, 0, 1, 1], [], []>} : vector<127x8xbf16>, vector<8x32xbf16>, vector<127x32xf32> -> vector<127x32xf32>
    %c0_4 = arith.constant 0 : index
    %c0_5 = arith.constant 0 : index
    %4 = vector.load %arg6[%c0_4, %c0_5] : memref<1x32xf32, #tpu.memory_space<vmem>>, vector<1x32xf32>
    %5 = vector.broadcast %4 : vector<1x32xf32> to vector<127x32xf32>
    %6 = arith.addf %3, %5 : vector<127x32xf32>
    %cst_6 = arith.constant 0.000000e+00 : f32
    %7 = vector.broadcast %cst_6 : f32 to vector<127x32xf32>
    %8 = arith.maximumf %6, %7 : vector<127x32xf32>
    %cst_7 = arith.constant 0.000000e+00 : bf16
    %9 = vector.broadcast %cst_7 : bf16 to vector<1x32xbf16>
    %c0_8 = arith.constant 0 : index
    %c0_9 = arith.constant 0 : index
    %10 = vector.load %arg31[%c0_8, %c0_9] : memref<129x32xbf16, #tpu.memory_space<vmem>>, vector<1x32xbf16>
    tpu.vector_store %arg31[%c0_8, %c0_9], %9 {strides = array<i32>} : memref<129x32xbf16, #tpu.memory_space<vmem>>, vector<1x32xbf16>,
    %cst_10 = arith.constant 0.000000e+00 : bf16
    %11 = vector.broadcast %cst_10 : bf16 to vector<1x32xbf16>
    %c128 = arith.constant 128 : index
    %c0_11 = arith.constant 0 : index
    %12 = vector.load %arg31[%c128, %c0_11] : memref<129x32xbf16, #tpu.memory_space<vmem>>, vector<1x32xbf16>
    tpu.vector_store %arg31[%c128, %c0_11], %11 {strides = array<i32>} : memref<129x32xbf16, #tpu.memory_space<vmem>>, vector<1x32xbf16>,
    %13 = arith.truncf %8 : vector<127x32xf32> to vector<127x32xbf16>
    %c1 = arith.constant 1 : index
    %c0_12 = arith.constant 0 : index
    %14 = vector.load %arg31[%c1, %c0_12] : memref<129x32xbf16, #tpu.memory_space<vmem>>, vector<127x32xbf16>
    tpu.vector_store %arg31[%c1, %c0_12], %13 {strides = array<i32>} : memref<129x32xbf16, #tpu.memory_space<vmem>>, vector<127x32xbf16>,
    %c0_13 = arith.constant 0 : index
    %c0_14 = arith.constant 0 : index
    %15 = vector.load %arg31[%c0_13, %c0_14] : memref<129x32xbf16, #tpu.memory_space<vmem>>, vector<126x32xbf16>
    %c1_15 = arith.constant 1 : index
    %c0_16 = arith.constant 0 : index
    %16 = vector.load %arg31[%c1_15, %c0_16] : memref<129x32xbf16, #tpu.memory_space<vmem>>, vector<126x32xbf16>
    %c2 = arith.constant 2 : index
    %c0_17 = arith.constant 0 : index
    %17 = vector.load %arg31[%c2, %c0_17] : memref<129x32xbf16, #tpu.memory_space<vmem>>, vector<126x32xbf16>
    %c3 = arith.constant 3 : index
    %c0_18 = arith.constant 0 : index
    %18 = vector.load %arg31[%c3, %c0_18] : memref<129x32xbf16, #tpu.memory_space<vmem>>, vector<126x32xbf16>
    %19 = tpu.concatenate %15, %16, %17, %18 in 1 : vector<126x32xbf16>, vector<126x32xbf16>, vector<126x32xbf16>, vector<126x32xbf16> -> vector<126x128xbf16>
    %c0_19 = arith.constant 0 : index
    %c0_20 = arith.constant 0 : index
    %20 = vector.load %arg7[%c0_19, %c0_20] : memref<128x64xbf16, #tpu.memory_space<vmem>>, vector<128x64xbf16>
    %cst_21 = arith.constant dense<0.000000e+00> : vector<126x64xf32>
    %21 = tpu.matmul %19, %20, %cst_21 {dimension_numbers = #tpu.dot_dimension_numbers<[1], [0], [0], [1], [0, 0, 1, 1], [], []>} : vector<126x128xbf16>, vector<128x64xbf16>, vector<126x64xf32> -> vector<126x64xf32>
    %c0_22 = arith.constant 0 : index
    %c0_23 = arith.constant 0 : index
    %22 = vector.load %arg8[%c0_22, %c0_23] : memref<1x64xf32, #tpu.memory_space<vmem>>, vector<1x64xf32>
    %23 = vector.broadcast %22 : vector<1x64xf32> to vector<126x64xf32>
    %24 = arith.addf %21, %23 : vector<126x64xf32>
    %cst_24 = arith.constant 0.000000e+00 : f32
    %25 = vector.broadcast %cst_24 : f32 to vector<126x64xf32>
    %26 = arith.maximumf %24, %25 : vector<126x64xf32>
    %c0_25 = arith.constant 0 : index
    %c0_26 = arith.constant 0 : index
    %27 = vector.load %arg9[%c0_25, %c0_26] : memref<64x126xbf16, #tpu.memory_space<vmem>>, vector<64x126xbf16>
    %28 = arith.truncf %26 : vector<126x64xf32> to vector<126x64xbf16>
    %cst_27 = arith.constant dense<0.000000e+00> : vector<64x64xf32>
    %29 = tpu.matmul %27, %28, %cst_27 {dimension_numbers = #tpu.dot_dimension_numbers<[1], [0], [0], [1], [0, 0, 1, 1], [], []>} : vector<64x126xbf16>, vector<126x64xbf16>, vector<64x64xf32> -> vector<64x64xf32>
    %c0_28 = arith.constant 0 : index
    %c0_29 = arith.constant 0 : index
    %c0_30 = arith.constant 0 : index
    %30 = vector.load %arg2[%c0_28, %c0_29, %c0_30] : memref<1x18x64xbf16, #tpu.memory_space<vmem>>, vector<1x15x64xbf16>
    %31 = vector.shape_cast %30 : vector<1x15x64xbf16> to vector<15x64xbf16>
    %c0_31 = arith.constant 0 : index
    %c1_32 = arith.constant 1 : index
    %c0_33 = arith.constant 0 : index
    %32 = vector.load %arg2[%c0_31, %c1_32, %c0_33] : memref<1x18x64xbf16, #tpu.memory_space<vmem>>, vector<1x15x64xbf16>
    %33 = vector.shape_cast %32 : vector<1x15x64xbf16> to vector<15x64xbf16>
    %c0_34 = arith.constant 0 : index
    %c2_35 = arith.constant 2 : index
    %c0_36 = arith.constant 0 : index
    %34 = vector.load %arg2[%c0_34, %c2_35, %c0_36] : memref<1x18x64xbf16, #tpu.memory_space<vmem>>, vector<1x15x64xbf16>
    %35 = vector.shape_cast %34 : vector<1x15x64xbf16> to vector<15x64xbf16>
    %c0_37 = arith.constant 0 : index
    %c3_38 = arith.constant 3 : index
    %c0_39 = arith.constant 0 : index
    %36 = vector.load %arg2[%c0_37, %c3_38, %c0_39] : memref<1x18x64xbf16, #tpu.memory_space<vmem>>, vector<1x15x64xbf16>
    %37 = vector.shape_cast %36 : vector<1x15x64xbf16> to vector<15x64xbf16>
    %38 = tpu.concatenate %31, %33, %35, %37 in 1 : vector<15x64xbf16>, vector<15x64xbf16>, vector<15x64xbf16>, vector<15x64xbf16> -> vector<15x256xbf16>
    %c0_40 = arith.constant 0 : index
    %c0_41 = arith.constant 0 : index
    %39 = vector.load %arg10[%c0_40, %c0_41] : memref<256x128xbf16, #tpu.memory_space<vmem>>, vector<256x128xbf16>
    %cst_42 = arith.constant dense<0.000000e+00> : vector<15x128xf32>
    %40 = tpu.matmul %38, %39, %cst_42 {dimension_numbers = #tpu.dot_dimension_numbers<[1], [0], [0], [1], [0, 0, 1, 1], [], []>} : vector<15x256xbf16>, vector<256x128xbf16>, vector<15x128xf32> -> vector<15x128xf32>
    %c0_43 = arith.constant 0 : index
    %c0_44 = arith.constant 0 : index
    %41 = vector.load %arg11[%c0_43, %c0_44] : memref<1x128xf32, #tpu.memory_space<vmem>>, vector<1x128xf32>
    %42 = vector.broadcast %41 : vector<1x128xf32> to vector<15x128xf32>
    %43 = arith.addf %40, %42 : vector<15x128xf32>
    %cst_45 = arith.constant 0.000000e+00 : f32
    %44 = vector.broadcast %cst_45 : f32 to vector<15x128xf32>
    %45 = arith.maximumf %43, %44 : vector<15x128xf32>
    %cst_46 = arith.constant 0.000000e+00 : bf16
    %46 = vector.broadcast %cst_46 : bf16 to vector<1x128xbf16>
    %c0_47 = arith.constant 0 : index
    %c0_48 = arith.constant 0 : index
    %47 = vector.load %arg32[%c0_47, %c0_48] : memref<17x128xbf16, #tpu.memory_space<vmem>>, vector<1x128xbf16>
    tpu.vector_store %arg32[%c0_47, %c0_48], %46 {strides = array<i32>} : memref<17x128xbf16, #tpu.memory_space<vmem>>, vector<1x128xbf16>,
    %cst_49 = arith.constant 0.000000e+00 : bf16
    %48 = vector.broadcast %cst_49 : bf16 to vector<1x128xbf16>
    %c16 = arith.constant 16 : index
    %c0_50 = arith.constant 0 : index
    %49 = vector.load %arg32[%c16, %c0_50] : memref<17x128xbf16, #tpu.memory_space<vmem>>, vector<1x128xbf16>
    tpu.vector_store %arg32[%c16, %c0_50], %48 {strides = array<i32>} : memref<17x128xbf16, #tpu.memory_space<vmem>>, vector<1x128xbf16>,
    %50 = arith.truncf %45 : vector<15x128xf32> to vector<15x128xbf16>
    %c1_51 = arith.constant 1 : index
    %c0_52 = arith.constant 0 : index
    %51 = vector.load %arg32[%c1_51, %c0_52] : memref<17x128xbf16, #tpu.memory_space<vmem>>, vector<15x128xbf16>
    tpu.vector_store %arg32[%c1_51, %c0_52], %50 {strides = array<i32>} : memref<17x128xbf16, #tpu.memory_space<vmem>>, vector<15x128xbf16>,
    %c0_53 = arith.constant 0 : index
    %c0_54 = arith.constant 0 : index
    %52 = vector.load %arg32[%c0_53, %c0_54] : memref<17x128xbf16, #tpu.memory_space<vmem>>, vector<15x128xbf16>
    %c1_55 = arith.constant 1 : index
    %c0_56 = arith.constant 0 : index
    %53 = vector.load %arg32[%c1_55, %c0_56] : memref<17x128xbf16, #tpu.memory_space<vmem>>, vector<15x128xbf16>
    %c2_57 = arith.constant 2 : index
    %c0_58 = arith.constant 0 : index
    %54 = vector.load %arg32[%c2_57, %c0_58] : memref<17x128xbf16, #tpu.memory_space<vmem>>, vector<15x128xbf16>
    %55 = tpu.concatenate %52, %53, %54 in 1 : vector<15x128xbf16>, vector<15x128xbf16>, vector<15x128xbf16> -> vector<15x384xbf16>
    %c0_59 = arith.constant 0 : index
    %c0_60 = arith.constant 0 : index
    %56 = vector.load %arg12[%c0_59, %c0_60] : memref<384x64xbf16, #tpu.memory_space<vmem>>, vector<384x64xbf16>
    %cst_61 = arith.constant dense<0.000000e+00> : vector<15x64xf32>
    %57 = tpu.matmul %55, %56, %cst_61 {dimension_numbers = #tpu.dot_dimension_numbers<[1], [0], [0], [1], [0, 0, 1, 1], [], []>} : vector<15x384xbf16>, vector<384x64xbf16>, vector<15x64xf32> -> vector<15x64xf32>
    %c0_62 = arith.constant 0 : index
    %c0_63 = arith.constant 0 : index
    %58 = vector.load %arg13[%c0_62, %c0_63] : memref<1x64xf32, #tpu.memory_space<vmem>>, vector<1x64xf32>
    %59 = vector.broadcast %58 : vector<1x64xf32> to vector<15x64xf32>
    %60 = arith.addf %57, %59 : vector<15x64xf32>
    %cst_64 = arith.constant 0.000000e+00 : f32
    %61 = vector.broadcast %cst_64 : f32 to vector<15x64xf32>
    %62 = arith.maximumf %60, %61 : vector<15x64xf32>
    %c0_65 = arith.constant 0 : index
    %c0_66 = arith.constant 0 : index
    %63 = vector.load %arg14[%c0_65, %c0_66] : memref<64x15xbf16, #tpu.memory_space<vmem>>, vector<64x15xbf16>
    %64 = arith.truncf %62 : vector<15x64xf32> to vector<15x64xbf16>
    %cst_67 = arith.constant dense<0.000000e+00> : vector<64x64xf32>
    %65 = tpu.matmul %63, %64, %cst_67 {dimension_numbers = #tpu.dot_dimension_numbers<[1], [0], [0], [1], [0, 0, 1, 1], [], []>} : vector<64x15xbf16>, vector<15x64xbf16>, vector<64x64xf32> -> vector<64x64xf32>
    %c0_68 = arith.constant 0 : index
    %c0_69 = arith.constant 0 : index
    %c0_70 = arith.constant 0 : index
    %66 = vector.load %arg3[%c0_68, %c0_69, %c0_70] : memref<1x10x128xbf16, #tpu.memory_space<vmem>>, vector<1x8x128xbf16>
    %67 = vector.shape_cast %66 : vector<1x8x128xbf16> to vector<8x128xbf16>
    %c0_71 = arith.constant 0 : index
    %c1_72 = arith.constant 1 : index
    %c0_73 = arith.constant 0 : index
    %68 = vector.load %arg3[%c0_71, %c1_72, %c0_73] : memref<1x10x128xbf16, #tpu.memory_space<vmem>>, vector<1x8x128xbf16>
    %69 = vector.shape_cast %68 : vector<1x8x128xbf16> to vector<8x128xbf16>
    %c0_74 = arith.constant 0 : index
    %c2_75 = arith.constant 2 : index
    %c0_76 = arith.constant 0 : index
    %70 = vector.load %arg3[%c0_74, %c2_75, %c0_76] : memref<1x10x128xbf16, #tpu.memory_space<vmem>>, vector<1x8x128xbf16>
    %71 = vector.shape_cast %70 : vector<1x8x128xbf16> to vector<8x128xbf16>
    %72 = tpu.concatenate %67, %69, %71 in 1 : vector<8x128xbf16>, vector<8x128xbf16>, vector<8x128xbf16> -> vector<8x384xbf16>
    %c0_77 = arith.constant 0 : index
    %c0_78 = arith.constant 0 : index
    %73 = vector.load %arg15[%c0_77, %c0_78] : memref<384x256xbf16, #tpu.memory_space<vmem>>, vector<384x256xbf16>
    %cst_79 = arith.constant dense<0.000000e+00> : vector<8x256xf32>
    %74 = tpu.matmul %72, %73, %cst_79 {dimension_numbers = #tpu.dot_dimension_numbers<[1], [0], [0], [1], [0, 0, 1, 1], [], []>} : vector<8x384xbf16>, vector<384x256xbf16>, vector<8x256xf32> -> vector<8x256xf32>
    %c0_80 = arith.constant 0 : index
    %c0_81 = arith.constant 0 : index
    %75 = vector.load %arg16[%c0_80, %c0_81] : memref<1x256xf32, #tpu.memory_space<vmem>>, vector<1x256xf32>
    %76 = vector.broadcast %75 : vector<1x256xf32> to vector<8x256xf32>
    %77 = arith.addf %74, %76 : vector<8x256xf32>
    %cst_82 = arith.constant 0.000000e+00 : f32
    %78 = vector.broadcast %cst_82 : f32 to vector<8x256xf32>
    %79 = arith.maximumf %77, %78 : vector<8x256xf32>
    %cst_83 = arith.constant 0.000000e+00 : bf16
    %80 = vector.broadcast %cst_83 : bf16 to vector<1x256xbf16>
    %c0_84 = arith.constant 0 : index
    %c0_85 = arith.constant 0 : index
    %81 = vector.load %arg33[%c0_84, %c0_85] : memref<10x256xbf16, #tpu.memory_space<vmem>>, vector<1x256xbf16>
    tpu.vector_store %arg33[%c0_84, %c0_85], %80 {strides = array<i32>} : memref<10x256xbf16, #tpu.memory_space<vmem>>, vector<1x256xbf16>,
    %cst_86 = arith.constant 0.000000e+00 : bf16
    %82 = vector.broadcast %cst_86 : bf16 to vector<1x256xbf16>
    %c9 = arith.constant 9 : index
    %c0_87 = arith.constant 0 : index
    %83 = vector.load %arg33[%c9, %c0_87] : memref<10x256xbf16, #tpu.memory_space<vmem>>, vector<1x256xbf16>
    tpu.vector_store %arg33[%c9, %c0_87], %82 {strides = array<i32>} : memref<10x256xbf16, #tpu.memory_space<vmem>>, vector<1x256xbf16>,
    %84 = arith.truncf %79 : vector<8x256xf32> to vector<8x256xbf16>
    %c1_88 = arith.constant 1 : index
    %c0_89 = arith.constant 0 : index
    %85 = vector.load %arg33[%c1_88, %c0_89] : memref<10x256xbf16, #tpu.memory_space<vmem>>, vector<8x256xbf16>
    tpu.vector_store %arg33[%c1_88, %c0_89], %84 {strides = array<i32>} : memref<10x256xbf16, #tpu.memory_space<vmem>>, vector<8x256xbf16>,
    %c0_90 = arith.constant 0 : index
    %c0_91 = arith.constant 0 : index
    %86 = vector.load %arg33[%c0_90, %c0_91] : memref<10x256xbf16, #tpu.memory_space<vmem>>, vector<8x256xbf16>
    %c1_92 = arith.constant 1 : index
    %c0_93 = arith.constant 0 : index
    %87 = vector.load %arg33[%c1_92, %c0_93] : memref<10x256xbf16, #tpu.memory_space<vmem>>, vector<8x256xbf16>
    %c2_94 = arith.constant 2 : index
    %c0_95 = arith.constant 0 : index
    %88 = vector.load %arg33[%c2_94, %c0_95] : memref<10x256xbf16, #tpu.memory_space<vmem>>, vector<8x256xbf16>
    %89 = tpu.concatenate %86, %87, %88 in 1 : vector<8x256xbf16>, vector<8x256xbf16>, vector<8x256xbf16> -> vector<8x768xbf16>
    %c0_96 = arith.constant 0 : index
    %c0_97 = arith.constant 0 : index
    %90 = vector.load %arg17[%c0_96, %c0_97] : memref<768x128xbf16, #tpu.memory_space<vmem>>, vector<768x128xbf16>
    %cst_98 = arith.constant dense<0.000000e+00> : vector<8x128xf32>
    %91 = tpu.matmul %89, %90, %cst_98 {dimension_numbers = #tpu.dot_dimension_numbers<[1], [0], [0], [1], [0, 0, 1, 1], [], []>} : vector<8x768xbf16>, vector<768x128xbf16>, vector<8x128xf32> -> vector<8x128xf32>
    %c0_99 = arith.constant 0 : index
    %c0_100 = arith.constant 0 : index
    %92 = vector.load %arg18[%c0_99, %c0_100] : memref<1x128xf32, #tpu.memory_space<vmem>>, vector<1x128xf32>
    %93 = vector.broadcast %92 : vector<1x128xf32> to vector<8x128xf32>
    %94 = arith.addf %91, %93 : vector<8x128xf32>
    %cst_101 = arith.constant 0.000000e+00 : f32
    %95 = vector.broadcast %cst_101 : f32 to vector<8x128xf32>
    %96 = arith.maximumf %94, %95 : vector<8x128xf32>
    %c0_102 = arith.constant 0 : index
    %c0_103 = arith.constant 0 : index
    %97 = vector.load %arg19[%c0_102, %c0_103] : memref<64x8xbf16, #tpu.memory_space<vmem>>, vector<64x8xbf16>
    %98 = arith.truncf %96 : vector<8x128xf32> to vector<8x128xbf16>
    %cst_104 = arith.constant dense<0.000000e+00> : vector<64x128xf32>
    %99 = tpu.matmul %97, %98, %cst_104 {dimension_numbers = #tpu.dot_dimension_numbers<[1], [0], [0], [1], [0, 0, 1, 1], [], []>} : vector<64x8xbf16>, vector<8x128xbf16>, vector<64x128xf32> -> vector<64x128xf32>
    %100 = arith.truncf %99 : vector<64x128xf32> to vector<64x128xbf16>
    %c0_105 = arith.constant 0 : index
    %c0_106 = arith.constant 0 : index
    %101 = vector.load %arg20[%c0_105, %c0_106] : memref<128x64xbf16, #tpu.memory_space<vmem>>, vector<128x64xbf16>
    %cst_107 = arith.constant dense<0.000000e+00> : vector<64x64xf32>
    %102 = tpu.matmul %100, %101, %cst_107 {dimension_numbers = #tpu.dot_dimension_numbers<[1], [0], [0], [1], [0, 0, 1, 1], [], []>} : vector<64x128xbf16>, vector<128x64xbf16>, vector<64x64xf32> -> vector<64x64xf32>
    %c0_108 = arith.constant 0 : index
    %c0_109 = arith.constant 0 : index
    %c0_110 = arith.constant 0 : index
    %103 = vector.load %arg4[%c0_108, %c0_109, %c0_110] : memref<1x4x32xbf16, #tpu.memory_space<vmem>>, vector<1x4x32xbf16>
    %104 = vector.shape_cast %103 : vector<1x4x32xbf16> to vector<4x32xbf16>
    %c0_111 = arith.constant 0 : index
    %c0_112 = arith.constant 0 : index
    %105 = vector.load %arg21[%c0_111, %c0_112] : memref<32x256xbf16, #tpu.memory_space<vmem>>, vector<32x256xbf16>
    %cst_113 = arith.constant dense<0.000000e+00> : vector<4x256xf32>
    %106 = tpu.matmul %104, %105, %cst_113 {dimension_numbers = #tpu.dot_dimension_numbers<[1], [0], [0], [1], [0, 0, 1, 1], [], []>} : vector<4x32xbf16>, vector<32x256xbf16>, vector<4x256xf32> -> vector<4x256xf32>
    %c0_114 = arith.constant 0 : index
    %c0_115 = arith.constant 0 : index
    %107 = vector.load %arg22[%c0_114, %c0_115] : memref<1x256xf32, #tpu.memory_space<vmem>>, vector<1x256xf32>
    %108 = vector.broadcast %107 : vector<1x256xf32> to vector<4x256xf32>
    %109 = arith.addf %106, %108 : vector<4x256xf32>
    %cst_116 = arith.constant 0.000000e+00 : f32
    %110 = vector.broadcast %cst_116 : f32 to vector<4x256xf32>
    %111 = arith.maximumf %109, %110 : vector<4x256xf32>
    %112 = arith.truncf %111 : vector<4x256xf32> to vector<4x256xbf16>
    %c0_117 = arith.constant 0 : index
    %c0_118 = arith.constant 0 : index
    %113 = vector.load %arg23[%c0_117, %c0_118] : memref<256x128xbf16, #tpu.memory_space<vmem>>, vector<256x128xbf16>
    %cst_119 = arith.constant dense<0.000000e+00> : vector<4x128xf32>
    %114 = tpu.matmul %112, %113, %cst_119 {dimension_numbers = #tpu.dot_dimension_numbers<[1], [0], [0], [1], [0, 0, 1, 1], [], []>} : vector<4x256xbf16>, vector<256x128xbf16>, vector<4x128xf32> -> vector<4x128xf32>
    %c0_120 = arith.constant 0 : index
    %c0_121 = arith.constant 0 : index
    %115 = vector.load %arg24[%c0_120, %c0_121] : memref<1x128xf32, #tpu.memory_space<vmem>>, vector<1x128xf32>
    %116 = vector.broadcast %115 : vector<1x128xf32> to vector<4x128xf32>
    %117 = arith.addf %114, %116 : vector<4x128xf32>
    %cst_122 = arith.constant 0.000000e+00 : f32
    %118 = vector.broadcast %cst_122 : f32 to vector<4x128xf32>
    %119 = arith.maximumf %117, %118 : vector<4x128xf32>
    %120 = arith.truncf %119 : vector<4x128xf32> to vector<4x128xbf16>
    %c0_123 = arith.constant 0 : index
    %c0_124 = arith.constant 0 : index
    %121 = vector.load %arg25[%c0_123, %c0_124] : memref<128x64xbf16, #tpu.memory_space<vmem>>, vector<128x64xbf16>
    %cst_125 = arith.constant dense<0.000000e+00> : vector<4x64xf32>
    %122 = tpu.matmul %120, %121, %cst_125 {dimension_numbers = #tpu.dot_dimension_numbers<[1], [0], [0], [1], [0, 0, 1, 1], [], []>} : vector<4x128xbf16>, vector<128x64xbf16>, vector<4x64xf32> -> vector<4x64xf32>
    %c0_126 = arith.constant 0 : index
    %c0_127 = arith.constant 0 : index
    %123 = vector.load %arg26[%c0_126, %c0_127] : memref<1x64xf32, #tpu.memory_space<vmem>>, vector<1x64xf32>
    %124 = vector.broadcast %123 : vector<1x64xf32> to vector<4x64xf32>
    %125 = arith.addf %122, %124 : vector<4x64xf32>
    %c0_128 = arith.constant 0 : index
    %c0_129 = arith.constant 0 : index
    %126 = vector.load %arg27[%c0_128, %c0_129] : memref<16x64xbf16, #tpu.memory_space<vmem>>, vector<16x64xbf16>
    %127 = tpu.concatenate %29, %65 in 1 : vector<64x64xf32>, vector<64x64xf32> -> vector<64x128xf32>
    %128 = arith.truncf %127 : vector<64x128xf32> to vector<64x128xbf16>
    %cst_130 = arith.constant dense<0.000000e+00> : vector<16x128xf32>
    %129 = tpu.matmul %126, %128, %cst_130 {dimension_numbers = #tpu.dot_dimension_numbers<[1], [0], [0], [1], [0, 0, 1, 1], [], []>} : vector<16x64xbf16>, vector<64x128xbf16>, vector<16x128xf32> -> vector<16x128xf32>
    %c0_131 = arith.constant 0 : index
    %c0_132 = arith.constant 0 : index
    %130 = vector.load %arg28[%c0_131, %c0_132] : memref<16x64xbf16, #tpu.memory_space<vmem>>, vector<16x64xbf16>
    %131 = arith.truncf %102 : vector<64x64xf32> to vector<64x64xbf16>
    %cst_133 = arith.constant dense<0.000000e+00> : vector<16x64xf32>
    %132 = tpu.matmul %130, %131, %cst_133 {dimension_numbers = #tpu.dot_dimension_numbers<[1], [0], [0], [1], [0, 0, 1, 1], [], []>} : vector<16x64xbf16>, vector<64x64xbf16>, vector<16x64xf32> -> vector<16x64xf32>
    %c0_134 = arith.constant 0 : index
    %c0_135 = arith.constant 0 : index
    %133 = vector.load %arg29[%c0_134, %c0_135] : memref<16x4xbf16, #tpu.memory_space<vmem>>, vector<16x4xbf16>
    %134 = arith.truncf %125 : vector<4x64xf32> to vector<4x64xbf16>
    %cst_136 = arith.constant dense<0.000000e+00> : vector<16x64xf32>
    %135 = tpu.matmul %133, %134, %cst_136 {dimension_numbers = #tpu.dot_dimension_numbers<[1], [0], [0], [1], [0, 0, 1, 1], [], []>} : vector<16x4xbf16>, vector<4x64xbf16>, vector<16x64xf32> -> vector<16x64xf32>
    %136 = tpu.concatenate %129, %132, %135 in 1 : vector<16x128xf32>, vector<16x64xf32>, vector<16x64xf32> -> vector<16x256xf32>
    %137 = arith.truncf %136 : vector<16x256xf32> to vector<16x256xbf16>
    %c0_137 = arith.constant 0 : index
    %c0_138 = arith.constant 0 : index
    %c0_139 = arith.constant 0 : index
    %138 = vector.load %arg30[%c0_137, %c0_138, %c0_139] : memref<1x16x256xbf16, #tpu.memory_space<vmem>>, vector<1x16x256xbf16>
    %139 = vector.shape_cast %138 : vector<1x16x256xbf16> to vector<16x256xbf16>
    %140 = vector.shape_cast %137 : vector<16x256xbf16> to vector<1x16x256xbf16>
    tpu.vector_store %arg30[%c0_137, %c0_138, %c0_139], %140 {strides = array<i32>} : memref<1x16x256xbf16, #tpu.memory_space<vmem>>, vector<1x16x256xbf16>,
    return
  }
  func.func @transform_0(%arg0: i32) -> (i32, i32, i32) {
    %c0_i32 = arith.constant 0 : i32
    %c0_i32_0 = arith.constant 0 : i32
    %c0_i32_1 = arith.constant 0 : i32
    return %arg0, %c0_i32, %c0_i32_0 : i32, i32, i32
  }
  func.func @transform_1(%arg0: i32) -> (i32, i32, i32) {
    %c0_i32 = arith.constant 0 : i32
    %c0_i32_0 = arith.constant 0 : i32
    %c0_i32_1 = arith.constant 0 : i32
    return %arg0, %c0_i32, %c0_i32_0 : i32, i32, i32
  }
  func.func @transform_2(%arg0: i32) -> (i32, i32, i32) {
    %c0_i32 = arith.constant 0 : i32
    %c0_i32_0 = arith.constant 0 : i32
    %c0_i32_1 = arith.constant 0 : i32
    return %arg0, %c0_i32, %c0_i32_0 : i32, i32, i32
  }
  func.func @transform_3(%arg0: i32) -> (i32, i32, i32) {
    %c0_i32 = arith.constant 0 : i32
    %c0_i32_0 = arith.constant 0 : i32
    %c0_i32_1 = arith.constant 0 : i32
    return %arg0, %c0_i32, %c0_i32_0 : i32, i32, i32
  }
  func.func @transform_4(%arg0: i32) -> (i32, i32) {
    %c0_i32 = arith.constant 0 : i32
    %c0_i32_0 = arith.constant 0 : i32
    %c0_i32_1 = arith.constant 0 : i32
    return %c0_i32, %c0_i32_0 : i32, i32
  }
  func.func @transform_5(%arg0: i32) -> (i32, i32) {
    %c0_i32 = arith.constant 0 : i32
    %c0_i32_0 = arith.constant 0 : i32
    %c0_i32_1 = arith.constant 0 : i32
    return %c0_i32, %c0_i32_0 : i32, i32
  }
  func.func @transform_6(%arg0: i32) -> (i32, i32) {
    %c0_i32 = arith.constant 0 : i32
    %c0_i32_0 = arith.constant 0 : i32
    %c0_i32_1 = arith.constant 0 : i32
    return %c0_i32, %c0_i32_0 : i32, i32
  }
  func.func @transform_7(%arg0: i32) -> (i32, i32) {
    %c0_i32 = arith.constant 0 : i32
    %c0_i32_0 = arith.constant 0 : i32
    %c0_i32_1 = arith.constant 0 : i32
    return %c0_i32, %c0_i32_0 : i32, i32
  }
  func.func @transform_8(%arg0: i32) -> (i32, i32) {
    %c0_i32 = arith.constant 0 : i32
    %c0_i32_0 = arith.constant 0 : i32
    %c0_i32_1 = arith.constant 0 : i32
    return %c0_i32, %c0_i32_0 : i32, i32
  }
  func.func @transform_9(%arg0: i32) -> (i32, i32) {
    %c0_i32 = arith.constant 0 : i32
    %c0_i32_0 = arith.constant 0 : i32
    %c0_i32_1 = arith.constant 0 : i32
    return %c0_i32, %c0_i32_0 : i32, i32
  }
  func.func @transform_10(%arg0: i32) -> (i32, i32) {
    %c0_i32 = arith.constant 0 : i32
    %c0_i32_0 = arith.constant 0 : i32
    %c0_i32_1 = arith.constant 0 : i32
    return %c0_i32, %c0_i32_0 : i32, i32
  }
  func.func @transform_11(%arg0: i32) -> (i32, i32) {
    %c0_i32 = arith.constant 0 : i32
    %c0_i32_0 = arith.constant 0 : i32
    %c0_i32_1 = arith.constant 0 : i32
    return %c0_i32, %c0_i32_0 : i32, i32
  }
  func.func @transform_12(%arg0: i32) -> (i32, i32) {
    %c0_i32 = arith.constant 0 : i32
    %c0_i32_0 = arith.constant 0 : i32
    %c0_i32_1 = arith.constant 0 : i32
    return %c0_i32, %c0_i32_0 : i32, i32
  }
  func.func @transform_13(%arg0: i32) -> (i32, i32) {
    %c0_i32 = arith.constant 0 : i32
    %c0_i32_0 = arith.constant 0 : i32
    %c0_i32_1 = arith.constant 0 : i32
    return %c0_i32, %c0_i32_0 : i32, i32
  }
  func.func @transform_14(%arg0: i32) -> (i32, i32) {
    %c0_i32 = arith.constant 0 : i32
    %c0_i32_0 = arith.constant 0 : i32
    %c0_i32_1 = arith.constant 0 : i32
    return %c0_i32, %c0_i32_0 : i32, i32
  }
  func.func @transform_15(%arg0: i32) -> (i32, i32) {
    %c0_i32 = arith.constant 0 : i32
    %c0_i32_0 = arith.constant 0 : i32
    %c0_i32_1 = arith.constant 0 : i32
    return %c0_i32, %c0_i32_0 : i32, i32
  }
  func.func @transform_16(%arg0: i32) -> (i32, i32) {
    %c0_i32 = arith.constant 0 : i32
    %c0_i32_0 = arith.constant 0 : i32
    %c0_i32_1 = arith.constant 0 : i32
    return %c0_i32, %c0_i32_0 : i32, i32
  }
  func.func @transform_17(%arg0: i32) -> (i32, i32) {
    %c0_i32 = arith.constant 0 : i32
    %c0_i32_0 = arith.constant 0 : i32
    %c0_i32_1 = arith.constant 0 : i32
    return %c0_i32, %c0_i32_0 : i32, i32
  }
  func.func @transform_18(%arg0: i32) -> (i32, i32) {
    %c0_i32 = arith.constant 0 : i32
    %c0_i32_0 = arith.constant 0 : i32
    %c0_i32_1 = arith.constant 0 : i32
    return %c0_i32, %c0_i32_0 : i32, i32
  }
  func.func @transform_19(%arg0: i32) -> (i32, i32) {
    %c0_i32 = arith.constant 0 : i32
    %c0_i32_0 = arith.constant 0 : i32
    %c0_i32_1 = arith.constant 0 : i32
    return %c0_i32, %c0_i32_0 : i32, i32
  }
  func.func @transform_20(%arg0: i32) -> (i32, i32) {
    %c0_i32 = arith.constant 0 : i32
    %c0_i32_0 = arith.constant 0 : i32
    %c0_i32_1 = arith.constant 0 : i32
    return %c0_i32, %c0_i32_0 : i32, i32
  }
  func.func @transform_21(%arg0: i32) -> (i32, i32) {
    %c0_i32 = arith.constant 0 : i32
    %c0_i32_0 = arith.constant 0 : i32
    %c0_i32_1 = arith.constant 0 : i32
    return %c0_i32, %c0_i32_0 : i32, i32
  }
  func.func @transform_22(%arg0: i32) -> (i32, i32) {
    %c0_i32 = arith.constant 0 : i32
    %c0_i32_0 = arith.constant 0 : i32
    %c0_i32_1 = arith.constant 0 : i32
    return %c0_i32, %c0_i32_0 : i32, i32
  }
  func.func @transform_23(%arg0: i32) -> (i32, i32) {
    %c0_i32 = arith.constant 0 : i32
    %c0_i32_0 = arith.constant 0 : i32
    %c0_i32_1 = arith.constant 0 : i32
    return %c0_i32, %c0_i32_0 : i32, i32
  }
  func.func @transform_24(%arg0: i32) -> (i32, i32) {
    %c0_i32 = arith.constant 0 : i32
    %c0_i32_0 = arith.constant 0 : i32
    %c0_i32_1 = arith.constant 0 : i32
    return %c0_i32, %c0_i32_0 : i32, i32
  }
  func.func @transform_25(%arg0: i32) -> (i32, i32) {
    %c0_i32 = arith.constant 0 : i32
    %c0_i32_0 = arith.constant 0 : i32
    %c0_i32_1 = arith.constant 0 : i32
    return %c0_i32, %c0_i32_0 : i32, i32
  }
  func.func @transform_26(%arg0: i32) -> (i32, i32) {
    %c0_i32 = arith.constant 0 : i32
    %c0_i32_0 = arith.constant 0 : i32
    %c0_i32_1 = arith.constant 0 : i32
    return %c0_i32, %c0_i32_0 : i32, i32
  }
  func.func @transform_27(%arg0: i32) -> (i32, i32) {
    %c0_i32 = arith.constant 0 : i32
    %c0_i32_0 = arith.constant 0 : i32
    %c0_i32_1 = arith.constant 0 : i32
    return %c0_i32, %c0_i32_0 : i32, i32
  }
  func.func @transform_28(%arg0: i32) -> (i32, i32) {
    %c0_i32 = arith.constant 0 : i32
    %c0_i32_0 = arith.constant 0 : i32
    %c0_i32_1 = arith.constant 0 : i32
    return %c0_i32, %c0_i32_0 : i32, i32
  }
  func.func @transform_29(%arg0: i32) -> (i32, i32, i32) {
    %c0_i32 = arith.constant 0 : i32
    %c0_i32_0 = arith.constant 0 : i32
    %c0_i32_1 = arith.constant 0 : i32
    return %arg0, %c0_i32, %c0_i32_0 : i32, i32, i32
  }
}

module attributes {stable_mosaic.version = 11 : i64} {
  func.func @_attn_fusion_kernel(%arg0: i32, %arg1: memref<16x256xbf16, #tpu.memory_space<vmem>>, %arg2: memref<256x768xbf16, #tpu.memory_space<vmem>>, %arg3: memref<1x768xf32, #tpu.memory_space<vmem>>, %arg4: memref<1024x64xbf16, #tpu.memory_space<vmem>>, %arg5: memref<64x1024xbf16, #tpu.memory_space<vmem>>, %arg6: memref<256x512xbf16, #tpu.memory_space<vmem>>, %arg7: memref<1x512xf32, #tpu.memory_space<vmem>>, %arg8: memref<512x256xbf16, #tpu.memory_space<vmem>>, %arg9: memref<1x256xf32, #tpu.memory_space<vmem>>, %arg10: memref<1x256xf32, #tpu.memory_space<vmem>>, %arg11: memref<1x256xf32, #tpu.memory_space<vmem>>, %arg12: memref<16x256xbf16, #tpu.memory_space<vmem>>) attributes {dimension_semantics = [#tpu.dimension_semantics<parallel>], iteration_bounds = array<i64: 2>, scalar_prefetch = 0 : i64, scratch_operands = 0 : i64, tpu.core_type = #tpu.core_type<tc>, window_params = [{transform_indices = @transform_0, window_bounds = array<i64: 16, 256>}, {pipeline_mode = #tpu.pipeline_mode<synchronous>, transform_indices = @transform_1, window_bounds = array<i64: 256, 768>}, {pipeline_mode = #tpu.pipeline_mode<synchronous>, transform_indices = @transform_2, window_bounds = array<i64: 1, 768>}, {pipeline_mode = #tpu.pipeline_mode<synchronous>, transform_indices = @transform_3, window_bounds = array<i64: 1024, 64>}, {pipeline_mode = #tpu.pipeline_mode<synchronous>, transform_indices = @transform_4, window_bounds = array<i64: 64, 1024>}, {pipeline_mode = #tpu.pipeline_mode<synchronous>, transform_indices = @transform_5, window_bounds = array<i64: 256, 512>}, {pipeline_mode = #tpu.pipeline_mode<synchronous>, transform_indices = @transform_6, window_bounds = array<i64: 1, 512>}, {pipeline_mode = #tpu.pipeline_mode<synchronous>, transform_indices = @transform_7, window_bounds = array<i64: 512, 256>}, {pipeline_mode = #tpu.pipeline_mode<synchronous>, transform_indices = @transform_8, window_bounds = array<i64: 1, 256>}, {pipeline_mode = #tpu.pipeline_mode<synchronous>, transform_indices = @transform_9, window_bounds = array<i64: 1, 256>}, {pipeline_mode = #tpu.pipeline_mode<synchronous>, transform_indices = @transform_10, window_bounds = array<i64: 1, 256>}, {transform_indices = @transform_11, window_bounds = array<i64: 16, 256>}]} {
    %c0 = arith.constant 0 : index
    %c0_0 = arith.constant 0 : index
    %0 = vector.load %arg1[%c0, %c0_0] : memref<16x256xbf16, #tpu.memory_space<vmem>>, vector<16x256xbf16>
    %c0_1 = arith.constant 0 : index
    %c0_2 = arith.constant 0 : index
    %1 = vector.load %arg2[%c0_1, %c0_2] : memref<256x768xbf16, #tpu.memory_space<vmem>>, vector<256x768xbf16>
    %cst = arith.constant dense<0.000000e+00> : vector<16x768xf32>
    %2 = tpu.matmul %0, %1, %cst {dimension_numbers = #tpu.dot_dimension_numbers<[1], [0], [0], [1], [0, 0, 1, 1], [], []>} : vector<16x256xbf16>, vector<256x768xbf16>, vector<16x768xf32> -> vector<16x768xf32>
    %c0_3 = arith.constant 0 : index
    %c0_4 = arith.constant 0 : index
    %3 = vector.load %arg3[%c0_3, %c0_4] : memref<1x768xf32, #tpu.memory_space<vmem>>, vector<1x768xf32>
    %4 = vector.broadcast %3 : vector<1x768xf32> to vector<16x768xf32>
    %5 = arith.addf %2, %4 : vector<16x768xf32>
    %6 = vector.extract_strided_slice %5 {offsets = [0, 0], sizes = [16, 256], strides = [1, 1]} : vector<16x768xf32> to vector<16x256xf32>
    %7 = arith.truncf %6 : vector<16x256xf32> to vector<16x256xbf16>
    %8 = vector.extract_strided_slice %5 {offsets = [0, 256], sizes = [16, 256], strides = [1, 1]} : vector<16x768xf32> to vector<16x256xf32>
    %9 = arith.truncf %8 : vector<16x256xf32> to vector<16x256xbf16>
    %10 = vector.extract_strided_slice %5 {offsets = [0, 512], sizes = [16, 256], strides = [1, 1]} : vector<16x768xf32> to vector<16x256xf32>
    %11 = arith.truncf %10 : vector<16x256xf32> to vector<16x256xbf16>
    %12 = vector.extract_strided_slice %7 {offsets = [0, 0], sizes = [16, 64], strides = [1, 1]} : vector<16x256xbf16> to vector<16x64xbf16>
    %13 = vector.extract_strided_slice %7 {offsets = [0, 64], sizes = [16, 64], strides = [1, 1]} : vector<16x256xbf16> to vector<16x64xbf16>
    %14 = vector.extract_strided_slice %7 {offsets = [0, 128], sizes = [16, 64], strides = [1, 1]} : vector<16x256xbf16> to vector<16x64xbf16>
    %15 = vector.extract_strided_slice %7 {offsets = [0, 192], sizes = [16, 64], strides = [1, 1]} : vector<16x256xbf16> to vector<16x64xbf16>
    %16 = tpu.concatenate %12, %12, %12, %12, %13, %13, %13, %13, %14, %14, %14, %14, %15, %15, %15, %15 in 1 : vector<16x64xbf16>, vector<16x64xbf16>, vector<16x64xbf16>, vector<16x64xbf16>, vector<16x64xbf16>, vector<16x64xbf16>, vector<16x64xbf16>, vector<16x64xbf16>, vector<16x64xbf16>, vector<16x64xbf16>, vector<16x64xbf16>, vector<16x64xbf16>, vector<16x64xbf16>, vector<16x64xbf16>, vector<16x64xbf16>, vector<16x64xbf16> -> vector<16x1024xbf16>
    %17 = tpu.concatenate %9, %9, %9, %9 in 1 : vector<16x256xbf16>, vector<16x256xbf16>, vector<16x256xbf16>, vector<16x256xbf16> -> vector<16x1024xbf16>
    %18 = arith.mulf %16, %17 : vector<16x1024xbf16>
    %c0_5 = arith.constant 0 : index
    %c0_6 = arith.constant 0 : index
    %19 = vector.load %arg4[%c0_5, %c0_6] : memref<1024x64xbf16, #tpu.memory_space<vmem>>, vector<1024x64xbf16>
    %cst_7 = arith.constant dense<0.000000e+00> : vector<16x64xf32>
    %20 = tpu.matmul %18, %19, %cst_7 {dimension_numbers = #tpu.dot_dimension_numbers<[1], [0], [0], [1], [0, 0, 1, 1], [], []>} : vector<16x1024xbf16>, vector<1024x64xbf16>, vector<16x64xf32> -> vector<16x64xf32>
    %cst_8 = arith.constant 2.500000e-01 : f32
    %21 = vector.broadcast %cst_8 : f32 to vector<16x64xf32>
    %22 = arith.mulf %20, %21 : vector<16x64xf32>
    %23 = vector.extract_strided_slice %22 {offsets = [0, 0], sizes = [16, 16], strides = [1, 1]} : vector<16x64xf32> to vector<16x16xf32>
    %24 = vector.extract_strided_slice %22 {offsets = [0, 16], sizes = [16, 16], strides = [1, 1]} : vector<16x64xf32> to vector<16x16xf32>
    %25 = vector.extract_strided_slice %22 {offsets = [0, 32], sizes = [16, 16], strides = [1, 1]} : vector<16x64xf32> to vector<16x16xf32>
    %26 = vector.extract_strided_slice %22 {offsets = [0, 48], sizes = [16, 16], strides = [1, 1]} : vector<16x64xf32> to vector<16x16xf32>
    %27 = arith.maximumf %23, %24 : vector<16x16xf32>
    %28 = arith.maximumf %25, %26 : vector<16x16xf32>
    %29 = arith.maximumf %27, %28 : vector<16x16xf32>
    %30 = tpu.concatenate %29, %29, %29, %29 in 1 : vector<16x16xf32>, vector<16x16xf32>, vector<16x16xf32>, vector<16x16xf32> -> vector<16x64xf32>
    %31 = arith.subf %22, %30 : vector<16x64xf32>
    %32 = math.exp %31 : vector<16x64xf32>
    %33 = vector.extract_strided_slice %32 {offsets = [0, 0], sizes = [16, 16], strides = [1, 1]} : vector<16x64xf32> to vector<16x16xf32>
    %34 = vector.extract_strided_slice %32 {offsets = [0, 16], sizes = [16, 16], strides = [1, 1]} : vector<16x64xf32> to vector<16x16xf32>
    %35 = arith.addf %33, %34 : vector<16x16xf32>
    %36 = vector.extract_strided_slice %32 {offsets = [0, 32], sizes = [16, 16], strides = [1, 1]} : vector<16x64xf32> to vector<16x16xf32>
    %37 = arith.addf %35, %36 : vector<16x16xf32>
    %38 = vector.extract_strided_slice %32 {offsets = [0, 48], sizes = [16, 16], strides = [1, 1]} : vector<16x64xf32> to vector<16x16xf32>
    %39 = arith.addf %37, %38 : vector<16x16xf32>
    %40 = tpu.reciprocal %39 {approx = true} : vector<16x16xf32> -> vector<16x16xf32>
    %41 = tpu.concatenate %40, %40, %40, %40 in 1 : vector<16x16xf32>, vector<16x16xf32>, vector<16x16xf32>, vector<16x16xf32> -> vector<16x64xf32>
    %42 = arith.mulf %32, %41 : vector<16x64xf32>
    %43 = arith.truncf %42 : vector<16x64xf32> to vector<16x64xbf16>
    %c0_9 = arith.constant 0 : index
    %c0_10 = arith.constant 0 : index
    %44 = vector.load %arg5[%c0_9, %c0_10] : memref<64x1024xbf16, #tpu.memory_space<vmem>>, vector<64x1024xbf16>
    %cst_11 = arith.constant dense<0.000000e+00> : vector<16x1024xf32>
    %45 = tpu.matmul %43, %44, %cst_11 {dimension_numbers = #tpu.dot_dimension_numbers<[1], [0], [0], [1], [0, 0, 1, 1], [], []>} : vector<16x64xbf16>, vector<64x1024xbf16>, vector<16x1024xf32> -> vector<16x1024xf32>
    %46 = tpu.concatenate %11, %11, %11, %11 in 1 : vector<16x256xbf16>, vector<16x256xbf16>, vector<16x256xbf16>, vector<16x256xbf16> -> vector<16x1024xbf16>
    %47 = arith.truncf %45 : vector<16x1024xf32> to vector<16x1024xbf16>
    %48 = arith.mulf %47, %46 : vector<16x1024xbf16>
    %49 = vector.extract_strided_slice %48 {offsets = [0, 0], sizes = [16, 64], strides = [1, 1]} : vector<16x1024xbf16> to vector<16x64xbf16>
    %50 = arith.extf %49 : vector<16x64xbf16> to vector<16x64xf32>
    %51 = vector.extract_strided_slice %48 {offsets = [0, 64], sizes = [16, 64], strides = [1, 1]} : vector<16x1024xbf16> to vector<16x64xbf16>
    %52 = arith.extf %51 : vector<16x64xbf16> to vector<16x64xf32>
    %53 = arith.addf %50, %52 : vector<16x64xf32>
    %54 = vector.extract_strided_slice %48 {offsets = [0, 128], sizes = [16, 64], strides = [1, 1]} : vector<16x1024xbf16> to vector<16x64xbf16>
    %55 = arith.extf %54 : vector<16x64xbf16> to vector<16x64xf32>
    %56 = arith.addf %53, %55 : vector<16x64xf32>
    %57 = vector.extract_strided_slice %48 {offsets = [0, 192], sizes = [16, 64], strides = [1, 1]} : vector<16x1024xbf16> to vector<16x64xbf16>
    %58 = arith.extf %57 : vector<16x64xbf16> to vector<16x64xf32>
    %59 = arith.addf %56, %58 : vector<16x64xf32>
    %60 = vector.extract_strided_slice %48 {offsets = [0, 256], sizes = [16, 64], strides = [1, 1]} : vector<16x1024xbf16> to vector<16x64xbf16>
    %61 = arith.extf %60 : vector<16x64xbf16> to vector<16x64xf32>
    %62 = vector.extract_strided_slice %48 {offsets = [0, 320], sizes = [16, 64], strides = [1, 1]} : vector<16x1024xbf16> to vector<16x64xbf16>
    %63 = arith.extf %62 : vector<16x64xbf16> to vector<16x64xf32>
    %64 = arith.addf %61, %63 : vector<16x64xf32>
    %65 = vector.extract_strided_slice %48 {offsets = [0, 384], sizes = [16, 64], strides = [1, 1]} : vector<16x1024xbf16> to vector<16x64xbf16>
    %66 = arith.extf %65 : vector<16x64xbf16> to vector<16x64xf32>
    %67 = arith.addf %64, %66 : vector<16x64xf32>
    %68 = vector.extract_strided_slice %48 {offsets = [0, 448], sizes = [16, 64], strides = [1, 1]} : vector<16x1024xbf16> to vector<16x64xbf16>
    %69 = arith.extf %68 : vector<16x64xbf16> to vector<16x64xf32>
    %70 = arith.addf %67, %69 : vector<16x64xf32>
    %71 = vector.extract_strided_slice %48 {offsets = [0, 512], sizes = [16, 64], strides = [1, 1]} : vector<16x1024xbf16> to vector<16x64xbf16>
    %72 = arith.extf %71 : vector<16x64xbf16> to vector<16x64xf32>
    %73 = vector.extract_strided_slice %48 {offsets = [0, 576], sizes = [16, 64], strides = [1, 1]} : vector<16x1024xbf16> to vector<16x64xbf16>
    %74 = arith.extf %73 : vector<16x64xbf16> to vector<16x64xf32>
    %75 = arith.addf %72, %74 : vector<16x64xf32>
    %76 = vector.extract_strided_slice %48 {offsets = [0, 640], sizes = [16, 64], strides = [1, 1]} : vector<16x1024xbf16> to vector<16x64xbf16>
    %77 = arith.extf %76 : vector<16x64xbf16> to vector<16x64xf32>
    %78 = arith.addf %75, %77 : vector<16x64xf32>
    %79 = vector.extract_strided_slice %48 {offsets = [0, 704], sizes = [16, 64], strides = [1, 1]} : vector<16x1024xbf16> to vector<16x64xbf16>
    %80 = arith.extf %79 : vector<16x64xbf16> to vector<16x64xf32>
    %81 = arith.addf %78, %80 : vector<16x64xf32>
    %82 = vector.extract_strided_slice %48 {offsets = [0, 768], sizes = [16, 64], strides = [1, 1]} : vector<16x1024xbf16> to vector<16x64xbf16>
    %83 = arith.extf %82 : vector<16x64xbf16> to vector<16x64xf32>
    %84 = vector.extract_strided_slice %48 {offsets = [0, 832], sizes = [16, 64], strides = [1, 1]} : vector<16x1024xbf16> to vector<16x64xbf16>
    %85 = arith.extf %84 : vector<16x64xbf16> to vector<16x64xf32>
    %86 = arith.addf %83, %85 : vector<16x64xf32>
    %87 = vector.extract_strided_slice %48 {offsets = [0, 896], sizes = [16, 64], strides = [1, 1]} : vector<16x1024xbf16> to vector<16x64xbf16>
    %88 = arith.extf %87 : vector<16x64xbf16> to vector<16x64xf32>
    %89 = arith.addf %86, %88 : vector<16x64xf32>
    %90 = vector.extract_strided_slice %48 {offsets = [0, 960], sizes = [16, 64], strides = [1, 1]} : vector<16x1024xbf16> to vector<16x64xbf16>
    %91 = arith.extf %90 : vector<16x64xbf16> to vector<16x64xf32>
    %92 = arith.addf %89, %91 : vector<16x64xf32>
    %93 = tpu.concatenate %59, %70, %81, %92 in 1 : vector<16x64xf32>, vector<16x64xf32>, vector<16x64xf32>, vector<16x64xf32> -> vector<16x256xf32>
    %94 = arith.truncf %93 : vector<16x256xf32> to vector<16x256xbf16>
    %c0_12 = arith.constant 0 : index
    %c0_13 = arith.constant 0 : index
    %95 = vector.load %arg6[%c0_12, %c0_13] : memref<256x512xbf16, #tpu.memory_space<vmem>>, vector<256x512xbf16>
    %cst_14 = arith.constant dense<0.000000e+00> : vector<16x512xf32>
    %96 = tpu.matmul %94, %95, %cst_14 {dimension_numbers = #tpu.dot_dimension_numbers<[1], [0], [0], [1], [0, 0, 1, 1], [], []>} : vector<16x256xbf16>, vector<256x512xbf16>, vector<16x512xf32> -> vector<16x512xf32>
    %c0_15 = arith.constant 0 : index
    %c0_16 = arith.constant 0 : index
    %97 = vector.load %arg7[%c0_15, %c0_16] : memref<1x512xf32, #tpu.memory_space<vmem>>, vector<1x512xf32>
    %98 = vector.broadcast %97 : vector<1x512xf32> to vector<16x512xf32>
    %99 = arith.addf %96, %98 : vector<16x512xf32>
    %cst_17 = arith.constant 0.000000e+00 : f32
    %100 = vector.broadcast %cst_17 : f32 to vector<16x512xf32>
    %101 = arith.maximumf %99, %100 : vector<16x512xf32>
    %102 = arith.truncf %101 : vector<16x512xf32> to vector<16x512xbf16>
    %c0_18 = arith.constant 0 : index
    %c0_19 = arith.constant 0 : index
    %103 = vector.load %arg8[%c0_18, %c0_19] : memref<512x256xbf16, #tpu.memory_space<vmem>>, vector<512x256xbf16>
    %cst_20 = arith.constant dense<0.000000e+00> : vector<16x256xf32>
    %104 = tpu.matmul %102, %103, %cst_20 {dimension_numbers = #tpu.dot_dimension_numbers<[1], [0], [0], [1], [0, 0, 1, 1], [], []>} : vector<16x512xbf16>, vector<512x256xbf16>, vector<16x256xf32> -> vector<16x256xf32>
    %c0_21 = arith.constant 0 : index
    %c0_22 = arith.constant 0 : index
    %105 = vector.load %arg9[%c0_21, %c0_22] : memref<1x256xf32, #tpu.memory_space<vmem>>, vector<1x256xf32>
    %106 = vector.broadcast %105 : vector<1x256xf32> to vector<16x256xf32>
    %107 = arith.addf %104, %106 : vector<16x256xf32>
    %cst_23 = arith.constant dense<0.000000e+00> : vector<16xf32>
    %108 = vector.multi_reduction <add>, %107, %cst_23 [1] : vector<16x256xf32> to vector<16xf32>
    %109 = vector.shape_cast %108 : vector<16xf32> to vector<16x1xf32>
    %cst_24 = arith.constant 2.560000e+02 : f32
    %110 = vector.broadcast %cst_24 : f32 to vector<16x1xf32>
    %111 = arith.divf %109, %110 : vector<16x1xf32>
    %112 = vector.broadcast %111 : vector<16x1xf32> to vector<16x256xf32>
    %113 = arith.subf %107, %112 : vector<16x256xf32>
    %114 = arith.mulf %113, %113 : vector<16x256xf32>
    %cst_25 = arith.constant dense<0.000000e+00> : vector<16xf32>
    %115 = vector.multi_reduction <add>, %114, %cst_25 [1] : vector<16x256xf32> to vector<16xf32>
    %116 = vector.shape_cast %115 : vector<16xf32> to vector<16x1xf32>
    %cst_26 = arith.constant 2.560000e+02 : f32
    %117 = vector.broadcast %cst_26 : f32 to vector<16x1xf32>
    %118 = arith.divf %116, %117 : vector<16x1xf32>
    %119 = vector.broadcast %111 : vector<16x1xf32> to vector<16x256xf32>
    %120 = arith.subf %107, %119 : vector<16x256xf32>
    %cst_27 = arith.constant 9.99999974E-6 : f32
    %121 = vector.broadcast %cst_27 : f32 to vector<16x1xf32>
    %122 = arith.addf %118, %121 : vector<16x1xf32>
    %123 = math.rsqrt %122 : vector<16x1xf32>
    %124 = vector.broadcast %123 : vector<16x1xf32> to vector<16x256xf32>
    %125 = arith.mulf %120, %124 : vector<16x256xf32>
    %c0_28 = arith.constant 0 : index
    %c0_29 = arith.constant 0 : index
    %126 = vector.load %arg10[%c0_28, %c0_29] : memref<1x256xf32, #tpu.memory_space<vmem>>, vector<1x256xf32>
    %127 = vector.broadcast %126 : vector<1x256xf32> to vector<16x256xf32>
    %128 = arith.mulf %125, %127 : vector<16x256xf32>
    %c0_30 = arith.constant 0 : index
    %c0_31 = arith.constant 0 : index
    %129 = vector.load %arg11[%c0_30, %c0_31] : memref<1x256xf32, #tpu.memory_space<vmem>>, vector<1x256xf32>
    %130 = vector.broadcast %129 : vector<1x256xf32> to vector<16x256xf32>
    %131 = arith.addf %128, %130 : vector<16x256xf32>
    %132 = arith.truncf %131 : vector<16x256xf32> to vector<16x256xbf16>
    %c0_32 = arith.constant 0 : index
    %c0_33 = arith.constant 0 : index
    %133 = vector.load %arg12[%c0_32, %c0_33] : memref<16x256xbf16, #tpu.memory_space<vmem>>, vector<16x256xbf16>
    tpu.vector_store %arg12[%c0_32, %c0_33], %132 {strides = array<i32>} : memref<16x256xbf16, #tpu.memory_space<vmem>>, vector<16x256xbf16>,
    return
  }
  func.func @transform_0(%arg0: i32) -> (i32, i32) {
    %c0_i32 = arith.constant 0 : i32
    %c0_i32_0 = arith.constant 0 : i32
    return %arg0, %c0_i32 : i32, i32
  }
  func.func @transform_1(%arg0: i32) -> (i32, i32) {
    %c0_i32 = arith.constant 0 : i32
    %c0_i32_0 = arith.constant 0 : i32
    %c0_i32_1 = arith.constant 0 : i32
    return %c0_i32, %c0_i32_0 : i32, i32
  }
  func.func @transform_2(%arg0: i32) -> (i32, i32) {
    %c0_i32 = arith.constant 0 : i32
    %c0_i32_0 = arith.constant 0 : i32
    %c0_i32_1 = arith.constant 0 : i32
    return %c0_i32, %c0_i32_0 : i32, i32
  }
  func.func @transform_3(%arg0: i32) -> (i32, i32) {
    %c0_i32 = arith.constant 0 : i32
    %c0_i32_0 = arith.constant 0 : i32
    %c0_i32_1 = arith.constant 0 : i32
    return %c0_i32, %c0_i32_0 : i32, i32
  }
  func.func @transform_4(%arg0: i32) -> (i32, i32) {
    %c0_i32 = arith.constant 0 : i32
    %c0_i32_0 = arith.constant 0 : i32
    %c0_i32_1 = arith.constant 0 : i32
    return %c0_i32, %c0_i32_0 : i32, i32
  }
  func.func @transform_5(%arg0: i32) -> (i32, i32) {
    %c0_i32 = arith.constant 0 : i32
    %c0_i32_0 = arith.constant 0 : i32
    %c0_i32_1 = arith.constant 0 : i32
    return %c0_i32, %c0_i32_0 : i32, i32
  }
  func.func @transform_6(%arg0: i32) -> (i32, i32) {
    %c0_i32 = arith.constant 0 : i32
    %c0_i32_0 = arith.constant 0 : i32
    %c0_i32_1 = arith.constant 0 : i32
    return %c0_i32, %c0_i32_0 : i32, i32
  }
  func.func @transform_7(%arg0: i32) -> (i32, i32) {
    %c0_i32 = arith.constant 0 : i32
    %c0_i32_0 = arith.constant 0 : i32
    %c0_i32_1 = arith.constant 0 : i32
    return %c0_i32, %c0_i32_0 : i32, i32
  }
  func.func @transform_8(%arg0: i32) -> (i32, i32) {
    %c0_i32 = arith.constant 0 : i32
    %c0_i32_0 = arith.constant 0 : i32
    %c0_i32_1 = arith.constant 0 : i32
    return %c0_i32, %c0_i32_0 : i32, i32
  }
  func.func @transform_9(%arg0: i32) -> (i32, i32) {
    %c0_i32 = arith.constant 0 : i32
    %c0_i32_0 = arith.constant 0 : i32
    %c0_i32_1 = arith.constant 0 : i32
    return %c0_i32, %c0_i32_0 : i32, i32
  }
  func.func @transform_10(%arg0: i32) -> (i32, i32) {
    %c0_i32 = arith.constant 0 : i32
    %c0_i32_0 = arith.constant 0 : i32
    %c0_i32_1 = arith.constant 0 : i32
    return %c0_i32, %c0_i32_0 : i32, i32
  }
  func.func @transform_11(%arg0: i32) -> (i32, i32) {
    %c0_i32 = arith.constant 0 : i32
    %c0_i32_0 = arith.constant 0 : i32
    return %arg0, %c0_i32 : i32, i32
  }
}

</mosaic_0001>

<bundles_post_ra>
// kernel: a_call__.3
= control target key start
LH: loop header
LB: loop body
LE: loop exit
PB: predicated region body
PF: predicated region fallthrough
CT: control target
= control target key end

     0   :  { %s6565_s0 = inlined_call_operand.vmem [shape: bf16[32,256], index: 0, kind: input, shape index: {}]   ;;  %s6566_s1 = inlined_call_operand.hbm [shape: bf16[256,768], index: 1, kind: input, shape index: {}]   ;;  %s6567_s2 = inlined_call_operand.hbm [shape: f32[1,768], index: 2, kind: input, shape index: {}]   ;;  %s6568_s3 = inlined_call_operand.hbm [shape: bf16[1024,64], index: 3, kind: input, shape index: {}]   ;;  %s6569_s4 = inlined_call_operand.hbm [shape: bf16[64,1024], index: 4, kind: input, shape index: {}]   ;;  %s6570_s5 = inlined_call_operand.hbm [shape: bf16[256,512], index: 5, kind: input, shape index: {}]   ;;  %s6571_s6 = inlined_call_operand.hbm [shape: f32[1,512], index: 6, kind: input, shape index: {}]   ;;  %s6572_s7 = inlined_call_operand.hbm [shape: bf16[512,256], index: 7, kind: input, shape index: {}]   ;;  %s6573_s8 = inlined_call_operand.hbm [shape: f32[1,256], index: 8, kind: input, shape index: {}]   ;;  %s6574_s9 = inlined_call_operand.vmem [shape: f32[1,256], index: 9, kind: input, shape index: {}]   ;;  %s6575_s10 = inlined_call_operand.vmem [shape: f32[1,256], index: 10, kind: input, shape index: {}]   ;;  %s6576_s11 = inlined_call_operand.hbm [shape: bf16[32,256], index: 11, kind: output, shape index: {}]  }
   0x1   :  { %6581 = sst [smem:[#allocation27_spill]] %s6566_s1 }
   0x2   :  { %6582 = sst [smem:[#allocation28_spill]] %s6567_s2 }
   0x3   :  { %6583 = sst [smem:[#allocation29_spill]] %s6568_s3 }
   0x4   :  { %6584 = sst [smem:[#allocation30_spill]] %s6569_s4 }
   0x5   :  { %16 = vsyncpa [#allocation3], 0 }
   0x6   :  { %17 = vsyncpa [#allocation6], 0 }
   0x7   :  { %18 = vsyncpa [#allocation9], 0 }
   0x8   :  { %19 = vsyncpa [#allocation12], 0 }
   0x9   :  { %20 = vsyncpa [#allocation15], 0 }
   0xa   :  { %21 = vsyncpa [#allocation4], 0 }
   0xb   :  { %23 = vsyncpa [#allocation4 + $0x1], 0  ;;  %s6137_s17 = smov 0   ;;  %s6139_s18 = smov 0  }
   0xc   :  { %s6141_s19 = smov 0   ;;  %s6143_s20 = smov 0  }
   0xd LB: > { %6585 = sst [smem:[#allocation23_spill]] %s6043_s19  ;;  %s6158_s21 = sadd.s32 4294967295, %s6047_s20   ;;  %s6047_s20 = sphi %s6143_s20, %s6599_s20   ;;  %s6043_s19 = sphi %s6141_s19, %s6601_s19   ;;  %s6039_s18 = sphi %s6139_s18, %s6603_s18   ;;  %s6035_s17 = sphi %s6137_s17, %s6602_s17  }
   0xe   : > { %s3890_s22 = sadd.s32 4294967294, %s6047_s20   ;;  %s6162_s23 = sadd.s32 1, %s6047_s20  }
   0xf   : > { %6586 = sst [smem:[#allocation24_spill]] %s6162_s23  ;;  %s272_s24 = sadd.s32 1, %s6043_s19 }
  0x10   : > { %s269_s25 = ssub.s32 %s6047_s20, %s6162_s23  ;;  %p282_p0 = scmp.ne.s32.totalorder %s6043_s19, %s6039_s18 }
  0x11   : > { %p270_p1 = scmp.eq.s32.totalorder %s269_s25, 0  ;;  %p283_p2 = scmp.eq.s32.totalorder %s6158_s21, 1 }
  0x12   : > { %p288_p3 = scmp.ne.s32.totalorder %s6039_s18, %s6035_s17  ;;  %p289_p4 = scmp.eq.s32.totalorder %s3890_s22, 1 }
  0x13   : > { %s6173_s26 = scalar_select %p270_p1, %s6043_s19, %s272_s24  }
  0x14   : > { %p6175_p5 = por %p283_p2, %p282_p0  ;;  %p6179_p6 = por %p289_p4, %p288_p3 }
  0x15   : > { %6587 = sst [smem:[#allocation25_spill]] %s6173_s26  ;;  %p3891_p7 = scmp.ge.s32.totalorder %s6047_s20, 1 }
  0x16   : > { %s6589_s28 = scalar_select %p6179_p6, 1, 0 }
  0x17   : > { %p296_p8 = scmp.lt.s32.totalorder %s6047_s20, 3  ;;  %p5604_p9 = scmp.eq.s32.totalorder %s6158_s21, 0 }
  0x18   : > { %6590 = sst [smem:[#allocation26_spill]] %s6589_s28  ;;  %s6049_s14 = smov [#allocation5]  }
  0x19   : > { %p6186_p10 = pnand %p3891_p7, %p296_p8  ;;  %s6592_s2 = sld [smem:[#allocation28_spill]] }
  0x1a   : > { %s324_s15 = sshll.u32 %s6049_s14, 4  ;;  %s6593_s4 = sld [smem:[#allocation30_spill]]  ;;  %s325_s15 = int_to_ptr.vmem [resolvable:$true] %s324_s15 }
  0x1b   : > { %p5575_p11 = pneg %p6186_p10  ;;  %s6050_s30 = smov [#allocation8]  }
  0x1c   : > { %s349_s12 = sshll.u32 %s6050_s30, 4  ;;  %s6051_s14 = smov 512   ;;  %s350_s12 = int_to_ptr.vmem [resolvable:$true] %s349_s12 }
  0x1d   : > { %p6200_p12 = pnand %p5604_p9, %p5575_p11  ;;  %s6053_s26 = smov [#allocation11]  }
  0x1e   : > { %s378_s19 = sshll.u32 %s6053_s26, 4  ;;  %s6595_s1 = sld [smem:[#allocation27_spill]]  ;;  %s379_s19 = int_to_ptr.vmem [resolvable:$true] %s378_s19 }
  0x1f   : > { %s322_s13 = sshll.u32 %s6592_s2, 4  ;;  %s6052_s2 = smov 32   ;;  %s323_s13 = int_to_ptr.hbm [resolvable:$true] %s322_s13 }
  0x20   : > { %s347_s24 = sshll.u32 %s6593_s4, 4  ;;  %s376_s4 = sshll.u32 %s6571_s6, 4  ;;  %s348_s24 = int_to_ptr.hbm [resolvable:$true] %s347_s24  ;;  %s377_s4 = int_to_ptr.hbm [resolvable:$true] %s376_s4 }
  0x21   : > { %5581 = dma.hbm_to_vmem [thread:$0]  (!%p6200_p12), %s323_s13, 96, %s325_s15, [#allocation6]  }
  0x22   : > { %5587 = dma.hbm_to_vmem [thread:$0]  (!%p6200_p12), %s348_s24, 4096, %s350_s12, [#allocation9], %s6051_s14, %s6051_s14, %s6052_s2  }
  0x23   : > { %5593 = dma.hbm_to_vmem [thread:$0]  (!%p6200_p12), %s377_s4, 64, %s379_s19, [#allocation12]  }
  0x24   : > { %s307_s30 = sshll.u32 %s6595_s1, 4  ;;  %s6054_s13 = smov [#allocation2]   ;;  %s308_s30 = int_to_ptr.hbm [resolvable:$true] %s307_s30 }
  0x25   : > { %s309_s15 = sshll.u32 %s6054_s13, 4  ;;  %s6055_s2 = smov 384   ;;  %s310_s15 = int_to_ptr.vmem [resolvable:$true] %s309_s15 }
  0x26   : > { %s6056_s24 = smov 24   ;;  %s6596_s3 = sld [smem:[#allocation29_spill]] }
  0x27   : > { %5578 = dma.hbm_to_vmem [thread:$0]  (!%p6200_p12), %s308_s30, 12288, %s310_s15, [#allocation3], %s6055_s2, %s6055_s2, %s6056_s24  }
  0x28   : > { %s6057_s16 = smov [#allocation7]   ;;  %s361_s19 = sshll.u32 %s6570_s5, 4  ;;  %s362_s19 = int_to_ptr.hbm [resolvable:$true] %s361_s19 }
  0x29   : > { %s335_s23 = sshll.u32 %s6057_s16, 4  ;;  %s6058_s22 = smov 64   ;;  %s336_s23 = int_to_ptr.vmem [resolvable:$true] %s335_s23 }
  0x2a   : > { %s6059_s13 = smov 4   ;;  %s6060_s30 = smov [#allocation10]  }
  0x2b   : > { %s363_s15 = sshll.u32 %s6060_s30, 4  ;;  %s6061_s2 = smov 256   ;;  %s364_s15 = int_to_ptr.vmem [resolvable:$true] %s363_s15 }
  0x2c   : > { %s333_s26 = sshll.u32 %s6596_s3, 4  ;;  %s6062_s24 = smov 16   ;;  %s334_s26 = int_to_ptr.hbm [resolvable:$true] %s333_s26 }
  0x2d   : > { %5584 = dma.hbm_to_vmem [thread:$0]  (!%p6200_p12), %s334_s26, 8192, %s336_s23, [#allocation6], %s6058_s22, %s6058_s22, %s6059_s13  }
  0x2e   : > { %5590 = dma.hbm_to_vmem [thread:$0]  (!%p6200_p12), %s362_s19, 8192, %s364_s15, [#allocation9], %s6061_s2, %s6061_s2, %s6062_s24  }
  0x2f   : > { %s387_s16 = sshll.u32 %s6572_s7, 4  ;;  %s6063_s28 = smov [#allocation13]   ;;  %s388_s16 = int_to_ptr.hbm [resolvable:$true] %s387_s16 }
  0x30   : > { %s389_s4 = sshll.u32 %s6063_s28, 4  ;;  %s402_s23 = sshll.u32 %s6573_s8, 4  ;;  %s390_s4 = int_to_ptr.vmem [resolvable:$true] %s389_s4  ;;  %s403_s23 = int_to_ptr.hbm [resolvable:$true] %s402_s23 }
  0x31   : > { %s6064_s22 = smov 128   ;;  %s6065_s13 = smov 8  }
  0x32   : > { %5596 = dma.hbm_to_vmem [thread:$0]  (!%p6200_p12), %s388_s16, 8192, %s390_s4, [#allocation12], %s6064_s22, %s6064_s22, %s6065_s13  }
  0x33   : > { %s6066_s30 = smov [#allocation14]   ;;  %433 = sbr.rel (%p6186_p10) target bundleno = 2155 (0x86b), region = 64 }
  0x34   : > { %s404_s3 = sshll.u32 %s6066_s30, 4  ;;  %s405_s3 = int_to_ptr.vmem [resolvable:$true] %s404_s3 }
  0x35   : > { %5599 = dma.hbm_to_vmem [thread:$0]  (!%p6200_p12), %s403_s23, 32, %s405_s3, [#allocation15]  }
  0x38   : > { %6010 = dma.done.wait (%p5604_p9), [#allocation3], 12288  }
  0x39   : > { %6012 = vsyncadd (%p5604_p9), [#allocation3], 4294955008 }
  0x3a   : > { %6014 = dma.done.wait (%p5604_p9), [#allocation6], 8288  }
  0x3b   : > { %6016 = vsyncadd (%p5604_p9), [#allocation6], 4294959008 }
  0x3c   : > { %6018 = dma.done.wait (%p5604_p9), [#allocation9], 12288  }
  0x3d   : > { %6020 = vsyncadd (%p5604_p9), [#allocation9], 4294955008 }
  0x3e   : > { %6022 = dma.done.wait (%p5604_p9), [#allocation12], 8256  }
  0x3f   : > { %6024 = vsyncadd (%p5604_p9), [#allocation12], 4294959040 }
  0x40   : > { %6026 = dma.done.wait (%p5604_p9), [#allocation15], 32  }
  0x41   : > { %6028 = vsyncadd (%p5604_p9), [#allocation15], 4294967264  ;;  %s3911_s1 = sshll.u32 %s6158_s21, 1  ;;  %v4092_v0 = vld [vmem:[#allocation2 + $0x150] sm:$0xf]  ;;  %s6067_s2 = smov 64  }
  0x42   : > { %v5264_v1 = vld [vmem:[#allocation2 + $0x164] sm:$0xf0]  ;;  %v4284_v2 = vld [vmem:[#allocation2 + $0x2d0] sm:$0xf]  ;;  %v5261_v5 = vld [vmem:[#allocation2 + $0x154] sm:$0xf] }
  0x43   : > { %v4093_v3 = vor.u32 %v5264_v1, %v4092_v0  ;;  %v5312_v4 = vld [vmem:[#allocation2 + $0x2e4] sm:$0xf0]  ;;  %v4094_v6 = vld [vmem:[#allocation2 + $0x168] sm:$0xf0]  ;;  %v5309_v9 = vld [vmem:[#allocation2 + $0x2d4] sm:$0xf] }
  0x44   : > { %v4285_v7 = vor.u32 %v5312_v4, %v4284_v2  ;;  %v4097_v8 = vor.u32 %v5261_v5, %v4094_v6  ;;  %v4286_v10 = vld [vmem:[#allocation2 + $0x2e8] sm:$0xf0]  ;;  %v4068_v11 = vld [vmem:[#allocation2 + $0x120] sm:$0xf]  ;;  %v5258_v13 = vld [vmem:[#allocation2 + $0x134] sm:$0xf0] }
  0x45   : > { %1121 = vmatpush.bf16.msra.mxu0 %v4093_v3  ;;  %v4289_v12 = vor.u32 %v5309_v9, %v4286_v10  ;;  %v4260_v14 = vld [vmem:[#allocation2 + $0x2a0] sm:$0xf]  ;;  %v5306_v15 = vld [vmem:[#allocation2 + $0x2b4] sm:$0xf0]  ;;  %v4069_v16 = vor.u32 %v5258_v13, %v4068_v11  ;;  %v5255_v18 = vld [vmem:[#allocation2 + $0x124] sm:$0xf] }
  0x46   : > { %1135 = vmatpush.bf16.msra.mxu1 %v4285_v7  ;;  %1149 = vmatpush.bf16.msra.mxu2 %v4097_v8  ;;  %v4261_v17 = vor.u32 %v5306_v15, %v4260_v14  ;;  %v4070_v19 = vld [vmem:[#allocation2 + $0x138] sm:$0xf0]  ;;  %v5303_v20 = vld [vmem:[#allocation2 + $0x2a4] sm:$0xf]  ;;  %v4044_v23 = vld [vmem:[#allocation2 + $0xf0] sm:$0xf] }
  0x47   : > { %1163 = vmatpush.bf16.msra.mxu3 %v4289_v12  ;;  %v4073_v21 = vor.u32 %v5255_v18, %v4070_v19  ;;  %v4262_v22 = vld [vmem:[#allocation2 + $0x2b8] sm:$0xf0]  ;;  %v5252_v24 = vld [vmem:[#allocation2 + $0x104] sm:$0xf0]  ;;  %v4236_v26 = vld [vmem:[#allocation2 + $0x270] sm:$0xf] }
  0x48   : > { %v4265_v25 = vor.u32 %v5303_v20, %v4262_v22  ;;  %v5300_v27 = vld [vmem:[#allocation2 + $0x284] sm:$0xf0]  ;;  %v5249_v28 = vld [vmem:[#allocation2 + $0xf4] sm:$0xf]  ;;  %v4045_v29 = vor.u32 %v5252_v24, %v4044_v23  ;;  %v4046_v30 = vld [vmem:[#allocation2 + $0x108] sm:$0xf0] }
  0x49   : > { %1122 = vmatpush.bf16.msra.mxu0 %v4069_v16  ;;  %v5297_v31 = vld [vmem:[#allocation2 + $0x274] sm:$0xf]  ;;  %v4238_v32 = vld [vmem:[#allocation2 + $0x288] sm:$0xf0]  ;;  %v4237_v33 = vor.u32 %v5300_v27, %v4236_v26  ;;  %v4049_v34 = vor.u32 %v5249_v28, %v4046_v30  ;;  %v4020_v35 = vld [vmem:[#allocation2 + $0xc0] sm:$0xf] }
  0x4a   : > { %1136 = vmatpush.bf16.msra.mxu1 %v4261_v17  ;;  %1150 = vmatpush.bf16.msra.mxu2 %v4073_v21  ;;  %v5246_v36 = vld [vmem:[#allocation2 + $0xd4] sm:$0xf0]  ;;  %v4212_v37 = vld [vmem:[#allocation2 + $0x240] sm:$0xf]  ;;  %v4241_v38 = vor.u32 %v5297_v31, %v4238_v32  ;;  %v5243_v40 = vld [vmem:[#allocation2 + $0xc4] sm:$0xf] }
  0x4b   : > { %1164 = vmatpush.bf16.msra.mxu3 %v4265_v25  ;;  %v5294_v39 = vld [vmem:[#allocation2 + $0x254] sm:$0xf0]  ;;  %v4022_v41 = vld [vmem:[#allocation2 + $0xd8] sm:$0xf0]  ;;  %v5291_v42 = vld [vmem:[#allocation2 + $0x244] sm:$0xf]  ;;  %v4021_v44 = vor.u32 %v5246_v36, %v4020_v35 }
  0x4c   : > { %v4214_v43 = vld [vmem:[#allocation2 + $0x258] sm:$0xf0]  ;;  %p6263_p13 = scmp.lt.s32.totalorder %s3911_s1, 3  ;;  %v4213_v45 = vor.u32 %v5294_v39, %v4212_v37  ;;  %v4025_v46 = vor.u32 %v5243_v40, %v4022_v41  ;;  %v3996_v47 = vld [vmem:[#allocation2 + $0x90] sm:$0xf]  ;;  %vm1307_vm0 = vcmask 523264  }
  0x4d   : > { %1123 = vmatpush.bf16.msra.mxu0 %v4045_v29  ;;  %v5240_v48 = vld [vmem:[#allocation2 + $0xa4] sm:$0xf0]  ;;  %v4188_v49 = vld [vmem:[#allocation2 + $0x210] sm:$0xf]  ;;  %v4217_v50 = vor.u32 %v5291_v42, %v4214_v43  ;;  %v5237_v52 = vld [vmem:[#allocation2 + $0x94] sm:$0xf] }
  0x4e   : > { %1137 = vmatpush.bf16.msra.mxu1 %v4237_v33  ;;  %1151 = vmatpush.bf16.msra.mxu2 %v4049_v34  ;;  %v5288_v51 = vld [vmem:[#allocation2 + $0x224] sm:$0xf0]  ;;  %v3998_v53 = vld [vmem:[#allocation2 + $0xa8] sm:$0xf0]  ;;  %v5285_v54 = vld [vmem:[#allocation2 + $0x214] sm:$0xf]  ;;  %v3997_v56 = vor.u32 %v5240_v48, %v3996_v47 }
  0x4f   : > { %1165 = vmatpush.bf16.msra.mxu3 %v4241_v38  ;;  %v4190_v55 = vld [vmem:[#allocation2 + $0x228] sm:$0xf0]  ;;  %s6605_s1 = smov (!%p6263_p13, %s3911_s1), 3  ;;  %v4189_v57 = vor.u32 %v5288_v51, %v4188_v49  ;;  %v4001_v58 = vor.u32 %v5237_v52, %v3998_v53  ;;  %v3972_v59 = vld [vmem:[#allocation2 + $0x60] sm:$0xf]  ;;  %s6068_s24 = smov 112  }
  0x50   : > { %v5234_v60 = vld [vmem:[#allocation2 + $0x74] sm:$0xf0]  ;;  %v4164_v61 = vld [vmem:[#allocation2 + $0x1e0] sm:$0xf]  ;;  %v4193_v62 = vor.u32 %v5285_v54, %v4190_v55  ;;  %v5231_v0 = vld [vmem:[#allocation2 + $0x64] sm:$0xf] }
  0x51   : > { %1124 = vmatpush.bf16.msra.mxu0 %v4021_v44  ;;  %v5282_v63 = vld [vmem:[#allocation2 + $0x1f4] sm:$0xf0]  ;;  %v3974_v1 = vld [vmem:[#allocation2 + $0x78] sm:$0xf0]  ;;  %v5279_v2 = vld [vmem:[#allocation2 + $0x1e4] sm:$0xf]  ;;  %v3973_v4 = vor.u32 %v5234_v60, %v3972_v59 }
  0x52   : > { %1138 = vmatpush.bf16.msra.mxu1 %v4213_v45  ;;  %1152 = vmatpush.bf16.msra.mxu2 %v4025_v46  ;;  %v4166_v3 = vld [vmem:[#allocation2 + $0x1f8] sm:$0xf0]  ;;  %s5216_s29 = sshll.u32 %s6605_s1, 3  ;;  %v4165_v5 = vor.u32 %v5282_v63, %v4164_v61  ;;  %v3977_v6 = vor.u32 %v5231_v0, %v3974_v1  ;;  %v3948_v7 = vld [vmem:[#allocation2 + $0x30] sm:$0xf]  ;;  %s6069_s12 = smov 96  }
  0x53   : > { %1166 = vmatpush.bf16.msra.mxu3 %v4217_v50  ;;  %v5228_v8 = vld [vmem:[#allocation2 + $0x44] sm:$0xf0]  ;;  %v4140_v9 = vld [vmem:[#allocation2 + $0x1b0] sm:$0xf]  ;;  %v4169_v10 = vor.u32 %v5279_v2, %v4166_v3  ;;  %v5225_v12 = vld [vmem:[#allocation2 + $0x34] sm:$0xf]  ;;  %s515_s15 = scalar_lea.vmem %s6565_s0, %s5216_s29 }
  0x54   : > { %v5276_v11 = vld [vmem:[#allocation2 + $0x1c4] sm:$0xf0]  ;;  %v3950_v13 = vld [vmem:[#allocation2 + $0x48] sm:$0xf0]  ;;  %v5273_v14 = vld [vmem:[#allocation2 + $0x1b4] sm:$0xf]  ;;  %v3949_v16 = vor.u32 %v5228_v8, %v3948_v7 }
  0x55   : > { %1125 = vmatpush.bf16.msra.mxu0 %v3997_v56  ;;  %v4142_v15 = vld [vmem:[#allocation2 + $0x1c8] sm:$0xf0]  ;;  %v3924_v17 = vld [vmem:[#allocation2] sm:$0xf]  ;;  %v5222_v18 = vld [vmem:[#allocation2 + $0x14] sm:$0xf0]  ;;  %v4141_v19 = vor.u32 %v5276_v11, %v4140_v9  ;;  %v3953_v20 = vor.u32 %v5225_v12, %v3950_v13 }
  0x56   : > { %1139 = vmatpush.bf16.msra.mxu1 %v4189_v57  ;;  %1153 = vmatpush.bf16.msra.mxu2 %v4001_v58  ;;  %v4116_v21 = vld [vmem:[#allocation2 + $0x180] sm:$0xf]  ;;  %v5270_v22 = vld [vmem:[#allocation2 + $0x194] sm:$0xf0]  ;;  %v5219_v23 = vld [vmem:[#allocation2 + $0x4] sm:$0xf]  ;;  %v4145_v24 = vor.u32 %v5273_v14, %v4142_v15  ;;  %v3925_v31 = vor.u32 %v5222_v18, %v3924_v17 }
  0x57   : > { %1167 = vmatpush.bf16.msra.mxu3 %v4193_v62  ;;  %v3926_v25 = vld [vmem:[#allocation2 + $0x18] sm:$0xf0]  ;;  %v5267_v26 = vld [vmem:[#allocation2 + $0x184] sm:$0xf]  ;;  %v3916_v28 = vld [vmem:[%s515_s15] sm:$0xf]  ;;  %v4117_v35 = vor.u32 %v5270_v22, %v4116_v21 }
  0x58   : > { %v4118_v27 = vld [vmem:[#allocation2 + $0x198] sm:$0xf0]  ;;  %v4102_v30 = vld [vmem:[#allocation2 + $0x170] sm:$0xf0]  ;;  %v5218_v32 = vld [vmem:[%s515_s15 + $0x4] sm:$0xf0]  ;;  %v3929_v36 = vor.u32 %v5219_v23, %v3926_v25 }
  0x59   : > { %1126 = vmatpush.bf16.msra.mxu0 %v3973_v4  ;;  %v5262_v29 = vld [vmem:[#allocation2 + $0x15c] sm:$0xf]  ;;  %v4294_v34 = vld [vmem:[#allocation2 + $0x2f0] sm:$0xf0]  ;;  %v5217_v37 = vld [vmem:[%s515_s15 + $0x4] sm:$0xf]  ;;  %v4121_v39 = vor.u32 %v5267_v26, %v4118_v27  ;;  %v6277_v44 = vor.u32 %v5218_v32, %v3916_v28 }
  0x5a   : > { %1140 = vmatpush.bf16.msra.mxu1 %v4165_v5  ;;  %1154 = vmatpush.bf16.msra.mxu2 %v3977_v6  ;;  %v5310_v33 = vld [vmem:[#allocation2 + $0x2dc] sm:$0xf]  ;;  %v3918_v38 = vld [vmem:[%s515_s15 + $0x8] sm:$0xf0]  ;;  %v4105_v40 = vor.u32 %v5262_v29, %v4102_v30  ;;  %v4100_v42 = vld [vmem:[#allocation2 + $0x158] sm:$0xf] }
  0x5b   : > { %1168 = vmatpush.bf16.msra.mxu3 %v4169_v10  ;;  %v5256_v41 = vld [vmem:[#allocation2 + $0x12c] sm:$0xf]  ;;  %v5265_v43 = vld [vmem:[#allocation2 + $0x16c] sm:$0xf0]  ;;  %v4297_v45 = vor.u32 %v5310_v33, %v4294_v34  ;;  %v4078_v46 = vld [vmem:[#allocation2 + $0x140] sm:$0xf0]  ;;  %v6279_v49 = vor.u32 %v5217_v37, %v3918_v38 }
  0x5c   : > { %v4292_v47 = vld [vmem:[#allocation2 + $0x2d8] sm:$0xf]  ;;  %v5313_v48 = vld [vmem:[#allocation2 + $0x2ec] sm:$0xf0]  ;;  %v5304_v50 = vld [vmem:[#allocation2 + $0x2ac] sm:$0xf]  ;;  %v4101_v52 = vor.u32 %v5265_v43, %v4100_v42  ;;  %v4081_v53 = vor.u32 %v5256_v41, %v4078_v46 }
  0x5d   : > { %1127 = vmatpush.bf16.msra.mxu0 %v3949_v16  ;;  %v4270_v51 = vld [vmem:[#allocation2 + $0x2c0] sm:$0xf0]  ;;  %v4293_v54 = vor.u32 %v5313_v48, %v4292_v47  ;;  %v5250_v55 = vld [vmem:[#allocation2 + $0xfc] sm:$0xf]  ;;  %v4076_v56 = vld [vmem:[#allocation2 + $0x128] sm:$0xf] }
  0x5e   : > { %1141 = vmatpush.bf16.msra.mxu1 %v4141_v19  ;;  %1155 = vmatpush.bf16.msra.mxu2 %v3953_v20  ;;  %v5259_v57 = vld [vmem:[#allocation2 + $0x13c] sm:$0xf0]  ;;  %v4273_v58 = vor.u32 %v5304_v50, %v4270_v51  ;;  %v4054_v59 = vld [vmem:[#allocation2 + $0x110] sm:$0xf0]  ;;  %v4268_v60 = vld [vmem:[#allocation2 + $0x2a8] sm:$0xf] }
  0x5f   : > { %1169 = vmatpush.bf16.msra.mxu3 %v4145_v24  ;;  %v5307_v61 = vld [vmem:[#allocation2 + $0x2bc] sm:$0xf0]  ;;  %v5298_v62 = vld [vmem:[#allocation2 + $0x27c] sm:$0xf]  ;;  %v4246_v63 = vld [vmem:[#allocation2 + $0x290] sm:$0xf0]  ;;  %v4077_v0 = vor.u32 %v5259_v57, %v4076_v56  ;;  %v4057_v1 = vor.u32 %v5250_v55, %v4054_v59 }
  0x60   : > { %v4269_v2 = vor.u32 %v5307_v61, %v4268_v60  ;;  %v5244_v3 = vld [vmem:[#allocation2 + $0xcc] sm:$0xf]  ;;  %v4052_v4 = vld [vmem:[#allocation2 + $0xf8] sm:$0xf]  ;;  %v5253_v5 = vld [vmem:[#allocation2 + $0x10c] sm:$0xf0]  ;;  %v4249_v6 = vor.u32 %v5298_v62, %v4246_v63 }
  0x61   : > { %1128 = vmatpush.bf16.msra.mxu0 %v3925_v31  ;;  %v4030_v7 = vld [vmem:[#allocation2 + $0xe0] sm:$0xf0]  ;;  %v4244_v8 = vld [vmem:[#allocation2 + $0x278] sm:$0xf]  ;;  %v5301_v9 = vld [vmem:[#allocation2 + $0x28c] sm:$0xf0]  ;;  %v4053_v12 = vor.u32 %v5253_v5, %v4052_v4 }
  0x62   : > { %1142 = vmatpush.bf16.msra.mxu1 %v4117_v35  ;;  %1156 = vmatpush.bf16.msra.mxu2 %v3929_v36  ;;  %v5292_v10 = vld [vmem:[#allocation2 + $0x24c] sm:$0xf]  ;;  %v4222_v11 = vld [vmem:[#allocation2 + $0x260] sm:$0xf0]  ;;  %v4033_v13 = vor.u32 %v5244_v3, %v4030_v7  ;;  %v4245_v14 = vor.u32 %v5301_v9, %v4244_v8  ;;  %v5238_v15 = vld [vmem:[#allocation2 + $0x9c] sm:$0xf] }
  0x63   : > { %1170 = vmatpush.bf16.msra.mxu3 %v4121_v39  ;;  %v4028_v16 = vld [vmem:[#allocation2 + $0xc8] sm:$0xf]  ;;  %v5247_v17 = vld [vmem:[#allocation2 + $0xdc] sm:$0xf0]  ;;  %v4225_v18 = vor.u32 %v5292_v10, %v4222_v11  ;;  %v4006_v19 = vld [vmem:[#allocation2 + $0xb0] sm:$0xf0] }
  0x64   : > { %1129 = vmatmul.bf16.vlgmr.msra.gmra.mxu0 %v6277_v44  ;;  %v4220_v20 = vld [vmem:[#allocation2 + $0x248] sm:$0xf]  ;;  %v5295_v21 = vld [vmem:[#allocation2 + $0x25c] sm:$0xf0]  ;;  %v5286_v22 = vld [vmem:[#allocation2 + $0x21c] sm:$0xf]  ;;  %v4029_v24 = vor.u32 %v5247_v17, %v4028_v16  ;;  %v4009_v25 = vor.u32 %v5238_v15, %v4006_v19 }
  0x65   : > { %1143 = vmatmul.bf16.vlgmr.msra.gmra.mxu1 %v6279_v49  ;;  %1157 = vmatmul.bf16.vlgmr.msra.gmra.mxu2 %v6277_v44  ;;  %v4198_v23 = vld [vmem:[#allocation2 + $0x230] sm:$0xf0]  ;;  %v4221_v26 = vor.u32 %v5295_v21, %v4220_v20  ;;  %v5232_v27 = vld [vmem:[#allocation2 + $0x6c] sm:$0xf]  ;;  %v4004_v28 = vld [vmem:[#allocation2 + $0x98] sm:$0xf] }
  0x66   : > { %1205 = vmatpush.bf16.msrb.mxu2 %v4105_v40  ;;  %1171 = vmatmul.bf16.vlgmr.msra.gmra.mxu3 %v6279_v49  ;;  %v5241_v29 = vld [vmem:[#allocation2 + $0xac] sm:$0xf0]  ;;  %v4201_v30 = vor.u32 %v5286_v22, %v4198_v23  ;;  %v3982_v31 = vld [vmem:[#allocation2 + $0x80] sm:$0xf0]  ;;  %v4196_v32 = vld [vmem:[#allocation2 + $0x218] sm:$0xf] }
  0x67   : > { %1219 = vmatpush.bf16.msrb.mxu3 %v4297_v45  ;;  %1177 = vmatpush.bf16.msrb.mxu0 %v4101_v52  ;;  %v5289_v33 = vld [vmem:[#allocation2 + $0x22c] sm:$0xf0]  ;;  %v5280_v34 = vld [vmem:[#allocation2 + $0x1ec] sm:$0xf]  ;;  %v4174_v35 = vld [vmem:[#allocation2 + $0x200] sm:$0xf0]  ;;  %v4005_v36 = vor.u32 %v5241_v29, %v4004_v28  ;;  %v3985_v37 = vor.u32 %v5232_v27, %v3982_v31 }
  0x68   : > { %1191 = vmatpush.bf16.msrb.mxu1 %v4293_v54  ;;  %v4197_v38 = vor.u32 %v5289_v33, %v4196_v32  ;;  %v5226_v39 = vld [vmem:[#allocation2 + $0x3c] sm:$0xf]  ;;  %v3980_v40 = vld [vmem:[#allocation2 + $0x68] sm:$0xf]  ;;  %v5235_v41 = vld [vmem:[#allocation2 + $0x7c] sm:$0xf0]  ;;  %v4177_v42 = vor.u32 %v5280_v34, %v4174_v35 }
  0x69   : > { %v3958_v43 = vld [vmem:[#allocation2 + $0x50] sm:$0xf0]  ;;  %v4172_v45 = vld [vmem:[#allocation2 + $0x1e8] sm:$0xf]  ;;  %v5283_v46 = vld [vmem:[#allocation2 + $0x1fc] sm:$0xf0]  ;;  %v3981_v50 = vor.u32 %v5235_v41, %v3980_v40 }
  0x6a   : > { %1206 = vmatpush.bf16.msrb.mxu2 %v4081_v53  ;;  %v5274_v47 = vld [vmem:[#allocation2 + $0x1bc] sm:$0xf]  ;;  %v4150_v48 = vld [vmem:[#allocation2 + $0x1d0] sm:$0xf0]  ;;  %v3961_v51 = vor.u32 %v5226_v39, %v3958_v43  ;;  %v4173_v52 = vor.u32 %v5283_v46, %v4172_v45  ;;  %v5220_v53 = vld [vmem:[#allocation2 + $0xc] sm:$0xf] }
  0x6b   : > { %1220 = vmatpush.bf16.msrb.mxu3 %v4273_v58  ;;  %1178 = vmatpush.bf16.msrb.mxu0 %v4077_v0  ;;  %v3956_v54 = vld [vmem:[#allocation2 + $0x38] sm:$0xf]  ;;  %v5229_v55 = vld [vmem:[#allocation2 + $0x4c] sm:$0xf0]  ;;  %v4153_v56 = vor.u32 %v5274_v47, %v4150_v48  ;;  %v3934_v57 = vld [vmem:[#allocation2 + $0x20] sm:$0xf0] }
  0x6c   : > { %1192 = vmatpush.bf16.msrb.mxu1 %v4269_v2  ;;  %v4148_v58 = vld [vmem:[#allocation2 + $0x1b8] sm:$0xf]  ;;  %v5277_v59 = vld [vmem:[#allocation2 + $0x1cc] sm:$0xf0]  ;;  %v5268_v60 = vld [vmem:[#allocation2 + $0x18c] sm:$0xf]  ;;  %v3957_v62 = vor.u32 %v5229_v55, %v3956_v54  ;;  %v3937_v63 = vor.u32 %v5220_v53, %v3934_v57 }
  0x6d   : > { %v4126_v61 = vld [vmem:[#allocation2 + $0x1a0] sm:$0xf0]  ;;  %v4149_v0 = vor.u32 %v5277_v59, %v4148_v58  ;;  %v5223_v2 = vld [vmem:[#allocation2 + $0x1c] sm:$0xf0]  ;;  %v4124_v4 = vld [vmem:[#allocation2 + $0x188] sm:$0xf] }
  0x6e   : > { %1207 = vmatpush.bf16.msrb.mxu2 %v4057_v1  ;;  %v3932_v1 = vld [vmem:[#allocation2 + $0x8] sm:$0xf]  ;;  %v4129_v3 = vor.u32 %v5268_v60, %v4126_v61  ;;  %v5271_v5 = vld [vmem:[#allocation2 + $0x19c] sm:$0xf0]  ;;  %v5314_v16 = vld [vmem:[#allocation2 + $0x2f4] sm:$0xf0] }
  0x6f   : > { %1221 = vmatpush.bf16.msrb.mxu3 %v4249_v6  ;;  %1179 = vmatpush.bf16.msrb.mxu0 %v4053_v12  ;;  %v3933_v6 = vor.u32 %v5223_v2, %v3932_v1  ;;  %v4125_v7 = vor.u32 %v5271_v5, %v4124_v4  ;;  %v6289_v8 = vld [vmem:[#allocation5] sm:$0x3f]  ;;  %v4302_v22 = vld [vmem:[#allocation2 + $0x2f8] sm:$0xf0]  ;;  %v4084_v23 = vld [vmem:[#allocation2 + $0x130] sm:$0xf] }
  0x70   : > { %1193 = vmatpush.bf16.msrb.mxu1 %v4245_v14  ;;  %v619_v10 = vperm.slane %v6289_v8, 0  ;;  %v620_v11 = vperm.slane %v6289_v8, 1  ;;  %v4108_v12 = vld [vmem:[#allocation2 + $0x160] sm:$0xf]  ;;  %v5263_v17 = vld [vmem:[#allocation2 + $0x164] sm:$0xf] }
  0x71   : > { %v4300_v14 = vld [vmem:[#allocation2 + $0x2e0] sm:$0xf]  ;;  %v5311_v21 = vld [vmem:[#allocation2 + $0x2e4] sm:$0xf]  ;;  %v5308_v27 = vld [vmem:[#allocation2 + $0x2c4] sm:$0xf0] }
  0x72   : > { %1208 = vmatpush.bf16.msrb.mxu2 %v4033_v13  ;;  %v5266_v13 = vld [vmem:[#allocation2 + $0x174] sm:$0xf0]  ;;  %v4301_v19 = vor.u32 %v5314_v16, %v4300_v14  ;;  %v5257_v31 = vld [vmem:[#allocation2 + $0x134] sm:$0xf]  ;;  %v4086_v32 = vld [vmem:[#allocation2 + $0x148] sm:$0xf0] }
  0x73   : > { %1222 = vmatpush.bf16.msrb.mxu3 %v4225_v18  ;;  %1180 = vmatpush.bf16.msrb.mxu0 %v4029_v24  ;;  %v4109_v15 = vor.u32 %v5266_v13, %v4108_v12  ;;  %v4110_v18 = vld [vmem:[#allocation2 + $0x178] sm:$0xf0]  ;;  %v4305_v24 = vor.u32 %v5311_v21, %v4302_v22  ;;  %v5305_v33 = vld [vmem:[#allocation2 + $0x2b4] sm:$0xf]  ;;  %v4089_v35 = vor.u32 %v5257_v31, %v4086_v32  ;;  %v4252_v41 = vld [vmem:[#allocation2 + $0x280] sm:$0xf] }
  0x74   : > { %1194 = vmatpush.bf16.msrb.mxu1 %v4221_v26  ;;  %v4113_v20 = vor.u32 %v5263_v17, %v4110_v18  ;;  %v4276_v26 = vld [vmem:[#allocation2 + $0x2b0] sm:$0xf]  ;;  %v5251_v43 = vld [vmem:[#allocation2 + $0x104] sm:$0xf]  ;;  %v4062_v48 = vld [vmem:[#allocation2 + $0x118] sm:$0xf0] }
  0x75   : > { %v4065_v54 = vor.u32 %v5251_v43, %v4062_v48  ;;  %v4036_v55 = vld [vmem:[#allocation2 + $0xd0] sm:$0xf]  ;;  %v5296_v59 = vld [vmem:[#allocation2 + $0x264] sm:$0xf0]  ;;  %v5245_v60 = vld [vmem:[#allocation2 + $0xd4] sm:$0xf] }
  0x76   : > { %1209 = vmatpush.bf16.msrb.mxu2 %v4009_v25  ;;  %v5260_v25 = vld [vmem:[#allocation2 + $0x144] sm:$0xf0]  ;;  %v4228_v57 = vld [vmem:[#allocation2 + $0x250] sm:$0xf]  ;;  %v4038_v61 = vld [vmem:[#allocation2 + $0xe8] sm:$0xf0] }
  0x77   : > { %1223 = vmatpush.bf16.msrb.mxu3 %v4201_v30  ;;  %1181 = vmatpush.bf16.msrb.mxu0 %v4005_v36  ;;  %v4085_v29 = vor.u32 %v5260_v25, %v4084_v23  ;;  %v4277_v30 = vor.u32 %v5308_v27, %v4276_v26  ;;  %v4278_v36 = vld [vmem:[#allocation2 + $0x2c8] sm:$0xf0]  ;;  %v4229_v4 = vor.u32 %v5296_v59, %v4228_v57  ;;  %v5290_v14 = vld [vmem:[#allocation2 + $0x234] sm:$0xf0]  ;;  %v4014_v16 = vld [vmem:[#allocation2 + $0xb8] sm:$0xf0] }
  0x78   : > { %1195 = vmatpush.bf16.msrb.mxu1 %v4197_v38  ;;  %v5254_v38 = vld [vmem:[#allocation2 + $0x114] sm:$0xf0]  ;;  %v4281_v40 = vor.u32 %v5305_v33, %v4278_v36  ;;  %v4041_v5 = vor.u32 %v5245_v60, %v4038_v61  ;;  %v3988_v27 = vld [vmem:[#allocation2 + $0x70] sm:$0xf]  ;;  %v5284_v31 = vld [vmem:[#allocation2 + $0x204] sm:$0xf0] }
  0x79   : > { %v3990_v33 = vld [vmem:[#allocation2 + $0x88] sm:$0xf0]  ;;  %v4132_v59 = vld [vmem:[#allocation2 + $0x190] sm:$0xf]  ;;  %v5272_v60 = vld [vmem:[#allocation2 + $0x1a4] sm:$0xf0] }
  0x7a   : > { %1210 = vmatpush.bf16.msrb.mxu2 %v3985_v37  ;;  %v4060_v37 = vld [vmem:[#allocation2 + $0x100] sm:$0xf]  ;;  %v5221_v61 = vld [vmem:[#allocation2 + $0x14] sm:$0xf]  ;;  %s6070_s14 = smov 16   ;;  %s6071_s16 = smov 32  }
  0x7b   : > { %1224 = vmatpush.bf16.msrb.mxu3 %v4177_v42  ;;  %1182 = vmatpush.bf16.msrb.mxu0 %v3981_v50  ;;  %v5302_v42 = vld [vmem:[#allocation2 + $0x294] sm:$0xf0]  ;;  %v4061_v47 = vor.u32 %v5254_v38, %v4060_v37  ;;  %v5299_v50 = vld [vmem:[#allocation2 + $0x284] sm:$0xf]  ;;  %s6072_s28 = smov 48   ;;  %vm2032_vm1 = vcmask 130048  }
  0x7c   : > { %1196 = vmatpush.bf16.msrb.mxu1 %v4173_v52  ;;  %v4253_v53 = vor.u32 %v5302_v42, %v4252_v41  ;;  %v5230_v41 = vld [vmem:[#allocation2 + $0x54] sm:$0xf0]  ;;  %vm2038_vm2 = vcmask 392192   ;;  %vm2035_vm3 = vcmask 261120   ;;  %s6073_s4 = smov 80   ;;  %s507_s30 = sand.u32 1, %s6039_s18  }
  0x7d   : > { %s3910_s1 = sshll.u32 %s507_s30, 4  ;;  %s5540_s3 = sshll.u32 %s6158_s21, 4 }
  0x7e   : > { %1211 = vmatpush.bf16.msrb.mxu2 %v3961_v51  ;;  %v4254_v51 = vld [vmem:[#allocation2 + $0x298] sm:$0xf0]  ;;  %s3745_s19 = scalar_lea.hbm %s6576_s11, %s5540_s3  ;;  %s509_s15 = scalar_lea.vmem [#allocation16], %s3910_s1 }
  0x7f   : > { %1225 = vmatpush.bf16.msrb.mxu3 %v4153_v56  ;;  %1183 = vmatpush.bf16.msrb.mxu0 %v3957_v62  ;;  %v5248_v56 = vld [vmem:[#allocation2 + $0xe4] sm:$0xf0]  ;;  %v4257_v58 = vor.u32 %v5299_v50, %v4254_v51  ;;  %v5293_v62 = vld [vmem:[#allocation2 + $0x254] sm:$0xf]  ;;  %v3966_v50 = vld [vmem:[#allocation2 + $0x58] sm:$0xf0] }
  0x80   : > { %1197 = vmatpush.bf16.msrb.mxu1 %v4149_v0  ;;  %v5275_v51 = vld [vmem:[#allocation2 + $0x1c4] sm:$0xf]  ;;  %s3733_s21 = scalar_lea.sflag [#allocation4], %s507_s30 }
  0x82   : > { %1212 = vmatpush.bf16.msrb.mxu2 %v3937_v63  ;;  %v4230_v63 = vld [vmem:[#allocation2 + $0x268] sm:$0xf0] }
  0x83   : > { %1226 = vmatpush.bf16.msrb.mxu3 %v4129_v3  ;;  %1184 = vmatpush.bf16.msrb.mxu0 %v3933_v6  ;;  %v4037_v3 = vor.u32 %v5248_v56, %v4036_v55  ;;  %v4012_v6 = vld [vmem:[#allocation2 + $0xa0] sm:$0xf]  ;;  %v4233_v13 = vor.u32 %v5293_v62, %v4230_v63  ;;  %v3940_v55 = vld [vmem:[#allocation2 + $0x10] sm:$0xf]  ;;  %v5224_v56 = vld [vmem:[#allocation2 + $0x24] sm:$0xf0] }
  0x84   : > { %1198 = vmatpush.bf16.msrb.mxu1 %v4125_v7  ;;  %v5242_v7 = vld [vmem:[#allocation2 + $0xb4] sm:$0xf0]  ;;  %v3942_v63 = vld [vmem:[#allocation2 + $0x28] sm:$0xf0] }
  0x85   : > { %1213 = vmatmul.bf16.vlgmr.msrb.gmra.mxu2 %v6277_v44  ;;  %v4013_v23 = vor.u32 %v5242_v7, %v4012_v6 }
  0x86   : > { %1227 = vmatmul.bf16.vlgmr.msrb.gmra.mxu3 %v6279_v49  ;;  %1185 = vmatmul.bf16.vlgmr.msrb.gmra.mxu0 %v6277_v44 }
  0x87   : > { %1199 = vmatmul.bf16.vlgmr.msrb.gmra.mxu1 %v6279_v49  ;;  %1233 = vmatpush.bf16.msra.mxu0 %v4109_v15  ;;  %v5239_v15 = vld [vmem:[#allocation2 + $0xa4] sm:$0xf] }
  0x88   : > { %1247 = vmatpush.bf16.msra.mxu1 %v4301_v19  ;;  %1261 = vmatpush.bf16.msra.mxu2 %v4113_v20  ;;  %v4206_v19 = vld [vmem:[#allocation2 + $0x238] sm:$0xf0]  ;;  %v4017_v26 = vor.u32 %v5239_v15, %v4014_v16 }
  0x89   : > { %1275 = vmatpush.bf16.msra.mxu3 %v4305_v24  ;;  %v5321_v15 = vld [vmem:[#allocation7 + $0x30] sm:$0xff] }
  0x8a   : > { %v5329_v16 = vld [vmem:[#allocation7 + $0x70] sm:$0xff] }
  0x8b   : > { %1234 = vmatpush.bf16.msra.mxu0 %v4085_v29 }
  0x8c   : > { %1248 = vmatpush.bf16.msra.mxu1 %v4277_v30  ;;  %1262 = vmatpush.bf16.msra.mxu2 %v4089_v35  ;;  %v4180_v30 = vld [vmem:[#allocation2 + $0x1f0] sm:$0xf]  ;;  %v4182_v35 = vld [vmem:[#allocation2 + $0x208] sm:$0xf0] }
  0x8d   : > { %1276 = vmatpush.bf16.msra.mxu3 %v4281_v40  ;;  %v3964_v40 = vld [vmem:[#allocation2 + $0x40] sm:$0xf] }
  0x8f   : > { %1235 = vmatpush.bf16.msra.mxu0 %v4061_v47  ;;  %v5227_v47 = vld [vmem:[#allocation2 + $0x44] sm:$0xf] }
  0x90   : > { %1249 = vmatpush.bf16.msra.mxu1 %v4253_v53  ;;  %1263 = vmatpush.bf16.msra.mxu2 %v4065_v54  ;;  %v3965_v53 = vor.u32 %v5230_v41, %v3964_v40  ;;  %v3969_v57 = vor.u32 %v5227_v47, %v3966_v50  ;;  %v5362_v40 = vld [vmem:[#allocation7 + $0x178] sm:$0xff]  ;;  %v5377_v47 = vld [vmem:[#allocation7 + $0x1f0] sm:$0xff] }
  0x91   : > { %1277 = vmatpush.bf16.msra.mxu3 %v4257_v58  ;;  %v5370_v41 = vld [vmem:[#allocation7 + $0x1b8] sm:$0xff] }
  0x93   : > { %1236 = vmatpush.bf16.msra.mxu0 %v4037_v3 }
  0x94   : > { %1250 = vmatpush.bf16.msra.mxu1 %v4229_v4  ;;  %1264 = vmatpush.bf16.msra.mxu2 %v4041_v5  ;;  %v4133_v4 = vor.u32 %v5272_v60, %v4132_v59  ;;  %v3945_v5 = vor.u32 %v5221_v61, %v3942_v63  ;;  %v5359_v59 = vld [vmem:[#allocation7 + $0x160] sm:$0xff]  ;;  %v622_v63 = vperm.slane %v6289_v8, 3 }
  0x95   : > { %1278 = vmatpush.bf16.msra.mxu3 %v4233_v13  ;;  %v5338_v13 = vld [vmem:[#allocation7 + $0xb8] sm:$0xff]  ;;  %v5367_v60 = vld [vmem:[#allocation7 + $0x1a0] sm:$0xff] }
  0x96   : > { %v5375_v61 = vld [vmem:[#allocation7 + $0x1e0] sm:$0xff] }
  0x97   : > { %1237 = vmatpush.bf16.msra.mxu0 %v4013_v23  ;;  %v5327_v23 = vld [vmem:[#allocation7 + $0x60] sm:$0xff] }
  0x98   : > { %1265 = vmatpush.bf16.msra.mxu2 %v4017_v26  ;;  %v5334_v26 = vld [vmem:[#allocation7 + $0x98] sm:$0xff] }
  0xe1   : > { %v1130_v9 = vpop.f32.mrf.mxu0 }
  0xe2   : > { %v1144_v28 = vpop.f32.mrf.mxu1  ;;  %v1131_v45 = vadd.f32 %v1130_v9, %v619_v10  ;;  %v4204_v9 = vld [vmem:[#allocation2 + $0x220] sm:$0xf] }
  0xe3   : > { %v4205_v25 = vor.u32 %v5290_v14, %v4204_v9  ;;  %v5322_v9 = vld [vmem:[#allocation7 + $0x38] sm:$0xff] }
  0xe4   : > { %v1145_v0 = vadd.f32 %v1144_v28, %v1131_v45  ;;  %v5236_v28 = vld [vmem:[#allocation2 + $0x84] sm:$0xf0]  ;;  %v4156_v45 = vld [vmem:[#allocation2 + $0x1c0] sm:$0xf] }
  0xe5   : > { %v3989_v36 = vor.u32 %v5236_v28, %v3988_v27  ;;  %1251 = vmatpush.bf16.msra.mxu1 %v4205_v25  ;;  %v5346_v14 = vld [vmem:[#allocation7 + $0xf8] sm:$0xff]  ;;  %v5343_v25 = vld [vmem:[#allocation7 + $0xe0] sm:$0xff]  ;;  %v5317_v28 = vld [vmem:[#allocation7 + $0x10] sm:$0xff] }
  0xe6   : > { %v5342_v27 = vld [vmem:[#allocation7 + $0xd8] sm:$0xff] }
  0xe7   : > { %1238 = vmatpush.bf16.msra.mxu0 %v3989_v36  ;;  %v5323_v36 = vld [vmem:[#allocation7 + $0x40] sm:$0xff] }
  0xe8   : > { %v1158_v34 = vpop.f32.mrf.mxu2 }
  0xe9   : > { %v1172_v39 = vpop.f32.mrf.mxu3  ;;  %v1159_v46 = vadd.f32 %v1158_v34, %v620_v11  ;;  %v1132_v52 = vpop.f32.mrf.mxu0  ;;  %v5281_v34 = vld [vmem:[#allocation2 + $0x1f4] sm:$0xf] }
  0xea   : > { %v1133_v2 = vadd.f32 %v1132_v52, %v619_v10  ;;  %v1146_v17 = vpop.f32.mrf.mxu1  ;;  %v5287_v10 = vld [vmem:[#allocation2 + $0x224] sm:$0xf]  ;;  %v4185_v43 = vor.u32 %v5281_v34, %v4182_v35  ;;  %v4158_v52 = vld [vmem:[#allocation2 + $0x1d8] sm:$0xf0]  ;;  %v5340_v34 = vld [vmem:[#allocation7 + $0xc8] sm:$0xff] }
  0xeb   : > { %v1173_v1 = vadd.f32 %v1172_v39, %v1159_v46  ;;  %v4209_v29 = vor.u32 %v5287_v10, %v4206_v19  ;;  %v4181_v39 = vor.u32 %v5284_v31, %v4180_v30  ;;  %v5278_v46 = vld [vmem:[#allocation2 + $0x1d4] sm:$0xf0]  ;;  %v4161_v58 = vor.u32 %v5275_v51, %v4158_v52  ;;  %1239 = vmatpush.bf16.msra.mxu0 %v3965_v53  ;;  %v5320_v10 = vld [vmem:[#allocation7 + $0x28] sm:$0xff]  ;;  %v5315_v35 = vld [vmem:[#allocation7] sm:$0xff] }
  0xec   : > { %v1147_v21 = vadd.f32 %v1146_v17, %v1133_v2  ;;  %v4157_v54 = vor.u32 %v5278_v46, %v4156_v45  ;;  %v3941_v2 = vor.u32 %v5224_v56, %v3940_v55  ;;  %v5337_v17 = vld [vmem:[#allocation7 + $0xb0] sm:$0xff]  ;;  %v5328_v19 = vld [vmem:[#allocation7 + $0x68] sm:$0xff] }
  0xed   : > { %v6297_v20 = vpack.c.bf16 %v1173_v1, %v1145_v0  ;;  %1279 = vmatpush.bf16.msra.mxu3 %v4209_v29  ;;  %1252 = vmatpush.bf16.msra.mxu1 %v4181_v39  ;;  %v5269_v0 = vld [vmem:[#allocation2 + $0x194] sm:$0xf]  ;;  %v4134_v1 = vld [vmem:[#allocation2 + $0x1a8] sm:$0xf0]  ;;  %v5354_v39 = vld [vmem:[#allocation7 + $0x138] sm:$0xff] }
  0xee   : > { %v4137_v6 = vor.u32 %v5269_v0, %v4134_v1  ;;  %v5325_v29 = vld [vmem:[#allocation7 + $0x50] sm:$0xff]  ;;  %v5352_v52 = vld [vmem:[#allocation7 + $0x128] sm:$0xff]  ;;  %v5350_v0 = vld [vmem:[#allocation7 + $0x118] sm:$0xff] }
  0xef   : > { %v1297_v37 = vunpack.c.l.b16 %v6297_v20  ;;  %v1302_v3 = vunpack.c.h.b16 %v6297_v20  ;;  %1240 = vmatpush.bf16.msra.mxu0 %v3941_v2  ;;  %v5336_v20 = vld [vmem:[#allocation7 + $0xa8] sm:$0xff]  ;;  %v5333_v30 = vld [vmem:[#allocation7 + $0x90] sm:$0xff]  ;;  %v5358_v1 = vld [vmem:[#allocation7 + $0x158] sm:$0xff] }
  0xf0   : > { %v1160_v12 = vpop.f32.mrf.mxu2  ;;  %v5341_v31 = vld [vmem:[#allocation7 + $0xd0] sm:$0xff]  ;;  %v5360_v53 = vld [vmem:[#allocation7 + $0x168] sm:$0xff]  ;;  %v5366_v2 = vld [vmem:[#allocation7 + $0x198] sm:$0xff] }
  0xf1   : > { %v1161_v18 = vadd.f32 %v1160_v12, %v620_v11  ;;  %v1174_v22 = vpop.f32.mrf.mxu3  ;;  %v5233_v11 = vld [vmem:[#allocation2 + $0x74] sm:$0xf]  ;;  %1280 = vmatpush.bf16.msra.mxu3 %v4185_v43  ;;  %1253 = vmatpush.bf16.msra.mxu1 %v4157_v54  ;;  %v5330_v12 = vld [vmem:[#allocation7 + $0x78] sm:$0xff] }
  0xf2   : > { %v3993_v42 = vor.u32 %v5233_v11, %v3990_v33  ;;  %1241 = vmatmul.bf16.vlgmr.msra.gmra.mxu0 %v6277_v44  ;;  %v5316_v11 = vld [vmem:[#allocation7 + $0x8] sm:$0xff]  ;;  %v5353_v43 = vld [vmem:[#allocation7 + $0x130] sm:$0xff] }
  0xf3   : > { %v1175_v24 = vadd.f32 %v1174_v22, %v1161_v18  ;;  %1878 = vmatpush.bf16.msrb.mxu0 %v5322_v9  ;;  %v5345_v18 = vld [vmem:[#allocation7 + $0xf0] sm:$0xff]  ;;  %v5319_v22 = vld [vmem:[#allocation7 + $0x20] sm:$0xff]  ;;  %v5332_v33 = vld [vmem:[#allocation7 + $0x88] sm:$0xff] }
  0xf4   : > { %1266 = vmatpush.bf16.msra.mxu2 %v3993_v42  ;;  %v5378_v42 = vld [vmem:[#allocation7 + $0x1f8] sm:$0xff]  ;;  %v5361_v45 = vld [vmem:[#allocation7 + $0x170] sm:$0xff]  ;;  %v5368_v54 = vld [vmem:[#allocation7 + $0x1a8] sm:$0xff] }
  0xf5   : > { %v1290_v32 = vpack.c.bf16 %v1175_v24, %v1147_v21  ;;  %1281 = vmatpush.bf16.msra.mxu3 %v4161_v58  ;;  %1254 = vmatpush.bf16.msra.mxu1 %v4133_v4  ;;  %v5344_v21 = vld [vmem:[#allocation7 + $0xe8] sm:$0xff]  ;;  %v5335_v24 = vld [vmem:[#allocation7 + $0xa0] sm:$0xff]  ;;  %v5369_v46 = vld [vmem:[#allocation7 + $0x1b0] sm:$0xff] }
  0xf6   : > { %v5376_v55 = vld [vmem:[#allocation7 + $0x1e8] sm:$0xff]  ;;  %v5351_v58 = vld [vmem:[#allocation7 + $0x120] sm:$0xff] }
  0xf7   : > { %v1298_v38 = vunpack.c.l.b16 %v1290_v32  ;;  %v1303_v62 = vunpack.c.h.b16 %v1290_v32  ;;  %1879 = vmatpush.bf16.msrb.mxu0 %v5321_v15  ;;  %v5324_v32 = vld [vmem:[#allocation7 + $0x48] sm:$0xff]  ;;  %v5357_v15 = vld [vmem:[#allocation7 + $0x150] sm:$0xff] }
  0xf8   : > { %1267 = vmatpush.bf16.msra.mxu2 %v3969_v57  ;;  %1255 = vmatmul.bf16.vlgmr.msra.gmra.mxu1 %v6279_v49 }
  0xf9   : > { %v6300_v48 = vpack.c.b16 %v1298_v38, %v1297_v37  ;;  %v6305_v7 = vpack.c.b16 %v1303_v62, %v1302_v3  ;;  %1282 = vmatpush.bf16.msra.mxu3 %v4137_v6  ;;  %1892 = vmatpush.bf16.msrb.mxu1 %v5330_v12  ;;  %v5331_v37 = vld [vmem:[#allocation7 + $0x80] sm:$0xff]  ;;  %v621_v62 = vperm.slane %v6289_v8, 2 }
  0xfa   : > { %v5339_v38 = vld [vmem:[#allocation7 + $0xc0] sm:$0xff] }
  0xfb   : > { %1300 = vrot.lane.b32.xlu0 %v6300_v48, %s6067_s2  ;;  %1880 = vmatpush.bf16.msrb.mxu0 %v5320_v10  ;;  %v5373_v10 = vld [vmem:[#allocation7 + $0x1d0] sm:$0xff] }
  0xfc   : > { %1268 = vmatpush.bf16.msra.mxu2 %v3945_v5  ;;  %1283 = vmatmul.bf16.vlgmr.msra.gmra.mxu3 %v6279_v49  ;;  %v5326_v49 = vld [vmem:[#allocation7 + $0x58] sm:$0xff] }
  0xfd   : > { %1920 = vmatpush.bf16.msrb.mxu3 %v5346_v14  ;;  %1893 = vmatpush.bf16.msrb.mxu1 %v5329_v16  ;;  %v5374_v5 = vld [vmem:[#allocation7 + $0x1d8] sm:$0xff]  ;;  %v5349_v14 = vld [vmem:[#allocation7 + $0x110] sm:$0xff] }
  0xfe   : > { %v5365_v16 = vld [vmem:[#allocation7 + $0x190] sm:$0xff] }
  0xff   : > { %1269 = vmatmul.bf16.vlgmr.msra.gmra.mxu2 %v6277_v44  ;;  %1881 = vmatpush.bf16.msrb.mxu0 %v5319_v22  ;;  %v5318_v44 = vld [vmem:[#allocation7 + $0x18] sm:$0xff]  ;;  %v5372_v22 = vld [vmem:[#allocation7 + $0x1c8] sm:$0xff] }
 0x100   : > { %1906 = vmatpush.bf16.msrb.mxu2 %v5338_v13 }
 0x101   : > { %1921 = vmatpush.bf16.msrb.mxu3 %v5345_v18  ;;  %1894 = vmatpush.bf16.msrb.mxu1 %v5328_v19  ;;  %v5348_v19 = vld [vmem:[#allocation7 + $0x108] sm:$0xff] }
 0x103   : > { %1305 = vrot.lane.b32.xlu0 %v6305_v7, %s6067_s2  ;;  %1882 = vmatpush.bf16.msrb.mxu0 %v5318_v44  ;;  %v1186_v50 = vpop.f32.mrf.mxu0 }
 0x104   : > { %1907 = vmatpush.bf16.msrb.mxu2 %v5337_v17  ;;  %v1200_v56 = vpop.f32.mrf.mxu1  ;;  %v1187_v6 = vadd.f32 %v1186_v50, %v621_v62 }
 0x105   : > { %1922 = vmatpush.bf16.msrb.mxu3 %v5344_v21  ;;  %1895 = vmatpush.bf16.msrb.mxu1 %v5327_v23  ;;  %v5364_v21 = vld [vmem:[#allocation7 + $0x188] sm:$0xff] }
 0x106   : > { %v1201_v23 = vadd.f32 %v1200_v56, %v1187_v6 }
 0x107   : > { %1883 = vmatpush.bf16.msrb.mxu0 %v5317_v28  ;;  %v5371_v28 = vld [vmem:[#allocation7 + $0x1c0] sm:$0xff] }
 0x108   : > { %1908 = vmatpush.bf16.msrb.mxu2 %v5336_v20  ;;  %v1214_v51 = vpop.f32.mrf.mxu2  ;;  %v5356_v20 = vld [vmem:[#allocation7 + $0x148] sm:$0xff] }
 0x109   : > { %1923 = vmatpush.bf16.msrb.mxu3 %v5343_v25  ;;  %1896 = vmatpush.bf16.msrb.mxu1 %v5326_v49  ;;  %v1228_v57 = vpop.f32.mrf.mxu3  ;;  %v1215_v9 = vadd.f32 %v1214_v51, %v622_v63  ;;  %v5347_v49 = vld [vmem:[#allocation7 + $0x100] sm:$0xff] }
 0x10b   : > { %1884 = vmatpush.bf16.msrb.mxu0 %v5316_v11  ;;  %v1188_v3 = vpop.f32.mrf.mxu0 }
 0x10c   : > { %1909 = vmatpush.bf16.msrb.mxu2 %v5335_v24  ;;  %v1189_v12 = vadd.f32 %v1188_v3, %v621_v62  ;;  %v1202_v17 = vpop.f32.mrf.mxu1  ;;  %v1229_v24 = vadd.f32 %v1228_v57, %v1215_v9 }
 0x10d   : > { %1924 = vmatpush.bf16.msrb.mxu3 %v5342_v27  ;;  %1897 = vmatpush.bf16.msrb.mxu1 %v5325_v29  ;;  %v5363_v27 = vld [vmem:[#allocation7 + $0x180] sm:$0xff] }
 0x10e   : > { %v1203_v25 = vadd.f32 %v1202_v17, %v1189_v12  ;;  %v1291_v29 = vpack.c.bf16 %v1229_v24, %v1201_v23 }
 0x10f   : > { %1885 = vmatpush.bf16.msrb.mxu0 %v5315_v35 }
 0x110   : > { %1910 = vmatpush.bf16.msrb.mxu2 %v5334_v26  ;;  %v1216_v4 = vpop.f32.mrf.mxu2  ;;  %v5355_v26 = vld [vmem:[#allocation7 + $0x140] sm:$0xff]  ;;  %v1323_v11 = vunpack.c.h.b16 %v1291_v29 }
 0x111   : > { %1925 = vmatpush.bf16.msrb.mxu3 %v5341_v31  ;;  %1898 = vmatpush.bf16.msrb.mxu1 %v5324_v32  ;;  %v1217_v13 = vadd.f32 %v1216_v4, %v622_v63  ;;  %v1230_v18 = vpop.f32.mrf.mxu3  ;;  %v1322_v31 = vunpack.c.l.b16 %v1291_v29 }
 0x113   : > { %1934 = vmatpush.bf16.msra.mxu0 %v5354_v39  ;;  %v1231_v44 = vadd.f32 %v1230_v18, %v1217_v13 }
 0x114   : > { %1911 = vmatpush.bf16.msrb.mxu2 %v5333_v30 }
 0x115   : > { %1926 = vmatpush.bf16.msrb.mxu3 %v5340_v34  ;;  %1899 = vmatpush.bf16.msrb.mxu1 %v5323_v36  ;;  %v1292_v30 = vpack.c.bf16 %v1231_v44, %v1203_v25 }
 0x117   : > { %1935 = vmatpush.bf16.msra.mxu0 %v5353_v43  ;;  %v1324_v32 = vunpack.c.l.b16 %v1292_v30 }
 0x118   : > { %1912 = vmatpush.bf16.msrb.mxu2 %v5332_v33  ;;  %v1325_v33 = vunpack.c.h.b16 %v1292_v30 }
 0x119   : > { %1927 = vmatpush.bf16.msrb.mxu3 %v5339_v38  ;;  %1948 = vmatpush.bf16.msra.mxu1 %v5362_v40  ;;  %v1326_v34 = vpack.c.b16 %v1324_v32, %v1322_v31 }
 0x11a   : > { %v1327_v35 = vpack.c.b16 %v1325_v33, %v1323_v11 }
 0x11b   : > { %1936 = vmatpush.bf16.msra.mxu0 %v5352_v52 }
 0x11c   : > { %1913 = vmatpush.bf16.msrb.mxu2 %v5331_v37  ;;  %v1338_v37 = vunpack.c.l.bf16 %v1326_v34  ;;  %v1339_v38 = vunpack.c.l.bf16 %v1327_v35 }
 0x11d   : > { %1976 = vmatpush.bf16.msra.mxu3 %v5378_v42  ;;  %1949 = vmatpush.bf16.msra.mxu1 %v5361_v45 }
 0x11f   : > { %1937 = vmatpush.bf16.msra.mxu0 %v5351_v58 }
 0x120   : > { %1962 = vmatpush.bf16.msra.mxu2 %v5370_v41 }
 0x121   : > { %1977 = vmatpush.bf16.msra.mxu3 %v5377_v47  ;;  %1950 = vmatpush.bf16.msra.mxu1 %v5360_v53  ;;  %v1341_v47 = vunpack.c.h.bf16 %v1327_v35 }
 0x123   : > { %1938 = vmatpush.bf16.msra.mxu0 %v5350_v0 }
 0x124   : > { %1963 = vmatpush.bf16.msra.mxu2 %v5369_v46  ;;  %v1340_v46 = vunpack.c.h.bf16 %v1326_v34 }
 0x125   : > { %1978 = vmatpush.bf16.msra.mxu3 %v5376_v55  ;;  %1951 = vmatpush.bf16.msra.mxu1 %v5359_v59 }
 0x127   : > { %1939 = vmatpush.bf16.msra.mxu0 %v5349_v14 }
 0x128   : > { %1964 = vmatpush.bf16.msra.mxu2 %v5368_v54 }
 0x129   : > { %1979 = vmatpush.bf16.msra.mxu3 %v5375_v61  ;;  %1952 = vmatpush.bf16.msra.mxu1 %v5358_v1 }
 0x12b   : > { %1940 = vmatpush.bf16.msra.mxu0 %v5348_v19 }
 0x12c   : > { %1965 = vmatpush.bf16.msra.mxu2 %v5367_v60 }
 0x12d   : > { %1980 = vmatpush.bf16.msra.mxu3 %v5374_v5  ;;  %1953 = vmatpush.bf16.msra.mxu1 %v5357_v15 }
 0x12f   : > { %1941 = vmatpush.bf16.msra.mxu0 %v5347_v49 }
 0x130   : > { %1966 = vmatpush.bf16.msra.mxu2 %v5366_v2 }
 0x131   : > { %1981 = vmatpush.bf16.msra.mxu3 %v5373_v10  ;;  %1954 = vmatpush.bf16.msra.mxu1 %v5356_v20 }
 0x134   : > { %1967 = vmatpush.bf16.msra.mxu2 %v5365_v16  ;;  %v623_v16 = vperm.slane %v6289_v8, 4 }
 0x135   : > { %1982 = vmatpush.bf16.msra.mxu3 %v5372_v22  ;;  %1955 = vmatpush.bf16.msra.mxu1 %v5355_v26 }
 0x138   : > { %1968 = vmatpush.bf16.msra.mxu2 %v5364_v21  ;;  %v624_v21 = vperm.slane %v6289_v8, 5 }
 0x139   : > { %1983 = vmatpush.bf16.msra.mxu3 %v5371_v28 }
 0x13c   : > { %1969 = vmatpush.bf16.msra.mxu2 %v5363_v27 }
 0x16d   : > { %v1301_v36 = vpop.permute.xlu0 %1300 }
 0x16e   : > { %v1310_v39 = vsel %vm1307_vm0, %v6300_v48, %v1301_v36  ;;  %v1312_v40 = vsel %vm1307_vm0, %v1301_v36, %v6300_v48 }
 0x16f   : > { %v1330_v41 = vunpack.c.l.bf16 %v1310_v39  ;;  %v1331_v42 = vunpack.c.l.bf16 %v1312_v40  ;;  %v1334_v43 = vunpack.c.h.bf16 %v1310_v39  ;;  %v1335_v45 = vunpack.c.h.bf16 %v1312_v40  ;;  %v1242_v20 = vpop.f32.mrf.mxu0 }
 0x171   : > { %v1342_v50 = vmul.f32 %v1338_v37, %v1330_v41  ;;  %v1343_v51 = vmul.f32 %v1339_v38, %v1330_v41  ;;  %v1344_v52 = vmul.f32 %v1338_v37, %v1331_v42  ;;  %v1345_v53 = vmul.f32 %v1339_v38, %v1331_v42 }
 0x172   : > { %v1350_v54 = vmul.f32 %v1340_v46, %v1334_v43  ;;  %v1351_v55 = vmul.f32 %v1341_v47, %v1334_v43  ;;  %v1352_v56 = vmul.f32 %v1340_v46, %v1335_v45  ;;  %v1353_v57 = vmul.f32 %v1341_v47, %v1335_v45 }
 0x174   : > { %v1358_v58 = vpack.c.bf16 %v1350_v54, %v1342_v50  ;;  %v1359_v59 = vpack.c.bf16 %v1351_v55, %v1343_v51  ;;  %v1360_v60 = vpack.c.bf16 %v1352_v56, %v1344_v52  ;;  %v1361_v61 = vpack.c.bf16 %v1353_v57, %v1345_v53 }
 0x175   : > { %v1306_v48 = vpop.permute.xlu0 %1305  ;;  %v1256_v22 = vpop.f32.mrf.mxu1 }
 0x176   : > { %1886 = vmatmul.bf16.vlgmr.msrb.gmra.mxu0 %v1358_v58  ;;  %1900 = vmatmul.bf16.vlgmr.msrb.gmra.mxu1 %v1359_v59  ;;  %v1316_v62 = vsel %vm1307_vm0, %v6305_v7, %v1306_v48  ;;  %v1318_v63 = vsel %vm1307_vm0, %v1306_v48, %v6305_v7  ;;  %v1243_v7 = vadd.f32 %v1242_v20, %v623_v16 }
 0x177   : > { %1914 = vmatmul.bf16.vlgmr.msrb.gmra.mxu2 %v1360_v60  ;;  %1928 = vmatmul.bf16.vlgmr.msrb.gmra.mxu3 %v1361_v61  ;;  %v1332_v0 = vunpack.c.l.bf16 %v1316_v62  ;;  %v1336_v1 = vunpack.c.h.bf16 %v1316_v62  ;;  %v1333_v2 = vunpack.c.l.bf16 %v1318_v63  ;;  %v1337_v3 = vunpack.c.h.bf16 %v1318_v63  ;;  %v6331_v27 = vpop.f32.mrf.mxu0 }
 0x178   : > { %v1257_v23 = vadd.f32 %v1256_v22, %v1243_v7 }
 0x179   : > { %v1346_v4 = vmul.f32 %v1338_v37, %v1332_v0  ;;  %v1347_v5 = vmul.f32 %v1339_v38, %v1332_v0  ;;  %v1354_v6 = vmul.f32 %v1340_v46, %v1336_v1  ;;  %v1355_v9 = vmul.f32 %v1341_v47, %v1336_v1 }
 0x17a   : > { %v1348_v12 = vmul.f32 %v1338_v37, %v1333_v2  ;;  %v1349_v13 = vmul.f32 %v1339_v38, %v1333_v2  ;;  %v1356_v14 = vmul.f32 %v1340_v46, %v1337_v3  ;;  %v1357_v15 = vmul.f32 %v1341_v47, %v1337_v3 }
 0x17b   : > { %v1362_v17 = vpack.c.bf16 %v1354_v6, %v1346_v4  ;;  %v1363_v18 = vpack.c.bf16 %v1355_v9, %v1347_v5 }
 0x17c   : > { %v1364_v10 = vpack.c.bf16 %v1356_v14, %v1348_v12  ;;  %v1365_v19 = vpack.c.bf16 %v1357_v15, %v1349_v13 }
 0x17d   : > { %v6333_v28 = vpop.f32.mrf.mxu1 }
 0x17f   : > { %v1284_v44 = vpop.f32.mrf.mxu3 }
 0x182   : > { %v1270_v24 = vpop.f32.mrf.mxu2 }
 0x183   : > { %v1271_v25 = vadd.f32 %v1270_v24, %v624_v21 }
 0x185   : > { %v1285_v49 = vadd.f32 %v1284_v44, %v1271_v25 }
 0x186   : > { %1942 = vmatmul.bf16.vlgmr.msra.gmra.mxu0 %v1362_v17  ;;  %1956 = vmatmul.bf16.vlgmr.msra.gmra.mxu1 %v1363_v18 }
 0x187   : > { %1970 = vmatmul.bf16.vlgmr.msra.gmra.mxu2 %v1364_v10  ;;  %1984 = vmatmul.bf16.vlgmr.msra.gmra.mxu3 %v1365_v19  ;;  %v6329_v26 = vpack.c.bf16 %v1285_v49, %v1257_v23  ;;  %v6337_v30 = vpop.f32.mrf.mxu3 }
 0x18a   : > { %v6335_v29 = vpop.f32.mrf.mxu2 }
 0x1f3   : > { %v1887_v31 = vpop.f32.mrf.mxu0  ;;  %v1901_v11 = vpop.f32.mrf.mxu1 }
 0x1f4   : > { %v1902_v36 = vadd.f32 %v1901_v11, %v1887_v31 }
 0x1fa   : > { %v1915_v32 = vpop.f32.mrf.mxu2  ;;  %v1929_v33 = vpop.f32.mrf.mxu3 }
 0x1fb   : > { %v1889_v34 = vpop.f32.mrf.mxu0  ;;  %v1903_v35 = vpop.f32.mrf.mxu1  ;;  %v1916_v37 = vadd.f32 %v1915_v32, %v1902_v36 }
 0x1fc   : > { %v1904_v42 = vadd.f32 %v1903_v35, %v1889_v34 }
 0x1fd   : > { %v1930_v40 = vadd.f32 %v1929_v33, %v1916_v37 }
 0x202   : > { %v1917_v38 = vpop.f32.mrf.mxu2  ;;  %v1931_v39 = vpop.f32.mrf.mxu3 }
 0x203   : > { %v1943_v41 = vpop.f32.mrf.mxu0  ;;  %v1957_v45 = vpop.f32.mrf.mxu1  ;;  %v1918_v46 = vadd.f32 %v1917_v38, %v1904_v42 }
 0x204   : > { %v1944_v43 = vadd.f32 %v1943_v41, %v1930_v40 }
 0x205   : > { %v1932_v52 = vadd.f32 %v1931_v39, %v1918_v46 }
 0x206   : > { %v1958_v47 = vadd.f32 %v1957_v45, %v1944_v43 }
 0x20a   : > { %v1971_v50 = vpop.f32.mrf.mxu2  ;;  %v1985_v51 = vpop.f32.mrf.mxu3 }
 0x20b   : > { %v1972_v53 = vadd.f32 %v1971_v50, %v1958_v47  ;;  %v1945_v54 = vpop.f32.mrf.mxu0  ;;  %v1959_v58 = vpop.f32.mrf.mxu1  ;;  %v4668_v47 = vld [vmem:[#allocation8 + $0xc8] sm:$0xf] }
 0x20c   : > { %v1946_v56 = vadd.f32 %v1945_v54, %v1932_v52  ;;  %v5408_v50 = vld [vmem:[#allocation8 + $0xe4] sm:$0xf0]  ;;  %v4660_v54 = vld [vmem:[#allocation8 + $0xc0] sm:$0xf] }
 0x20d   : > { %v1986_v55 = vadd.f32 %v1985_v51, %v1972_v53  ;;  %v5404_v51 = vld [vmem:[#allocation8 + $0xcc] sm:$0xf]  ;;  %v4669_v52 = vor.u32 %v5408_v50, %v4668_v47  ;;  %v4686_v47 = vld [vmem:[#allocation8 + $0xf8] sm:$0xf0]  ;;  %v4676_v50 = vld [vmem:[#allocation8 + $0xd0] sm:$0xf] }
 0x20e   : > { %v1960_v59 = vadd.f32 %v1959_v58, %v1946_v56  ;;  %v4670_v53 = vld [vmem:[#allocation8 + $0xe8] sm:$0xf0]  ;;  %v5403_v58 = vld [vmem:[#allocation8 + $0xc4] sm:$0xf] }
 0x20f   : > { %v1990_v57 = vmul.f32 0.25, %v1986_v55  ;;  %v5407_v55 = vld [vmem:[#allocation8 + $0xdc] sm:$0xf0]  ;;  %v4673_v56 = vor.u32 %v5404_v51, %v4670_v53  ;;  %2331 = vmatpush.bf16.msrb.mxu2 %v4669_v52  ;;  %v5409_v51 = vld [vmem:[#allocation8 + $0xec] sm:$0xf0] }
 0x210   : > { %v4677_v53 = vor.u32 %v5409_v51, %v4676_v50 }
 0x211   : > { %1994 = vrot.lane.b32.xlu1 %v1990_v57, %s6068_s24  ;;  %2345 = vmatpush.bf16.msrb.mxu3 %v4673_v56  ;;  %v4652_v56 = vld [vmem:[#allocation8 + $0x98] sm:$0xf] }
 0x212   : > { %v1973_v60 = vpop.f32.mrf.mxu2  ;;  %v1987_v48 = vpop.f32.mrf.mxu3 }
 0x213   : > { %v1974_v61 = vadd.f32 %v1973_v60, %v1960_v59  ;;  %v4662_v59 = vld [vmem:[#allocation8 + $0xe0] sm:$0xf0] }
 0x214   : > { %v4665_v60 = vor.u32 %v5403_v58, %v4662_v59  ;;  %v5402_v58 = vld [vmem:[#allocation8 + $0xb4] sm:$0xf0]  ;;  %v5398_v59 = vld [vmem:[#allocation8 + $0x9c] sm:$0xf] }
 0x215   : > { %v1988_v62 = vadd.f32 %v1987_v48, %v1974_v61  ;;  %v4636_v61 = vld [vmem:[#allocation8 + $0x88] sm:$0xf] }
 0x216   : > { %2317 = vmatpush.bf16.msrb.mxu1 %v4665_v60  ;;  %v5400_v48 = vld [vmem:[#allocation8 + $0xa4] sm:$0xf0]  ;;  %v4654_v60 = vld [vmem:[#allocation8 + $0xb8] sm:$0xf0] }
 0x217   : > { %v1991_v63 = vmul.f32 0.25, %v1988_v62  ;;  %v5396_v62 = vld [vmem:[#allocation8 + $0x8c] sm:$0xf] }
 0x219   : > { %1996 = vrot.lane.b32.xlu1 %v1991_v63, %s6068_s24 }
 0x283   : > { %v1995_v0 = vpop.permute.xlu1 %1994 }
 0x284   : > { %v2000_v1 = vmax.f32 %v1990_v57, %v1995_v0  ;;  %v4638_v0 = vld [vmem:[#allocation8 + $0xa8] sm:$0xf0] }
 0x286   : > { %2004 = vrot.lane.b32.xlu2 %v2000_v1, %s6069_s12 }
 0x28b   : > { %v1997_v2 = vpop.permute.xlu1 %1996 }
 0x28c   : > { %v2001_v3 = vmax.f32 %v1991_v63, %v1997_v2  ;;  %v5399_v2 = vld [vmem:[#allocation8 + $0x9c] sm:$0xf0] }
 0x28e   : > { %2006 = vrot.lane.b32.xlu2 %v2001_v3, %s6069_s12 }
 0x2e0   : > { %v2005_v4 = vpop.permute.xlu2 %2004 }
 0x2e1   : > { %v2010_v5 = vmax.f32 %v2000_v1, %v2005_v4  ;;  %v4628_v1 = vld [vmem:[#allocation8 + $0x80] sm:$0xf] }
 0x2e2   : > { %v4629_v4 = vor.u32 %v5399_v2, %v4628_v1  ;;  %v4646_v2 = vld [vmem:[#allocation8 + $0xb0] sm:$0xf0] }
 0x2e3   : > { %2014 = vrot.lane.b32.xlu0 %v2010_v5, %s6070_s14  ;;  %2020 = vrot.lane.b32.xlu2 %v2010_v5, %s6071_s16 }
 0x2e8   : > { %v2007_v6 = vpop.permute.xlu2 %2006 }
 0x2e9   : > { %v2011_v9 = vmax.f32 %v2001_v3, %v2007_v6  ;;  %v4641_v3 = vor.u32 %v5396_v62, %v4638_v0  ;;  %v4630_v6 = vld [vmem:[#allocation8 + $0xa0] sm:$0xf0]  ;;  %v4644_v62 = vld [vmem:[#allocation8 + $0x90] sm:$0xf]  ;;  %v5397_v0 = vld [vmem:[#allocation8 + $0x94] sm:$0xf] }
 0x2eb   : > { %2028 = vrot.lane.b32.xlu2 %v2011_v9, %s6072_s28  ;;  %2022 = vrot.lane.b32.xlu0 %v2011_v9, %s6071_s16 }
 0x2ec   : > { %2016 = vrot.lane.b32.xlu1 %v2011_v9, %s6070_s14  ;;  %2346 = vmatpush.bf16.msrb.mxu3 %v4641_v3  ;;  %v4620_v3 = vld [vmem:[#allocation8 + $0x58] sm:$0xf] }
 0x2f4   : > { %2026 = vrot.lane.b32.xlu1 %v2010_v5, %s6072_s28 }
 0x33d   : > { %v2021_v13 = vpop.permute.xlu2 %2020 }
 0x345   : > { %v2029_v18 = vpop.permute.xlu2 %2028 }
 0x355   : > { %v2015_v12 = vpop.permute.xlu0 %2014 }
 0x356   : > { %v2033_v7 = vsel %vm2032_vm1, %v2010_v5, %v2015_v12  ;;  %v5395_v5 = vld [vmem:[#allocation8 + $0x84] sm:$0xf]  ;;  %v4604_v12 = vld [vmem:[#allocation8 + $0x48] sm:$0xf] }
 0x357   : > { %v2036_v24 = vsel %vm2035_vm3, %v2033_v7, %v2021_v13  ;;  %v5392_v13 = vld [vmem:[#allocation8 + $0x64] sm:$0xf0]  ;;  %v5387_v7 = vld [vmem:[#allocation8 + $0x44] sm:$0xf] }
 0x35d   : > { %v2023_v14 = vpop.permute.xlu0 %2022 }
 0x35e   : > { %v2017_v15 = vpop.permute.xlu1 %2016 }
 0x35f   : > { %v2034_v17 = vsel %vm2032_vm1, %v2011_v9, %v2017_v15  ;;  %v4633_v9 = vor.u32 %v5395_v5, %v4630_v6  ;;  %v4605_v15 = vor.u32 %v5392_v13, %v4604_v12  ;;  %v4649_v5 = vor.u32 %v5397_v0, %v4646_v2  ;;  %v5390_v6 = vld [vmem:[#allocation8 + $0x5c] sm:$0xf]  ;;  %v4612_v12 = vld [vmem:[#allocation8 + $0x50] sm:$0xf] }
 0x360   : > { %v2037_v10 = vsel %vm2035_vm3, %v2034_v17, %v2023_v14  ;;  %v5388_v14 = vld [vmem:[#allocation8 + $0x4c] sm:$0xf] }
 0x361   : > { %v2040_v19 = vsel %vm2038_vm2, %v2037_v10, %v2029_v18  ;;  %2318 = vmatpush.bf16.msrb.mxu1 %v4633_v9  ;;  %v4606_v17 = vld [vmem:[#allocation8 + $0x68] sm:$0xf0]  ;;  %v4596_v18 = vld [vmem:[#allocation8 + $0x40] sm:$0xf]  ;;  %v4622_v9 = vld [vmem:[#allocation8 + $0x78] sm:$0xf0] }
 0x362   : > { %v2042_v20 = vsub.f32 %v1991_v63, %v2040_v19  ;;  %v4637_v63 = vor.u32 %v5400_v48, %v4636_v61  ;;  %v5391_v10 = vld [vmem:[#allocation8 + $0x5c] sm:$0xf0]  ;;  %v4609_v19 = vor.u32 %v5388_v14, %v4606_v17  ;;  %v4653_v61 = vor.u32 %v5402_v58, %v4652_v56  ;;  %v5393_v14 = vld [vmem:[#allocation8 + $0x6c] sm:$0xf0]  ;;  %v4614_v17 = vld [vmem:[#allocation8 + $0x70] sm:$0xf0] }
 0x363   : > { %v4657_v48 = vor.u32 %v5398_v59, %v4654_v60  ;;  %v2414_v58 = vunpack.c.h.b16 %v6329_v26 }
 0x364   : > { %v2045_v22 = vmul.f32 1.442695, %v2042_v20  ;;  %2332 = vmatpush.bf16.msrb.mxu2 %v4637_v63  ;;  %v4597_v20 = vor.u32 %v5391_v10, %v4596_v18  ;;  %2347 = vmatpush.bf16.msrb.mxu3 %v4609_v19  ;;  %v5401_v63 = vld [vmem:[#allocation8 + $0xac] sm:$0xf0]  ;;  %v4625_v18 = vor.u32 %v5390_v6, %v4622_v9  ;;  %v4613_v10 = vor.u32 %v5393_v14, %v4612_v12  ;;  %v4588_v19 = vld [vmem:[#allocation8 + $0x18] sm:$0xf] }
 0x365   : > { %v4645_v1 = vor.u32 %v5401_v63, %v4644_v62 }
 0x366   : > { %v2027_v23 = vpop.permute.xlu1 %2026  ;;  %5711 = vpow2.f32 %v2045_v22  ;;  %v4598_v22 = vld [vmem:[#allocation8 + $0x60] sm:$0xf0] }
 0x367   : > { %v2039_v25 = vsel %vm2038_vm2, %v2036_v24, %v2027_v23  ;;  %v4601_v23 = vor.u32 %v5387_v7, %v4598_v22  ;;  %v4572_v24 = vld [vmem:[#allocation8 + $0x8] sm:$0xf]  ;;  %v5382_v7 = vld [vmem:[#allocation8 + $0x1c] sm:$0xf] }
 0x368   : > { %v2041_v44 = vsub.f32 %v1990_v57, %v2039_v25  ;;  %v4661_v57 = vor.u32 %v5407_v55, %v4660_v54  ;;  %2333 = vmatpush.bf16.msrb.mxu2 %v4605_v15  ;;  %v5384_v25 = vld [vmem:[#allocation8 + $0x24] sm:$0xf0]  ;;  %v5405_v54 = vld [vmem:[#allocation8 + $0xd4] sm:$0xf] }
 0x369   : > { %2319 = vmatpush.bf16.msrb.mxu1 %v4601_v23  ;;  %v4678_v55 = vld [vmem:[#allocation8 + $0xf0] sm:$0xf0]  ;;  %v4590_v23 = vld [vmem:[#allocation8 + $0x38] sm:$0xf0] }
 0x36a   : > { %v2043_v49 = vmul.f32 1.442695, %v2041_v44  ;;  %2303 = vmatpush.bf16.msrb.mxu0 %v4661_v57  ;;  %v5380_v44 = vld [vmem:[#allocation8 + $0xc] sm:$0xf]  ;;  %v4681_v57 = vor.u32 %v5405_v54, %v4678_v55  ;;  %v5389_v15 = vld [vmem:[#allocation8 + $0x54] sm:$0xf] }
 0x36b   : > { %v4617_v22 = vor.u32 %v5389_v15, %v4614_v17 }
 0x36c   : > { %v6355_v31 = vpop.eup %5711  ;;  %5713 = vpow2.f32 %v2043_v49  ;;  %v4573_v49 = vor.u32 %v5384_v25, %v4572_v24  ;;  %v4580_v24 = vld [vmem:[#allocation8 + $0x10] sm:$0xf] }
 0x36d   : > { %2051 = vrot.lane.b32.xlu1 %v6355_v31, %s6068_s24  ;;  %v5385_v25 = vld [vmem:[#allocation8 + $0x2c] sm:$0xf0] }
 0x36e   : > { %2304 = vmatpush.bf16.msrb.mxu0 %v4629_v4  ;;  %2334 = vmatpush.bf16.msrb.mxu2 %v4573_v49  ;;  %v5394_v4 = vld [vmem:[#allocation8 + $0x74] sm:$0xf0]  ;;  %v4582_v49 = vld [vmem:[#allocation8 + $0x30] sm:$0xf0] }
 0x36f   : > { %v4621_v13 = vor.u32 %v5394_v4, %v4620_v3 }
 0x372   : > { %v6359_v11 = vpop.eup %5713  ;;  %2305 = vmatpush.bf16.msrb.mxu0 %v4597_v20  ;;  %v5386_v20 = vld [vmem:[#allocation8 + $0x34] sm:$0xf0] }
 0x373   : > { %2057 = vrot.lane.b32.xlu2 %v6359_v11, %s6069_s12  ;;  %2049 = vrot.lane.b32.xlu0 %v6359_v11, %s6068_s24  ;;  %s3748_s24 = sshll.u32 %s3745_s19, 4  ;;  %s3749_s24 = int_to_ptr.hbm [resolvable:$true] %s3748_s24 }
 0x375   : > { %2065 = vrot.lane.b32.xlu1 %v6359_v11, %s6073_s4 }
 0x37b   : > { %2067 = vrot.lane.b32.xlu2 %v6355_v31, %s6073_s4  ;;  %2059 = vrot.lane.b32.xlu0 %v6355_v31, %s6069_s12  ;;  %s5979_s12 = sshra.s32 %s3749_s24, 4  ;;  %s5985_s4 = scalar_lea.hbm %s6576_s11, 32  ;;  %s5980_s12 = int_to_ptr.hbm [resolvable:$true] %s5979_s12 }
 0x37c   : > { %p5986_p3 = scmp.lt.s32.totalorder %s5980_s12, %s6576_s11 }
 0x3cd   : > { %v2058_v33 = vpop.permute.xlu2 %2057 }
 0x3d5   : > { %v2068_v42 = vpop.permute.xlu2 %2067 }
 0x3df   : > { %v2052_v32 = vpop.permute.xlu1 %2051 }
 0x3e0   : > { %v2056_v39 = vadd.f32 %v6355_v31, %v2052_v32  ;;  %v4574_v32 = vld [vmem:[#allocation8 + $0x28] sm:$0xf0] }
 0x3e5   : > { %v2050_v34 = vpop.permute.xlu0 %2049 }
 0x3e6   : > { %v2055_v35 = vadd.f32 %v6359_v11, %v2050_v34  ;;  %v5383_v34 = vld [vmem:[#allocation8 + $0x1c] sm:$0xf0] }
 0x3e7   : > { %v2066_v37 = vpop.permute.xlu1 %2065 }
 0x3e8   : > { %v2063_v36 = vadd.f32 %v2058_v33, %v2055_v35  ;;  %v4564_v33 = vld [vmem:[#allocation8] sm:$0xf]  ;;  %v4577_v35 = vor.u32 %v5380_v44, %v4574_v32  ;;  %v5381_v44 = vld [vmem:[#allocation8 + $0x14] sm:$0xf]  ;;  %v4589_v32 = vor.u32 %v5386_v20, %v4588_v19 }
 0x3ea   : > { %v2071_v38 = vadd.f32 %v2066_v37, %v2063_v36  ;;  %v4565_v36 = vor.u32 %v5383_v34, %v4564_v33  ;;  %v5379_v37 = vld [vmem:[#allocation8 + $0x4] sm:$0xf]  ;;  %2348 = vmatpush.bf16.msrb.mxu3 %v4577_v35  ;;  %v4593_v33 = vor.u32 %v5382_v7, %v4590_v23  ;;  %v4581_v34 = vor.u32 %v5385_v25, %v4580_v24 }
 0x3ec   : > { %5715 = vrcp.f32 %v2071_v38  ;;  %v4566_v38 = vld [vmem:[#allocation8 + $0x20] sm:$0xf0]  ;;  %2306 = vmatpush.bf16.msrb.mxu0 %v4565_v36  ;;  %v4585_v36 = vor.u32 %v5381_v44, %v4582_v49 }
 0x3ed   : > { %v2060_v40 = vpop.permute.xlu0 %2059 }
 0x3ee   : > { %v2064_v41 = vadd.f32 %v2060_v40, %v2056_v39  ;;  %v4569_v39 = vor.u32 %v5379_v37, %v4566_v38  ;;  %v4684_v40 = vld [vmem:[#allocation8 + $0xd8] sm:$0xf] }
 0x3f0   : > { %v2072_v43 = vadd.f32 %v2068_v42, %v2064_v41  ;;  %2320 = vmatpush.bf16.msrb.mxu1 %v4569_v39  ;;  %v5410_v41 = vld [vmem:[#allocation8 + $0xf4] sm:$0xf0]  ;;  %v5406_v42 = vld [vmem:[#allocation8 + $0xdc] sm:$0xf]  ;;  %2359 = vmatpush.bf16.msra.mxu0 %v4677_v53 }
 0x3f1   : > { %v4689_v52 = vor.u32 %v5406_v42, %v4686_v47 }
 0x3f2   : > { %v6371_v45 = vpop.eup %5715  ;;  %5717 = vrcp.f32 %v2072_v43  ;;  %v4685_v43 = vor.u32 %v5410_v41, %v4684_v40 }
 0x3f3   : > { %2083 = vrot.lane.b32.xlu2 %v6371_v45, %s6071_s16  ;;  %2077 = vrot.lane.b32.xlu0 %v6371_v45, %s6070_s14 }
 0x3f4   : > { %2387 = vmatpush.bf16.msra.mxu2 %v4685_v43  ;;  %2401 = vmatpush.bf16.msra.mxu3 %v4689_v52 }
 0x3f5   : > { %2373 = vmatpush.bf16.msra.mxu1 %v4681_v57  ;;  %2360 = vmatpush.bf16.msra.mxu0 %v4645_v1  ;;  %v2413_v57 = vunpack.c.l.b16 %v6329_v26 }
 0x3f8   : > { %v6377_v46 = vpop.eup %5717  ;;  %2388 = vmatpush.bf16.msra.mxu2 %v4653_v61  ;;  %2402 = vmatpush.bf16.msra.mxu3 %v4657_v48 }
 0x3f9   : > { %2079 = vrot.lane.b32.xlu1 %v6377_v46, %s6070_s14  ;;  %2374 = vmatpush.bf16.msra.mxu1 %v4649_v5  ;;  %s5981_s14 = scalar_lea.hbm %s5980_s12, 16 }
 0x3fa   : > { %2361 = vmatpush.bf16.msra.mxu0 %v4613_v10  ;;  %p5982_p0 = scmp.ne.s32.totalorder %s5980_s12, %s5981_s14  ;;  %p5987_p4 = scmp.lt.s32.totalorder %s5985_s4, %s5981_s14 }
 0x3fb   : > { %2091 = vrot.lane.b32.xlu2 %v6377_v46, %s6072_s28  ;;  %2085 = vrot.lane.b32.xlu0 %v6377_v46, %s6071_s16 }
 0x3fc   : > { %2389 = vmatpush.bf16.msra.mxu2 %v4621_v13  ;;  %2403 = vmatpush.bf16.msra.mxu3 %v4625_v18  ;;  %p5983_p1 = pnand %p5982_p0, %p6175_p5  ;;  %p5988_p7 = por %p5987_p4, %p5986_p3 }
 0x3fd   : > { %2375 = vmatpush.bf16.msra.mxu1 %v4617_v22 }
 0x3fe   : > { %2362 = vmatpush.bf16.msra.mxu0 %v4581_v34  ;;  %p5984_p2 = pneg %p5983_p1 }
 0x400   : > { %2390 = vmatpush.bf16.msra.mxu2 %v4589_v32  ;;  %2404 = vmatpush.bf16.msra.mxu3 %v4593_v33  ;;  %p5989_p8 = pnand %p5988_p7, %p5984_p2 }
 0x401   : > { %2089 = vrot.lane.b32.xlu1 %v6371_v45, %s6072_s28  ;;  %2376 = vmatpush.bf16.msra.mxu1 %v4585_v36 }
 0x44d   : > { %v2084_v37 = vpop.permute.xlu2 %2083 }
 0x455   : > { %v2092_v43 = vpop.permute.xlu2 %2091 }
 0x465   : > { %v2078_v35 = vpop.permute.xlu0 %2077 }
 0x466   : > { %v2095_v42 = vsel %vm2032_vm1, %v6371_v45, %v2078_v35 }
 0x467   : > { %v2097_v51 = vsel %vm2035_vm3, %v2095_v42, %v2084_v37 }
 0x46b   : > { %v2080_v38 = vpop.permute.xlu1 %2079 }
 0x46c   : > { %v2096_v39 = vsel %vm2032_vm1, %v6377_v46, %v2080_v38 }
 0x46d   : > { %v2086_v40 = vpop.permute.xlu0 %2085 }
 0x46e   : > { %v2098_v41 = vsel %vm2035_vm3, %v2096_v39, %v2086_v40 }
 0x46f   : > { %v2100_v47 = vsel %vm2038_vm2, %v2098_v41, %v2092_v43 }
 0x470   : > { %v2102_v53 = vmul.f32 %v6355_v31, %v2100_v47  ;;  %v1245_v31 = vadd.f32 %v6331_v27, %v623_v16 }
 0x472   : > { %v1259_v45 = vadd.f32 %v6333_v28, %v1245_v31 }
 0x473   : > { %v2090_v50 = vpop.permute.xlu1 %2089 }
 0x474   : > { %v2099_v52 = vsel %vm2038_vm2, %v2097_v51, %v2090_v50 }
 0x475   : > { %v2101_v54 = vmul.f32 %v6359_v11, %v2099_v52  ;;  %v1273_v11 = vadd.f32 %v6335_v29, %v624_v21 }
 0x477   : > { %v2103_v55 = vpack.c.bf16 %v2102_v53, %v2101_v54  ;;  %v1287_v46 = vadd.f32 %v6337_v30, %v1273_v11 }
 0x479   : > { %4690 = vmatmul.msk.bf16.vlgmr.msrb.gmra.mxu0 %vm1307_vm0, %v2103_v55  ;;  %4691 = vmatmul.msk.bf16.vlgmr.msrb.gmra.mxu1 %vm1307_vm0, %v2103_v55  ;;  %v1294_v56 = vpack.c.bf16 %v1287_v46, %v1259_v45 }
 0x47a   : > { %4692 = vmatmul.msk.bf16.vlgmr.msrb.gmra.mxu2 %vm1307_vm0, %v2103_v55  ;;  %4693 = vmatmul.msk.bf16.vlgmr.msrb.gmra.mxu3 %vm1307_vm0, %v2103_v55 }
 0x47b   : > { %v2415_v59 = vunpack.c.l.b16 %v1294_v56  ;;  %v2416_v60 = vunpack.c.h.b16 %v1294_v56 }
 0x47d   : > { %v2417_v62 = vpack.c.b16 %v2415_v59, %v2413_v57  ;;  %v2418_v63 = vpack.c.b16 %v2416_v60, %v2414_v58 }
 0x47f   : > { %v6415_v0 = vunpack.c.l.bf16 %v2417_v62  ;;  %v6417_v21 = vunpack.c.l.bf16 %v2418_v63  ;;  %v2447_v9 = vunpack.c.h.bf16 %v2417_v62  ;;  %v2448_v12 = vunpack.c.h.bf16 %v2418_v63 }
 0x489   : > { %4694 = vmatmul.msk.bf16.vlgmr.msra.gmra.mxu0 %vm1307_vm0, %v2103_v55  ;;  %4695 = vmatmul.msk.bf16.vlgmr.msra.gmra.mxu1 %vm1307_vm0, %v2103_v55 }
 0x48a   : > { %4696 = vmatmul.msk.bf16.vlgmr.msra.gmra.mxu2 %vm1307_vm0, %v2103_v55  ;;  %4697 = vmatmul.msk.bf16.vlgmr.msra.gmra.mxu3 %vm1307_vm0, %v2103_v55 }
 0x4f6   : > { %v2308_v61 = vpop.f32.mrf.mxu0  ;;  %v2322_v48 = vpop.f32.mrf.mxu1 }
 0x4f7   : > { %v2421_v25 = vpack.c.bf16 %v2322_v48, %v2308_v61 }
 0x4f9   : > { %v2429_v36 = vunpack.c.l.bf16 %v2421_v25  ;;  %v2430_v37 = vunpack.c.h.bf16 %v2421_v25 }
 0x4fb   : > { %v2449_v50 = vmul.f32 %v6415_v0, %v2429_v36  ;;  %v2450_v51 = vmul.f32 %v6417_v21, %v2430_v37  ;;  %v4812_v37 = vld [vmem:[#allocation10 + $0xe0] sm:$0xf] }
 0x4fd   : > { %v2336_v16 = vpop.f32.mrf.mxu2  ;;  %v2350_v27 = vpop.f32.mrf.mxu3  ;;  %v6446_v60 = vpack.c.bf16 %v2450_v51, %v2449_v50 }
 0x4fe   : > { %v2422_v8 = vpack.c.bf16 %v2350_v27, %v2336_v16  ;;  %v2310_v26 = vpop.f32.mrf.mxu0  ;;  %v2324_v2 = vpop.f32.mrf.mxu1 }
 0x4ff   : > { %v2425_v35 = vpack.c.bf16 %v2324_v2, %v2310_v26 }
 0x500   : > { %v2431_v28 = vunpack.c.l.bf16 %v2422_v8  ;;  %v2432_v29 = vunpack.c.h.bf16 %v2422_v8 }
 0x501   : > { %v2437_v42 = vunpack.c.l.bf16 %v2425_v35  ;;  %v2438_v43 = vunpack.c.h.bf16 %v2425_v35 }
 0x502   : > { %v2451_v30 = vmul.f32 %v6415_v0, %v2431_v28  ;;  %v2452_v1 = vmul.f32 %v6417_v21, %v2432_v29 }
 0x503   : > { %v2457_v45 = vmul.f32 %v2447_v9, %v2437_v42  ;;  %v2458_v46 = vmul.f32 %v2448_v12, %v2438_v43  ;;  %v4814_v42 = vld [vmem:[#allocation10 + $0xf0] sm:$0xf0]  ;;  %v4796_v43 = vld [vmem:[#allocation10 + $0xc0] sm:$0xf] }
 0x504   : > { %v6421_v3 = vpack.c.bf16 %v2452_v1, %v2451_v30 }
 0x505   : > { %v2338_v4 = vpop.f32.mrf.mxu2  ;;  %v2352_v5 = vpop.f32.mrf.mxu3  ;;  %v6455_v63 = vpack.c.bf16 %v2458_v46, %v2457_v45  ;;  %v4940_v45 = vld [vmem:[#allocation10 + $0x1e0] sm:$0xf]  ;;  %v5473_v46 = vld [vmem:[#allocation10 + $0x1ec] sm:$0xf0] }
 0x506   : > { %v2426_v6 = vpack.c.bf16 %v2352_v5, %v2338_v4  ;;  %2529 = vrot.lane.b32.xlu1 %v6421_v3, %s6067_s2  ;;  %v2507_v7 = vunpack.c.l.bf16 %v6421_v3  ;;  %v2364_v23 = vpop.f32.mrf.mxu0  ;;  %v2378_v24 = vpop.f32.mrf.mxu1 }
 0x507   : > { %v2423_v47 = vpack.c.bf16 %v2378_v24, %v2364_v23  ;;  %v2474_v26 = vunpack.c.l.bf16 %v6455_v63 }
 0x508   : > { %v2439_v13 = vunpack.c.l.bf16 %v2426_v6  ;;  %v2440_v14 = vunpack.c.h.bf16 %v2426_v6 }
 0x509   : > { %v2433_v56 = vunpack.c.l.bf16 %v2423_v47  ;;  %v2434_v57 = vunpack.c.h.bf16 %v2423_v47  ;;  %v5437_v47 = vld [vmem:[#allocation10 + $0xcc] sm:$0xf0] }
 0x50a   : > { %v2459_v15 = vmul.f32 %v2447_v9, %v2439_v13  ;;  %v2460_v17 = vmul.f32 %v2448_v12, %v2440_v14  ;;  %v2521_v13 = vrot.slane %v6421_v3, 4  ;;  %v4797_v3 = vor.u32 %v5437_v47, %v4796_v43  ;;  %v5463_v43 = vld [vmem:[#allocation10 + $0x1a4] sm:$0xf]  ;;  %v4910_v47 = vld [vmem:[#allocation10 + $0x1b0] sm:$0xf0] }
 0x50b   : > { %v2453_v62 = vmul.f32 %v6415_v0, %v2433_v56  ;;  %v2454_v16 = vmul.f32 %v6417_v21, %v2434_v57 }
 0x50c   : > { %v6425_v18 = vpack.c.bf16 %v2460_v17, %v2459_v15  ;;  %v2525_v23 = vunpack.c.l.bf16 %v2521_v13  ;;  %v4924_v13 = vld [vmem:[#allocation10 + $0x1c0] sm:$0xf] }
 0x50d   : > { %v2392_v10 = vpop.f32.mrf.mxu2  ;;  %v2406_v19 = vpop.f32.mrf.mxu3  ;;  %v6463_v1 = vpack.c.bf16 %v2454_v16, %v2453_v62  ;;  %v4764_v16 = vld [vmem:[#allocation10 + $0x80] sm:$0xf] }
 0x50e   : > { %v2424_v20 = vpack.c.bf16 %v2406_v19, %v2392_v10  ;;  %2531 = vrot.lane.b32.xlu2 %v6425_v18, %s6067_s2  ;;  %v2508_v22 = vunpack.c.l.bf16 %v6425_v18  ;;  %v2366_v54 = vpop.f32.mrf.mxu0  ;;  %v2380_v55 = vpop.f32.mrf.mxu1  ;;  %v2522_v14 = vrot.slane %v6425_v18, 4  ;;  %v5435_v18 = vld [vmem:[#allocation10 + $0xc4] sm:$0xf] }
 0x50f   : > { %v2427_v58 = vpack.c.bf16 %v2380_v55, %v2366_v54  ;;  %v2541_v5 = vunpack.c.l.bf16 %v6463_v1  ;;  %v5433_v54 = vld [vmem:[#allocation10 + $0xac] sm:$0xf0]  ;;  %v5431_v55 = vld [vmem:[#allocation10 + $0xa4] sm:$0xf] }
 0x510   : > { %v2435_v44 = vunpack.c.l.bf16 %v2424_v20  ;;  %v2436_v49 = vunpack.c.h.bf16 %v2424_v20  ;;  %v5681_v32 = vpack.i.bf16 %v2508_v22, %v2507_v7  ;;  %v2526_v24 = vunpack.c.l.bf16 %v2522_v14  ;;  %v5469_v14 = vld [vmem:[#allocation10 + $0x1cc] sm:$0xf0] }
 0x511   : > { %v2441_v27 = vunpack.c.l.bf16 %v2427_v58  ;;  %v2442_v8 = vunpack.c.h.bf16 %v2427_v58 }
 0x512   : > { %v2455_v33 = vmul.f32 %v6415_v0, %v2435_v44  ;;  %v2456_v34 = vmul.f32 %v6417_v21, %v2436_v49  ;;  %5682 = vrot.lane.b32.xlu0 %v5681_v32, %s6067_s2  ;;  %v2473_v0 = vunpack.c.l.bf16 %v6446_v60 }
 0x513   : > { %v2461_v29 = vmul.f32 %v2447_v9, %v2441_v27  ;;  %v2462_v30 = vmul.f32 %v2448_v12, %v2442_v8  ;;  %v4941_v27 = vor.u32 %v5473_v46, %v4940_v45  ;;  %v5471_v8 = vld [vmem:[#allocation10 + $0x1e4] sm:$0xf]  ;;  %v4734_v45 = vld [vmem:[#allocation10 + $0x50] sm:$0xf0] }
 0x514   : > { %v6438_v38 = vpack.c.bf16 %v2456_v34, %v2455_v33  ;;  %v5691_v21 = vpack.i.bf16 %v2474_v26, %v2473_v0 }
 0x515   : > { %v2394_v39 = vpop.f32.mrf.mxu2  ;;  %v2408_v40 = vpop.f32.mrf.mxu3  ;;  %v6475_v2 = vpack.c.bf16 %v2462_v30, %v2461_v29  ;;  %v5429_v29 = vld [vmem:[#allocation10 + $0x8c] sm:$0xf0]  ;;  %v5427_v30 = vld [vmem:[#allocation10 + $0x84] sm:$0xf]  ;;  %3039 = vmatpush.bf16.msrb.mxu1 %v4941_v27 }
 0x516   : > { %v2428_v41 = vpack.c.bf16 %v2408_v40, %v2394_v39  ;;  %2597 = vrot.lane.b32.xlu1 %v6438_v38, %s6067_s2  ;;  %v2575_v61 = vunpack.c.l.bf16 %v6438_v38  ;;  %v5441_v39 = vld [vmem:[#allocation10 + $0xec] sm:$0xf0]  ;;  %v5439_v40 = vld [vmem:[#allocation10 + $0xe4] sm:$0xf] }
 0x517   : > { %v2542_v4 = vunpack.c.l.bf16 %v6475_v2  ;;  %v4817_v51 = vor.u32 %v5439_v40, %v4814_v42  ;;  %v5465_v40 = vld [vmem:[#allocation10 + $0x1ac] sm:$0xf0] }
 0x518   : > { %v2443_v52 = vunpack.c.l.bf16 %v2428_v41  ;;  %v2444_v53 = vunpack.c.h.bf16 %v2428_v41  ;;  %v4813_v41 = vor.u32 %v5441_v39, %v4812_v37  ;;  %v5425_v37 = vld [vmem:[#allocation10 + $0x6c] sm:$0xf0]  ;;  %v5423_v39 = vld [vmem:[#allocation10 + $0x64] sm:$0xf] }
 0x519   : > { %v5696_v6 = vpack.i.bf16 %v2542_v4, %v2541_v5  ;;  %3053 = vmatpush.bf16.msrb.mxu2 %v4817_v51 }
 0x51a   : > { %v2463_v31 = vmul.f32 %v2447_v9, %v2443_v52  ;;  %v2464_v11 = vmul.f32 %v2448_v12, %v2444_v53  ;;  %3025 = vmatpush.bf16.msrb.mxu0 %v4813_v41  ;;  %v4780_v53 = vld [vmem:[#allocation10 + $0xa0] sm:$0xf]  ;;  %v4750_v41 = vld [vmem:[#allocation10 + $0x70] sm:$0xf0] }
 0x51b   : > { %v4781_v62 = vor.u32 %v5433_v54, %v4780_v53  ;;  %v4753_v53 = vor.u32 %v5423_v39, %v4750_v41  ;;  %v5421_v54 = vld [vmem:[#allocation10 + $0x4c] sm:$0xf0]  ;;  %v4804_v41 = vld [vmem:[#allocation10 + $0xc8] sm:$0xf] }
 0x51c   : > { %v6444_v59 = vpack.c.bf16 %v2464_v11, %v2463_v31  ;;  %v4782_v31 = vld [vmem:[#allocation10 + $0xb0] sm:$0xf0]  ;;  %v2589_v11 = vrot.slane %v6438_v38, 4  ;;  %v4913_v38 = vor.u32 %v5463_v43, %v4910_v47  ;;  %v5436_v43 = vld [vmem:[#allocation10 + $0xcc] sm:$0xf] }
 0x51d   : > { %v4806_v47 = vld [vmem:[#allocation10 + $0xd8] sm:$0xf0] }
 0x51e   : > { %2599 = vrot.lane.b32.xlu2 %v6444_v59, %s6067_s2  ;;  %2495 = vrot.lane.b32.xlu1 %v6446_v60, %s6067_s2  ;;  %v2576_v48 = vunpack.c.l.bf16 %v6444_v59  ;;  %v2590_v58 = vrot.slane %v6444_v59, 4 }
 0x51f   : > { %3026 = vmatpush.bf16.msrb.mxu0 %v4797_v3  ;;  %v4892_v3 = vld [vmem:[#allocation10 + $0x180] sm:$0xf] }
 0x520   : > { %v5686_v28 = vpack.i.bf16 %v2576_v48, %v2575_v61 }
 0x522   : > { %5687 = vrot.lane.b32.xlu0 %v5686_v28, %s6067_s2  ;;  %v4785_v28 = vor.u32 %v5431_v55, %v4782_v31  ;;  %v5459_v55 = vld [vmem:[#allocation10 + $0x184] sm:$0xf]  ;;  %v4894_v31 = vld [vmem:[#allocation10 + $0x190] sm:$0xf0] }
 0x523   : > { %3027 = vmatpush.bf16.msrb.mxu0 %v4781_v62  ;;  %v4897_v27 = vor.u32 %v5459_v55, %v4894_v31  ;;  %v4772_v55 = vld [vmem:[#allocation10 + $0x88] sm:$0xf]  ;;  %v5430_v31 = vld [vmem:[#allocation10 + $0x94] sm:$0xf0] }
 0x526   : > { %2497 = vrot.lane.b32.xlu2 %v6455_v63, %s6067_s2  ;;  %2563 = vrot.lane.b32.xlu1 %v6463_v1, %s6067_s2 }
 0x52a   : > { %5692 = vrot.lane.b32.xlu0 %v5691_v21, %s6067_s2  ;;  %v4942_v21 = vld [vmem:[#allocation10 + $0x1f0] sm:$0xf0] }
 0x52e   : > { %2565 = vrot.lane.b32.xlu2 %v6475_v2, %s6067_s2 }
 0x532   : > { %5697 = vrot.lane.b32.xlu0 %v5696_v6, %s6067_s2 }
 0x568   : > { %v2532_v9 = vpop.permute.xlu2 %2531 }
 0x569   : > { %v2534_v17 = vrot.slane %v2532_v9, 4  ;;  %v4766_v9 = vld [vmem:[#allocation10 + $0x90] sm:$0xf0] }
 0x56b   : > { %v2538_v49 = vunpack.c.l.bf16 %v2534_v17 }
 0x578   : > { %v2530_v12 = vpop.permute.xlu1 %2529 }
 0x579   : > { %v2533_v10 = vrot.slane %v2530_v12, 4  ;;  %v4945_v12 = vor.u32 %v5471_v8, %v4942_v21  ;;  %v5415_v21 = vld [vmem:[#allocation10 + $0x24] sm:$0xf] }
 0x57b   : > { %v2537_v32 = vunpack.c.l.bf16 %v2533_v10  ;;  %3067 = vmatpush.bf16.msrb.mxu3 %v4945_v12  ;;  %v4860_v12 = vld [vmem:[#allocation10 + $0x140] sm:$0xf] }
 0x584   : > { %v5683_v15 = vpop.permute.xlu0 %5682 }
 0x585   : > { %v5685_v19 = vunpack.i.h.bf16 %v5683_v15  ;;  %v5684_v20 = vunpack.i.l.bf16 %v5683_v15 }
 0x587   : > { %v2518_v25 = vadd.f32 %v5685_v19, %v2508_v22  ;;  %v2517_v44 = vadd.f32 %v5684_v20, %v2507_v7  ;;  %v4798_v22 = vld [vmem:[#allocation10 + $0xd0] sm:$0xf0]  ;;  %v2600_v7 = vpop.permute.xlu2 %2599  ;;  %v4925_v19 = vor.u32 %v5469_v14, %v4924_v13  ;;  %v5467_v20 = vld [vmem:[#allocation10 + $0x1c4] sm:$0xf]  ;;  %v5453_v13 = vld [vmem:[#allocation10 + $0x14c] sm:$0xf0] }
 0x588   : > { %v4801_v52 = vor.u32 %v5435_v18, %v4798_v22  ;;  %v2602_v56 = vrot.slane %v2600_v7, 4  ;;  %v2598_v57 = vpop.permute.xlu1 %2597 }
 0x589   : > { %v2528_v33 = vadd.f32 %v2526_v24, %v2518_v25  ;;  %v2527_v34 = vadd.f32 %v2525_v23, %v2517_v44  ;;  %v2601_v15 = vrot.slane %v2598_v57, 4  ;;  %v4926_v23 = vld [vmem:[#allocation10 + $0x1d0] sm:$0xf0]  ;;  %v2593_v24 = vunpack.c.l.bf16 %v2589_v11  ;;  %v4748_v44 = vld [vmem:[#allocation10 + $0x60] sm:$0xf]  ;;  %3040 = vmatpush.bf16.msrb.mxu1 %v4925_v19 }
 0x58a   : > { %3054 = vmatpush.bf16.msrb.mxu2 %v4801_v52  ;;  %v4765_v25 = vor.u32 %v5429_v29, %v4764_v16  ;;  %v4749_v59 = vor.u32 %v5425_v37, %v4748_v44  ;;  %v5419_v11 = vld [vmem:[#allocation10 + $0x44] sm:$0xf]  ;;  %v4876_v57 = vld [vmem:[#allocation10 + $0x160] sm:$0xf]  ;;  %v4820_v44 = vld [vmem:[#allocation10 + $0xe8] sm:$0xf] }
 0x58b   : > { %v2539_v35 = vadd.f32 %v2537_v32, %v2527_v34  ;;  %v2540_v36 = vadd.f32 %v2538_v49, %v2528_v33  ;;  %v4929_v49 = vor.u32 %v5467_v20, %v4926_v23  ;;  %v4908_v32 = vld [vmem:[#allocation10 + $0x1a0] sm:$0xf]  ;;  %v2594_v33 = vunpack.c.l.bf16 %v2590_v58  ;;  %v5457_v58 = vld [vmem:[#allocation10 + $0x16c] sm:$0xf0]  ;;  %v5455_v29 = vld [vmem:[#allocation10 + $0x164] sm:$0xf] }
 0x58c   : > { %v4909_v42 = vor.u32 %v5465_v40, %v4908_v32  ;;  %v2605_v51 = vunpack.c.l.bf16 %v2601_v15  ;;  %3028 = vmatpush.bf16.msrb.mxu0 %v4765_v25  ;;  %v4716_v16 = vld [vmem:[#allocation10 + $0x20] sm:$0xf]  ;;  %v4737_v8 = vor.u32 %v5419_v11, %v4734_v45  ;;  %v5411_v20 = vld [vmem:[#allocation10 + $0x4] sm:$0xf]  ;;  %v4702_v25 = vld [vmem:[#allocation10 + $0x10] sm:$0xf0]  ;;  %v4861_v32 = vor.u32 %v5453_v13, %v4860_v12 }
 0x58d   : > { %v5701_v50 = vpack.i.bf16 %v2540_v36, %v2539_v35  ;;  %v4769_v36 = vor.u32 %v5427_v30, %v4766_v9  ;;  %3068 = vmatpush.bf16.msrb.mxu3 %v4929_v49  ;;  %v4878_v30 = vld [vmem:[#allocation10 + $0x170] sm:$0xf0]  ;;  %v4877_v9 = vor.u32 %v5457_v58, %v4876_v57  ;;  %v4700_v15 = vld [vmem:[#allocation10] sm:$0xf]  ;;  %v5451_v23 = vld [vmem:[#allocation10 + $0x144] sm:$0xf]  ;;  %v4705_v37 = vor.u32 %v5411_v20, %v4702_v25 }
 0x58e   : > { %3055 = vmatpush.bf16.msrb.mxu2 %v4785_v28  ;;  %3041 = vmatpush.bf16.msrb.mxu1 %v4909_v42  ;;  %v5417_v28 = vld [vmem:[#allocation10 + $0x2c] sm:$0xf0]  ;;  %v5442_v49 = vld [vmem:[#allocation10 + $0xf4] sm:$0xf0]  ;;  %v4773_v45 = vor.u32 %v5430_v31, %v4772_v55  ;;  %v4828_v58 = vld [vmem:[#allocation10 + $0x100] sm:$0xf] }
 0x58f   : > { %5702 = vrot.lane.b32.xlu0 %v5701_v50, %s6067_s2  ;;  %v2606_v50 = vunpack.c.l.bf16 %v2602_v56  ;;  %v4717_v14 = vor.u32 %v5417_v28, %v4716_v16  ;;  %v4821_v39 = vor.u32 %v5442_v49, %v4820_v44  ;;  %v5438_v42 = vld [vmem:[#allocation10 + $0xd4] sm:$0xf0]  ;;  %v5443_v16 = vld [vmem:[#allocation10 + $0x104] sm:$0xf]  ;;  %v4756_v28 = vld [vmem:[#allocation10 + $0x68] sm:$0xf] }
 0x590   : > { %3029 = vmatpush.bf16.msrb.mxu0 %v4749_v59  ;;  %v4790_v59 = vld [vmem:[#allocation10 + $0xb8] sm:$0xf0]  ;;  %v5424_v12 = vld [vmem:[#allocation10 + $0x6c] sm:$0xf]  ;;  %v4740_v20 = vld [vmem:[#allocation10 + $0x48] sm:$0xf] }
 0x591   : > { %3069 = vmatpush.bf16.msrb.mxu3 %v4913_v38  ;;  %v5470_v44 = vld [vmem:[#allocation10 + $0x1d4] sm:$0xf0]  ;;  %v5420_v49 = vld [vmem:[#allocation10 + $0x4c] sm:$0xf]  ;;  %v4710_v55 = vld [vmem:[#allocation10 + $0x18] sm:$0xf0] }
 0x592   : > { %3056 = vmatpush.bf16.msrb.mxu2 %v4769_v36 }
 0x594   : > { %v5688_v6 = vpop.permute.xlu0 %5687 }
 0x595   : > { %v5690_v17 = vunpack.i.h.bf16 %v5688_v6  ;;  %v5689_v10 = vunpack.i.l.bf16 %v5688_v6  ;;  %v4718_v6 = vld [vmem:[#allocation10 + $0x30] sm:$0xf0]  ;;  %3070 = vmatpush.bf16.msrb.mxu3 %v4897_v27 }
 0x596   : > { %3057 = vmatpush.bf16.msrb.mxu2 %v4753_v53  ;;  %v4721_v19 = vor.u32 %v5415_v21, %v4718_v6  ;;  %v4948_v6 = vld [vmem:[#allocation10 + $0x1e8] sm:$0xf] }
 0x597   : > { %v2586_v34 = vadd.f32 %v5690_v17, %v2576_v48  ;;  %v2585_v35 = vadd.f32 %v5689_v10, %v2575_v61  ;;  %v4732_v48 = vld [vmem:[#allocation10 + $0x40] sm:$0xf]  ;;  %v5461_v61 = vld [vmem:[#allocation10 + $0x18c] sm:$0xf0]  ;;  %v4881_v10 = vor.u32 %v5455_v29, %v4878_v30  ;;  %v5426_v29 = vld [vmem:[#allocation10 + $0x74] sm:$0xf0] }
 0x598   : > { %v4893_v46 = vor.u32 %v5461_v61, %v4892_v3  ;;  %v4733_v62 = vor.u32 %v5421_v54, %v4732_v48  ;;  %v5413_v17 = vld [vmem:[#allocation10 + $0xc] sm:$0xf0]  ;;  %v5432_v3 = vld [vmem:[#allocation10 + $0xac] sm:$0xf]  ;;  %v4844_v61 = vld [vmem:[#allocation10 + $0x120] sm:$0xf]  ;;  %v4757_v21 = vor.u32 %v5426_v29, %v4756_v28 }
 0x599   : > { %v2596_v18 = vadd.f32 %v2594_v33, %v2586_v34  ;;  %v2595_v22 = vadd.f32 %v2593_v24, %v2585_v35  ;;  %v4862_v24 = vld [vmem:[#allocation10 + $0x150] sm:$0xf0]  ;;  %v5440_v33 = vld [vmem:[#allocation10 + $0xec] sm:$0xf]  ;;  %v4822_v34 = vld [vmem:[#allocation10 + $0xf8] sm:$0xf0]  ;;  %v4701_v35 = vor.u32 %v5413_v17, %v4700_v15  ;;  %3071 = vmatpush.bf16.msrb.mxu3 %v4881_v10  ;;  %v4793_v38 = vor.u32 %v5432_v3, %v4790_v59 }
 0x59a   : > { %3042 = vmatpush.bf16.msrb.mxu1 %v4893_v46  ;;  %3030 = vmatpush.bf16.msrb.mxu0 %v4733_v62  ;;  %v4865_v36 = vor.u32 %v5451_v23, %v4862_v24  ;;  %v4825_v40 = vor.u32 %v5440_v33, %v4822_v34  ;;  %v4846_v54 = vld [vmem:[#allocation10 + $0x130] sm:$0xf0]  ;;  %v5428_v46 = vld [vmem:[#allocation10 + $0x8c] sm:$0xf]  ;;  %v5445_v62 = vld [vmem:[#allocation10 + $0x10c] sm:$0xf0] }
 0x59b   : > { %v2607_v7 = vadd.f32 %v2605_v51, %v2595_v22  ;;  %v2608_v52 = vadd.f32 %v2606_v50, %v2596_v18  ;;  %3058 = vmatpush.bf16.msrb.mxu2 %v4737_v8  ;;  %v4805_v50 = vor.u32 %v5438_v42, %v4804_v41  ;;  %v4809_v51 = vor.u32 %v5436_v43, %v4806_v47  ;;  %v4788_v18 = vld [vmem:[#allocation10 + $0xa8] sm:$0xf]  ;;  %v5434_v22 = vld [vmem:[#allocation10 + $0xb4] sm:$0xf0]  ;;  %v4830_v8 = vld [vmem:[#allocation10 + $0x110] sm:$0xf0] }
 0x59c   : > { %v4789_v48 = vor.u32 %v5434_v22, %v4788_v18  ;;  %v4829_v27 = vor.u32 %v5445_v62, %v4828_v58  ;;  %v4833_v30 = vor.u32 %v5443_v16, %v4830_v8  ;;  %v5472_v15 = vld [vmem:[#allocation10 + $0x1ec] sm:$0xf]  ;;  %v4950_v17 = vld [vmem:[#allocation10 + $0x1f8] sm:$0xf0]  ;;  %v5422_v23 = vld [vmem:[#allocation10 + $0x54] sm:$0xf0] }
 0x59d   : > { %v5706_v56 = vpack.i.bf16 %v2608_v52, %v2607_v7  ;;  %3072 = vmatpush.bf16.msrb.mxu3 %v4865_v36  ;;  %v5449_v7 = vld [vmem:[#allocation10 + $0x12c] sm:$0xf0]  ;;  %v5447_v52 = vld [vmem:[#allocation10 + $0x124] sm:$0xf]  ;;  %v4932_v24 = vld [vmem:[#allocation10 + $0x1c8] sm:$0xf]  ;;  %v4741_v25 = vor.u32 %v5422_v23, %v4740_v20 }
 0x59e   : > { %3043 = vmatpush.bf16.msrb.mxu1 %v4877_v9  ;;  %3031 = vmatpush.bf16.msrb.mxu0 %v4717_v14  ;;  %v4845_v53 = vor.u32 %v5449_v7, %v4844_v61  ;;  %v4849_v11 = vor.u32 %v5447_v52, %v4846_v54  ;;  %v5474_v9 = vld [vmem:[#allocation10 + $0x1f4] sm:$0xf0]  ;;  %v4758_v14 = vld [vmem:[#allocation10 + $0x78] sm:$0xf0]  ;;  %v4933_v33 = vor.u32 %v5470_v44, %v4932_v24  ;;  %v4916_v41 = vld [vmem:[#allocation10 + $0x1a8] sm:$0xf] }
 0x59f   : > { %5707 = vrot.lane.b32.xlu1 %v5706_v56, %s6067_s2  ;;  %3059 = vmatpush.bf16.msrb.mxu2 %v4721_v19  ;;  %v4774_v56 = vld [vmem:[#allocation10 + $0x98] sm:$0xf0]  ;;  %v4949_v13 = vor.u32 %v5474_v9, %v4948_v6  ;;  %v4761_v10 = vor.u32 %v5424_v12, %v4758_v14  ;;  %v4953_v19 = vor.u32 %v5472_v15, %v4950_v17  ;;  %v5466_v42 = vld [vmem:[#allocation10 + $0x1b4] sm:$0xf0]  ;;  %v5416_v47 = vld [vmem:[#allocation10 + $0x2c] sm:$0xf]  ;;  %v2496_v14 = vpop.permute.xlu1 %2495 }
 0x5a0   : > { %v4777_v57 = vor.u32 %v5428_v46, %v4774_v56  ;;  %v4934_v36 = vld [vmem:[#allocation10 + $0x1d8] sm:$0xf0]  ;;  %v4917_v18 = vor.u32 %v5466_v42, %v4916_v41  ;;  %v5414_v61 = vld [vmem:[#allocation10 + $0x14] sm:$0xf0]  ;;  %v4900_v7 = vld [vmem:[#allocation10 + $0x188] sm:$0xf] }
 0x5a1   : > { %3073 = vmatpush.bf16.msrb.mxu3 %v4849_v11  ;;  %v4918_v22 = vld [vmem:[#allocation10 + $0x1b8] sm:$0xf0]  ;;  %v5412_v54 = vld [vmem:[#allocation10 + $0xc] sm:$0xf]  ;;  %v4884_v62 = vld [vmem:[#allocation10 + $0x168] sm:$0xf] }
 0x5a2   : > { %3044 = vmatpush.bf16.msrb.mxu1 %v4861_v32  ;;  %3032 = vmatpush.bf16.msrb.mxu0 %v4701_v35  ;;  %v4742_v32 = vld [vmem:[#allocation10 + $0x58] sm:$0xf0]  ;;  %v5468_v35 = vld [vmem:[#allocation10 + $0x1cc] sm:$0xf]  ;;  %v4713_v11 = vor.u32 %v5412_v54, %v4710_v55  ;;  %v5458_v16 = vld [vmem:[#allocation10 + $0x174] sm:$0xf0] }
 0x5a3   : > { %3060 = vmatpush.bf16.msrb.mxu2 %v4705_v37  ;;  %v4745_v34 = vor.u32 %v5420_v49, %v4742_v32  ;;  %v4724_v37 = vld [vmem:[#allocation10 + $0x28] sm:$0xf]  ;;  %v4902_v46 = vld [vmem:[#allocation10 + $0x198] sm:$0xf0]  ;;  %v2487_v8 = vrot.slane %v6446_v60, 4  ;;  %v2488_v28 = vrot.slane %v6455_v63, 4  ;;  %v4885_v29 = vor.u32 %v5458_v16, %v4884_v62 }
 0x5a4   : > { %v4868_v9 = vld [vmem:[#allocation10 + $0x148] sm:$0xf]  ;;  %v5454_v12 = vld [vmem:[#allocation10 + $0x154] sm:$0xf0]  ;;  %v5448_v32 = vld [vmem:[#allocation10 + $0x12c] sm:$0xf] }
 0x5a5   : > { %3074 = vmatpush.bf16.msrb.mxu3 %v4833_v30  ;;  %v4886_v30 = vld [vmem:[#allocation10 + $0x178] sm:$0xf0]  ;;  %v4852_v24 = vld [vmem:[#allocation10 + $0x128] sm:$0xf]  ;;  %v2492_v49 = vunpack.c.l.bf16 %v2488_v28  ;;  %v5004_v55 = vld [vmem:[#allocation13 + $0x60] sm:$0xf] }
 0x5a6   : > { %3081 = vmatpush.bf16.msra.mxu0 %v4821_v39  ;;  %3045 = vmatpush.bf16.msrb.mxu1 %v4845_v53  ;;  %v4937_v39 = vor.u32 %v5468_v35, %v4934_v36  ;;  %v5462_v53 = vld [vmem:[#allocation10 + $0x194] sm:$0xf0]  ;;  %v2491_v35 = vunpack.c.l.bf16 %v2487_v8  ;;  %v4838_v41 = vld [vmem:[#allocation10 + $0x118] sm:$0xf0]  ;;  %v4996_v8 = vld [vmem:[#allocation13 + $0x50] sm:$0xf] }
 0x5a7   : > { %3109 = vmatpush.bf16.msra.mxu2 %v4825_v40  ;;  %v5418_v40 = vld [vmem:[#allocation10 + $0x34] sm:$0xf0]  ;;  %v4901_v31 = vor.u32 %v5462_v53, %v4900_v7  ;;  %v2556_v7 = vrot.slane %v6475_v2, 4  ;;  %v5012_v53 = vld [vmem:[#allocation13 + $0x70] sm:$0xf]  ;;  %s3746_s2 = sshll.u32 %s509_s15, 4  ;;  %s3747_s2 = int_to_ptr.vmem [resolvable:$true] %s3746_s2 }
 0x5a8   : > { %v4725_v43 = vor.u32 %v5418_v40, %v4724_v37  ;;  %v5446_v40 = vld [vmem:[#allocation10 + $0x114] sm:$0xf0]  ;;  %v5490_v54 = vld [vmem:[#allocation13 + $0x74] sm:$0xf0] }
 0x5a9   : > { %3123 = vmatpush.bf16.msra.mxu3 %v4953_v19  ;;  %v4870_v19 = vld [vmem:[#allocation10 + $0x158] sm:$0xf0] }
 0x5aa   : > { %3082 = vmatpush.bf16.msra.mxu0 %v4805_v50  ;;  %3046 = vmatpush.bf16.msrb.mxu1 %v4829_v27  ;;  %v4726_v50 = vld [vmem:[#allocation10 + $0x38] sm:$0xf0]  ;;  %v5456_v27 = vld [vmem:[#allocation10 + $0x16c] sm:$0xf] }
 0x5ab   : > { %3110 = vmatpush.bf16.msra.mxu2 %v4809_v51  ;;  %v5464_v51 = vld [vmem:[#allocation10 + $0x1ac] sm:$0xf]  ;;  %v4729_v3 = vor.u32 %v5416_v47, %v4726_v50  ;;  %v4889_v6 = vor.u32 %v5456_v27, %v4886_v30  ;;  %v2560_v27 = vunpack.c.l.bf16 %v2556_v7  ;;  %v5486_v28 = vld [vmem:[#allocation13 + $0x54] sm:$0xf0] }
 0x5ac   : > { %v4921_v59 = vor.u32 %v5464_v51, %v4918_v22 }
 0x5ad   : > { %3124 = vmatpush.bf16.msra.mxu3 %v4937_v39  ;;  %v4836_v39 = vld [vmem:[#allocation10 + $0x108] sm:$0xf] }
 0x5ae   : > { %3083 = vmatpush.bf16.msra.mxu0 %v4789_v48  ;;  %3095 = vmatpush.bf16.msra.mxu1 %v4949_v13  ;;  %v5693_v48 = vpop.permute.xlu0 %5692  ;;  %v5452_v13 = vld [vmem:[#allocation10 + $0x14c] sm:$0xf]  ;;  %v4837_v50 = vor.u32 %v5446_v40, %v4836_v39  ;;  %v5522_v40 = vld [vmem:[#allocation13 + $0x174] sm:$0xf0] }
 0x5af   : > { %3111 = vmatpush.bf16.msra.mxu2 %v4793_v38  ;;  %v4708_v38 = vld [vmem:[#allocation10 + $0x8] sm:$0xf]  ;;  %v5694_v58 = vunpack.i.l.bf16 %v5693_v48  ;;  %v4873_v23 = vor.u32 %v5452_v13, %v4870_v19  ;;  %v4988_v13 = vld [vmem:[#allocation13 + $0x40] sm:$0xf]  ;;  %v5506_v19 = vld [vmem:[#allocation13 + $0xf4] sm:$0xf0] }
 0x5b0   : > { %v4709_v52 = vor.u32 %v5414_v61, %v4708_v38 }
 0x5b1   : > { %3125 = vmatpush.bf16.msra.mxu3 %v4921_v59  ;;  %v2483_v20 = vadd.f32 %v5694_v58, %v2473_v0  ;;  %v5444_v0 = vld [vmem:[#allocation10 + $0x10c] sm:$0xf] }
 0x5b2   : > { %3084 = vmatpush.bf16.msra.mxu0 %v4773_v45  ;;  %3096 = vmatpush.bf16.msra.mxu1 %v4933_v33  ;;  %v5460_v45 = vld [vmem:[#allocation10 + $0x18c] sm:$0xf]  ;;  %v4854_v33 = vld [vmem:[#allocation10 + $0x138] sm:$0xf0] }
 0x5b3   : > { %3112 = vmatpush.bf16.msra.mxu2 %v4777_v57  ;;  %v4905_v56 = vor.u32 %v5460_v45, %v4902_v46  ;;  %v5695_v57 = vunpack.i.h.bf16 %v5693_v48  ;;  %v4857_v37 = vor.u32 %v5448_v32, %v4854_v33  ;;  %v5013_v45 = vor.u32 %v5490_v54, %v5012_v53  ;;  %v5488_v46 = vld [vmem:[#allocation13 + $0x64] sm:$0xf0]  ;;  %v5478_v53 = vld [vmem:[#allocation13 + $0x14] sm:$0xf0]  ;;  %v5124_v54 = vld [vmem:[#allocation13 + $0x150] sm:$0xf] }
 0x5b4   : > { %v5005_v62 = vor.u32 %v5488_v46, %v5004_v55  ;;  %v5504_v32 = vld [vmem:[#allocation13 + $0xe4] sm:$0xf0] }
 0x5b5   : > { %3126 = vmatpush.bf16.msra.mxu3 %v4905_v56  ;;  %v2484_v15 = vadd.f32 %v5695_v57, %v2474_v26  ;;  %v2493_v26 = vadd.f32 %v2491_v35, %v2483_v20  ;;  %v2564_v56 = vpop.permute.xlu1 %2563  ;;  %v5502_v35 = vld [vmem:[#allocation13 + $0xd4] sm:$0xf0] }
 0x5b6   : > { %3085 = vmatpush.bf16.msra.mxu0 %v4757_v21  ;;  %3097 = vmatpush.bf16.msra.mxu1 %v4917_v18  ;;  %v2498_v21 = vpop.permute.xlu2 %2497  ;;  %v5698_v17 = vpop.permute.xlu0 %5697 }
 0x5b7   : > { %3113 = vmatpush.bf16.msra.mxu2 %v4761_v10  ;;  %v4869_v10 = vor.u32 %v5454_v12, %v4868_v9  ;;  %v2500_v44 = vrot.slane %v2498_v21, 4  ;;  %v2494_v36 = vadd.f32 %v2492_v49, %v2484_v15  ;;  %v5700_v38 = vunpack.i.h.bf16 %v5698_v17  ;;  %v5068_v49 = vld [vmem:[#allocation13 + $0xe0] sm:$0xf] }
 0x5b8   : > { %v4997_v9 = vor.u32 %v5486_v28, %v4996_v8  ;;  %v5069_v33 = vor.u32 %v5504_v32, %v5068_v49  ;;  %v5116_v8 = vld [vmem:[#allocation13 + $0x140] sm:$0xf]  ;;  %v5532_v49 = vld [vmem:[#allocation13 + $0x1c4] sm:$0xf0]  ;;  %v5505_v32 = vld [vmem:[#allocation13 + $0xf4] sm:$0xf] }
 0x5b9   : > { %3127 = vmatpush.bf16.msra.mxu3 %v4889_v6  ;;  %v2504_v60 = vunpack.c.l.bf16 %v2500_v44  ;;  %v2552_v57 = vadd.f32 %v5700_v38, %v2542_v4 }
 0x5ba   : > { %3086 = vmatpush.bf16.msra.mxu0 %v4741_v25  ;;  %3098 = vmatpush.bf16.msra.mxu1 %v4901_v31  ;;  %v5450_v25 = vld [vmem:[#allocation10 + $0x134] sm:$0xf0] }
 0x5bb   : > { %3114 = vmatpush.bf16.msra.mxu2 %v4745_v34  ;;  %v2499_v34 = vrot.slane %v2496_v14, 4  ;;  %v4853_v63 = vor.u32 %v5450_v25, %v4852_v24  ;;  %v2562_v21 = vadd.f32 %v2560_v27, %v2552_v57  ;;  %v5484_v14 = vld [vmem:[#allocation13 + $0x44] sm:$0xf0]  ;;  %v5196_v57 = vld [vmem:[#allocation13 + $0x1e0] sm:$0xf] }
 0x5bc   : > { %v4989_v20 = vor.u32 %v5484_v14, %v4988_v13  ;;  %v5476_v27 = vld [vmem:[#allocation13 + $0x4] sm:$0xf0]  ;;  %v5494_v13 = vld [vmem:[#allocation13 + $0x94] sm:$0xf0]  ;;  %v5188_v14 = vld [vmem:[#allocation13 + $0x1d0] sm:$0xf] }
 0x5bd   : > { %3128 = vmatpush.bf16.msra.mxu3 %v4873_v23  ;;  %v2503_v42 = vunpack.c.l.bf16 %v2499_v34  ;;  %v5060_v34 = vld [vmem:[#allocation13 + $0xd0] sm:$0xf] }
 0x5be   : > { %3087 = vmatpush.bf16.msra.mxu0 %v4725_v43  ;;  %3099 = vmatpush.bf16.msra.mxu1 %v4885_v29  ;;  %v2506_v43 = vadd.f32 %v2504_v60, %v2494_v36  ;;  %v2566_v31 = vpop.permute.xlu2 %2565  ;;  %v2567_v29 = vrot.slane %v2564_v56, 4  ;;  %v5061_v36 = vor.u32 %v5502_v35, %v5060_v34  ;;  %v5052_v60 = vld [vmem:[#allocation13 + $0xc0] sm:$0xf] }
 0x5bf   : > { %3115 = vmatpush.bf16.msra.mxu2 %v4729_v3  ;;  %v2505_v51 = vadd.f32 %v2503_v42, %v2493_v26  ;;  %v4841_v3 = vor.u32 %v5444_v0, %v4838_v41  ;;  %v2568_v16 = vrot.slane %v2566_v31, 4  ;;  %v5482_v26 = vld [vmem:[#allocation13 + $0x34] sm:$0xf0]  ;;  %v5500_v0 = vld [vmem:[#allocation13 + $0xc4] sm:$0xf0] }
 0x5c0   : > { %v2571_v2 = vunpack.c.l.bf16 %v2567_v29  ;;  %v5053_v42 = vor.u32 %v5500_v0, %v5052_v60  ;;  %v5518_v31 = vld [vmem:[#allocation13 + $0x154] sm:$0xf0]  ;;  %v5516_v29 = vld [vmem:[#allocation13 + $0x144] sm:$0xf0]  ;;  %v5172_v60 = vld [vmem:[#allocation13 + $0x1b0] sm:$0xf] }
 0x5c1   : > { %3129 = vmatpush.bf16.msra.mxu3 %v4857_v37  ;;  %v2572_v12 = vunpack.c.l.bf16 %v2568_v16  ;;  %v5140_v37 = vld [vmem:[#allocation13 + $0x170] sm:$0xf]  ;;  %v5125_v46 = vor.u32 %v5518_v31, %v5124_v54  ;;  %v4956_v16 = vld [vmem:[#allocation13] sm:$0xf]  ;;  %v5530_v0 = vld [vmem:[#allocation13 + $0x1b4] sm:$0xf0] }
 0x5c2   : > { %3088 = vmatpush.bf16.msra.mxu0 %v4709_v52  ;;  %3100 = vmatpush.bf16.msra.mxu1 %v4869_v10  ;;  %v5699_v52 = vunpack.i.l.bf16 %v5698_v17  ;;  %v5076_v10 = vld [vmem:[#allocation13 + $0xf0] sm:$0xf]  ;;  %v5141_v41 = vor.u32 %v5522_v40, %v5140_v37  ;;  %v4957_v28 = vor.u32 %v5476_v27, %v4956_v16  ;;  %v5485_v37 = vld [vmem:[#allocation13 + $0x54] sm:$0xf]  ;;  %v5084_v54 = vld [vmem:[#allocation13 + $0x100] sm:$0xf] }
 0x5c3   : > { %3116 = vmatpush.bf16.msra.mxu2 %v4713_v11  ;;  %v2555_v11 = vrot.slane %v6463_v1, 4  ;;  %v2574_v4 = vadd.f32 %v2572_v12, %v2562_v21  ;;  %v5077_v44 = vor.u32 %v5506_v19, %v5076_v10  ;;  %v5014_v21 = vld [vmem:[#allocation13 + $0x78] sm:$0xf0]  ;;  %v5028_v12 = vld [vmem:[#allocation13 + $0x90] sm:$0xf] }
 0x5c4   : > { %v2551_v58 = vadd.f32 %v5699_v52, %v2541_v5  ;;  %v4964_v52 = vld [vmem:[#allocation13 + $0x10] sm:$0xf]  ;;  %v5487_v10 = vld [vmem:[#allocation13 + $0x64] sm:$0xf]  ;;  %v5006_v19 = vld [vmem:[#allocation13 + $0x68] sm:$0xf0] }
 0x5c5   : > { %3130 = vmatpush.bf16.msra.mxu3 %v4841_v3  ;;  %v2559_v30 = vunpack.c.l.bf16 %v2555_v11  ;;  %v5044_v3 = vld [vmem:[#allocation13 + $0xb0] sm:$0xf]  ;;  %v4965_v55 = vor.u32 %v5478_v53, %v4964_v52  ;;  %v5036_v11 = vld [vmem:[#allocation13 + $0xa0] sm:$0xf]  ;;  %v5062_v52 = vld [vmem:[#allocation13 + $0xd8] sm:$0xf0] }
 0x5c6   : > { %3101 = vmatpush.bf16.msra.mxu1 %v4853_v63  ;;  %v4980_v63 = vld [vmem:[#allocation13 + $0x30] sm:$0xf] }
 0x5c7   : > { %v2561_v6 = vadd.f32 %v2559_v30, %v2551_v58  ;;  %v4981_v39 = vor.u32 %v5482_v26, %v4980_v63  ;;  %v5536_v58 = vld [vmem:[#allocation13 + $0x1e4] sm:$0xf0]  ;;  %v5489_v30 = vld [vmem:[#allocation13 + $0x74] sm:$0xf] }
 0x5c8   : > { %v5512_v63 = vld [vmem:[#allocation13 + $0x124] sm:$0xf0] }
 0x5c9   : > { %v2573_v1 = vadd.f32 %v2571_v2, %v2561_v6  ;;  %v5117_v6 = vor.u32 %v5516_v29, %v5116_v8  ;;  %v5029_v2 = vor.u32 %v5494_v13, %v5028_v12  ;;  %v5499_v8 = vld [vmem:[#allocation13 + $0xc4] sm:$0xf]  ;;  %v5134_v12 = vld [vmem:[#allocation13 + $0x168] sm:$0xf0]  ;;  %v5148_v13 = vld [vmem:[#allocation13 + $0x180] sm:$0xf] }
 0x5ca   : > { %3102 = vmatpush.bf16.msra.mxu1 %v4837_v50  ;;  %v5132_v50 = vld [vmem:[#allocation13 + $0x160] sm:$0xf] }
 0x601   : > { %v5703_v47 = vpop.permute.xlu0 %5702 }
 0x602   : > { %v5705_v18 = vunpack.i.h.bf16 %v5703_v47  ;;  %v5704_v22 = vunpack.i.l.bf16 %v5703_v47  ;;  %v5480_v47 = vld [vmem:[#allocation13 + $0x24] sm:$0xf0] }
 0x604   : > { %v2626_v59 = vsel %vm1307_vm0, %v2506_v43, %v5705_v18  ;;  %v2625_v48 = vsel %vm1307_vm0, %v2505_v51, %v5704_v22  ;;  %v4972_v43 = vld [vmem:[#allocation13 + $0x20] sm:$0xf]  ;;  %v5520_v18 = vld [vmem:[#allocation13 + $0x164] sm:$0xf0] }
 0x605   : > { %v2629_v61 = vpack.c.bf16 %v2626_v59, %v2625_v48  ;;  %v4973_v51 = vor.u32 %v5480_v47, %v4972_v43  ;;  %v5133_v22 = vor.u32 %v5520_v18, %v5132_v50  ;;  %v5498_v59 = vld [vmem:[#allocation13 + $0xb4] sm:$0xf0]  ;;  %v5204_v48 = vld [vmem:[#allocation13 + $0x1f0] sm:$0xf]  ;;  %v5070_v43 = vld [vmem:[#allocation13 + $0xe8] sm:$0xf0] }
 0x606   : > { %v5045_v38 = vor.u32 %v5498_v59, %v5044_v3  ;;  %v5092_v50 = vld [vmem:[#allocation13 + $0x110] sm:$0xf]  ;;  %v4990_v3 = vld [vmem:[#allocation13 + $0x48] sm:$0xf0] }
 0x607   : > { %3033 = vmatmul.bf16.vlgmr.msrb.gmra.mxu0 %v2629_v61  ;;  %3061 = vmatmul.bf16.vlgmr.msrb.gmra.mxu2 %v2629_v61 }
 0x608   : > { %3539 = vmatpush.bf16.msrb.mxu0 %v5013_v45  ;;  %3567 = vmatpush.bf16.msrb.mxu2 %v5141_v41  ;;  %v5496_v45 = vld [vmem:[#allocation13 + $0xa4] sm:$0xf0]  ;;  %v5173_v41 = vor.u32 %v5530_v0, %v5172_v60  ;;  %v5118_v0 = vld [vmem:[#allocation13 + $0x148] sm:$0xf0] }
 0x609   : > { %v5037_v56 = vor.u32 %v5496_v45, %v5036_v11  ;;  %v5481_v11 = vld [vmem:[#allocation13 + $0x34] sm:$0xf]  ;;  %v4982_v45 = vld [vmem:[#allocation13 + $0x38] sm:$0xf0] }
 0x60c   : > { %3540 = vmatpush.bf16.msrb.mxu0 %v5005_v62  ;;  %3568 = vmatpush.bf16.msrb.mxu2 %v5133_v22  ;;  %v5197_v62 = vor.u32 %v5536_v58, %v5196_v57  ;;  %v5483_v22 = vld [vmem:[#allocation13 + $0x44] sm:$0xf]  ;;  %v5142_v57 = vld [vmem:[#allocation13 + $0x178] sm:$0xf0]  ;;  %v5156_v58 = vld [vmem:[#allocation13 + $0x190] sm:$0xf] }
 0x60d   : > { %v4993_v59 = vor.u32 %v5483_v22, %v4990_v3  ;;  %v6517_v22 = vld [vmem:[#allocation11] sm:$0xf] }
 0x610   : > { %3541 = vmatpush.bf16.msrb.mxu0 %v4997_v9  ;;  %3569 = vmatpush.bf16.msrb.mxu2 %v5125_v46  ;;  %v5017_v9 = vor.u32 %v5489_v30, %v5014_v21  ;;  %v5521_v46 = vld [vmem:[#allocation13 + $0x174] sm:$0xf]  ;;  %v5479_v30 = vld [vmem:[#allocation13 + $0x24] sm:$0xf]  ;;  %v4974_v21 = vld [vmem:[#allocation13 + $0x28] sm:$0xf0] }
 0x611   : > { %v5708_v15 = vpop.permute.xlu1 %5707  ;;  %v5145_v16 = vor.u32 %v5521_v46, %v5142_v57  ;;  %v5511_v46 = vld [vmem:[#allocation13 + $0x124] sm:$0xf] }
 0x612   : > { %v5710_v5 = vunpack.i.h.bf16 %v5708_v15  ;;  %v5709_v17 = vunpack.i.l.bf16 %v5708_v15 }
 0x614   : > { %v2627_v23 = vsel %vm1307_vm0, %v2573_v1, %v5709_v17  ;;  %v2628_v24 = vsel %vm1307_vm0, %v2574_v4, %v5710_v5  ;;  %3542 = vmatpush.bf16.msrb.mxu0 %v4989_v20  ;;  %v5534_v4 = vld [vmem:[#allocation13 + $0x1d4] sm:$0xf0]  ;;  %3570 = vmatpush.bf16.msrb.mxu2 %v5117_v6  ;;  %v5108_v1 = vld [vmem:[#allocation13 + $0x130] sm:$0xf]  ;;  %v5009_v20 = vor.u32 %v5487_v10, %v5006_v19  ;;  %v5519_v6 = vld [vmem:[#allocation13 + $0x164] sm:$0xf] }
 0x615   : > { %v2630_v25 = vpack.c.bf16 %v2628_v24, %v2627_v23  ;;  %v5189_v15 = vor.u32 %v5534_v4, %v5188_v14  ;;  %v5514_v5 = vld [vmem:[#allocation13 + $0x134] sm:$0xf0]  ;;  %v5020_v23 = vld [vmem:[#allocation13 + $0x80] sm:$0xf]  ;;  %v5492_v24 = vld [vmem:[#allocation13 + $0x84] sm:$0xf0] }
 0x616   : > { %v5109_v17 = vor.u32 %v5514_v5, %v5108_v1  ;;  %v5524_v14 = vld [vmem:[#allocation13 + $0x184] sm:$0xf0]  ;;  %v5046_v1 = vld [vmem:[#allocation13 + $0xb8] sm:$0xf0]  ;;  %v5537_v5 = vld [vmem:[#allocation13 + $0x1f4] sm:$0xf] }
 0x617   : > { %3047 = vmatmul.bf16.vlgmr.msrb.gmra.mxu1 %v2630_v25  ;;  %3075 = vmatmul.bf16.vlgmr.msrb.gmra.mxu3 %v2630_v25  ;;  %v5149_v4 = vor.u32 %v5524_v14, %v5148_v13  ;;  %v5206_v10 = vld [vmem:[#allocation13 + $0x1f8] sm:$0xf0] }
 0x618   : > { %3089 = vmatmul.bf16.vlgmr.msra.gmra.mxu0 %v2629_v61  ;;  %3117 = vmatmul.bf16.vlgmr.msra.gmra.mxu2 %v2629_v61  ;;  %v5538_v61 = vld [vmem:[#allocation13 + $0x1f4] sm:$0xf0] }
 0x619   : > { %3553 = vmatpush.bf16.msrb.mxu1 %v5077_v44  ;;  %3543 = vmatpush.bf16.msrb.mxu0 %v4981_v39  ;;  %v5205_v7 = vor.u32 %v5538_v61, %v5204_v48  ;;  %v5021_v44 = vor.u32 %v5492_v24, %v5020_v23  ;;  %v4998_v39 = vld [vmem:[#allocation13 + $0x58] sm:$0xf0]  ;;  %v5164_v48 = vld [vmem:[#allocation13 + $0x1a0] sm:$0xf]  ;;  %v5477_v23 = vld [vmem:[#allocation13 + $0x14] sm:$0xf] }
 0x61a   : > { %3571 = vmatpush.bf16.msrb.mxu2 %v5109_v17  ;;  %v5001_v40 = vor.u32 %v5485_v37, %v4998_v39  ;;  %v4966_v24 = vld [vmem:[#allocation13 + $0x18] sm:$0xf0]  ;;  %v5475_v37 = vld [vmem:[#allocation13 + $0x4] sm:$0xf]  ;;  %v4958_v39 = vld [vmem:[#allocation13 + $0x8] sm:$0xf0] }
 0x61b   : > { %3581 = vmatpush.bf16.msrb.mxu3 %v5205_v7  ;;  %v5501_v7 = vld [vmem:[#allocation13 + $0xd4] sm:$0xf]  ;;  %v4961_v60 = vor.u32 %v5475_v37, %v4958_v39 }
 0x61c   : > { %v5065_v53 = vor.u32 %v5501_v7, %v5062_v52  ;;  %v5491_v52 = vld [vmem:[#allocation13 + $0x84] sm:$0xf] }
 0x61d   : > { %3554 = vmatpush.bf16.msrb.mxu1 %v5069_v33  ;;  %3544 = vmatpush.bf16.msrb.mxu0 %v4973_v51  ;;  %v5078_v33 = vld [vmem:[#allocation13 + $0xf8] sm:$0xf0]  ;;  %v5510_v51 = vld [vmem:[#allocation13 + $0x114] sm:$0xf0] }
 0x61e   : > { %v5081_v35 = vor.u32 %v5505_v32, %v5078_v33  ;;  %v5093_v18 = vor.u32 %v5510_v51, %v5092_v50  ;;  %v5495_v33 = vld [vmem:[#allocation13 + $0xa4] sm:$0xf]  ;;  %v5533_v50 = vld [vmem:[#allocation13 + $0x1d4] sm:$0xf] }
 0x61f   : > { %3582 = vmatpush.bf16.msrb.mxu3 %v5197_v62  ;;  %v5526_v62 = vld [vmem:[#allocation13 + $0x194] sm:$0xf0] }
 0x620   : > { %v5157_v27 = vor.u32 %v5526_v62, %v5156_v58  ;;  %v5529_v58 = vld [vmem:[#allocation13 + $0x1b4] sm:$0xf]  ;;  %v5174_v62 = vld [vmem:[#allocation13 + $0x1b8] sm:$0xf0] }
 0x621   : > { %3555 = vmatpush.bf16.msrb.mxu1 %v5061_v36  ;;  %3545 = vmatpush.bf16.msrb.mxu0 %v4965_v55  ;;  %v5100_v36 = vld [vmem:[#allocation13 + $0x120] sm:$0xf]  ;;  %v5508_v55 = vld [vmem:[#allocation13 + $0x104] sm:$0xf0] }
 0x622   : > { %v5101_v26 = vor.u32 %v5512_v63, %v5100_v36  ;;  %v5085_v31 = vor.u32 %v5508_v55, %v5084_v54  ;;  %v5198_v63 = vld [vmem:[#allocation13 + $0x1e8] sm:$0xf0]  ;;  %v5531_v54 = vld [vmem:[#allocation13 + $0x1c4] sm:$0xf]  ;;  %v2697_v55 = vperm.slane %v6517_v22, 0 }
 0x623   : > { %3583 = vmatpush.bf16.msrb.mxu3 %v5189_v15  ;;  %v5497_v15 = vld [vmem:[#allocation13 + $0xb4] sm:$0xf] }
 0x624   : > { %3572 = vmatpush.bf16.msrb.mxu2 %v5101_v26  ;;  %v5049_v17 = vor.u32 %v5497_v15, %v5046_v1 }
 0x625   : > { %3556 = vmatpush.bf16.msrb.mxu1 %v5053_v42  ;;  %3546 = vmatpush.bf16.msrb.mxu0 %v4957_v28  ;;  %v5503_v42 = vld [vmem:[#allocation13 + $0xe4] sm:$0xf]  ;;  %v5054_v28 = vld [vmem:[#allocation13 + $0xc8] sm:$0xf0] }
 0x626   : > { %v5073_v47 = vor.u32 %v5503_v42, %v5070_v43  ;;  %v5057_v29 = vor.u32 %v5499_v8, %v5054_v28  ;;  %v5493_v43 = vld [vmem:[#allocation13 + $0x94] sm:$0xf]  ;;  %v5094_v28 = vld [vmem:[#allocation13 + $0x118] sm:$0xf0] }
 0x627   : > { %3103 = vmatmul.bf16.vlgmr.msra.gmra.mxu1 %v2630_v25  ;;  %3131 = vmatmul.bf16.vlgmr.msra.gmra.mxu3 %v2630_v25  ;;  %v5180_v25 = vld [vmem:[#allocation13 + $0x1c0] sm:$0xf]  ;;  %v5509_v8 = vld [vmem:[#allocation13 + $0x114] sm:$0xf] }
 0x628   : > { %v5181_v34 = vor.u32 %v5532_v49, %v5180_v25  ;;  %3573 = vmatpush.bf16.msrb.mxu2 %v5093_v18  ;;  %v5517_v25 = vld [vmem:[#allocation13 + $0x154] sm:$0xf]  ;;  %v5126_v49 = vld [vmem:[#allocation13 + $0x158] sm:$0xf0] }
 0x629   : > { %3557 = vmatpush.bf16.msrb.mxu1 %v5045_v38  ;;  %3595 = vmatpush.bf16.msra.mxu0 %v5017_v9  ;;  %v5528_v38 = vld [vmem:[#allocation13 + $0x1a4] sm:$0xf0]  ;;  %v4977_v9 = vor.u32 %v5479_v30, %v4974_v21  ;;  %v5129_v32 = vor.u32 %v5517_v25, %v5126_v49  ;;  %v5190_v18 = vld [vmem:[#allocation13 + $0x1d8] sm:$0xf0] }
 0x62a   : > { %3584 = vmatpush.bf16.msrb.mxu3 %v5181_v34  ;;  %v5165_v61 = vor.u32 %v5528_v38, %v5164_v48  ;;  %v5038_v34 = vld [vmem:[#allocation13 + $0xa8] sm:$0xf0]  ;;  %v5193_v3 = vor.u32 %v5533_v50, %v5190_v18  ;;  %v5110_v48 = vld [vmem:[#allocation13 + $0x138] sm:$0xf0]  ;;  %v2700_v50 = vperm.slane %v6517_v22, 3 }
 0x62b   : > { %v5041_v36 = vor.u32 %v5495_v33, %v5038_v34 }
 0x62c   : > { %3574 = vmatpush.bf16.msrb.mxu2 %v5085_v31 }
 0x62d   : > { %3558 = vmatpush.bf16.msrb.mxu1 %v5037_v56  ;;  %3596 = vmatpush.bf16.msra.mxu0 %v5009_v20  ;;  %v4985_v56 = vor.u32 %v5481_v11, %v4982_v45  ;;  %v5209_v20 = vor.u32 %v5537_v5, %v5206_v10  ;;  %v5182_v11 = vld [vmem:[#allocation13 + $0x1c8] sm:$0xf0]  ;;  %v5158_v10 = vld [vmem:[#allocation13 + $0x198] sm:$0xf0] }
 0x62e   : > { %3585 = vmatpush.bf16.msrb.mxu3 %v5173_v41  ;;  %v5185_v45 = vor.u32 %v5531_v54, %v5182_v11 }
 0x630   : > { %3623 = vmatpush.bf16.msra.mxu2 %v5145_v16 }
 0x631   : > { %3559 = vmatpush.bf16.msrb.mxu1 %v5029_v2  ;;  %3597 = vmatpush.bf16.msra.mxu0 %v5001_v40  ;;  %v5137_v2 = vor.u32 %v5519_v6, %v5134_v12  ;;  %v5515_v40 = vld [vmem:[#allocation13 + $0x144] sm:$0xf]  ;;  %v5097_v6 = vor.u32 %v5509_v8, %v5094_v28  ;;  %v2698_v12 = vperm.slane %v6517_v22, 1  ;;  %v3213_v8 = vld [vmem:[#allocation14] sm:$0x3] }
 0x632   : > { %3586 = vmatpush.bf16.msrb.mxu3 %v5165_v61  ;;  %v5121_v42 = vor.u32 %v5515_v40, %v5118_v0  ;;  %v2699_v40 = vperm.slane %v6517_v22, 2 }
 0x634   : > { %3624 = vmatpush.bf16.msra.mxu2 %v5137_v2  ;;  %v5507_v2 = vld [vmem:[#allocation13 + $0x104] sm:$0xf] }
 0x635   : > { %3560 = vmatpush.bf16.msrb.mxu1 %v5021_v44  ;;  %3598 = vmatpush.bf16.msra.mxu0 %v4993_v59  ;;  %v4969_v44 = vor.u32 %v5477_v23, %v4966_v24  ;;  %v5513_v59 = vld [vmem:[#allocation13 + $0x134] sm:$0xf] }
 0x636   : > { %3587 = vmatpush.bf16.msrb.mxu3 %v5157_v27  ;;  %v5113_v38 = vor.u32 %v5513_v59, %v5110_v48  ;;  %v5177_v27 = vor.u32 %v5529_v58, %v5174_v62 }
 0x638   : > { %3625 = vmatpush.bf16.msra.mxu2 %v5129_v32 }
 0x639   : > { %3609 = vmatpush.bf16.msra.mxu1 %v5081_v35  ;;  %3599 = vmatpush.bf16.msra.mxu0 %v4985_v56  ;;  %v5535_v35 = vld [vmem:[#allocation13 + $0x1e4] sm:$0xf]  ;;  %v5102_v56 = vld [vmem:[#allocation13 + $0x128] sm:$0xf0] }
 0x63a   : > { %3588 = vmatpush.bf16.msrb.mxu3 %v5149_v4  ;;  %v5201_v26 = vor.u32 %v5535_v35, %v5198_v63  ;;  %v5105_v57 = vor.u32 %v5511_v46, %v5102_v56  ;;  %v5086_v4 = vld [vmem:[#allocation13 + $0x108] sm:$0xf0] }
 0x63b   : > { %v5150_v63 = vld [vmem:[#allocation13 + $0x188] sm:$0xf0] }
 0x63c   : > { %3626 = vmatpush.bf16.msra.mxu2 %v5121_v42 }
 0x63d   : > { %3610 = vmatpush.bf16.msra.mxu1 %v5073_v47  ;;  %3600 = vmatpush.bf16.msra.mxu0 %v4977_v9  ;;  %v5030_v47 = vld [vmem:[#allocation13 + $0x98] sm:$0xf0]  ;;  %v5166_v9 = vld [vmem:[#allocation13 + $0x1a8] sm:$0xf0] }
 0x63e   : > { %3637 = vmatpush.bf16.msra.mxu3 %v5209_v20  ;;  %v5033_v51 = vor.u32 %v5493_v43, %v5030_v47  ;;  %v5089_v20 = vor.u32 %v5507_v2, %v5086_v4 }
 0x640   : > { %3627 = vmatpush.bf16.msra.mxu2 %v5113_v38 }
 0x641   : > { %3611 = vmatpush.bf16.msra.mxu1 %v5065_v53  ;;  %3601 = vmatpush.bf16.msra.mxu0 %v4969_v44  ;;  %v5022_v53 = vld [vmem:[#allocation13 + $0x88] sm:$0xf0] }
 0x642   : > { %3638 = vmatpush.bf16.msra.mxu3 %v5201_v26  ;;  %v5025_v31 = vor.u32 %v5491_v52, %v5022_v53 }
 0x644   : > { %3628 = vmatpush.bf16.msra.mxu2 %v5105_v57 }
 0x645   : > { %3612 = vmatpush.bf16.msra.mxu1 %v5057_v29  ;;  %3602 = vmatpush.bf16.msra.mxu0 %v4961_v60  ;;  %v5527_v29 = vld [vmem:[#allocation13 + $0x1a4] sm:$0xf] }
 0x646   : > { %3639 = vmatpush.bf16.msra.mxu3 %v5193_v3  ;;  %v5169_v1 = vor.u32 %v5527_v29, %v5166_v9  ;;  %v3215_v29 = vperm.slane %v3213_v8, 0 }
 0x648   : > { %3629 = vmatpush.bf16.msra.mxu2 %v5097_v6 }
 0x649   : > { %3613 = vmatpush.bf16.msra.mxu1 %v5049_v17  ;;  %v5525_v17 = vld [vmem:[#allocation13 + $0x194] sm:$0xf] }
 0x64a   : > { %3640 = vmatpush.bf16.msra.mxu3 %v5185_v45  ;;  %v5161_v44 = vor.u32 %v5525_v17, %v5158_v10 }
 0x64c   : > { %3630 = vmatpush.bf16.msra.mxu2 %v5089_v20 }
 0x64d   : > { %3614 = vmatpush.bf16.msra.mxu1 %v5041_v36  ;;  %v5523_v36 = vld [vmem:[#allocation13 + $0x184] sm:$0xf] }
 0x64e   : > { %3641 = vmatpush.bf16.msra.mxu3 %v5177_v27  ;;  %v5153_v39 = vor.u32 %v5523_v36, %v5150_v63 }
 0x651   : > { %3615 = vmatpush.bf16.msra.mxu1 %v5033_v51 }
 0x652   : > { %3642 = vmatpush.bf16.msra.mxu3 %v5169_v1 }
 0x655   : > { %3616 = vmatpush.bf16.msra.mxu1 %v5025_v31 }
 0x656   : > { %3643 = vmatpush.bf16.msra.mxu3 %v5161_v44 }
 0x65a   : > { %3644 = vmatpush.bf16.msra.mxu3 %v5153_v39 }
 0x684   : > { %v3034_v19 = vpop.f32.mrf.mxu0 }
 0x685   : > { %v3035_v16 = vadd.f32 %v3034_v19, %v2697_v55 }
 0x68a   : > { %v3062_v41 = vpop.f32.mrf.mxu2 }
 0x68b   : > { %v3063_v23 = vadd.f32 %v3062_v41, %v2698_v12 }
 0x68c   : > { %v3036_v61 = vpop.f32.mrf.mxu0 }
 0x68d   : > { %v3037_v13 = vadd.f32 %v3036_v61, %v2697_v55 }
 0x692   : > { %v3064_v30 = vpop.f32.mrf.mxu2 }
 0x693   : > { %v3065_v49 = vadd.f32 %v3064_v30, %v2698_v12  ;;  %v3216_v30 = vperm.slane %v3213_v8, 1  ;;  %v3718_v8 = vld [vmem:[%s6575_s10] sm:$0x3] }
 0x694   : > { %v3048_v7 = vpop.f32.mrf.mxu1 }
 0x695   : > { %v3049_v14 = vadd.f32 %v3048_v7, %v3035_v16  ;;  %v3090_v19 = vpop.f32.mrf.mxu0 }
 0x696   : > { %v3091_v43 = vadd.f32 %v3090_v19, %v2699_v40 }
 0x697   : > { %v3137_v24 = vmax.f32 %v3049_v14, 0.0 }
 0x69a   : > { %v3076_v21 = vpop.f32.mrf.mxu3 }
 0x69b   : > { %v3077_v32 = vadd.f32 %v3076_v21, %v3063_v23  ;;  %v3118_v26 = vpop.f32.mrf.mxu2 }
 0x69c   : > { %v3050_v15 = vpop.f32.mrf.mxu1  ;;  %v3119_v38 = vadd.f32 %v3118_v26, %v2700_v50  ;;  %v6074_v26 = vmov 256.0  }
 0x69d   : > { %v3051_v5 = vadd.f32 %v3050_v15, %v3037_v13  ;;  %v3138_v60 = vmax.f32 %v3077_v32, 0.0  ;;  %v3092_v42 = vpop.f32.mrf.mxu0  ;;  %5719 = vrcp.f32 %v6074_v26 }
 0x69e   : > { %v3093_v51 = vadd.f32 %v3092_v42, %v2699_v40 }
 0x69f   : > { %v3141_v25 = vmax.f32 %v3051_v5, 0.0 }
 0x6a1   : > { %v3145_v33 = vpack.c.bf16 %v3141_v25, %v3137_v24 }
 0x6a2   : > { %v3078_v34 = vpop.f32.mrf.mxu3 }
 0x6a3   : > { %v3079_v35 = vadd.f32 %v3078_v34, %v3065_v49  ;;  %3547 = vmatmul.bf16.vlgmr.msrb.gmra.mxu0 %v3145_v33  ;;  %v3120_v48 = vpop.f32.mrf.mxu2 }
 0x6a4   : > { %v3104_v37 = vpop.f32.mrf.mxu1  ;;  %v3121_v52 = vadd.f32 %v3120_v48, %v2700_v50 }
 0x6a5   : > { %v3142_v0 = vmax.f32 %v3079_v35, 0.0  ;;  %v3105_v18 = vadd.f32 %v3104_v37, %v3091_v43  ;;  %v5720_v37 = vpop.eup %5719 }
 0x6a6   : > { %v3658_v39 = vmul.f32 256.0, %v5720_v37  ;;  %vm3662_vm4 = vweird.f32 %v5720_v37 }
 0x6a7   : > { %v3146_v41 = vpack.c.bf16 %v3142_v0, %v3138_v60  ;;  %v3139_v61 = vmax.f32 %v3105_v18, 0.0 }
 0x6a8   : > { %v3659_v40 = vsub.f32 1.0, %v3658_v39 }
 0x6a9   : > { %3561 = vmatmul.bf16.vlgmr.msrb.gmra.mxu1 %v3146_v41 }
 0x6aa   : > { %v3132_v47 = vpop.f32.mrf.mxu3  ;;  %v3660_v60 = vmul.f32 %v5720_v37, %v3659_v40 }
 0x6ab   : > { %v3133_v53 = vadd.f32 %v3132_v47, %v3119_v38 }
 0x6ac   : > { %v3106_v3 = vpop.f32.mrf.mxu1  ;;  %v3661_v0 = vadd.f32 %v5720_v37, %v3660_v60 }
 0x6ad   : > { %v3107_v59 = vadd.f32 %v3106_v3, %v3093_v51  ;;  %v3140_v11 = vmax.f32 %v3133_v53, 0.0 }
 0x6af   : > { %v3143_v7 = vmax.f32 %v3107_v59, 0.0 }
 0x6b1   : > { %v3147_v54 = vpack.c.bf16 %v3143_v7, %v3139_v61 }
 0x6b2   : > { %v3134_v55 = vpop.f32.mrf.mxu3 }
 0x6b3   : > { %v3135_v31 = vadd.f32 %v3134_v55, %v3121_v52  ;;  %3575 = vmatmul.bf16.vlgmr.msrb.gmra.mxu2 %v3147_v54  ;;  %3603 = vmatmul.bf16.vlgmr.msra.gmra.mxu0 %v3145_v33 }
 0x6b5   : > { %v3144_v45 = vmax.f32 %v3135_v31, 0.0 }
 0x6b7   : > { %v3148_v46 = vpack.c.bf16 %v3144_v45, %v3140_v11 }
 0x6b9   : > { %3589 = vmatmul.bf16.vlgmr.msrb.gmra.mxu3 %v3148_v46  ;;  %3617 = vmatmul.bf16.vlgmr.msra.gmra.mxu1 %v3146_v41  ;;  %v3663_v41 = vsel %vm3662_vm4, %v5720_v37, %v3661_v0 }
 0x6c3   : > { %3631 = vmatmul.bf16.vlgmr.msra.gmra.mxu2 %v3147_v54 }
 0x6c9   : > { %3645 = vmatmul.bf16.vlgmr.msra.gmra.mxu3 %v3148_v46 }
 0x720   : > { %v3548_v22 = vpop.f32.mrf.mxu0 }
 0x721   : > { %v3549_v12 = vadd.f32 %v3548_v22, %v3215_v29 }
 0x726   : > { %v3562_v56 = vpop.f32.mrf.mxu1 }
 0x727   : > { %v3563_v14 = vadd.f32 %v3562_v56, %v3549_v12  ;;  %v3720_v12 = vperm.slane %v3718_v8, 0 }
 0x728   : > { %v3550_v58 = vpop.f32.mrf.mxu0 }
 0x729   : > { %v3551_v20 = vadd.f32 %v3550_v58, %v3215_v29 }
 0x72e   : > { %v3564_v62 = vpop.f32.mrf.mxu1 }
 0x72f   : > { %v3565_v44 = vadd.f32 %v3564_v62, %v3551_v20  ;;  %v3708_v62 = vld [vmem:[%s6574_s9] sm:$0x3] }
 0x730   : > { %v3604_v28 = vpop.f32.mrf.mxu0 }
 0x731   : > { %v3605_v13 = vadd.f32 %v3604_v28, %v3216_v30 }
 0x736   : > { %v3576_v57 = vpop.f32.mrf.mxu2  ;;  %v3618_v21 = vpop.f32.mrf.mxu1 }
 0x737   : > { %v3619_v2 = vadd.f32 %v3618_v21, %v3605_v13  ;;  %v3577_v4 = vadd.f32 %v3576_v57, %v3563_v14  ;;  %v3711_v21 = vperm.slane %v3708_v62, 1  ;;  %v3721_v13 = vperm.slane %v3718_v8, 1 }
 0x738   : > { %v3606_v1 = vpop.f32.mrf.mxu0 }
 0x739   : > { %v3607_v23 = vadd.f32 %v3606_v1, %v3216_v30  ;;  %v3710_v30 = vperm.slane %v3708_v62, 0 }
 0x73c   : > { %v3590_v16 = vpop.f32.mrf.mxu3 }
 0x73d   : > { %v3591_v17 = vadd.f32 %v3590_v16, %v3577_v4 }
 0x73e   : > { %v3578_v27 = vpop.f32.mrf.mxu2  ;;  %v3620_v19 = vpop.f32.mrf.mxu1 }
 0x73f   : > { %v3621_v49 = vadd.f32 %v3620_v19, %v3607_v23  ;;  %v3579_v32 = vadd.f32 %v3578_v27, %v3565_v44 }
 0x744   : > { %v3592_v6 = vpop.f32.mrf.mxu3 }
 0x745   : > { %v3593_v35 = vadd.f32 %v3592_v6, %v3579_v32 }
 0x746   : > { %v3632_v9 = vpop.f32.mrf.mxu2 }
 0x747   : > { %v3633_v15 = vadd.f32 %v3632_v9, %v3619_v2 }
 0x74c   : > { %v3646_v5 = vpop.f32.mrf.mxu3 }
 0x74d   : > { %v3647_v10 = vadd.f32 %v3646_v5, %v3633_v15 }
 0x74e   : > { %v3634_v25 = vpop.f32.mrf.mxu2 }
 0x74f   : > { %v3651_v24 = vadd.f32 %v3647_v10, %v3591_v17  ;;  %v3635_v33 = vadd.f32 %v3634_v25, %v3621_v49 }
 0x751   : > { %3652 = vadd.xlane.f32.xlu2 %v3651_v24 }
 0x754   : > { %v3648_v34 = vpop.f32.mrf.mxu3 }
 0x755   : > { %v3649_v36 = vadd.f32 %v3648_v34, %v3635_v33 }
 0x757   : > { %v3654_v63 = vadd.f32 %v3649_v36, %v3593_v35 }
 0x759   : > { %3655 = vadd.xlane.f32.xlu0 %v3654_v63 }
 0x7c4   : > { %v3653_v42 = vpop.xlane.xlu2 %3652 }
 0x7c5   : > { %v3664_v43 = vmul.f32 %v3663_v41, %v3653_v42 }
 0x7c7   : > { %v3666_v47 = vsub.f32 %v3591_v17, %v3664_v43  ;;  %v3667_v50 = vsub.f32 %v3647_v10, %v3664_v43 }
 0x7c9   : > { %v3670_v51 = vmul.f32 %v3666_v47, %v3666_v47  ;;  %v3671_v18 = vmul.f32 %v3667_v50, %v3667_v50 }
 0x7cb   : > { %v3674_v3 = vadd.f32 %v3671_v18, %v3670_v51 }
 0x7cc   : > { %v3656_v59 = vpop.xlane.xlu0 %3655 }
 0x7cd   : > { %v3665_v48 = vmul.f32 %v3663_v41, %v3656_v59  ;;  %3675 = vadd.xlane.f32.xlu1 %v3674_v3 }
 0x7cf   : > { %v3668_v38 = vsub.f32 %v3593_v35, %v3665_v48  ;;  %v3669_v61 = vsub.f32 %v3649_v36, %v3665_v48 }
 0x7d1   : > { %v3672_v7 = vmul.f32 %v3668_v38, %v3668_v38  ;;  %v3673_v52 = vmul.f32 %v3669_v61, %v3669_v61 }
 0x7d3   : > { %v3677_v53 = vadd.f32 %v3673_v52, %v3672_v7 }
 0x7d5   : > { %3678 = vadd.xlane.f32.xlu2 %v3677_v53 }
 0x840   : > { %v3676_v54 = vpop.xlane.xlu1 %3675 }
 0x841   : > { %v3680_v55 = vmul.f32 %v3676_v54, %v3663_v41 }
 0x843   : > { %v3682_v31 = vadd.f32 1e-05, %v3680_v55 }
 0x845   : > { %5721 = vrsqrt.f32 %v3682_v31  ;;  %vm3690_vm6 = vweird.f32 %v3682_v31 }
 0x848   : > { %v3679_v11 = vpop.xlane.xlu2 %3678 }
 0x849   : > { %v3681_v45 = vmul.f32 %v3679_v11, %v3663_v41 }
 0x84b   : > { %v5722_v46 = vpop.eup %5721  ;;  %v3683_v22 = vadd.f32 1e-05, %v3681_v45 }
 0x84c   : > { %v3685_v56 = vmul.f32 %v5722_v46, %v3682_v31  ;;  %vm3691_vm5 = vweird.f32 %v5722_v46 }
 0x84d   : > { %5723 = vrsqrt.f32 %v3683_v22  ;;  %vm3692_vm7 = vmor %vm3690_vm6, %vm3691_vm5  ;;  %vm3700_vm9 = vweird.f32 %v3683_v22 }
 0x84e   : > { %v3686_v57 = vmul.f32 %v5722_v46, %v3685_v56 }
 0x850   : > { %v3687_v58 = vmul.f32 0.5, %v3686_v57 }
 0x852   : > { %v3688_v16 = vsub.f32 1.5, %v3687_v58 }
 0x853   : > { %v5724_v27 = vpop.eup %5723 }
 0x854   : > { %v3689_v28 = vmul.f32 %v5722_v46, %v3688_v16  ;;  %v3695_v29 = vmul.f32 %v5724_v27, %v3683_v22  ;;  %vm3701_vm8 = vweird.f32 %v5724_v27 }
 0x855   : > { %vm3702_vm10 = vmor %vm3700_vm9, %vm3701_vm8 }
 0x856   : > { %v3693_v6 = vsel %vm3692_vm7, %v5722_v46, %v3689_v28  ;;  %v3696_v9 = vmul.f32 %v5724_v27, %v3695_v29 }
 0x857   : > { %v3704_v14 = vmul.f32 %v3693_v6, %v3666_v47  ;;  %v3705_v2 = vmul.f32 %v3693_v6, %v3667_v50 }
 0x858   : > { %v3697_v4 = vmul.f32 0.5, %v3696_v9 }
 0x859   : > { %v3714_v15 = vmul.f32 %v3710_v30, %v3704_v14  ;;  %v3715_v1 = vmul.f32 %v3711_v21, %v3705_v2 }
 0x85a   : > { %v3698_v5 = vsub.f32 1.5, %v3697_v4 }
 0x85b   : > { %v3724_v17 = vadd.f32 %v3720_v12, %v3714_v15  ;;  %v3725_v10 = vadd.f32 %v3721_v13, %v3715_v1 }
 0x85c   : > { %v3699_v19 = vmul.f32 %v5724_v27, %v3698_v5 }
 0x85d   : > { %v3728_v20 = vpack.c.bf16 %v3725_v10, %v3724_v17 }
 0x85e   : > { %v3703_v23 = vsel %vm3702_vm10, %v5724_v27, %v3699_v19 }
 0x85f   : > { %v3706_v24 = vmul.f32 %v3703_v23, %v3668_v38  ;;  %v3707_v25 = vmul.f32 %v3703_v23, %v3669_v61  ;;  %3730 = vst [vmem:[%s509_s15] sm:$0xff] %v3728_v20 }
 0x861   : > { %v3716_v44 = vmul.f32 %v3710_v30, %v3706_v24  ;;  %v3717_v49 = vmul.f32 %v3711_v21, %v3707_v25 }
 0x863   : > { %v3726_v32 = vadd.f32 %v3720_v12, %v3716_v44  ;;  %v3727_v33 = vadd.f32 %v3721_v13, %v3717_v49 }
 0x865   : > { %v3729_v34 = vpack.c.bf16 %v3727_v33, %v3726_v32 }
 0x867   : > { %3731 = vst [vmem:[%s509_s15 + $0x8] sm:$0xff] %v3729_v34 }
 0x868   : > { %5992 = shalt.err (!%p5989_p8)
}
 0x869   : > { %s6075_s22 = smov 128   ;;  %s6076_s13 = smov 8  }
 0x86a   : > { %5573 = dma.vmem_to_hbm [thread:$0]  (%p6175_p5), %s3747_s2, 256, %s3749_s24, %s3733_s21, %s6075_s22, %s6075_s22, %s6076_s13  }
 0x86b PF: > { %p5620_p9 = scmp.ge.s32.totalorder %s6047_s20, 2  ;;  %s3763_s1 = sand.u32 1, %s6035_s17  }
 0x86c   : > { %s3764_s3 = scalar_lea.sflag [#allocation4], %s3763_s1 }
 0x86d   : > { %p5601_p10 = pnand %p5620_p9, %p6179_p6 }
 0x86f   : > { %p5602_p11 = pneg %p5601_p10 }
 0x871   : > { %6030 = dma.done.wait (%p5602_p11), %s3764_s3, 256  }
 0x872   : > { %6032 = vsyncadd (%p5602_p11), %s3764_s3, 4294967040  ;;  %s6599_s20 = sld [smem:[#allocation24_spill]]  ;;  %s6602_s17 = smov %s6039_s18 }
 0x873   : > { %s6600_s29 = sld [smem:[#allocation23_spill]] }
 0x874   : > { %s6601_s19 = sld [smem:[#allocation25_spill]] }
 0x878   : > { %p26_p12 = scmp.ge.s32.totalorder %s6599_s20, 4  }
 0x879   : > { %s6603_s18 = smov %s6600_s29 }
 0x87a   :  { %28 = sbr.rel (!%p26_p12) target bundleno = 13 (0xd), region = 132 }
 0x87f   :  { %3770 = vsyncpa [#allocation3], 1 }
 0x880   :  { %3772 = vsyncpa [#allocation3 + $0x1], 1 }
 0x881   :  { %3773 = vsyncpa [#allocation6], 1 }
 0x882   :  { %3774 = vsyncpa [#allocation9], 1 }
 0x883   :  { %3775 = vsyncpa [#allocation12], 1 }
 0x884   :  { %3776 = vsyncpa [#allocation15], 1 }
 0x885   :  { %3777 = vsyncpa [#allocation4], 1 }
 0x886   :  { %3779 = vsyncpa [#allocation4 + $0x1], 1 }

// kernel: a_call__.2
= control target key start
LH: loop header
LB: loop body
LE: loop exit
PB: predicated region body
PF: predicated region fallthrough
CT: control target
= control target key end

     0   :  { %s6916_s6 = smov 1   ;;  %s6917_s10 = smov 2   ;;  %s7912_s0 = inlined_call_operand.smem [shape: u32[30], index: -1, kind: input, shape index: {}] }
   0x1   :  { %s6986_s5 = sld [smem:[%s7912_s0]]   ;;  %s6918_s14 = smov 3  }
   0x2   :  { %s6991_s9 = sld [smem:[%s7912_s0 + %s6916_s6]]   ;;  %s6919_s18 = smov 4  }
   0x3   :  { %s6996_s13 = sld [smem:[%s7912_s0 + %s6917_s10]]   ;;  %s6920_s22 = smov 5  }
   0x4   :  { %s7001_s17 = sld [smem:[%s7912_s0 + %s6918_s14]]   ;;  %s6921_s26 = smov 6  }
   0x5   :  { %s7006_s21 = sld [smem:[%s7912_s0 + %s6919_s18]]   ;;  %s6922_s30 = smov 7  }
   0x6   :  { %s7011_s25 = sld [smem:[%s7912_s0 + %s6920_s22]]   ;;  %s6923_s4 = smov 8  }
   0x7   :  { %7938 = sst [smem:[#allocation56_spill]] %s6986_s5  ;;  %s6924_s10 = smov 9  }
   0x8   :  { %7939 = sst [smem:[#allocation57_spill]] %s6991_s9  ;;  %s6925_s15 = smov 10  }
   0x9   :  { %7940 = sst [smem:[#allocation58_spill]] %s6996_s13  ;;  %s6926_s20 = smov 11  }
   0xa   :  { %7941 = sst [smem:[#allocation59_spill]] %s7001_s17  ;;  %s6928_s1 = smov 13  }
   0xb   :  { %s7016_s29 = sld [smem:[%s7912_s0 + %s6921_s26]]   ;;  %s6927_s26 = smov 12  }
   0xc   :  { %s7021_s3 = sld [smem:[%s7912_s0 + %s6922_s30]]   ;;  %s6929_s7 = smov 14  }
   0xd   :  { %s7026_s8 = sld [smem:[%s7912_s0 + %s6923_s4]]   ;;  %s6931_s22 = smov 16  }
   0xe   :  { %s7031_s14 = sld [smem:[%s7912_s0 + %s6924_s10]]   ;;  %s6932_s28 = smov 17  }
   0xf   :  { %s7036_s19 = sld [smem:[%s7912_s0 + %s6925_s15]]   ;;  %s6930_s15 = smov 15  }
  0x10   :  { %s7041_s24 = sld [smem:[%s7912_s0 + %s6926_s20]]  }
  0x11   :  { %s7046_s30 = sld [smem:[%s7912_s0 + %s6927_s26]]  }
  0x12   :  { %7942 = sst [smem:[#allocation60_spill]] %s7021_s3 }
  0x13   :  { %7943 = sst [smem:[#allocation61_spill]] %s7026_s8 }
  0x14   :  { %s7051_s6 = sld [smem:[%s7912_s0 + %s6928_s1]]  }
  0x15   :  { %7944 = sst [smem:[#allocation62_spill]] %s7036_s19 }
  0x16   :  { %s7056_s12 = sld [smem:[%s7912_s0 + %s6929_s7]]   ;;  %s6933_s7 = smov 18  }
  0x17   :  { %7945 = sst [smem:[#allocation63_spill]] %s7046_s30 }
  0x18   :  { %s7061_s20 = sld [smem:[%s7912_s0 + %s6930_s15]]   ;;  %s6934_s15 = smov 19  }
  0x19   :  { %s7066_s27 = sld [smem:[%s7912_s0 + %s6931_s22]]   ;;  %s6935_s22 = smov 20  }
  0x1a   :  { %7946 = sst [smem:[#allocation64_spill]] %s7051_s6 }
  0x1b   :  { %s7071_s4 = sld [smem:[%s7912_s0 + %s6932_s28]]   ;;  %s6936_s28 = smov 21  }
  0x1c   :  { %7947 = sst [smem:[#allocation65_spill]] %s7056_s12 }
  0x1d   :  { %s7076_s17 = sld [smem:[%s7912_s0 + %s6933_s7]]   ;;  %s6937_s7 = smov 22  }
  0x1e   :  { %s7081_s13 = sld [smem:[%s7912_s0 + %s6934_s15]]   ;;  %s6938_s15 = smov 23  }
  0x1f   :  { %7948 = sst [smem:[#allocation66_spill]] %s7066_s27 }
  0x20   :  { %s7086_s9 = sld [smem:[%s7912_s0 + %s6935_s22]]   ;;  %s6939_s22 = smov 24  }
  0x21   :  { %7949 = sst [smem:[#allocation67_spill]] %s7071_s4 }
  0x22   :  { %s7091_s5 = sld [smem:[%s7912_s0 + %s6936_s28]]   ;;  %s6940_s28 = smov 25  }
  0x23   :  { %7950 = sst [smem:[#allocation68_spill]] %s7076_s17 }
  0x24   :  { %7951 = sst [smem:[#allocation69_spill]] %s7081_s13 }
  0x25   :  { %s7096_s17 = sld [smem:[%s7912_s0 + %s6937_s7]]   ;;  %s6941_s7 = smov 26  }
  0x26   :  { %7952 = sst [smem:[#allocation70_spill]] %s7086_s9 }
  0x27   :  { %s7101_s27 = sld [smem:[%s7912_s0 + %s6938_s15]]   ;;  %s6942_s15 = smov 27  }
  0x28   :  { %7953 = sst [smem:[#allocation71_spill]] %s7091_s5 }
  0x29   :  { %s7106_s9 = sld [smem:[%s7912_s0 + %s6939_s22]]   ;;  %s6943_s22 = smov 28  }
  0x2a   :  { %s7111_s12 = sld [smem:[%s7912_s0 + %s6940_s28]]   ;;  %s6944_s28 = smov 29  }
  0x2b   :  { %7954 = sst [smem:[#allocation72_spill]] %s7096_s17 }
  0x2c   :  { %s7116_s17 = sld [smem:[%s7912_s0 + %s6941_s7]]  }
  0x2d   :  { %s7121_s30 = sld [smem:[%s7912_s0 + %s6942_s15]]  }
  0x2e   :  { %s7131_s19 = sld [smem:[%s7912_s0 + %s6944_s28]]  }
  0x2f   :  { %7955 = sst [smem:[#allocation73_spill]] %s7106_s9 }
  0x30   :  { %7956 = sst [smem:[#allocation74_spill]] %s7111_s12 }
  0x31   :  { %s7126_s9 = sld [smem:[%s7912_s0 + %s6943_s22]]  }
  0x32   :  { %64 = vsyncpa [#allocation6], 0 }
  0x33   :  { %65 = vsyncpa [#allocation8], 0 }
  0x34   :  { %66 = vsyncpa [#allocation11], 0 }
  0x35   :  { %67 = vsyncpa [#allocation14], 0 }
  0x36   :  { %68 = vsyncpa [#allocation17], 0 }
  0x37   :  { %69 = vsyncpa [#allocation20], 0 }
  0x38   :  { %70 = vsyncpa [#allocation23], 0 }
  0x39   :  { %71 = vsyncpa [#allocation26], 0 }
  0x3a   :  { %72 = vsyncpa [#allocation29], 0 }
  0x3b   :  { %73 = vsyncpa [#allocation32], 0 }
  0x3c   :  { %74 = vsyncpa [#allocation35], 0 }
  0x3d   :  { %75 = vsyncpa [#allocation38], 0 }
  0x3e   :  { %76 = vsyncpa [#allocation41], 0  ;;  %s7133_s7 = smov 0  }
  0x3f LB: > { %s7957_s13 = sld [smem:[#allocation69_spill]]  ;;  %s7139_s0 = sadd.s32 4294967295, %s6914_s7   ;;  %s6914_s7 = sphi %s7133_s7, %s82_s7  }
  0x40   : > { %s7958_s12 = sld [smem:[#allocation74_spill]]  ;;  %p4736_p0 = scmp.ge.s32.totalorder %s6914_s7, 1 }
  0x41   : > { %s7959_s8 = sld [smem:[#allocation61_spill]]  ;;  %p742_p1 = scmp.lt.s32.totalorder %s6914_s7, 3 }
  0x42   : > { %s7960_s6 = sld [smem:[#allocation64_spill]] }
  0x43   : > { %s7961_s5 = sld [smem:[#allocation71_spill]]  ;;  %p7143_p2 = pnand %p4736_p0, %p742_p1 }
  0x44   : > { %s7962_s4 = sld [smem:[#allocation67_spill]]  ;;  %p6004_p3 = scmp.eq.s32.totalorder (!%p7143_p2), %s7139_s0, 0 }
  0x45   : > { %s7963_s3 = sld [smem:[#allocation60_spill]]  ;;  %746 = sbr.rel (%p7143_p2) target bundleno = 402 (0x192), region = 12 }
  0x46   : > { %7964 = sst [smem:[#allocation75_spill]] %s6914_s7  ;;  %s766_s11 = sshll.u32 (!%p7143_p2), %s7011_s25, 4  ;;  %s767_s11 = int_to_ptr.hbm [resolvable:$true] %s766_s11 }
  0x47   : > { %s6945_s15 = smov (!%p7143_p2), [#allocation7]   ;;  %s6156_s22 = sshra.s32 (!%p7143_p2), %s767_s11, 4  ;;  %s6157_s22 = int_to_ptr.hbm [resolvable:$true] %s6156_s22 }
  0x48   : > { %s768_s16 = sshll.u32 (!%p7143_p2), %s6945_s15, 4  ;;  %s6158_s23 = scalar_lea.hbm (!%p7143_p2), %s6157_s22, 1  ;;  %s769_s16 = int_to_ptr.vmem [resolvable:$true] %s768_s16 }
  0x49   : > { %p6159_p4 = scmp.ne.s32.totalorder (!%p7143_p2), %s6157_s22, %s6158_s23  ;;  %s6162_s26 = scalar_lea.hbm (!%p7143_p2), %s7011_s25, 1 }
  0x4a   : > { %p6163_p7 = scmp.lt.s32.totalorder %s6157_s22, %s7011_s25  ;;  %p6164_p8 = scmp.lt.s32.totalorder %s6162_s26, %s6158_s23 }
  0x4b   : > { %s792_s18 = sshll.u32 %s7963_s3, 4  ;;  %p6160_p5 = pnand %p6159_p4, %p6004_p3  ;;  %s7152_s18 = int_to_ptr.hbm [resolvable:$true] %s792_s18 }
  0x4c   : > { %p6165_p9 = por %p6164_p8, %p6163_p7 }
  0x4d   : > { %p6161_p6 = pneg %p6160_p5 }
  0x4f   : > { %p6166_p10 = pnand %p6165_p9, %p6161_p6 }
  0x51   : > { %6169 = shalt.err (!%p6166_p10)
}
  0x52   : > { %5907 = dma.hbm_to_vmem [thread:$0]  (%p6004_p3), %s767_s11, 16, %s769_s16, [#allocation8]  }
  0x53   : > { %s6946_s28 = smov [#allocation10]   ;;  %s817_s2 = sshll.u32 %s7031_s14, 4  ;;  %s818_s2 = int_to_ptr.hbm [resolvable:$true] %s817_s2 }
  0x54   : > { %s794_s1 = sshll.u32 %s6946_s28, 4  ;;  %s6184_s15 = sshra.s32 %s7152_s18, 4  ;;  %s795_s1 = int_to_ptr.vmem [resolvable:$true] %s794_s1  ;;  %s6185_s15 = int_to_ptr.hbm [resolvable:$true] %s6184_s15 }
  0x55   : > { %s6186_s7 = scalar_lea.hbm %s6185_s15, 1  ;;  %s6190_s22 = scalar_lea.hbm %s7963_s3, 1 }
  0x56   : > { %p6187_p11 = scmp.ne.s32.totalorder %s6185_s15, %s6186_s7  ;;  %p6191_p0 = scmp.lt.s32.totalorder %s6185_s15, %s7963_s3 }
  0x57   : > { %p6192_p1 = scmp.lt.s32.totalorder %s6190_s22, %s6186_s7 }
  0x58   : > { %p6188_p12 = pnand %p6187_p11, %p6004_p3 }
  0x59   : > { %p6193_p4 = por %p6192_p1, %p6191_p0 }
  0x5a   : > { %p6189_p13 = pneg %p6188_p12 }
  0x5c   : > { %p6194_p5 = pnand %p6193_p4, %p6189_p13 }
  0x5e   : > { %6197 = shalt.err (!%p6194_p5)
}
  0x5f   : > { %5911 = dma.hbm_to_vmem [thread:$0]  (%p6004_p3), %s7152_s18, 16, %s795_s1, [#allocation11]  }
  0x60   : > { %s6947_s11 = smov [#allocation13]   ;;  %s843_s23 = sshll.u32 %s7041_s24, 4  ;;  %s7170_s23 = int_to_ptr.hbm [resolvable:$true] %s843_s23 }
  0x61   : > { %s819_s16 = sshll.u32 %s6947_s11, 4  ;;  %s6212_s26 = sshra.s32 %s818_s2, 4  ;;  %s820_s16 = int_to_ptr.vmem [resolvable:$true] %s819_s16  ;;  %s6213_s26 = int_to_ptr.hbm [resolvable:$true] %s6212_s26 }
  0x62   : > { %s6214_s7 = scalar_lea.hbm %s6213_s26, 128  ;;  %s6218_s28 = scalar_lea.hbm %s7031_s14, 128 }
  0x63   : > { %p6215_p6 = scmp.ne.s32.totalorder %s6213_s26, %s6214_s7  ;;  %p6219_p9 = scmp.lt.s32.totalorder %s6213_s26, %s7031_s14 }
  0x64   : > { %p6220_p10 = scmp.lt.s32.totalorder %s6218_s28, %s6214_s7 }
  0x65   : > { %p6216_p7 = pnand %p6215_p6, %p6004_p3 }
  0x66   : > { %p6221_p11 = por %p6220_p10, %p6219_p9 }
  0x67   : > { %p6217_p8 = pneg %p6216_p7 }
  0x69   : > { %p6222_p12 = pnand %p6221_p11, %p6217_p8 }
  0x6b   : > { %6225 = shalt.err (!%p6222_p12)
}
  0x6c   : > { %s7924_s18 = smov 64   ;;  %s7926_s1 = smov 4  }
  0x6d   : > { %5915 = dma.hbm_to_vmem [thread:$0]  (%p6004_p3), %s818_s2, 2048, %s820_s16, [#allocation14], %s7924_s18, %s7924_s18, %s7926_s1  }
  0x6e   : > { %s869_s15 = sshll.u32 %s7960_s6, 4  ;;  %s6950_s22 = smov [#allocation16]   ;;  %s7182_s15 = int_to_ptr.hbm [resolvable:$true] %s869_s15 }
  0x6f   : > { %s845_s11 = sshll.u32 %s6950_s22, 4  ;;  %s6240_s26 = sshra.s32 %s7170_s23, 4  ;;  %s846_s11 = int_to_ptr.vmem [resolvable:$true] %s845_s11  ;;  %s6241_s26 = int_to_ptr.hbm [resolvable:$true] %s6240_s26 }
  0x70   : > { %s6242_s7 = scalar_lea.hbm %s6241_s26, 192  ;;  %s6246_s28 = scalar_lea.hbm %s7041_s24, 192 }
  0x71   : > { %p6243_p13 = scmp.ne.s32.totalorder %s6241_s26, %s6242_s7  ;;  %p6247_p4 = scmp.lt.s32.totalorder %s6241_s26, %s7041_s24 }
  0x72   : > { %p6248_p5 = scmp.lt.s32.totalorder %s6246_s28, %s6242_s7 }
  0x73   : > { %p6244_p0 = pnand %p6243_p13, %p6004_p3 }
  0x74   : > { %p6249_p6 = por %p6248_p5, %p6247_p4 }
  0x75   : > { %p6245_p1 = pneg %p6244_p0 }
  0x77   : > { %p6250_p7 = pnand %p6249_p6, %p6245_p1 }
  0x79   : > { %6253 = shalt.err (!%p6250_p7)
}
  0x7a   : > { %5919 = dma.hbm_to_vmem [thread:$0]  (%p6004_p3), %s7170_s23, 3072, %s846_s11, [#allocation17], %s7924_s18, %s7924_s18, %s7926_s1  }
  0x7b   : > { %s6951_s2 = smov [#allocation19]   ;;  %s898_s22 = sshll.u32 %s7061_s20, 4  ;;  %s7196_s22 = int_to_ptr.hbm [resolvable:$true] %s898_s22 }
  0x7c   : > { %s871_s16 = sshll.u32 %s6951_s2, 4  ;;  %s6268_s26 = sshra.s32 %s7182_s15, 4  ;;  %s872_s16 = int_to_ptr.vmem [resolvable:$true] %s871_s16  ;;  %s6269_s26 = int_to_ptr.hbm [resolvable:$true] %s6268_s26 }
  0x7d   : > { %s6270_s7 = scalar_lea.hbm %s6269_s26, 32  ;;  %s6274_s28 = scalar_lea.hbm %s7960_s6, 32 }
  0x7e   : > { %p6271_p8 = scmp.ne.s32.totalorder %s6269_s26, %s6270_s7  ;;  %p6275_p11 = scmp.lt.s32.totalorder %s6269_s26, %s7960_s6 }
  0x7f   : > { %p6276_p12 = scmp.lt.s32.totalorder %s6274_s28, %s6270_s7 }
  0x80   : > { %p6272_p9 = pnand %p6271_p8, %p6004_p3 }
  0x81   : > { %p6277_p13 = por %p6276_p12, %p6275_p11 }
  0x82   : > { %p6273_p10 = pneg %p6272_p9 }
  0x84   : > { %p6278_p0 = pnand %p6277_p13, %p6273_p10 }
  0x86   : > { %6281 = shalt.err (!%p6278_p0)
}
  0x87   : > { %5923 = dma.hbm_to_vmem [thread:$0]  (%p6004_p3), %s7182_s15, 512, %s872_s16, [#allocation20], %s7924_s18, %s7924_s18, %s7926_s1  }
  0x88   : > { %s924_s23 = sshll.u32 %s7962_s4, 4  ;;  %s6952_s11 = smov [#allocation22]   ;;  %s7210_s23 = int_to_ptr.hbm [resolvable:$true] %s924_s23 }
  0x89   : > { %s900_s2 = sshll.u32 %s6952_s11, 4  ;;  %s6296_s26 = sshra.s32 %s7196_s22, 4  ;;  %s901_s2 = int_to_ptr.vmem [resolvable:$true] %s900_s2  ;;  %s6297_s26 = int_to_ptr.hbm [resolvable:$true] %s6296_s26 }
  0x8a   : > { %s6298_s7 = scalar_lea.hbm %s6297_s26, 2  ;;  %s6302_s28 = scalar_lea.hbm %s7061_s20, 2 }
  0x8b   : > { %p6299_p1 = scmp.ne.s32.totalorder %s6297_s26, %s6298_s7  ;;  %p6303_p6 = scmp.lt.s32.totalorder %s6297_s26, %s7061_s20 }
  0x8c   : > { %p6304_p7 = scmp.lt.s32.totalorder %s6302_s28, %s6298_s7 }
  0x8d   : > { %p6300_p4 = pnand %p6299_p1, %p6004_p3 }
  0x8e   : > { %p6305_p8 = por %p6304_p7, %p6303_p6 }
  0x8f   : > { %p6301_p5 = pneg %p6300_p4 }
  0x91   : > { %p6306_p9 = pnand %p6305_p8, %p6301_p5 }
  0x93   : > { %6309 = shalt.err (!%p6306_p9)
}
  0x94   : > { %5927 = dma.hbm_to_vmem [thread:$0]  (%p6004_p3), %s7196_s22, 32, %s901_s2, [#allocation23]  }
  0x95   : > { %s6953_s15 = smov [#allocation25]   ;;  %s949_s11 = sshll.u32 %s7957_s13, 4  ;;  %s7221_s11 = int_to_ptr.hbm [resolvable:$true] %s949_s11 }
  0x96   : > { %s926_s16 = sshll.u32 %s6953_s15, 4  ;;  %s6324_s26 = sshra.s32 %s7210_s23, 4  ;;  %s927_s16 = int_to_ptr.vmem [resolvable:$true] %s926_s16  ;;  %s6325_s26 = int_to_ptr.hbm [resolvable:$true] %s6324_s26 }
  0x97   : > { %s6326_s7 = scalar_lea.hbm %s6325_s26, 1  ;;  %s6330_s28 = scalar_lea.hbm %s7962_s4, 1 }
  0x98   : > { %p6327_p10 = scmp.ne.s32.totalorder %s6325_s26, %s6326_s7  ;;  %p6331_p13 = scmp.lt.s32.totalorder %s6325_s26, %s7962_s4 }
  0x99   : > { %p6332_p0 = scmp.lt.s32.totalorder %s6330_s28, %s6326_s7 }
  0x9a   : > { %p6328_p11 = pnand %p6327_p10, %p6004_p3 }
  0x9b   : > { %p6333_p1 = por %p6332_p0, %p6331_p13 }
  0x9c   : > { %p6329_p12 = pneg %p6328_p11 }
  0x9e   : > { %p6334_p4 = pnand %p6333_p1, %p6329_p12 }
  0xa0   : > { %6337 = shalt.err (!%p6334_p4)
}
  0xa1   : > { %5931 = dma.hbm_to_vmem [thread:$0]  (%p6004_p3), %s7210_s23, 16, %s927_s16, [#allocation26]  }
  0xa2   : > { %s978_s22 = sshll.u32 %s7961_s5, 4  ;;  %s6954_s2 = smov [#allocation28]   ;;  %s7232_s22 = int_to_ptr.hbm [resolvable:$true] %s978_s22 }
  0xa3   : > { %s951_s15 = sshll.u32 %s6954_s2, 4  ;;  %s6352_s26 = sshra.s32 %s7221_s11, 4  ;;  %s952_s15 = int_to_ptr.vmem [resolvable:$true] %s951_s15  ;;  %s6353_s26 = int_to_ptr.hbm [resolvable:$true] %s6352_s26 }
  0xa4   : > { %s6354_s7 = scalar_lea.hbm %s6353_s26, 64  ;;  %s6358_s28 = scalar_lea.hbm %s7957_s13, 64 }
  0xa5   : > { %p6355_p5 = scmp.ne.s32.totalorder %s6353_s26, %s6354_s7  ;;  %p6359_p8 = scmp.lt.s32.totalorder %s6353_s26, %s7957_s13 }
  0xa6   : > { %p6360_p9 = scmp.lt.s32.totalorder %s6358_s28, %s6354_s7 }
  0xa7   : > { %p6356_p6 = pnand %p6355_p5, %p6004_p3 }
  0xa8   : > { %p6361_p10 = por %p6360_p9, %p6359_p8 }
  0xa9   : > { %p6357_p7 = pneg %p6356_p6 }
  0xab   : > { %p6362_p11 = pnand %p6361_p10, %p6357_p7 }
  0xad   : > { %6365 = shalt.err (!%p6362_p11)
}
  0xae   : > { %5935 = dma.hbm_to_vmem [thread:$0]  (%p6004_p3), %s7221_s11, 1024, %s952_s15, [#allocation29], %s7924_s18, %s7924_s18, %s7926_s1  }
  0xaf   : > { %s6955_s23 = smov [#allocation31]   ;;  %s1004_s2 = sshll.u32 %s7101_s27, 4  ;;  %s7246_s2 = int_to_ptr.hbm [resolvable:$true] %s1004_s2 }
  0xb0   : > { %s980_s16 = sshll.u32 %s6955_s23, 4  ;;  %s6380_s26 = sshra.s32 %s7232_s22, 4  ;;  %s981_s16 = int_to_ptr.vmem [resolvable:$true] %s980_s16  ;;  %s6381_s26 = int_to_ptr.hbm [resolvable:$true] %s6380_s26 }
  0xb1   : > { %s6382_s7 = scalar_lea.hbm %s6381_s26, 2  ;;  %s6386_s28 = scalar_lea.hbm %s7961_s5, 2 }
  0xb2   : > { %p6383_p12 = scmp.ne.s32.totalorder %s6381_s26, %s6382_s7  ;;  %p6387_p1 = scmp.lt.s32.totalorder %s6381_s26, %s7961_s5 }
  0xb3   : > { %p6388_p4 = scmp.lt.s32.totalorder %s6386_s28, %s6382_s7 }
  0xb4   : > { %p6384_p13 = pnand %p6383_p12, %p6004_p3 }
  0xb5   : > { %p6389_p5 = por %p6388_p4, %p6387_p1 }
  0xb6   : > { %p6385_p0 = pneg %p6384_p13 }
  0xb8   : > { %p6390_p6 = pnand %p6389_p5, %p6385_p0 }
  0xba   : > { %6393 = shalt.err (!%p6390_p6)
}
  0xbb   : > { %5939 = dma.hbm_to_vmem [thread:$0]  (%p6004_p3), %s7232_s22, 32, %s981_s16, [#allocation32]  }
  0xbc   : > { %s1030_s11 = sshll.u32 %s7958_s12, 4  ;;  %s6956_s15 = smov [#allocation34]   ;;  %s7257_s11 = int_to_ptr.hbm [resolvable:$true] %s1030_s11 }
  0xbd   : > { %s1006_s23 = sshll.u32 %s6956_s15, 4  ;;  %s6408_s26 = sshra.s32 %s7246_s2, 4  ;;  %s1007_s23 = int_to_ptr.vmem [resolvable:$true] %s1006_s23  ;;  %s6409_s26 = int_to_ptr.hbm [resolvable:$true] %s6408_s26 }
  0xbe   : > { %s6410_s7 = scalar_lea.hbm %s6409_s26, 1  ;;  %s6414_s28 = scalar_lea.hbm %s7101_s27, 1 }
  0xbf   : > { %p6411_p7 = scmp.ne.s32.totalorder %s6409_s26, %s6410_s7  ;;  %p6415_p10 = scmp.lt.s32.totalorder %s6409_s26, %s7101_s27 }
  0xc0   : > { %p6416_p11 = scmp.lt.s32.totalorder %s6414_s28, %s6410_s7 }
  0xc1   : > { %p6412_p8 = pnand %p6411_p7, %p6004_p3 }
  0xc2   : > { %p6417_p12 = por %p6416_p11, %p6415_p10 }
  0xc3   : > { %p6413_p9 = pneg %p6412_p8 }
  0xc5   : > { %p6418_p13 = pnand %p6417_p12, %p6413_p9 }
  0xc7   : > { %6421 = shalt.err (!%p6418_p13)
}
  0xc8   : > { %5943 = dma.hbm_to_vmem [thread:$0]  (%p6004_p3), %s7246_s2, 16, %s1007_s23, [#allocation35]  }
  0xc9   : > { %s6957_s22 = smov [#allocation37]   ;;  %s1055_s15 = sshll.u32 %s7121_s30, 4  ;;  %s7268_s15 = int_to_ptr.hbm [resolvable:$true] %s1055_s15 }
  0xca   : > { %s1032_s16 = sshll.u32 %s6957_s22, 4  ;;  %s6436_s26 = sshra.s32 %s7257_s11, 4  ;;  %s1033_s16 = int_to_ptr.vmem [resolvable:$true] %s1032_s16  ;;  %s6437_s26 = int_to_ptr.hbm [resolvable:$true] %s6436_s26 }
  0xcb   : > { %s6438_s7 = scalar_lea.hbm %s6437_s26, 1  ;;  %s6442_s28 = scalar_lea.hbm %s7958_s12, 1 }
  0xcc   : > { %p6439_p0 = scmp.ne.s32.totalorder %s6437_s26, %s6438_s7  ;;  %p6443_p5 = scmp.lt.s32.totalorder %s6437_s26, %s7958_s12 }
  0xcd   : > { %p6444_p6 = scmp.lt.s32.totalorder %s6442_s28, %s6438_s7 }
  0xce   : > { %p6440_p1 = pnand %p6439_p0, %p6004_p3 }
  0xcf   : > { %p6445_p7 = por %p6444_p6, %p6443_p5 }
  0xd0   : > { %p6441_p4 = pneg %p6440_p1 }
  0xd2   : > { %p6446_p8 = pnand %p6445_p7, %p6441_p4 }
  0xd4   : > { %6449 = shalt.err (!%p6446_p8)
}
  0xd5   : > { %5947 = dma.hbm_to_vmem [thread:$0]  (%p6004_p3), %s7257_s11, 16, %s1033_s16, [#allocation38]  }
  0xd6   : > { %s6958_s2 = smov [#allocation40]   ;;  %s754_s22 = sshll.u32 %s7006_s21, 4  ;;  %s7279_s22 = int_to_ptr.hbm [resolvable:$true] %s754_s22 }
  0xd7   : > { %s1057_s23 = sshll.u32 %s6958_s2, 4  ;;  %s6464_s26 = sshra.s32 %s7268_s15, 4  ;;  %s1058_s23 = int_to_ptr.vmem [resolvable:$true] %s1057_s23  ;;  %s6465_s26 = int_to_ptr.hbm [resolvable:$true] %s6464_s26 }
  0xd8   : > { %s6466_s7 = scalar_lea.hbm %s6465_s26, 8  ;;  %s6470_s28 = scalar_lea.hbm %s7121_s30, 8 }
  0xd9   : > { %p6467_p9 = scmp.ne.s32.totalorder %s6465_s26, %s6466_s7  ;;  %p6471_p12 = scmp.lt.s32.totalorder %s6465_s26, %s7121_s30 }
  0xda   : > { %p6472_p13 = scmp.lt.s32.totalorder %s6470_s28, %s6466_s7 }
  0xdb   : > { %p6468_p10 = pnand %p6467_p9, %p6004_p3 }
  0xdc   : > { %p6473_p0 = por %p6472_p13, %p6471_p12 }
  0xdd   : > { %p6469_p11 = pneg %p6468_p10 }
  0xdf   : > { %p6474_p1 = pnand %p6473_p0, %p6469_p11 }
  0xe1   : > { %6477 = shalt.err (!%p6474_p1)
}
  0xe2   : > { %5951 = dma.hbm_to_vmem [thread:$0]  (%p6004_p3), %s7268_s15, 128, %s1058_s23, [#allocation41], %s7924_s18, %s7924_s18, %s7926_s1  }
  0xe3   : > { %s777_s11 = sshll.u32 %s7016_s29, 4  ;;  %s6959_s16 = smov [#allocation5]   ;;  %s7293_s11 = int_to_ptr.hbm [resolvable:$true] %s777_s11 }
  0xe4   : > { %s756_s2 = sshll.u32 %s6959_s16, 4  ;;  %s6492_s26 = sshra.s32 %s7279_s22, 4  ;;  %s757_s2 = int_to_ptr.vmem [resolvable:$true] %s756_s2  ;;  %s6493_s26 = int_to_ptr.hbm [resolvable:$true] %s6492_s26 }
  0xe5   : > { %s6494_s7 = scalar_lea.hbm %s6493_s26, 4  ;;  %s6498_s28 = scalar_lea.hbm %s7006_s21, 4 }
  0xe6   : > { %p6495_p4 = scmp.ne.s32.totalorder %s6493_s26, %s6494_s7  ;;  %p6499_p7 = scmp.lt.s32.totalorder %s6493_s26, %s7006_s21 }
  0xe7   : > { %p6500_p8 = scmp.lt.s32.totalorder %s6498_s28, %s6494_s7 }
  0xe8   : > { %p6496_p5 = pnand %p6495_p4, %p6004_p3 }
  0xe9   : > { %p6501_p9 = por %p6500_p8, %p6499_p7 }
  0xea   : > { %p6497_p6 = pneg %p6496_p5 }
  0xec   : > { %p6502_p10 = pnand %p6501_p9, %p6497_p6 }
  0xee   : > { %6505 = shalt.err (!%p6502_p10)
}
  0xef   : > { %5905 = dma.hbm_to_vmem [thread:$0]  (%p6004_p3), %s7279_s22, 64, %s757_s2, [#allocation6]  }
  0xf0   : > { %s6960_s15 = smov [#allocation9]   ;;  %s803_s16 = sshll.u32 %s7959_s8, 4  ;;  %s7304_s16 = int_to_ptr.hbm [resolvable:$true] %s803_s16 }
  0xf1   : > { %s779_s23 = sshll.u32 %s6960_s15, 4  ;;  %s6520_s26 = sshra.s32 %s7293_s11, 4  ;;  %s780_s23 = int_to_ptr.vmem [resolvable:$true] %s779_s23  ;;  %s6521_s26 = int_to_ptr.hbm [resolvable:$true] %s6520_s26 }
  0xf2   : > { %s6522_s7 = scalar_lea.hbm %s6521_s26, 64  ;;  %s6526_s28 = scalar_lea.hbm %s7016_s29, 64 }
  0xf3   : > { %p6523_p11 = scmp.ne.s32.totalorder %s6521_s26, %s6522_s7  ;;  %p6527_p0 = scmp.lt.s32.totalorder %s6521_s26, %s7016_s29 }
  0xf4   : > { %p6528_p1 = scmp.lt.s32.totalorder %s6526_s28, %s6522_s7 }
  0xf5   : > { %p6524_p12 = pnand %p6523_p11, %p6004_p3 }
  0xf6   : > { %p6529_p4 = por %p6528_p1, %p6527_p0 }
  0xf7   : > { %p6525_p13 = pneg %p6524_p12 }
  0xf9   : > { %p6530_p5 = pnand %p6529_p4, %p6525_p13 }
  0xfb   : > { %6533 = shalt.err (!%p6530_p5)
}
  0xfc   : > { %s7966_s22 = sld [smem:[#allocation62_spill]]  ;;  %s6961_s15 = smov [#allocation12]  }
  0xfd   : > { %5909 = dma.hbm_to_vmem [thread:$0]  (%p6004_p3), %s7293_s11, 1024, %s780_s23, [#allocation8], %s7924_s18, %s7924_s18, %s7926_s1  }
  0xfe   : > { %s805_s3 = sshll.u32 %s6961_s15, 4  ;;  %s6548_s26 = sshra.s32 %s7304_s16, 4  ;;  %s806_s3 = int_to_ptr.vmem [resolvable:$true] %s805_s3  ;;  %s6549_s26 = int_to_ptr.hbm [resolvable:$true] %s6548_s26 }
  0xff   : > { %s6550_s7 = scalar_lea.hbm %s6549_s26, 32  ;;  %s6554_s28 = scalar_lea.hbm %s7959_s8, 32 }
 0x100   : > { %p6551_p6 = scmp.ne.s32.totalorder %s6549_s26, %s6550_s7  ;;  %p6555_p9 = scmp.lt.s32.totalorder %s6549_s26, %s7959_s8 }
 0x101   : > { %p6556_p10 = scmp.lt.s32.totalorder %s6554_s28, %s6550_s7 }
 0x102   : > { %s832_s2 = sshll.u32 %s7966_s22, 4  ;;  %p6552_p7 = pnand %p6551_p6, %p6004_p3  ;;  %s7318_s2 = int_to_ptr.hbm [resolvable:$true] %s832_s2 }
 0x103   : > { %p6557_p11 = por %p6556_p10, %p6555_p9 }
 0x104   : > { %p6553_p8 = pneg %p6552_p7 }
 0x106   : > { %p6558_p12 = pnand %p6557_p11, %p6553_p8 }
 0x108   : > { %6561 = shalt.err (!%p6558_p12)
}
 0x109   : > { %s7967_s11 = sld [smem:[#allocation63_spill]]  ;;  %s6962_s23 = smov [#allocation15]  }
 0x10a   : > { %5913 = dma.hbm_to_vmem [thread:$0]  (%p6004_p3), %s7304_s16, 512, %s806_s3, [#allocation11], %s7924_s18, %s7924_s18, %s7926_s1  }
 0x10b   : > { %s834_s15 = sshll.u32 %s6962_s23, 4  ;;  %s6576_s26 = sshra.s32 %s7318_s2, 4  ;;  %s835_s15 = int_to_ptr.vmem [resolvable:$true] %s834_s15  ;;  %s6577_s26 = int_to_ptr.hbm [resolvable:$true] %s6576_s26 }
 0x10c   : > { %s6578_s7 = scalar_lea.hbm %s6577_s26, 1  ;;  %s6582_s28 = scalar_lea.hbm %s7966_s22, 1 }
 0x10d   : > { %p6579_p13 = scmp.ne.s32.totalorder %s6577_s26, %s6578_s7  ;;  %p6583_p4 = scmp.lt.s32.totalorder %s6577_s26, %s7966_s22 }
 0x10e   : > { %p6584_p5 = scmp.lt.s32.totalorder %s6582_s28, %s6578_s7 }
 0x10f   : > { %s858_s4 = sshll.u32 %s7967_s11, 4  ;;  %p6580_p0 = pnand %p6579_p13, %p6004_p3  ;;  %s7332_s4 = int_to_ptr.hbm [resolvable:$true] %s858_s4 }
 0x110   : > { %p6585_p6 = por %p6584_p5, %p6583_p4 }
 0x111   : > { %p6581_p1 = pneg %p6580_p0 }
 0x113   : > { %p6586_p7 = pnand %p6585_p6, %p6581_p1 }
 0x115   : > { %6589 = shalt.err (!%p6586_p7)
}
 0x116   : > { %s7968_s3 = sld [smem:[#allocation65_spill]]  ;;  %s6963_s23 = smov [#allocation18]  }
 0x117   : > { %5917 = dma.hbm_to_vmem [thread:$0]  (%p6004_p3), %s7318_s2, 16, %s835_s15, [#allocation14]  }
 0x118   : > { %s860_s18 = sshll.u32 %s6963_s23, 4  ;;  %s6604_s26 = sshra.s32 %s7332_s4, 4  ;;  %s861_s18 = int_to_ptr.vmem [resolvable:$true] %s860_s18  ;;  %s6605_s26 = int_to_ptr.hbm [resolvable:$true] %s6604_s26 }
 0x119   : > { %s6606_s7 = scalar_lea.hbm %s6605_s26, 1  ;;  %s6610_s28 = scalar_lea.hbm %s7967_s11, 1 }
 0x11a   : > { %p6607_p8 = scmp.ne.s32.totalorder %s6605_s26, %s6606_s7  ;;  %p6611_p11 = scmp.lt.s32.totalorder %s6605_s26, %s7967_s11 }
 0x11b   : > { %p6612_p12 = scmp.lt.s32.totalorder %s6610_s28, %s6606_s7 }
 0x11c   : > { %s883_s16 = sshll.u32 %s7968_s3, 4  ;;  %p6608_p9 = pnand %p6607_p8, %p6004_p3  ;;  %s7343_s16 = int_to_ptr.hbm [resolvable:$true] %s883_s16 }
 0x11d   : > { %p6613_p13 = por %p6612_p12, %p6611_p11 }
 0x11e   : > { %p6609_p10 = pneg %p6608_p9 }
 0x120   : > { %p6614_p0 = pnand %p6613_p13, %p6609_p10 }
 0x122   : > { %6617 = shalt.err (!%p6614_p0)
}
 0x123   : > { %5921 = dma.hbm_to_vmem [thread:$0]  (%p6004_p3), %s7332_s4, 16, %s861_s18, [#allocation17]  }
 0x124   : > { %s6964_s2 = smov [#allocation21]   ;;  %s6632_s23 = sshra.s32 %s7343_s16, 4  ;;  %s6633_s23 = int_to_ptr.hbm [resolvable:$true] %s6632_s23 }
 0x125   : > { %s885_s15 = sshll.u32 %s6964_s2, 4  ;;  %s6634_s1 = scalar_lea.hbm %s6633_s23, 384  ;;  %s886_s15 = int_to_ptr.vmem [resolvable:$true] %s885_s15 }
 0x126   : > { %p6635_p1 = scmp.ne.s32.totalorder %s6633_s23, %s6634_s1  ;;  %s6638_s26 = scalar_lea.hbm %s7968_s3, 384 }
 0x127   : > { %p6639_p6 = scmp.lt.s32.totalorder %s6633_s23, %s7968_s3  ;;  %p6640_p7 = scmp.lt.s32.totalorder %s6638_s26, %s6634_s1 }
 0x128   : > { %p6636_p4 = pnand %p6635_p1, %p6004_p3 }
 0x129   : > { %p6641_p8 = por %p6640_p7, %p6639_p6 }
 0x12a   : > { %p6637_p5 = pneg %p6636_p4 }
 0x12c   : > { %p6642_p9 = pnand %p6641_p8, %p6637_p5 }
 0x12e   : > { %6645 = shalt.err (!%p6642_p9)
}
 0x12f   : > { %s7931_s7 = smov 128   ;;  %s7969_s4 = sld [smem:[#allocation66_spill]] }
 0x130   : > { %s7970_s18 = sld [smem:[#allocation68_spill]]  ;;  %s7932_s28 = smov 8  }
 0x131   : > { %5925 = dma.hbm_to_vmem [thread:$0]  (%p6004_p3), %s7343_s16, 6144, %s886_s15, [#allocation20], %s7931_s7, %s7931_s7, %s7932_s28  }
 0x132   : > { %s6967_s1 = smov [#allocation24]  }
 0x133   : > { %s911_s23 = sshll.u32 %s6967_s1, 4  ;;  %s912_s23 = int_to_ptr.vmem [resolvable:$true] %s911_s23 }
 0x135   : > { %s909_s2 = sshll.u32 %s7969_s4, 4  ;;  %s6666_s6 = scalar_lea.hbm %s7969_s4, 384  ;;  %s910_s2 = int_to_ptr.hbm [resolvable:$true] %s909_s2 }
 0x136   : > { %s935_s26 = sshll.u32 %s7970_s18, 4  ;;  %s6660_s3 = sshra.s32 %s910_s2, 4  ;;  %s6661_s3 = int_to_ptr.hbm [resolvable:$true] %s6660_s3  ;;  %s936_s26 = int_to_ptr.hbm [resolvable:$true] %s935_s26 }
 0x137   : > { %s6662_s5 = scalar_lea.hbm %s6661_s3, 384  ;;  %p6667_p13 = scmp.lt.s32.totalorder %s6661_s3, %s7969_s4 }
 0x138   : > { %p6663_p10 = scmp.ne.s32.totalorder %s6661_s3, %s6662_s5  ;;  %p6668_p0 = scmp.lt.s32.totalorder %s6666_s6, %s6662_s5 }
 0x13a   : > { %p6664_p11 = pnand %p6663_p10, %p6004_p3  ;;  %p6669_p1 = por %p6668_p0, %p6667_p13 }
 0x13c   : > { %p6665_p12 = pneg %p6664_p11 }
 0x13e   : > { %p6670_p4 = pnand %p6669_p1, %p6665_p12 }
 0x140   : > { %6673 = shalt.err (!%p6670_p4)
}
 0x141   : > { %s7971_s16 = smov 4   ;;  %s7972_s15 = smov 64  }
 0x142   : > { %s7973_s1 = sld [smem:[#allocation70_spill]]  ;;  %s6968_s7 = smov [#allocation27]  }
 0x143   : > { %5929 = dma.hbm_to_vmem [thread:$0]  (%p6004_p3), %s910_s2, 6144, %s912_s23, [#allocation23], %s7972_s15, %s7972_s15, %s7971_s16  }
 0x144   : > { %s937_s28 = sshll.u32 %s6968_s7, 4  ;;  %s6688_s5 = sshra.s32 %s936_s26, 4  ;;  %s938_s28 = int_to_ptr.vmem [resolvable:$true] %s937_s28  ;;  %s6689_s5 = int_to_ptr.hbm [resolvable:$true] %s6688_s5 }
 0x145   : > { %s6690_s6 = scalar_lea.hbm %s6689_s5, 32  ;;  %s6694_s3 = scalar_lea.hbm %s7970_s18, 32 }
 0x146   : > { %p6691_p5 = scmp.ne.s32.totalorder %s6689_s5, %s6690_s6  ;;  %p6695_p8 = scmp.lt.s32.totalorder %s6689_s5, %s7970_s18 }
 0x147   : > { %p6696_p9 = scmp.lt.s32.totalorder %s6694_s3, %s6690_s6 }
 0x148   : > { %s963_s8 = sshll.u32 %s7973_s1, 4  ;;  %p6692_p6 = pnand %p6691_p5, %p6004_p3  ;;  %s7376_s8 = int_to_ptr.hbm [resolvable:$true] %s963_s8 }
 0x149   : > { %p6697_p10 = por %p6696_p9, %p6695_p8 }
 0x14a   : > { %p6693_p7 = pneg %p6692_p6 }
 0x14c   : > { %p6698_p11 = pnand %p6697_p10, %p6693_p7 }
 0x14e   : > { %6701 = shalt.err (!%p6698_p11)
}
 0x14f   : > { %s7974_s7 = sld [smem:[#allocation72_spill]]  ;;  %s6969_s4 = smov [#allocation30]  }
 0x150   : > { %5933 = dma.hbm_to_vmem [thread:$0]  (%p6004_p3), %s936_s26, 512, %s938_s28, [#allocation26], %s7972_s15, %s7972_s15, %s7971_s16  }
 0x151   : > { %s965_s11 = sshll.u32 %s6969_s4, 4  ;;  %s6716_s5 = sshra.s32 %s7376_s8, 4  ;;  %s966_s11 = int_to_ptr.vmem [resolvable:$true] %s965_s11  ;;  %s6717_s5 = int_to_ptr.hbm [resolvable:$true] %s6716_s5 }
 0x152   : > { %s6718_s6 = scalar_lea.hbm %s6717_s5, 32  ;;  %s6722_s3 = scalar_lea.hbm %s7973_s1, 32 }
 0x153   : > { %p6719_p12 = scmp.ne.s32.totalorder %s6717_s5, %s6718_s6  ;;  %p6723_p1 = scmp.lt.s32.totalorder %s6717_s5, %s7973_s1 }
 0x154   : > { %p6724_p4 = scmp.lt.s32.totalorder %s6722_s3, %s6718_s6 }
 0x155   : > { %s7975_s2 = smov %s7974_s7  ;;  %s989_s23 = sshll.u32 %s7974_s7, 4  ;;  %s7388_s23 = int_to_ptr.hbm [resolvable:$true] %s989_s23 }
 0x156   : > { %p6720_p13 = pnand %p6719_p12, %p6004_p3  ;;  %p6725_p5 = por %p6724_p4, %p6723_p1 }
 0x158   : > { %p6721_p0 = pneg %p6720_p13 }
 0x15a   : > { %p6726_p6 = pnand %p6725_p5, %p6721_p0 }
 0x15c   : > { %6729 = shalt.err (!%p6726_p6)
}
 0x15d   : > { %s7976_s28 = smov 8   ;;  %s7977_s4 = smov 128  }
 0x15e   : > { %s7978_s26 = sld [smem:[#allocation73_spill]]  ;;  %s6970_s7 = smov [#allocation33]  }
 0x15f   : > { %5937 = dma.hbm_to_vmem [thread:$0]  (%p6004_p3), %s7376_s8, 512, %s966_s11, [#allocation29], %s7977_s4, %s7977_s4, %s7976_s28  }
 0x160   : > { %s991_s12 = sshll.u32 %s6970_s7, 4  ;;  %s6744_s5 = sshra.s32 %s7388_s23, 4  ;;  %s992_s12 = int_to_ptr.vmem [resolvable:$true] %s991_s12  ;;  %s6745_s5 = int_to_ptr.hbm [resolvable:$true] %s6744_s5 }
 0x161   : > { %s6746_s6 = scalar_lea.hbm %s6745_s5, 128  ;;  %s6750_s3 = scalar_lea.hbm %s7975_s2, 128 }
 0x162   : > { %p6747_p7 = scmp.ne.s32.totalorder %s6745_s5, %s6746_s6  ;;  %p6751_p10 = scmp.lt.s32.totalorder %s6745_s5, %s7975_s2 }
 0x163   : > { %p6752_p11 = scmp.lt.s32.totalorder %s6750_s3, %s6746_s6 }
 0x164   : > { %s1015_s13 = sshll.u32 %s7978_s26, 4  ;;  %p6748_p8 = pnand %p6747_p7, %p6004_p3  ;;  %s7402_s13 = int_to_ptr.hbm [resolvable:$true] %s1015_s13 }
 0x165   : > { %p6753_p12 = por %p6752_p11, %p6751_p10 }
 0x166   : > { %p6749_p9 = pneg %p6748_p8 }
 0x168   : > { %p6754_p13 = pnand %p6753_p12, %p6749_p9 }
 0x16a   : > { %6757 = shalt.err (!%p6754_p13)
}
 0x16b   : > { %5941 = dma.hbm_to_vmem [thread:$0]  (%p6004_p3), %s7388_s23, 2048, %s992_s12, [#allocation32], %s7972_s15, %s7972_s15, %s7971_s16  }
 0x16c   : > { %s1041_s8 = sshll.u32 %s7116_s17, 4  ;;  %s6971_s11 = smov [#allocation36]   ;;  %s7416_s8 = int_to_ptr.hbm [resolvable:$true] %s1041_s8 }
 0x16d   : > { %s1017_s28 = sshll.u32 %s6971_s11, 4  ;;  %s6772_s4 = sshra.s32 %s7402_s13, 4  ;;  %s1018_s28 = int_to_ptr.vmem [resolvable:$true] %s1017_s28  ;;  %s6773_s4 = int_to_ptr.hbm [resolvable:$true] %s6772_s4 }
 0x16e   : > { %s6774_s7 = scalar_lea.hbm %s6773_s4, 64  ;;  %s6778_s5 = scalar_lea.hbm %s7978_s26, 64 }
 0x16f   : > { %p6775_p0 = scmp.ne.s32.totalorder %s6773_s4, %s6774_s7  ;;  %p6779_p5 = scmp.lt.s32.totalorder %s6773_s4, %s7978_s26 }
 0x170   : > { %p6780_p6 = scmp.lt.s32.totalorder %s6778_s5, %s6774_s7 }
 0x171   : > { %p6776_p1 = pnand %p6775_p0, %p6004_p3 }
 0x172   : > { %p6781_p7 = por %p6780_p6, %p6779_p5 }
 0x173   : > { %p6777_p4 = pneg %p6776_p1 }
 0x175   : > { %p6782_p8 = pnand %p6781_p7, %p6777_p4 }
 0x177   : > { %6785 = shalt.err (!%p6782_p8)
}
 0x178   : > { %5945 = dma.hbm_to_vmem [thread:$0]  (%p6004_p3), %s7402_s13, 1024, %s1018_s28, [#allocation35], %s7972_s15, %s7972_s15, %s7971_s16  }
 0x179   : > { %s6972_s12 = smov [#allocation39]   ;;  %s1069_s6 = sshll.u32 %s7126_s9, 4  ;;  %s1070_s6 = int_to_ptr.hbm [resolvable:$true] %s1069_s6 }
 0x17a   : > { %s1043_s23 = sshll.u32 %s6972_s12, 4  ;;  %s6800_s3 = sshra.s32 %s7416_s8, 4  ;;  %s1044_s23 = int_to_ptr.vmem [resolvable:$true] %s1043_s23  ;;  %s6801_s3 = int_to_ptr.hbm [resolvable:$true] %s6800_s3 }
 0x17b   : > { %s6802_s11 = scalar_lea.hbm %s6801_s3, 8  ;;  %s6806_s4 = scalar_lea.hbm %s7116_s17, 8 }
 0x17c   : > { %p6803_p9 = scmp.ne.s32.totalorder %s6801_s3, %s6802_s11  ;;  %p6807_p12 = scmp.lt.s32.totalorder %s6801_s3, %s7116_s17 }
 0x17d   : > { %p6808_p13 = scmp.lt.s32.totalorder %s6806_s4, %s6802_s11 }
 0x17e   : > { %p6804_p10 = pnand %p6803_p9, %p6004_p3 }
 0x17f   : > { %p6809_p0 = por %p6808_p13, %p6807_p12 }
 0x180   : > { %p6805_p11 = pneg %p6804_p10 }
 0x182   : > { %p6810_p1 = pnand %p6809_p0, %p6805_p11 }
 0x184   : > { %6813 = shalt.err (!%p6810_p1)
}
 0x185   : > { %5949 = dma.hbm_to_vmem [thread:$0]  (%p6004_p3), %s7416_s8, 128, %s1044_s23, [#allocation38], %s7972_s15, %s7972_s15, %s7971_s16  }
 0x186   : > { %s6973_s13 = smov [#allocation42]   ;;  %s6828_s7 = sshra.s32 %s1070_s6, 4  ;;  %s6829_s7 = int_to_ptr.hbm [resolvable:$true] %s6828_s7 }
 0x187   : > { %s1071_s28 = sshll.u32 %s6973_s13, 4  ;;  %s6830_s5 = scalar_lea.hbm %s6829_s7, 8  ;;  %s1072_s28 = int_to_ptr.vmem [resolvable:$true] %s1071_s28 }
 0x188   : > { %p6831_p4 = scmp.ne.s32.totalorder %s6829_s7, %s6830_s5  ;;  %s6834_s12 = scalar_lea.hbm %s7126_s9, 8 }
 0x189   : > { %p6835_p7 = scmp.lt.s32.totalorder %s6829_s7, %s7126_s9  ;;  %p6836_p8 = scmp.lt.s32.totalorder %s6834_s12, %s6830_s5 }
 0x18a   : > { %p6832_p5 = pnand %p6831_p4, %p6004_p3 }
 0x18b   : > { %p6837_p9 = por %p6836_p8, %p6835_p7 }
 0x18c   : > { %p6833_p6 = pneg %p6832_p5 }
 0x18e   : > { %p6838_p10 = pnand %p6837_p9, %p6833_p6 }
 0x190   : > { %6841 = shalt.err (!%p6838_p10)
}
 0x191   : > { %5953 = dma.hbm_to_vmem [thread:$0]  (%p6004_p3), %s1070_s6, 128, %s1072_s28, [#allocation41], %s7972_s15, %s7972_s15, %s7971_s16  }
 0x192 PF: > { %1118 = sbr.rel (%p7143_p2) target bundleno = 2186 (0x88a), region = 136  ;;  %p6029_p11 = scmp.eq.s32.totalorder (!%p7143_p2), %s7139_s0, 0 }
 0x197   : > { %6861 = dma.done.wait (%p6029_p11), [#allocation6], 64  }
 0x198   : > { %6863 = vsyncadd (%p6029_p11), [#allocation6], 4294967232 }
 0x199   : > { %6865 = dma.done.wait (%p6029_p11), [#allocation8], 1040  }
 0x19a   : > { %6867 = vsyncadd (%p6029_p11), [#allocation8], 4294966256 }
 0x19b   : > { %6869 = dma.done.wait (%p6029_p11), [#allocation11], 528  }
 0x19c   : > { %6871 = vsyncadd (%p6029_p11), [#allocation11], 4294966768 }
 0x19d   : > { %6873 = dma.done.wait (%p6029_p11), [#allocation14], 2064  }
 0x19e   : > { %6875 = vsyncadd (%p6029_p11), [#allocation14], 4294965232 }
 0x19f   : > { %6877 = dma.done.wait (%p6029_p11), [#allocation17], 3088  }
 0x1a0   : > { %6879 = vsyncadd (%p6029_p11), [#allocation17], 4294964208 }
 0x1a1   : > { %6881 = dma.done.wait (%p6029_p11), [#allocation20], 6656  }
 0x1a2   : > { %6883 = vsyncadd (%p6029_p11), [#allocation20], 4294960640 }
 0x1a3   : > { %6885 = dma.done.wait (%p6029_p11), [#allocation23], 6176  }
 0x1a4   : > { %6887 = vsyncadd (%p6029_p11), [#allocation23], 4294961120 }
 0x1a5   : > { %6889 = dma.done.wait (%p6029_p11), [#allocation26], 528  }
 0x1a6   : > { %6891 = vsyncadd (%p6029_p11), [#allocation26], 4294966768 }
 0x1a7   : > { %6893 = dma.done.wait (%p6029_p11), [#allocation29], 1536  }
 0x1a8   : > { %6895 = vsyncadd (%p6029_p11), [#allocation29], 4294965760 }
 0x1a9   : > { %6897 = dma.done.wait (%p6029_p11), [#allocation32], 2080  }
 0x1aa   : > { %6899 = vsyncadd (%p6029_p11), [#allocation32], 4294965216 }
 0x1ab   : > { %6901 = dma.done.wait (%p6029_p11), [#allocation35], 1040  }
 0x1ac   : > { %6903 = vsyncadd (%p6029_p11), [#allocation35], 4294966256 }
 0x1ad   : > { %6905 = dma.done.wait (%p6029_p11), [#allocation38], 144  }
 0x1ae   : > { %6907 = vsyncadd (%p6029_p11), [#allocation38], 4294967152 }
 0x1af   : > { %6909 = dma.done.wait (%p6029_p11), [#allocation41], 256  }
 0x1b0   : > { %6911 = vsyncadd (%p6029_p11), [#allocation41], 4294967040  ;;  %vm1509_vm0 = vcmask 253952   ;;  %vm1510_vm1 = vsmask.f32 256  ;;  %vm2444_vm2 = vcmask 1040384  }
 0x1b1   : > { %vm3218_vm3 = vcmask 1044484   ;;  %vm3219_vm4 = vsmask.f32 4352  ;;  %p1329_p2 = scmp.lt.s32.totalorder %s7139_s0, 1  ;;  %vm7507_vm5 = vmand %vm1509_vm0, %vm1510_vm1  ;;  %vm1440_vm6 = vcmask 1043456   ;;  %s7985_s10 = sld [smem:[#allocation56_spill]] }
 0x1b2   : > { %vm7513_vm7 = vmand %vm2444_vm2, %vm1510_vm1  ;;  %vm1695_vm8 = vsmask.f32 7938  ;;  %vm3226_vm10 = vsmask.f32 7954  ;;  %v1370_v3 = vld [vmem:[#allocation5] sm:$0xf] }
 0x1b3   : > { %s7995_s0 = smov (!%p1329_p2, %s7139_s0), 1  ;;  %vm7521_vm9 = vmand %vm3218_vm3, %vm3219_vm4  ;;  %v1512_v4 = vld [vmem:[#allocation2] sm:$0x1]  ;;  %v1442_v6 = vsel %vm1440_vm6, %v1370_v3, 0  ;;  %v2446_v9 = vld [vmem:[#allocation3] sm:$0x1] }
 0x1b4   : > { %v1515_v5 = vld [vmem:[#allocation2 + $0x40] sm:$0x1]  ;;  %v1513_v7 = vsel %vm7507_vm5, 0, %v1512_v4  ;;  %vm3221_vm11 = vmor %vm7521_vm9, %vm7513_vm7  ;;  %s5660_s16 = sshll.u32 %s7995_s0, 6  ;;  %1451 = vmatpush.bf16.msra.mxu0 %v1442_v6  ;;  %v2447_v10 = vsel %vm7513_vm7, 0, %v2446_v9  ;;  %vm1415_vm13 = vcmask 64512  }
 0x1b5   : > { %v1516_v8 = vsel %vm7507_vm5, 0, %v1515_v5  ;;  %1514 = vst [vmem:[#allocation2] sm:$0x1] %v1513_v7  ;;  %v2449_v11 = vld [vmem:[#allocation3 + $0x8] sm:$0x1]  ;;  %vm3225_vm12 = vmand %vm2444_vm2, %vm1695_vm8  ;;  %vm1694_vm0 = vcmask 257024  }
 0x1b6   : > { %1517 = vst [vmem:[#allocation2 + $0x40] sm:$0x1] %v1516_v8  ;;  %v2450_v12 = vsel %vm7513_vm7, 0, %v2449_v11  ;;  %v3222_v13 = vld [vmem:[#allocation4] sm:$0x11]  ;;  %vm3227_vm14 = vmand %vm3218_vm3, %vm3226_vm10  ;;  %s6974_s8 = smov 32  }
 0x1b7   : > { %s1333_s15 = scalar_lea.vmem %s7985_s10, %s5660_s16  ;;  %2448 = vst [vmem:[#allocation3] sm:$0x1] %v2447_v10  ;;  %v3223_v15 = vsel %vm3221_vm11, 0, %v3222_v13  ;;  %vm3228_vm15 = vmor %vm3227_vm14, %vm3225_vm12  ;;  %v3229_v16 = vld [vmem:[#allocation4 + $0x8] sm:$0x11]  ;;  %s6975_s23 = smov 96  }
 0x1b8   : > { %v5663_v14 = vld [vmem:[%s1333_s15] sm:$0xff]  ;;  %2451 = vst [vmem:[#allocation3 + $0x8] sm:$0x1] %v2450_v12  ;;  %v3230_v17 = vsel %vm3228_vm15, 0, %v3229_v16  ;;  %v5664_v18 = vld [vmem:[%s1333_s15 + $0x8] sm:$0xff]  ;;  %v5665_v19 = vld [vmem:[%s1333_s15 + $0x10] sm:$0xff] }
 0x1b9   : > { %4829 = vmatmul.msk.bf16.vlgmr.msra.gmra.mxu0 %vm1415_vm13, %v5663_v14  ;;  %3224 = vst [vmem:[#allocation4] sm:$0x11] %v3223_v15  ;;  %v5666_v20 = vld [vmem:[%s1333_s15 + $0x18] sm:$0xff]  ;;  %v5667_v21 = vld [vmem:[%s1333_s15 + $0x20] sm:$0xff]  ;;  %v5668_v22 = vld [vmem:[%s1333_s15 + $0x28] sm:$0xff]  ;;  %vm1861_vm12 = vcmask 1046528  }
 0x1ba   : > { %3231 = vst [vmem:[#allocation4 + $0x8] sm:$0x11] %v3230_v17  ;;  %v5669_v23 = vld [vmem:[%s1333_s15 + $0x30] sm:$0xff]  ;;  %v5670_v24 = vld [vmem:[%s1333_s15 + $0x38] sm:$0xff]  ;;  %v7557_v25 = vld [vmem:[#allocation7] ss:$0 sm:$0xff] }
 0x1bb   : > { %vm1696_vm2 = vmand %vm1694_vm0, %vm1695_vm8  ;;  %vm1534_vm3 = vsmask.f32 4368  ;;  %vm1896_vm5 = vsmask.f32 6400  ;;  %s6976_s6 = smov 64   ;;  %s7988_s3 = sld [smem:[#allocation57_spill]] }
 0x1bc   : > { %v1697_v35 = vld [vmem:[#allocation2] sm:$0xf]  ;;  %vm7565_vm4 = vmor %vm1510_vm1, %vm1534_vm3  ;;  %vm1778_vm1 = vsmask.f32 7424  ;;  %s5903_s11 = smul.u32 12, %s7995_s0  ;;  %vm1954_vm14 = vcmask 261120  }
 0x1bd   : > { %vm1972_vm15 = vcmask 523264   ;;  %vm2788_vm3 = vcmask 1047552   ;;  %s5661_s13 = sshll.u32 %s7995_s0, 3  ;;  %s7991_s28 = sld [smem:[#allocation58_spill]]  ;;  %vm4338_vm7 = vcmask 31744  }
 0x1be   : > { %s7992_s5 = sld [smem:[#allocation59_spill]]  ;;  %s4794_s12 = sshll.u32 %s7995_s0, 1 }
 0x1bf   : > { %s5662_s16 = sshll.u32 %s7995_s0, 4 }
 0x1c0   : > { %s1352_s15 = scalar_lea.vmem %s7131_s19, %s5662_s16 }
 0x1c1   : > { %s1338_s4 = scalar_lea.vmem %s7988_s3, %s5903_s11 }
 0x1c3   : > { %s1343_s7 = scalar_lea.vmem %s7991_s28, %s5661_s13 }
 0x1c4   : > { %s1347_s10 = scalar_lea.vmem %s7992_s5, %s4794_s12 }
 0x1c9   : > { %4830 = vmatmul.msk.bf16.gmra.mxu0 %vm1415_vm13, %v5664_v18 }
 0x1d9   : > { %4831 = vmatmul.msk.bf16.gmra.mxu0 %vm1415_vm13, %v5665_v19 }
 0x1e9   : > { %4832 = vmatmul.msk.bf16.gmra.mxu0 %vm1415_vm13, %v5666_v20 }
 0x1f9   : > { %4833 = vmatmul.msk.bf16.gmra.mxu0 %vm1415_vm13, %v5667_v21 }
 0x209   : > { %4834 = vmatmul.msk.bf16.gmra.mxu0 %vm1415_vm13, %v5668_v22 }
 0x219   : > { %4835 = vmatmul.msk.bf16.gmra.mxu0 %vm1415_vm13, %v5669_v23 }
 0x229   : > { %4836 = vmatmul.msk.bf16.gmra.mxu0 %vm1415_vm13, %v5670_v24 }
 0x236   : > { %v1453_v26 = vpop.f32.mrf.mxu0 }
 0x237   : > { %v1454_v27 = vadd.f32 %v7557_v25, %v1453_v26 }
 0x239   : > { %v1493_v28 = vmax.f32 %v1454_v27, 0.0 }
 0x23b   : > { %v1518_v29 = vpack.c.bf16 %v1493_v28, %v1493_v28 }
 0x23d   : > { %v1537_v30 = vshrl.u32 %v1518_v29, 16  ;;  %v1540_v33 = vshll.u32 %v1518_v29, 16 }
 0x23e   : > { %v1455_v31 = vpop.f32.mrf.mxu0 }
 0x23f   : > { %v1539_v32 = vrot.slane %v1537_v30, 7  ;;  %v1456_v34 = vadd.f32 %v7557_v25, %v1455_v31 }
 0x241   : > { %v1542_v36 = vor.u32 %v1540_v33, %v1539_v32  ;;  %v1494_v37 = vmax.f32 %v1456_v34, 0.0  ;;  %v1543_v46 = vrot.slane %v1539_v32, 4 }
 0x243   : > { %v1698_v38 = vsel %vm1696_vm2, %v1542_v36, %v1697_v35  ;;  %v1519_v39 = vpack.c.bf16 %v1494_v37, %v1494_v37  ;;  %vm7789_vm2 = vmand %vm1440_vm6, %vm1695_vm8  ;;  %vm2183_vm8 = vcmask 1031168  }
 0x244   : > { %1699 = vst [vmem:[#allocation2] sm:$0xf] %v1698_v38 }
 0x245   : > { %v1545_v40 = vshrl.u32 %v1519_v39, 16  ;;  %v1548_v43 = vshll.u32 %v1519_v39, 16 }
 0x246   : > { %v1458_v41 = vpop.f32.mrf.mxu0 }
 0x247   : > { %v1547_v42 = vrot.slane %v1545_v40, 7  ;;  %v1459_v44 = vadd.f32 %v7557_v25, %v1458_v41 }
 0x249   : > { %v1550_v47 = vor.u32 %v1548_v43, %v1547_v42  ;;  %v1495_v48 = vmax.f32 %v1459_v44, 0.0  ;;  %v1552_v56 = vrot.slane %v1547_v42, 4 }
 0x24b   : > { %v1551_v49 = vsel %vm7565_vm4, %v1543_v46, %v1550_v47  ;;  %v1520_v50 = vpack.c.bf16 %v1495_v48, %v1495_v48  ;;  %v5890_v14 = vld [vmem:[#allocation2] sm:$0xe] }
 0x24c   : > { %1701 = vst.msk [vmem:[#allocation2 + $0x4] sm:$0xf] %vm1694_vm0, %v1551_v49 }
 0x24d   : > { %v1554_v51 = vshrl.u32 %v1520_v50, 16  ;;  %v1557_v54 = vshll.u32 %v1520_v50, 16 }
 0x24e   : > { %v1460_v52 = vpop.f32.mrf.mxu0 }
 0x24f   : > { %v1556_v53 = vrot.slane %v1554_v51, 7  ;;  %v1461_v55 = vadd.f32 %v7557_v25, %v1460_v52 }
 0x251   : > { %v1559_v57 = vor.u32 %v1557_v54, %v1556_v53  ;;  %v1496_v58 = vmax.f32 %v1461_v55, 0.0  ;;  %v1561_v4 = vrot.slane %v1556_v53, 4 }
 0x253   : > { %v1560_v59 = vsel %vm7565_vm4, %v1552_v56, %v1559_v57  ;;  %v1521_v60 = vpack.c.bf16 %v1496_v58, %v1496_v58  ;;  %v7577_v7 = vld [vmem:[#allocation2] sm:$0xff]  }
 0x254   : > { %1702 = vst.msk [vmem:[#allocation2 + $0x8] sm:$0xf] %vm1694_vm0, %v1560_v59  ;;  %v5889_v10 = vld [vmem:[#allocation2] sm:$0xf0]  ;;  %v1782_v13 = vshll.u32 %v7577_v7, 16  ;;  %v1780_v29 = vshrl.u32 %v7577_v7, 16 }
 0x255   : > { %v1563_v61 = vshrl.u32 %v1521_v60, 16  ;;  %v1566_v0 = vshll.u32 %v1521_v60, 16  ;;  %v5891_v16 = vor.u32 %v5890_v14, %v5889_v10 }
 0x256   : > { %v1463_v62 = vpop.f32.mrf.mxu0  ;;  %v1784_v22 = vrot.slane %v1782_v13, 1 }
 0x257   : > { %v1565_v63 = vrot.slane %v1563_v61, 7  ;;  %v1464_v3 = vadd.f32 %v7557_v25, %v1463_v62  ;;  %v1898_v23 = vshrl.u32 %v5891_v16, 16  ;;  %v1901_v24 = vshll.u32 %v5891_v16, 16 }
 0x258   : > { %v1785_v31 = vor.u32 %v1784_v22, %v1780_v29  ;;  %v1862_v59 = vrot.slane %v5891_v16, 1 }
 0x259   : > { %v1568_v5 = vor.u32 %v1566_v0, %v1565_v63  ;;  %v1497_v6 = vmax.f32 %v1464_v3, 0.0  ;;  %v1570_v19 = vrot.slane %v1565_v63, 4  ;;  %v1900_v37 = vrot.slane %v1898_v23, 1 }
 0x25a   : > { %v1903_v38 = vrot.slane %v1901_v24, 2 }
 0x25b   : > { %v1569_v8 = vsel %vm7565_vm4, %v1561_v4, %v1568_v5  ;;  %v1522_v9 = vpack.c.bf16 %v1497_v6, %v1497_v6 }
 0x25c   : > { %1703 = vst.msk [vmem:[#allocation2 + $0xc] sm:$0xf] %vm1694_vm0, %v1569_v8  ;;  %v1904_v48 = vor.u32 %v1903_v38, %v1900_v37 }
 0x25d   : > { %v1572_v11 = vshrl.u32 %v1522_v9, 16  ;;  %v1575_v12 = vshll.u32 %v1522_v9, 16 }
 0x25e   : > { %v1465_v15 = vpop.f32.mrf.mxu0 }
 0x25f   : > { %v1574_v17 = vrot.slane %v1572_v11, 7  ;;  %v1466_v18 = vadd.f32 %v7557_v25, %v1465_v15 }
 0x261   : > { %v1577_v20 = vor.u32 %v1575_v12, %v1574_v17  ;;  %v1498_v21 = vmax.f32 %v1466_v18, 0.0  ;;  %v1579_v34 = vrot.slane %v1574_v17, 4 }
 0x263   : > { %v1578_v26 = vsel %vm7565_vm4, %v1570_v19, %v1577_v20  ;;  %v1523_v27 = vpack.c.bf16 %v1498_v21, %v1498_v21  ;;  %v7586_v28 = vld [vmem:[#allocation2 + $0x8] sm:$0xff] }
 0x264   : > { %1704 = vst.msk [vmem:[#allocation2 + $0x10] sm:$0xf] %vm1694_vm0, %v1578_v26  ;;  %v1787_v32 = vshll.u32 %v7586_v28, 16  ;;  %v1791_v33 = vshrl.u32 %v7586_v28, 16  ;;  %v1863_v55 = vrot.slane %v7586_v28, 1 }
 0x265   : > { %v1581_v30 = vshrl.u32 %v1523_v27, 16  ;;  %v1584_v35 = vshll.u32 %v1523_v27, 16 }
 0x266   : > { %v1468_v36 = vpop.f32.mrf.mxu0  ;;  %v1789_v41 = vrot.slane %v1787_v32, 1  ;;  %v1905_v42 = vrot.slane %v1791_v33, 1  ;;  %v1906_v43 = vrot.slane %v1787_v32, 2  ;;  %v1864_v63 = vsel %vm1861_vm12, %v1862_v59, %v1863_v55 }
 0x267   : > { %v1583_v39 = vrot.slane %v1581_v30, 7  ;;  %v1469_v40 = vadd.f32 %v7557_v25, %v1468_v36 }
 0x268   : > { %v1790_v47 = vsel %vm1778_vm1, %v1785_v31, %v1789_v41  ;;  %v1907_v49 = vor.u32 %v1906_v43, %v1905_v42  ;;  %v1793_v12 = vor.u32 %v1791_v33, %v1789_v41 }
 0x269   : > { %v1586_v44 = vor.u32 %v1584_v35, %v1583_v39  ;;  %v1499_v46 = vmax.f32 %v1469_v40, 0.0  ;;  %1842 = vrot.lane.b32.xlu0 %v1790_v47, %s6974_s8  ;;  %v1588_v60 = vrot.slane %v1583_v39, 4 }
 0x26a   : > { %v1908_v52 = vsel %vm1896_vm5, %v1904_v48, %v1907_v49 }
 0x26b   : > { %v1587_v50 = vsel %vm7565_vm4, %v1579_v34, %v1586_v44  ;;  %v1524_v51 = vpack.c.bf16 %v1499_v46, %v1499_v46  ;;  %1938 = vrot.lane.b32.xlu1 %v1908_v52, %s6975_s23 }
 0x26c   : > { %1705 = vst.msk [vmem:[#allocation2 + $0x14] sm:$0xf] %vm1694_vm0, %v1587_v50 }
 0x26d   : > { %v1590_v53 = vshrl.u32 %v1524_v51, 16  ;;  %v1593_v54 = vshll.u32 %v1524_v51, 16 }
 0x26e   : > { %v1470_v56 = vpop.f32.mrf.mxu0 }
 0x26f   : > { %v1592_v57 = vrot.slane %v1590_v53, 7  ;;  %v1471_v58 = vadd.f32 %v7557_v25, %v1470_v56 }
 0x271   : > { %v1595_v61 = vor.u32 %v1593_v54, %v1592_v57  ;;  %v1500_v62 = vmax.f32 %v1471_v58, 0.0  ;;  %1877 = vrot.lane.b32.xlu0 %v1864_v63, %s6976_s6  ;;  %v1597_v9 = vrot.slane %v1592_v57, 4 }
 0x273   : > { %v1596_v0 = vsel %vm7565_vm4, %v1588_v60, %v1595_v61  ;;  %v1525_v3 = vpack.c.bf16 %v1500_v62, %v1500_v62  ;;  %v7606_v4 = vld [vmem:[#allocation2 + $0x10] sm:$0xff] }
 0x274   : > { %1706 = vst.msk [vmem:[#allocation2 + $0x18] sm:$0xf] %vm1694_vm0, %v1596_v0  ;;  %v1865_v6 = vrot.slane %v7606_v4, 1  ;;  %v1795_v8 = vshll.u32 %v7606_v4, 16  ;;  %v1799_v13 = vshrl.u32 %v7606_v4, 16 }
 0x275   : > { %v1599_v5 = vshrl.u32 %v1525_v3, 16  ;;  %v1602_v10 = vshll.u32 %v1525_v3, 16 }
 0x276   : > { %v1473_v11 = vpop.f32.mrf.mxu0  ;;  %v1866_v16 = vsel %vm1861_vm12, %v1863_v55, %v1865_v6  ;;  %v1797_v17 = vrot.slane %v1795_v8, 1  ;;  %v1909_v18 = vrot.slane %v1799_v13, 1  ;;  %v1910_v19 = vrot.slane %v1795_v8, 2 }
 0x277   : > { %v1601_v14 = vrot.slane %v1599_v5, 7  ;;  %v1474_v15 = vadd.f32 %v7557_v25, %v1473_v11  ;;  %1879 = vrot.lane.b32.xlu2 %v1866_v16, %s6976_s6 }
 0x278   : > { %v1798_v22 = vsel %vm1778_vm1, %v1793_v12, %v1797_v17  ;;  %v1911_v26 = vor.u32 %v1910_v19, %v1909_v18  ;;  %v1801_v47 = vor.u32 %v1799_v13, %v1797_v17 }
 0x279   : > { %v1604_v20 = vor.u32 %v1602_v10, %v1601_v14  ;;  %v1501_v21 = vmax.f32 %v1474_v15, 0.0  ;;  %1844 = vrot.lane.b32.xlu1 %v1798_v22, %s6974_s8  ;;  %v1606_v34 = vrot.slane %v1601_v14, 4 }
 0x27a   : > { %v1912_v33 = vsel %vm1896_vm5, %v1907_v49, %v1911_v26 }
 0x27b   : > { %v1605_v23 = vsel %vm7565_vm4, %v1597_v9, %v1604_v20  ;;  %v1526_v24 = vpack.c.bf16 %v1501_v21, %v1501_v21 }
 0x27c   : > { %1707 = vst.msk [vmem:[#allocation2 + $0x1c] sm:$0xf] %vm1694_vm0, %v1605_v23 }
 0x27d   : > { %v1608_v27 = vshrl.u32 %v1526_v24, 16  ;;  %v1611_v29 = vshll.u32 %v1526_v24, 16 }
 0x27e   : > { %v1475_v30 = vpop.f32.mrf.mxu0 }
 0x27f   : > { %v1610_v31 = vrot.slane %v1608_v27, 7  ;;  %v1476_v32 = vadd.f32 %v7557_v25, %v1475_v30  ;;  %1940 = vrot.lane.b32.xlu2 %v1912_v33, %s6975_s23 }
 0x281   : > { %v1613_v35 = vor.u32 %v1611_v29, %v1610_v31  ;;  %v1502_v36 = vmax.f32 %v1476_v32, 0.0  ;;  %v1615_v43 = vrot.slane %v1610_v31, 4 }
 0x283   : > { %v1614_v37 = vsel %vm7565_vm4, %v1606_v34, %v1613_v35  ;;  %v1527_v38 = vpack.c.bf16 %v1502_v36, %v1502_v36  ;;  %v7625_v39 = vld [vmem:[#allocation2 + $0x18] sm:$0xff] }
 0x284   : > { %1708 = vst.msk [vmem:[#allocation2 + $0x20] sm:$0xf] %vm1694_vm0, %v1614_v37  ;;  %v1867_v41 = vrot.slane %v7625_v39, 1  ;;  %v1803_v42 = vshll.u32 %v7625_v39, 16  ;;  %v1807_v48 = vshrl.u32 %v7625_v39, 16 }
 0x285   : > { %v1617_v40 = vshrl.u32 %v1527_v38, 16  ;;  %v1620_v44 = vshll.u32 %v1527_v38, 16 }
 0x286   : > { %v1478_v46 = vpop.f32.mrf.mxu0  ;;  %v1868_v51 = vsel %vm1861_vm12, %v1865_v6, %v1867_v41  ;;  %v1805_v52 = vrot.slane %v1803_v42, 1  ;;  %v1913_v53 = vrot.slane %v1807_v48, 1  ;;  %v1914_v54 = vrot.slane %v1803_v42, 2 }
 0x287   : > { %v1619_v49 = vrot.slane %v1617_v40, 7  ;;  %v1479_v50 = vadd.f32 %v7557_v25, %v1478_v46  ;;  %1881 = vrot.lane.b32.xlu1 %v1868_v51, %s6976_s6 }
 0x288   : > { %v1806_v57 = vsel %vm1778_vm1, %v1801_v47, %v1805_v52  ;;  %v1915_v58 = vor.u32 %v1914_v54, %v1913_v53  ;;  %v1809_v19 = vor.u32 %v1807_v48, %v1805_v52 }
 0x289   : > { %v1622_v55 = vor.u32 %v1620_v44, %v1619_v49  ;;  %v1503_v56 = vmax.f32 %v1479_v50, 0.0  ;;  %1846 = vrot.lane.b32.xlu0 %v1806_v57, %s6974_s8  ;;  %v1624_v6 = vrot.slane %v1619_v49, 4 }
 0x28a   : > { %v1916_v61 = vsel %vm1896_vm5, %v1911_v26, %v1915_v58 }
 0x28b   : > { %v1623_v59 = vsel %vm7565_vm4, %v1615_v43, %v1622_v55  ;;  %v1528_v60 = vpack.c.bf16 %v1503_v56, %v1503_v56  ;;  %1942 = vrot.lane.b32.xlu2 %v1916_v61, %s6975_s23  ;;  %v5684_v61 = vld [vmem:[#allocation9 + $0x38] sm:$0xff] }
 0x28c   : > { %1709 = vst.msk [vmem:[#allocation2 + $0x24] sm:$0xf] %vm1694_vm0, %v1623_v59  ;;  %2082 = vmatpush.bf16.msra.mxu1 %v5684_v61 }
 0x28d   : > { %v1626_v62 = vshrl.u32 %v1528_v60, 16  ;;  %v1629_v63 = vshll.u32 %v1528_v60, 16 }
 0x28e   : > { %v1480_v0 = vpop.f32.mrf.mxu0 }
 0x28f   : > { %v1628_v3 = vrot.slane %v1626_v62, 7  ;;  %v1481_v5 = vadd.f32 %v7557_v25, %v1480_v0 }
 0x291   : > { %v1631_v8 = vor.u32 %v1629_v63, %v1628_v3  ;;  %v1504_v9 = vmax.f32 %v1481_v5, 0.0  ;;  %v1633_v16 = vrot.slane %v1628_v3, 4 }
 0x293   : > { %v1632_v10 = vsel %vm7565_vm4, %v1624_v6, %v1631_v8  ;;  %v1529_v11 = vpack.c.bf16 %v1504_v9, %v1504_v9  ;;  %v7644_v12 = vld [vmem:[#allocation2 + $0x20] sm:$0xff] }
 0x294   : > { %1710 = vst.msk [vmem:[#allocation2 + $0x28] sm:$0xf] %vm1694_vm0, %v1632_v10  ;;  %v1869_v14 = vrot.slane %v7644_v12, 1  ;;  %v1811_v15 = vshll.u32 %v7644_v12, 16  ;;  %v1815_v20 = vshrl.u32 %v7644_v12, 16  ;;  %v5683_v10 = vld [vmem:[#allocation9 + $0x30] sm:$0xff] }
 0x295   : > { %v1635_v13 = vshrl.u32 %v1529_v11, 16  ;;  %v1638_v17 = vshll.u32 %v1529_v11, 16  ;;  %2083 = vmatpush.bf16.msra.mxu1 %v5683_v10  ;;  %v7709_v10 = vld [vmem:[%s1338_s4] sm:$0xff]  }
 0x296   : > { %v1483_v18 = vpop.f32.mrf.mxu0  ;;  %v1870_v23 = vsel %vm1861_vm12, %v1867_v41, %v1869_v14  ;;  %v1813_v24 = vrot.slane %v1811_v15, 1  ;;  %v1917_v26 = vrot.slane %v1815_v20, 1  ;;  %v1918_v27 = vrot.slane %v1811_v15, 2 }
 0x297   : > { %v1637_v21 = vrot.slane %v1635_v13, 7  ;;  %v1484_v22 = vadd.f32 %v7557_v25, %v1483_v18  ;;  %1883 = vrot.lane.b32.xlu1 %v1870_v23, %s6976_s6  ;;  %v5682_v18 = vld [vmem:[#allocation9 + $0x28] sm:$0xff] }
 0x298   : > { %v1814_v31 = vsel %vm1778_vm1, %v1809_v19, %v1813_v24  ;;  %v1919_v32 = vor.u32 %v1918_v27, %v1917_v26  ;;  %v1817_v55 = vor.u32 %v1815_v20, %v1813_v24  ;;  %v5681_v26 = vld [vmem:[#allocation9 + $0x20] sm:$0xff] }
 0x299   : > { %v1640_v29 = vor.u32 %v1638_v17, %v1637_v21  ;;  %v1505_v30 = vmax.f32 %v1484_v22, 0.0  ;;  %1848 = vrot.lane.b32.xlu0 %v1814_v31, %s6974_s8  ;;  %v1642_v42 = vrot.slane %v1637_v21, 4  ;;  %2084 = vmatpush.bf16.msra.mxu1 %v5682_v18 }
 0x29a   : > { %v1920_v35 = vsel %vm1896_vm5, %v1915_v58, %v1919_v32 }
 0x29b   : > { %v1641_v33 = vsel %vm7565_vm4, %v1633_v16, %v1640_v29  ;;  %v1530_v34 = vpack.c.bf16 %v1505_v30, %v1505_v30  ;;  %1944 = vrot.lane.b32.xlu2 %v1920_v35, %s6975_s23 }
 0x29c   : > { %1711 = vst.msk [vmem:[#allocation2 + $0x2c] sm:$0xf] %vm1694_vm0, %v1641_v33 }
 0x29d   : > { %v1644_v36 = vshrl.u32 %v1530_v34, 16  ;;  %v1647_v37 = vshll.u32 %v1530_v34, 16  ;;  %2085 = vmatpush.bf16.msra.mxu1 %v5681_v26 }
 0x29e   : > { %v1485_v38 = vpop.f32.mrf.mxu0 }
 0x29f   : > { %v1646_v40 = vrot.slane %v1644_v36, 7  ;;  %v1486_v41 = vadd.f32 %v7557_v25, %v1485_v38 }
 0x2a1   : > { %v1649_v43 = vor.u32 %v1647_v37, %v1646_v40  ;;  %v1506_v44 = vmax.f32 %v1486_v41, 0.0  ;;  %v1651_v52 = vrot.slane %v1646_v40, 4 }
 0x2a3   : > { %v1650_v46 = vsel %vm7565_vm4, %v1642_v42, %v1649_v43  ;;  %v1531_v47 = vpack.c.bf16 %v1506_v44, %v1506_v44  ;;  %v7663_v48 = vld [vmem:[#allocation2 + $0x28] sm:$0xff]  ;;  %v5679_v44 = vld [vmem:[#allocation9 + $0x10] sm:$0xff] }
 0x2a4   : > { %1712 = vst.msk [vmem:[#allocation2 + $0x30] sm:$0xf] %vm1694_vm0, %v1650_v46  ;;  %v1871_v50 = vrot.slane %v7663_v48, 1  ;;  %v1819_v51 = vshll.u32 %v7663_v48, 16  ;;  %v1823_v56 = vshrl.u32 %v7663_v48, 16 }
 0x2a5   : > { %v1653_v49 = vshrl.u32 %v1531_v47, 16  ;;  %v1656_v53 = vshll.u32 %v1531_v47, 16 }
 0x2a6   : > { %v1488_v54 = vpop.f32.mrf.mxu0  ;;  %v1872_v59 = vsel %vm1861_vm12, %v1869_v14, %v1871_v50  ;;  %v1821_v60 = vrot.slane %v1819_v51, 1  ;;  %v1921_v62 = vrot.slane %v1823_v56, 1  ;;  %v1922_v63 = vrot.slane %v1819_v51, 2 }
 0x2a7   : > { %v1655_v57 = vrot.slane %v1653_v49, 7  ;;  %v1489_v58 = vadd.f32 %v7557_v25, %v1488_v54  ;;  %1885 = vrot.lane.b32.xlu1 %v1872_v59, %s6976_s6  ;;  %v1734_v49 = vld [vmem:[#allocation2 + $0x40] sm:$0x1] }
 0x2a8   : > { %v1822_v5 = vsel %vm1778_vm1, %v1817_v55, %v1821_v60  ;;  %v1923_v6 = vor.u32 %v1922_v63, %v1921_v62  ;;  %v1825_v33 = vor.u32 %v1823_v56, %v1821_v60  ;;  %v1894_v51 = vunpack.c.l.b16 %v1734_v49 }
 0x2a9   : > { %v1658_v0 = vor.u32 %v1656_v53, %v1655_v57  ;;  %v1507_v3 = vmax.f32 %v1489_v58, 0.0  ;;  %1850 = vrot.lane.b32.xlu0 %v1822_v5, %s6974_s8  ;;  %v1660_v19 = vrot.slane %v1655_v57, 4 }
 0x2aa   : > { %v1924_v11 = vsel %vm1896_vm5, %v1919_v32, %v1923_v6  ;;  %v1895_v58 = vpack.c.b16 %v1894_v51, %v1894_v51 }
 0x2ab   : > { %v1659_v8 = vsel %vm7565_vm4, %v1651_v52, %v1658_v0  ;;  %v1532_v9 = vpack.c.bf16 %v1507_v3, %v1507_v3  ;;  %1946 = vrot.lane.b32.xlu2 %v1924_v11, %s6975_s23  ;;  %v5677_v52 = vld [vmem:[#allocation9] sm:$0xff]  ;;  %v2241_v11 = vshll.u32 %v7709_v10, 16 }
 0x2ac   : > { %1713 = vst.msk [vmem:[#allocation2 + $0x34] sm:$0xf] %vm1694_vm0, %v1659_v8  ;;  %v1934_v5 = vshll.u32 %v1895_v58, 16 }
 0x2ad   : > { %v1662_v13 = vshrl.u32 %v1532_v9, 16  ;;  %v1665_v14 = vshll.u32 %v1532_v9, 16 }
 0x2ae   : > { %v1490_v15 = vpop.f32.mrf.mxu0 }
 0x2af   : > { %v1664_v16 = vrot.slane %v1662_v13, 7  ;;  %v1491_v17 = vadd.f32 %v7557_v25, %v1490_v15  ;;  %v5680_v25 = vld [vmem:[#allocation9 + $0x18] sm:$0xff]  ;;  %v2239_v13 = vshrl.u32 %v7709_v10, 16 }
 0x2b0   : > { %2086 = vmatpush.bf16.msra.mxu1 %v5680_v25 }
 0x2b1   : > { %v1667_v20 = vor.u32 %v1665_v14, %v1664_v16  ;;  %v1508_v21 = vmax.f32 %v1491_v17, 0.0  ;;  %v1669_v31 = vrot.slane %v1664_v16, 4  ;;  %v2243_v14 = vrot.slane %v2241_v11, 1  ;;  %v2232_v17 = vld [vmem:[%s1338_s4 + $0x8] sm:$0x1] }
 0x2b2   : > { %v2250_v18 = vunpack.c.l.b16 %v2232_v17  ;;  %v5690_v17 = vld [vmem:[#allocation13 + $0x8] sm:$0xff] }
 0x2b3   : > { %v1668_v22 = vsel %vm7565_vm4, %v1660_v19, %v1667_v20  ;;  %v1533_v23 = vpack.c.bf16 %v1508_v21, %v1508_v21  ;;  %v7682_v24 = vld [vmem:[#allocation2 + $0x30] sm:$0xff]  ;;  %v2244_v15 = vor.u32 %v2243_v14, %v2239_v13  ;;  %v5892_v19 = vld [vmem:[%s1338_s4] sm:$0xf0]  ;;  %v5893_v20 = vld [vmem:[%s1338_s4] sm:$0xe] }
 0x2b4   : > { %1714 = vst.msk [vmem:[#allocation2 + $0x38] sm:$0xf] %vm1694_vm0, %v1668_v22  ;;  %v1873_v29 = vrot.slane %v7682_v24, 1  ;;  %v1827_v30 = vshll.u32 %v7682_v24, 16  ;;  %v1831_v34 = vshrl.u32 %v7682_v24, 16  ;;  %2087 = vmatpush.bf16.msra.mxu1 %v5679_v44  ;;  %v7718_v26 = vpack.c.b16 %v2250_v18, %v2250_v18 }
 0x2b5   : > { %v1671_v27 = vshrl.u32 %v1533_v23, 16  ;;  %v1674_v32 = vshll.u32 %v1533_v23, 16  ;;  %v7716_v23 = vor.u32 %v5893_v20, %v5892_v19  ;;  %v5689_v19 = vld [vmem:[#allocation13] sm:$0xff]  ;;  %v5704_v20 = vld [vmem:[#allocation13 + $0x78] sm:$0xff] }
 0x2b6   : > { %v1874_v36 = vsel %vm1861_vm12, %v1871_v50, %v1873_v29  ;;  %v1829_v37 = vrot.slane %v1827_v30, 1  ;;  %v1926_v38 = vrot.slane %v1827_v30, 2  ;;  %v1925_v40 = vrot.slane %v1831_v34, 1  ;;  %v5678_v50 = vld [vmem:[#allocation9 + $0x8] sm:$0xff] }
 0x2b7   : > { %v1673_v35 = vrot.slane %v1671_v27, 7  ;;  %1887 = vrot.lane.b32.xlu1 %v1874_v36, %s6976_s6  ;;  %v2257_v25 = vshrl.u32 %v7716_v23, 16 }
 0x2b8   : > { %v1830_v42 = vsel %vm1778_vm1, %v1825_v33, %v1829_v37  ;;  %v1927_v43 = vor.u32 %v1926_v38, %v1925_v40  ;;  %2088 = vmatpush.bf16.msra.mxu1 %v5678_v50  ;;  %v1833_v57 = vor.u32 %v1831_v34, %v1829_v37  ;;  %v2268_v33 = vshll.u32 %v7718_v26, 16 }
 0x2b9   : > { %v1676_v41 = vor.u32 %v1674_v32, %v1673_v35  ;;  %1852 = vrot.lane.b32.xlu0 %v1830_v42, %s6974_s8  ;;  %v2265_v32 = vshrl.u32 %v7718_v26, 16 }
 0x2ba   : > { %v1928_v47 = vsel %vm1896_vm5, %v1923_v6, %v1927_v43  ;;  %v1936_v6 = vrot.slane %v1934_v5, 2  ;;  %v2270_v36 = vrot.slane %v2268_v33, 2  ;;  %v5694_v5 = vld [vmem:[#allocation13 + $0x28] sm:$0xff]  ;;  %v5701_v33 = vld [vmem:[#allocation13 + $0x60] sm:$0xff] }
 0x2bb   : > { %v1677_v46 = vsel %vm7565_vm4, %v1669_v31, %v1676_v41  ;;  %1948 = vrot.lane.b32.xlu2 %v1928_v47, %s6975_s23  ;;  %v2260_v31 = vshll.u32 %v7716_v23, 16  ;;  %v2267_v35 = vrot.slane %v2265_v32, 1 }
 0x2bc   : > { %1715 = vst.msk [vmem:[#allocation2 + $0x3c] sm:$0xf] %vm1694_vm0, %v1677_v46  ;;  %2089 = vmatpush.bf16.msra.mxu1 %v5677_v52  ;;  %vm1989_vm0 = vcmask 785408  }
 0x2bd   : > { %v2262_v34 = vrot.slane %v2260_v31, 2  ;;  %v2271_v40 = vor.u32 %v2270_v36, %v2267_v35  ;;  %v5702_v31 = vld [vmem:[#allocation13 + $0x68] sm:$0xff]  ;;  %v5700_v35 = vld [vmem:[#allocation13 + $0x58] sm:$0xff] }
 0x2c3   : > { %v5888_v53 = vld [vmem:[#allocation2 + $0x38] sm:$0xff]  }
 0x2c4   : > { %v1875_v54 = vrot.slane %v5888_v53, 1  ;;  %v1835_v55 = vshll.u32 %v5888_v53, 16  ;;  %v1839_v56 = vshrl.u32 %v5888_v53, 16  ;;  %v5902_v32 = vld [vmem:[#allocation2 + $0x38] sm:$0x70] }
 0x2c6   : > { %v1876_v59 = vsel %vm1861_vm12, %v1873_v29, %v1875_v54  ;;  %v1837_v60 = vrot.slane %v1835_v55, 1  ;;  %v1929_v61 = vrot.slane %v1839_v56, 1  ;;  %v1930_v62 = vrot.slane %v1835_v55, 2 }
 0x2c7   : > { %1889 = vrot.lane.b32.xlu1 %v1876_v59, %s6976_s6 }
 0x2c8   : > { %v1838_v63 = vsel %vm1778_vm1, %v1833_v57, %v1837_v60  ;;  %v1931_v0 = vor.u32 %v1930_v62, %v1929_v61  ;;  %v1841_v8 = vor.u32 %v1839_v56, %v1837_v60  ;;  %vm3243_vm1 = vcmask 1047556  }
 0x2c9   : > { %1854 = vrot.lane.b32.xlu0 %v1838_v63, %s6974_s8  ;;  %v5696_v63 = vld [vmem:[#allocation13 + $0x38] sm:$0xff] }
 0x2ca   : > { %v1932_v3 = vsel %vm1896_vm5, %v1927_v43, %v1931_v0  ;;  %v1937_v9 = vsel %vm1896_vm5, %v1931_v0, %v1936_v6  ;;  %2414 = vmatpush.bf16.msra.mxu3 %v5696_v63 }
 0x2cb   : > { %1950 = vrot.lane.b32.xlu2 %v1932_v3, %s6975_s23 }
 0x2cf   : > { %1891 = vrot.lane.b32.xlu1 %v1875_v54, %s6976_s6 }
 0x2d1   : > { %1856 = vrot.lane.b32.xlu0 %v1841_v8, %s6974_s8  ;;  %v1880_v38 = vpop.permute.xlu2 %1879  ;;  %v5693_v8 = vld [vmem:[#allocation13 + $0x20] sm:$0xff] }
 0x2d3   : > { %1952 = vrot.lane.b32.xlu2 %v1937_v9, %s6975_s23 }
 0x2d9   : > { %2245 = vrot.lane.b32.xlu0 %v2244_v15, %s6976_s6  ;;  %v1941_v46 = vpop.permute.xlu2 %1940 }
 0x2db   : > { %v1843_v16 = vpop.permute.xlu0 %1842 }
 0x2dc   : > { %v1956_v21 = vsel %vm1954_vm14, %v7577_v7, %v1843_v16  ;;  %v2259_v7 = vrot.slane %v2257_v25, 1  ;;  %v5691_v16 = vld [vmem:[#allocation13 + $0x10] sm:$0xff] }
 0x2dd   : > { %v1939_v27 = vpop.permute.xlu1 %1938 }
 0x2de   : > { %v2263_v37 = vor.u32 %v2262_v34, %v2259_v7  ;;  %v5900_v7 = vld [vmem:[#allocation2 + $0x38] sm:$0xf]  }
 0x2df   : > { %v5901_v34 = vor.u32 %v5902_v32, %v5900_v7 }
 0x2e0   : > { %v2272_v42 = vsel %vm1896_vm5, %v2263_v37, %v2271_v40  ;;  %vm3244_vm5 = vmand %vm3243_vm1, %vm3226_vm10 }
 0x2e1   : > { %2273 = vrot.lane.b32.xlu1 %v2272_v42, %s6976_s6 }
 0x2e3   : > { %v1878_v22 = vpop.permute.xlu0 %1877 }
 0x2e4   : > { %v1974_v29 = vsel %vm1972_vm15, %v1956_v21, %v1878_v22 }
 0x2e5   : > { %v1991_v30 = vsel %vm1989_vm0, %v1974_v29, %v1939_v27  ;;  %v1943_v53 = vpop.permute.xlu2 %1942  ;;  %v5703_v27 = vld [vmem:[#allocation13 + $0x70] sm:$0xff] }
 0x2e6   : > { %2090 = vmatmul.bf16.vlgmr.msra.gmra.mxu1 %v1991_v30 }
 0x2eb   : > { %v1845_v41 = vpop.permute.xlu1 %1844 }
 0x2ec   : > { %v1958_v43 = vsel %vm1954_vm14, %v7586_v28, %v1845_v41  ;;  %v5699_v41 = vld [vmem:[#allocation13 + $0x50] sm:$0xff] }
 0x2ed   : > { %v1976_v44 = vsel %vm1972_vm15, %v1958_v43, %v1880_v38 }
 0x2ee   : > { %v1994_v47 = vsel %vm1989_vm0, %v1976_v44, %v1941_v46  ;;  %v5698_v44 = vld [vmem:[#allocation13 + $0x48] sm:$0xff]  ;;  %v5697_v46 = vld [vmem:[#allocation13 + $0x40] sm:$0xff] }
 0x2f5   : > { %v1945_v58 = vpop.permute.xlu2 %1944 }
 0x2f6   : > { %2095 = vmatmul.bf16.gmra.mxu1 %v1994_v47  ;;  %v2253_v47 = vrot.slane %v7716_v23, 1 }
 0x2f9   : > { %v1882_v51 = vpop.permute.xlu1 %1881 }
 0x2fb   : > { %v1847_v49 = vpop.permute.xlu0 %1846 }
 0x2fc   : > { %v1960_v50 = vsel %vm1954_vm14, %v7606_v4, %v1847_v49  ;;  %v2254_v49 = vrot.slane %v7718_v26, 1  ;;  %v7771_v26 = vld [vmem:[#allocation10] ss:$0 sm:$0xff] }
 0x2fd   : > { %v1978_v52 = vsel %vm1972_vm15, %v1960_v50, %v1882_v51 }
 0x2fe   : > { %v1997_v54 = vsel %vm1989_vm0, %v1978_v52, %v1943_v53 }
 0x305   : > { %v1947_v0 = vpop.permute.xlu2 %1946 }
 0x306   : > { %2100 = vmatmul.bf16.gmra.mxu1 %v1997_v54 }
 0x309   : > { %v1884_v56 = vpop.permute.xlu1 %1883 }
 0x30b   : > { %v1849_v55 = vpop.permute.xlu0 %1848 }
 0x30c   : > { %v1962_v28 = vsel %vm1954_vm14, %v7625_v39, %v1849_v55  ;;  %v5695_v39 = vld [vmem:[#allocation13 + $0x30] sm:$0xff] }
 0x30d   : > { %v1980_v57 = vsel %vm1972_vm15, %v1962_v28, %v1884_v56  ;;  %2415 = vmatpush.bf16.msra.mxu3 %v5695_v39 }
 0x30e   : > { %v2000_v59 = vsel %vm1989_vm0, %v1980_v57, %v1945_v58 }
 0x311   : > { %2416 = vmatpush.bf16.msra.mxu3 %v5694_v5 }
 0x315   : > { %2417 = vmatpush.bf16.msra.mxu3 %v5693_v8  ;;  %v1949_v14 = vpop.permute.xlu2 %1948 }
 0x316   : > { %2105 = vmatmul.bf16.gmra.mxu1 %v2000_v59 }
 0x319   : > { %v1886_v61 = vpop.permute.xlu1 %1885 }
 0x31b   : > { %v1851_v60 = vpop.permute.xlu0 %1850 }
 0x31c   : > { %v1964_v4 = vsel %vm1954_vm14, %v7644_v12, %v1851_v60  ;;  %v5692_v12 = vld [vmem:[#allocation13 + $0x18] sm:$0xff] }
 0x31d   : > { %v1982_v62 = vsel %vm1972_vm15, %v1964_v4, %v1886_v61  ;;  %2418 = vmatpush.bf16.msra.mxu3 %v5692_v12 }
 0x31e   : > { %v2003_v3 = vsel %vm1989_vm0, %v1982_v62, %v1947_v0 }
 0x321   : > { %2419 = vmatpush.bf16.msra.mxu3 %v5691_v16 }
 0x325   : > { %2420 = vmatpush.bf16.msra.mxu3 %v5690_v17  ;;  %v1951_v29 = vpop.permute.xlu2 %1950 }
 0x326   : > { %2110 = vmatmul.bf16.gmra.mxu1 %v2003_v3 }
 0x329   : > { %v1888_v11 = vpop.permute.xlu1 %1887  ;;  %2421 = vmatpush.bf16.msra.mxu3 %v5689_v19 }
 0x32b   : > { %v1853_v6 = vpop.permute.xlu0 %1852 }
 0x32c   : > { %v1966_v9 = vsel %vm1954_vm14, %v7663_v48, %v1853_v6 }
 0x32d   : > { %v1984_v13 = vsel %vm1972_vm15, %v1966_v9, %v1888_v11  ;;  %2428 = vmatpush.bf16.msrb.mxu3 %v5704_v20  ;;  %v1953_v42 = vpop.permute.xlu2 %1952 }
 0x32e   : > { %v2006_v15 = vsel %vm1989_vm0, %v1984_v13, %v1949_v14 }
 0x331   : > { %2429 = vmatpush.bf16.msrb.mxu3 %v5703_v27  ;;  %v5720_v27 = vld [vmem:[#allocation16 + $0x78] sm:$0xff] }
 0x335   : > { %2430 = vmatpush.bf16.msrb.mxu3 %v5702_v31  ;;  %v5719_v31 = vld [vmem:[#allocation16 + $0x70] sm:$0xff] }
 0x336   : > { %2115 = vmatmul.bf16.gmra.mxu1 %v2006_v15  ;;  %v6151_v15 = vld [vmem:[#allocation15] ss:$0 sm:$0xff] }
 0x339   : > { %v1890_v21 = vpop.permute.xlu1 %1889  ;;  %2431 = vmatpush.bf16.msrb.mxu3 %v5701_v33 }
 0x33b   : > { %v1855_v18 = vpop.permute.xlu0 %1854 }
 0x33c   : > { %v1968_v48 = vsel %vm1954_vm14, %v7682_v24, %v1855_v18 }
 0x33d   : > { %v1986_v22 = vsel %vm1972_vm15, %v1968_v48, %v1890_v21  ;;  %2432 = vmatpush.bf16.msrb.mxu3 %v5700_v35 }
 0x33e   : > { %v2009_v30 = vsel %vm1989_vm0, %v1986_v22, %v1951_v29 }
 0x341   : > { %v1892_v38 = vpop.permute.xlu1 %1891  ;;  %2433 = vmatpush.bf16.msrb.mxu3 %v5699_v41 }
 0x343   : > { %v1857_v25 = vpop.permute.xlu0 %1856 }
 0x344   : > { %v1971_v36 = vsel %vm1954_vm14, %v5901_v34, %v1857_v25 }
 0x345   : > { %v1988_v40 = vsel %vm1972_vm15, %v1971_v36, %v1892_v38  ;;  %2434 = vmatpush.bf16.msrb.mxu3 %v5698_v44 }
 0x346   : > { %2120 = vmatmul.bf16.gmra.mxu1 %v2009_v30  ;;  %v2012_v43 = vsel %vm1989_vm0, %v1988_v40, %v1953_v42 }
 0x349   : > { %2435 = vmatpush.bf16.msrb.mxu3 %v5697_v46 }
 0x34b   : > { %v2246_v24 = vpop.permute.xlu0 %2245 }
 0x34c   : > { %v2276_v37 = vsel %vm1972_vm15, %v7709_v10, %v2246_v24  ;;  %v2255_v10 = vsel %vm1861_vm12, %v2253_v47, %v2254_v49 }
 0x34d   : > { %2422 = vmatmul.bf16.vlgmr.msra.gmra.mxu3 %v2276_v37  ;;  %v5718_v37 = vld [vmem:[#allocation16 + $0x68] sm:$0xff] }
 0x34e   : > { %2716 = vmatpush.bf16.msra.mxu3 %v5720_v27  ;;  %v5710_v27 = vld [vmem:[#allocation16 + $0x28] sm:$0xff] }
 0x352   : > { %2717 = vmatpush.bf16.msra.mxu3 %v5719_v31  ;;  %v5708_v31 = vld [vmem:[#allocation16 + $0x18] sm:$0xff] }
 0x353   : > { %v2274_v50 = vpop.permute.xlu1 %2273 }
 0x354   : > { %v2280_v51 = vsel %vm1972_vm15, %v2255_v10, %v2274_v50 }
 0x356   : > { %2125 = vmatmul.bf16.gmra.mxu1 %v2012_v43  ;;  %2718 = vmatpush.bf16.msra.mxu3 %v5718_v37  ;;  %v5726_v37 = vld [vmem:[#allocation16 + $0xa8] sm:$0xff] }
 0x35d   : > { %2436 = vmatmul.bf16.vlgmr.msrb.gmra.mxu3 %v2280_v51 }
 0x363   : > { %v7761_v52 = vpop.f32.mrf.mxu1 }
 0x36b   : > { %v7763_v53 = vpop.f32.mrf.mxu1 }
 0x373   : > { %v7765_v54 = vpop.f32.mrf.mxu1 }
 0x37b   : > { %v7767_v55 = vpop.f32.mrf.mxu1 }
 0x383   : > { %v7769_v28 = vpop.f32.mrf.mxu1 }
 0x38b   : > { %v2103_v23 = vpop.f32.mrf.mxu1 }
 0x38c   : > { %v2104_v49 = vadd.f32 %v7771_v26, %v2103_v23 }
 0x38e   : > { %v2136_v23 = vmax.f32 %v2104_v49, 0.0 }
 0x393   : > { %v2106_v56 = vpop.f32.mrf.mxu1 }
 0x394   : > { %v2107_v57 = vadd.f32 %v7771_v26, %v2106_v56 }
 0x396   : > { %v2137_v60 = vmax.f32 %v2107_v57, 0.0  ;;  %v2474_v57 = vld [vmem:[#allocation3] sm:$0xf] }
 0x39b   : > { %v2108_v58 = vpop.f32.mrf.mxu1 }
 0x39c   : > { %v2109_v59 = vadd.f32 %v7771_v26, %v2108_v58  ;;  %v2102_v58 = vadd.f32 %v7771_v26, %v7769_v28 }
 0x39e   : > { %v2138_v4 = vmax.f32 %v2109_v59, 0.0 }
 0x3a0   : > { %v7775_v61 = vpack.c.bf16 %v2138_v4, %v2137_v60  ;;  %v2099_v4 = vadd.f32 %v7771_v26, %v7767_v55  ;;  %v5716_v55 = vld [vmem:[#allocation16 + $0x58] sm:$0xff] }
 0x3a3   : > { %v2111_v62 = vpop.f32.mrf.mxu1 }
 0x3a4   : > { %v2112_v24 = vadd.f32 %v7771_v26, %v2111_v62 }
 0x3a6   : > { %v2139_v43 = vmax.f32 %v2112_v24, 0.0  ;;  %v5728_v24 = vld [vmem:[#allocation16 + $0xb8] sm:$0xff] }
 0x3ab   : > { %v2113_v63 = vpop.f32.mrf.mxu1 }
 0x3ac   : > { %v2114_v32 = vadd.f32 %v7771_v26, %v2113_v63 }
 0x3ae   : > { %v2140_v38 = vmax.f32 %v2114_v32, 0.0  ;;  %v5686_v32 = vld [vmem:[#allocation12 + $0x8] sm:$0xff] }
 0x3b0   : > { %v2159_v10 = vpack.c.bf16 %v2140_v38, %v2139_v43  ;;  %v5725_v38 = vld [vmem:[#allocation16 + $0xa0] sm:$0xff]  ;;  %v5722_v43 = vld [vmem:[#allocation16 + $0x88] sm:$0xff] }
 0x3b3   : > { %v2116_v0 = vpop.f32.mrf.mxu1 }
 0x3b4   : > { %v2117_v29 = vadd.f32 %v7771_v26, %v2116_v0  ;;  %v5717_v0 = vld [vmem:[#allocation16 + $0x60] sm:$0xff] }
 0x3b5   : > { %2719 = vmatpush.bf16.msra.mxu3 %v5717_v0  ;;  %v5215_v0 = vld [vmem:[#allocation21 + $0xf0] sm:$0xf] }
 0x3b6   : > { %v2141_v35 = vmax.f32 %v2117_v29, 0.0 }
 0x3b9   : > { %2720 = vmatpush.bf16.msra.mxu3 %v5716_v55 }
 0x3bb   : > { %v2118_v3 = vpop.f32.mrf.mxu1 }
 0x3bc   : > { %v2119_v20 = vadd.f32 %v7771_v26, %v2118_v3  ;;  %v2097_v3 = vadd.f32 %v7771_v26, %v7765_v54 }
 0x3be   : > { %v2142_v33 = vmax.f32 %v2119_v20, 0.0 }
 0x3c0   : > { %v2160_v40 = vpack.c.bf16 %v2142_v33, %v2141_v35  ;;  %v5707_v33 = vld [vmem:[#allocation16 + $0x10] sm:$0xff] }
 0x3c1   : > { %v5727_v35 = vld [vmem:[#allocation16 + $0xb0] sm:$0xff] }
 0x3c3   : > { %v2121_v39 = vpop.f32.mrf.mxu1 }
 0x3c4   : > { %v2122_v18 = vadd.f32 %v7771_v26, %v2121_v39  ;;  %v2135_v39 = vmax.f32 %v2102_v58, 0.0 }
 0x3c6   : > { %v2143_v30 = vmax.f32 %v2122_v18, 0.0  ;;  %v5712_v18 = vld [vmem:[#allocation16 + $0x38] sm:$0xff] }
 0x3cb   : > { %v2123_v5 = vpop.f32.mrf.mxu1 }
 0x3cc   : > { %v2124_v14 = vadd.f32 %v7771_v26, %v2123_v5 }
 0x3ce   : > { %v2144_v48 = vmax.f32 %v2124_v14, 0.0  ;;  %v2133_v14 = vmax.f32 %v2097_v3, 0.0  ;;  %v5764_v3 = vld [vmem:[#allocation21 + $0xf4] sm:$0xf0] }
 0x3d0   : > { %v2423_v8 = vpop.f32.mrf.mxu3  ;;  %v2161_v7 = vpack.c.bf16 %v2144_v48, %v2143_v30  ;;  %v5685_v48 = vld [vmem:[#allocation12] sm:$0xff] }
 0x3d1   : > { %v2424_v21 = vadd.f32 %v6151_v15, %v2423_v8  ;;  %v2134_v8 = vmax.f32 %v2099_v4, 0.0  ;;  %v5151_v4 = vld [vmem:[#allocation21 + $0x70] sm:$0xf] }
 0x3d3   : > { %v2126_v6 = vpop.f32.mrf.mxu1 }
 0x3d4   : > { %v2127_v9 = vadd.f32 %v7771_v26, %v2126_v6  ;;  %v2094_v6 = vadd.f32 %v7771_v26, %v7763_v53 }
 0x3d6   : > { %v2145_v16 = vmax.f32 %v2127_v9, 0.0  ;;  %v2157_v9 = vpack.c.bf16 %v2136_v23, %v2135_v39  ;;  %v5748_v23 = vld [vmem:[#allocation21 + $0x74] sm:$0xf0]  ;;  %v5216_v39 = vor.u32 %v5764_v3, %v5215_v0 }
 0x3d8   : > { %v2425_v11 = vpop.f32.mrf.mxu3  ;;  %3151 = vmatpush.bf16.msrb.mxu1 %v5216_v39 }
 0x3d9   : > { %v2426_v41 = vadd.f32 %v6151_v15, %v2425_v11  ;;  %v5715_v15 = vld [vmem:[#allocation16 + $0x50] sm:$0xff] }
 0x3da   : > { %2721 = vmatpush.bf16.msra.mxu3 %v5715_v15 }
 0x3db   : > { %v2128_v12 = vpop.f32.mrf.mxu1 }
 0x3dc   : > { %v2129_v13 = vadd.f32 %v7771_v26, %v2128_v12 }
 0x3de   : > { %v2146_v17 = vmax.f32 %v2129_v13, 0.0  ;;  %v2092_v13 = vadd.f32 %v7771_v26, %v7761_v52  ;;  %v5711_v52 = vld [vmem:[#allocation16 + $0x30] sm:$0xff] }
 0x3e0   : > { %v2162_v19 = vpack.c.bf16 %v2146_v17, %v2145_v16  ;;  %v2437_v25 = vpop.f32.mrf.mxu3  ;;  %v2156_v16 = vpack.c.bf16 %v2134_v8, %v2133_v14  ;;  %v2131_v53 = vmax.f32 %v2092_v13, 0.0  ;;  %v5135_v14 = vld [vmem:[#allocation21 + $0x50] sm:$0xf] }
 0x3e1   : > { %v2438_v34 = vadd.f32 %v2437_v25, %v2424_v21  ;;  %v5713_v21 = vld [vmem:[#allocation16 + $0x40] sm:$0xff] }
 0x3e2   : > { %v2198_v22 = vsel %vm1861_vm12, %v2162_v19, 0  ;;  %v5714_v19 = vld [vmem:[#allocation16 + $0x48] sm:$0xff]  ;;  %v5709_v25 = vld [vmem:[#allocation16 + $0x20] sm:$0xff] }
 0x3e3   : > { %2200 = vmatpush.bf16.msra.mxu2 %v2198_v22  ;;  %v2442_v36 = vmax.f32 %v2438_v34, 0.0  ;;  %2722 = vmatpush.bf16.msra.mxu3 %v5714_v19  ;;  %v5705_v34 = vld [vmem:[#allocation16] sm:$0xff] }
 0x3e4   : > { %v5127_v19 = vld [vmem:[#allocation21 + $0x40] sm:$0xf] }
 0x3e5   : > { %v2452_v42 = vpack.c.bf16 %v2442_v36, %v2442_v36  ;;  %v5687_v36 = vld [vmem:[#allocation12 + $0x10] sm:$0xff] }
 0x3e7   : > { %2201 = vmatpush.bf16.msra.mxu2 %v2161_v7  ;;  %v2455_v44 = vshrl.u32 %v2452_v42, 16  ;;  %v2458_v46 = vshll.u32 %v2452_v42, 16  ;;  %2723 = vmatpush.bf16.msra.mxu3 %v5713_v21  ;;  %v5706_v7 = vld [vmem:[#allocation16 + $0x8] sm:$0xff]  ;;  %v5688_v42 = vld [vmem:[#allocation12 + $0x18] sm:$0xff] }
 0x3e8   : > { %v2439_v47 = vpop.f32.mrf.mxu3  ;;  %v5758_v21 = vld [vmem:[#allocation21 + $0xc4] sm:$0xf0] }
 0x3e9   : > { %v2457_v50 = vrot.slane %v2455_v44, 7  ;;  %v2440_v51 = vadd.f32 %v2439_v47, %v2426_v41  ;;  %v5723_v41 = vld [vmem:[#allocation16 + $0x90] sm:$0xff]  ;;  %v5721_v44 = vld [vmem:[#allocation16 + $0x80] sm:$0xff] }
 0x3eb   : > { %2202 = vmatpush.bf16.msra.mxu2 %v2160_v40  ;;  %v2460_v59 = vor.u32 %v2458_v46, %v2457_v50  ;;  %v2443_v60 = vmax.f32 %v2440_v51, 0.0  ;;  %v2461_v12 = vrot.slane %v2457_v50, 4  ;;  %v5724_v40 = vld [vmem:[#allocation16 + $0x98] sm:$0xff]  ;;  %v2481_v46 = vld [vmem:[#allocation3 + $0x8] sm:$0x1] }
 0x3ec   : > { %v2499_v47 = vunpack.c.l.b16 %v2481_v46  ;;  %v5754_v46 = vld [vmem:[#allocation21 + $0xa4] sm:$0xf0] }
 0x3ed   : > { %v2475_v62 = vsel %vm7789_vm2, %v2460_v59, %v2474_v57  ;;  %v2453_v63 = vpack.c.bf16 %v2443_v60, %v2443_v60 }
 0x3ee   : > { %2476 = vst [vmem:[#allocation3] sm:$0xf] %v2475_v62  ;;  %v2501_v51 = vpack.c.b16 %v2499_v47, %v2499_v47  ;;  %v5152_v62 = vor.u32 %v5748_v23, %v5151_v4  ;;  %v5778_v4 = vld [vmem:[#allocation21 + $0x164] sm:$0xf0]  ;;  %v5103_v23 = vld [vmem:[#allocation21 + $0x10] sm:$0xf] }
 0x3ef   : > { %2203 = vmatpush.bf16.msra.mxu2 %v2159_v10  ;;  %v2463_v28 = vshrl.u32 %v2453_v63, 16  ;;  %v2466_v5 = vshll.u32 %v2453_v63, 16 }
 0x3f0   : > { %v2503_v58 = vrot.slane %v2501_v51, 1  ;;  %3138 = vmatpush.bf16.msrb.mxu0 %v5152_v62  ;;  %v5736_v62 = vld [vmem:[#allocation21 + $0x14] sm:$0xf0] }
 0x3f1   : > { %v2465_v11 = vrot.slane %v2463_v28, 7  ;;  %v5104_v39 = vor.u32 %v5736_v62, %v5103_v23  ;;  %v5777_v23 = vld [vmem:[#allocation21 + $0x164] sm:$0xf]  ;;  %v5273_v62 = vld [vmem:[#allocation21 + $0x168] sm:$0xf0] }
 0x3f3   : > { %2204 = vmatpush.bf16.msra.mxu2 %v7775_v61  ;;  %v2468_v54 = vor.u32 %v2466_v5, %v2465_v11  ;;  %v2132_v61 = vmax.f32 %v2094_v6, 0.0  ;;  %v5143_v5 = vld [vmem:[#allocation21 + $0x60] sm:$0xf]  ;;  %v5746_v6 = vld [vmem:[#allocation21 + $0x64] sm:$0xf0] }
 0x3f4   : > { %v5144_v55 = vor.u32 %v5746_v6, %v5143_v5  ;;  %v5263_v5 = vld [vmem:[#allocation21 + $0x150] sm:$0xf]  ;;  %v5776_v6 = vld [vmem:[#allocation21 + $0x154] sm:$0xf0] }
 0x3f5   : > { %v2469_v17 = vsel %vm7565_vm4, %v2461_v12, %v2468_v54  ;;  %v2155_v20 = vpack.c.bf16 %v2132_v61, %v2131_v53  ;;  %v5896_v10 = vld [vmem:[#allocation3] sm:$0xe]  ;;  %v5762_v12 = vld [vmem:[#allocation21 + $0xe4] sm:$0xf0]  ;;  %vm2775_vm4 = vcmask 121856  }
 0x3f6   : > { %2477 = vst [vmem:[#allocation3 + $0x4] sm:$0xf] %v2469_v17  ;;  %3139 = vmatpush.bf16.msrb.mxu0 %v5144_v55  ;;  %v5744_v54 = vld [vmem:[#allocation21 + $0x54] sm:$0xf0]  ;;  %v5095_v55 = vld [vmem:[#allocation21] sm:$0xf] }
 0x3f7   : > { %2205 = vmatpush.bf16.msra.mxu2 %v2157_v9  ;;  %v5207_v9 = vld [vmem:[#allocation21 + $0xe0] sm:$0xf]  ;;  %v5136_v15 = vor.u32 %v5744_v54, %v5135_v14  ;;  %v5760_v17 = vld [vmem:[#allocation21 + $0xd4] sm:$0xf0] }
 0x3f8   : > { %v5208_v11 = vor.u32 %v5762_v12, %v5207_v9  ;;  %v5734_v12 = vld [vmem:[#allocation21 + $0x4] sm:$0xf0]  ;;  %v5752_v14 = vld [vmem:[#allocation21 + $0x94] sm:$0xf0] }
 0x3fa   : > { %3152 = vmatpush.bf16.msrb.mxu1 %v5208_v11  ;;  %3140 = vmatpush.bf16.msrb.mxu0 %v5136_v15  ;;  %v5167_v11 = vld [vmem:[#allocation21 + $0x90] sm:$0xf]  ;;  %v5747_v15 = vld [vmem:[#allocation21 + $0x74] sm:$0xf] }
 0x3fb   : > { %2206 = vmatpush.bf16.msra.mxu2 %v2156_v16  ;;  %v5199_v16 = vld [vmem:[#allocation21 + $0xd0] sm:$0xf]  ;;  %v5168_v54 = vor.u32 %v5752_v14, %v5167_v11  ;;  %v5768_v14 = vld [vmem:[#allocation21 + $0x114] sm:$0xf0] }
 0x3fc   : > { %v5200_v53 = vor.u32 %v5760_v17, %v5199_v16  ;;  %v5153_v16 = vld [vmem:[#allocation21 + $0x78] sm:$0xf0]  ;;  %v5231_v11 = vld [vmem:[#allocation21 + $0x110] sm:$0xf] }
 0x3fd   : > { %v5885_v26 = vld [vmem:[#allocation3] sm:$0xff]  }
 0x3fe   : > { %v2489_v22 = vshrl.u32 %v5885_v26, 16  ;;  %v2491_v45 = vshll.u32 %v5885_v26, 16  ;;  %v5895_v49 = vld [vmem:[#allocation3] sm:$0xf0]  ;;  %3153 = vmatpush.bf16.msrb.mxu1 %v5200_v53 }
 0x3ff   : > { %2207 = vmatpush.bf16.msra.mxu2 %v2155_v20  ;;  %v5897_v50 = vor.u32 %v5896_v10, %v5895_v49  ;;  %v5742_v20 = vld [vmem:[#allocation21 + $0x44] sm:$0xf0]  ;;  %v6977_v49 = vmov 65535  }
 0x400   : > { %v2493_v29 = vrot.slane %v2491_v45, 1  ;;  %v2789_v10 = vsel %vm1861_vm12, 4294967295, %v6977_v49 }
 0x401   : > { %v2502_v57 = vrot.slane %v5897_v50, 1 }
 0x402   : > { %4909 = vmatmul.msk.bf16.vlgmr.msra.gmra.mxu2 %vm2183_vm8, %v5685_v48  ;;  %v2494_v30 = vor.u32 %v2493_v29, %v2489_v22  ;;  %v5128_v48 = vor.u32 %v5742_v20, %v5127_v19  ;;  %v5740_v29 = vld [vmem:[#allocation21 + $0x34] sm:$0xf0]  ;;  %v5763_v19 = vld [vmem:[#allocation21 + $0xf4] sm:$0xf]  ;;  %v5217_v20 = vld [vmem:[#allocation21 + $0xf8] sm:$0xf0] }
 0x403   : > { %2702 = vmatpush.bf16.msrb.mxu2 %v5712_v18  ;;  %v2504_v59 = vsel %vm1861_vm12, %v2502_v57, %v2503_v58  ;;  %v5271_v57 = vld [vmem:[#allocation21 + $0x160] sm:$0xf]  ;;  %vm3245_vm12 = vmor %vm3244_vm5, %vm7789_vm2 }
 0x404   : > { %2724 = vmatmul.bf16.vlgmr.msra.gmra.mxu3 %v2494_v30  ;;  %3141 = vmatpush.bf16.msrb.mxu0 %v5128_v48  ;;  %v5183_v30 = vld [vmem:[#allocation21 + $0xb0] sm:$0xf]  ;;  %v5272_v3 = vor.u32 %v5778_v4, %v5271_v57  ;;  %v5096_v48 = vor.u32 %v5734_v12, %v5095_v55  ;;  %v5757_v57 = vld [vmem:[#allocation21 + $0xc4] sm:$0xf]  ;;  %v5193_v4 = vld [vmem:[#allocation21 + $0xc8] sm:$0xf0] }
 0x405   : > { %v5129_v55 = vld [vmem:[#allocation21 + $0x48] sm:$0xf0]  ;;  %v5265_v12 = vld [vmem:[#allocation21 + $0x158] sm:$0xf0] }
 0x407   : > { %2703 = vmatpush.bf16.msrb.mxu2 %v5711_v52 }
 0x40b   : > { %2704 = vmatpush.bf16.msrb.mxu2 %v5710_v27  ;;  %v5119_v27 = vld [vmem:[#allocation21 + $0x30] sm:$0xf] }
 0x40f   : > { %2705 = vmatpush.bf16.msrb.mxu2 %v5709_v25  ;;  %v5120_v25 = vor.u32 %v5740_v29, %v5119_v27  ;;  %v5255_v27 = vld [vmem:[#allocation21 + $0x140] sm:$0xf]  ;;  %v5774_v29 = vld [vmem:[#allocation21 + $0x144] sm:$0xf0] }
 0x411   : > { %3142 = vmatpush.bf16.msrb.mxu0 %v5120_v25 }
 0x412   : > { %4910 = vmatmul.msk.bf16.gmra.mxu2 %vm2183_vm8, %v5686_v32 }
 0x413   : > { %2706 = vmatpush.bf16.msrb.mxu2 %v5708_v31  ;;  %v5756_v31 = vld [vmem:[#allocation21 + $0xb4] sm:$0xf0] }
 0x414   : > { %v5184_v32 = vor.u32 %v5756_v31, %v5183_v30  ;;  %v5220_v30 = vor.u32 %v5763_v19, %v5217_v20  ;;  %v5761_v31 = vld [vmem:[#allocation21 + $0xe4] sm:$0xf]  ;;  %v5739_v19 = vld [vmem:[#allocation21 + $0x34] sm:$0xf] }
 0x417   : > { %2707 = vmatpush.bf16.msrb.mxu2 %v5707_v33 }
 0x41b   : > { %2708 = vmatpush.bf16.msrb.mxu2 %v5706_v7 }
 0x41f   : > { %2709 = vmatpush.bf16.msrb.mxu2 %v5705_v34  ;;  %v6152_v34 = vld [vmem:[#allocation18] ss:$0 sm:$0xff] }
 0x422   : > { %4911 = vmatmul.msk.bf16.gmra.mxu2 %vm2183_vm8, %v5687_v36 }
 0x423   : > { %2730 = vmatpush.bf16.msra.mxu2 %v5728_v24 }
 0x427   : > { %2731 = vmatpush.bf16.msra.mxu2 %v5727_v35 }
 0x42b   : > { %2732 = vmatpush.bf16.msra.mxu2 %v5726_v37  ;;  %v5111_v37 = vld [vmem:[#allocation21 + $0x20] sm:$0xf] }
 0x42f   : > { %2733 = vmatpush.bf16.msra.mxu2 %v5725_v38  ;;  %v5738_v38 = vld [vmem:[#allocation21 + $0x24] sm:$0xf0] }
 0x432   : > { %4912 = vmatmul.msk.bf16.gmra.mxu2 %vm2183_vm8, %v5688_v42  ;;  %v5112_v42 = vor.u32 %v5738_v38, %v5111_v37  ;;  %v5750_v37 = vld [vmem:[#allocation21 + $0x84] sm:$0xf0] }
 0x433   : > { %2734 = vmatpush.bf16.msra.mxu2 %v5724_v40  ;;  %v5279_v40 = vld [vmem:[#allocation21 + $0x170] sm:$0xf] }
 0x434   : > { %3143 = vmatpush.bf16.msrb.mxu0 %v5112_v42  ;;  %v5779_v42 = vld [vmem:[#allocation21 + $0x174] sm:$0xf] }
 0x437   : > { %2735 = vmatpush.bf16.msra.mxu2 %v5723_v41 }
 0x438   : > { %3144 = vmatpush.bf16.msrb.mxu0 %v5104_v39  ;;  %v5770_v39 = vld [vmem:[#allocation21 + $0x124] sm:$0xf0] }
 0x43b   : > { %2736 = vmatpush.bf16.msra.mxu2 %v5722_v43  ;;  %v5780_v43 = vld [vmem:[#allocation21 + $0x174] sm:$0xf0] }
 0x43c   : > { %v5280_v50 = vor.u32 %v5780_v43, %v5279_v40  ;;  %3145 = vmatpush.bf16.msrb.mxu0 %v5096_v48  ;;  %v5745_v40 = vld [vmem:[#allocation21 + $0x64] sm:$0xf] }
 0x43f   : > { %2737 = vmatpush.bf16.msra.mxu2 %v5721_v44  ;;  %v5175_v44 = vld [vmem:[#allocation21 + $0xa0] sm:$0xf] }
 0x440   : > { %v5176_v51 = vor.u32 %v5754_v46, %v5175_v44  ;;  %v5281_v44 = vld [vmem:[#allocation21 + $0x178] sm:$0xf0]  ;;  %v5247_v46 = vld [vmem:[#allocation21 + $0x130] sm:$0xf] }
 0x441   : > { %v5284_v49 = vor.u32 %v5779_v42, %v5281_v44  ;;  %v5737_v42 = vld [vmem:[#allocation21 + $0x24] sm:$0xf]  ;;  %v5771_v44 = vld [vmem:[#allocation21 + $0x134] sm:$0xf] }
 0x442   : > { %2710 = vmatmul.bf16.vlgmr.msrb.gmra.mxu2 %v5885_v26  ;;  %v5191_v26 = vld [vmem:[#allocation21 + $0xc0] sm:$0xf] }
 0x443   : > { %v5192_v45 = vor.u32 %v5758_v21, %v5191_v26  ;;  %3164 = vmatpush.bf16.msrb.mxu2 %v5280_v50  ;;  %v2790_v26 = vsel %vm2788_vm3, %v2789_v10, 0  ;;  %v5264_v21 = vor.u32 %v5776_v6, %v5263_v5  ;;  %v5743_v50 = vld [vmem:[#allocation21 + $0x54] sm:$0xf]  ;;  %v5741_v5 = vld [vmem:[#allocation21 + $0x44] sm:$0xf] }
 0x445   : > { %3154 = vmatpush.bf16.msrb.mxu1 %v5192_v45 }
 0x447   : > { %3165 = vmatpush.bf16.msrb.mxu2 %v5272_v3  ;;  %v5239_v3 = vld [vmem:[#allocation21 + $0x120] sm:$0xf] }
 0x448   : > { %v5240_v6 = vor.u32 %v5770_v39, %v5239_v3  ;;  %v5733_v3 = vld [vmem:[#allocation21 + $0x4] sm:$0xf] }
 0x449   : > { %3155 = vmatpush.bf16.msrb.mxu1 %v5184_v32  ;;  %v5209_v32 = vld [vmem:[#allocation21 + $0xe8] sm:$0xf0] }
 0x44b   : > { %3166 = vmatpush.bf16.msrb.mxu2 %v5264_v21  ;;  %v5755_v21 = vld [vmem:[#allocation21 + $0xb4] sm:$0xf] }
 0x44d   : > { %3156 = vmatpush.bf16.msrb.mxu1 %v5176_v51  ;;  %v5137_v51 = vld [vmem:[#allocation21 + $0x58] sm:$0xf0] }
 0x451   : > { %3157 = vmatpush.bf16.msrb.mxu1 %v5168_v54  ;;  %v7836_v54 = vld [vmem:[%s1343_s7] sm:$0xf] }
 0x452   : > { %2738 = vmatmul.bf16.vlgmr.msra.gmra.mxu2 %v2504_v59  ;;  %3146 = vmatmul.bf16.vlgmr.msrb.gmra.mxu0 %v7836_v54 }
 0x485   : > { %v7813_v60 = vpop.f32.mrf.mxu2 }
 0x487   : > { %v2725_v7 = vpop.f32.mrf.mxu3 }
 0x48d   : > { %v7815_v63 = vpop.f32.mrf.mxu2 }
 0x48f   : > { %v2727_v47 = vpop.f32.mrf.mxu3 }
 0x495   : > { %v7817_v28 = vpop.f32.mrf.mxu2 }
 0x49d   : > { %v7819_v8 = vpop.f32.mrf.mxu2 }
 0x4a5   : > { %v7821_v13 = vpop.f32.mrf.mxu2 }
 0x4ad   : > { %v7823_v61 = vpop.f32.mrf.mxu2 }
 0x4b5   : > { %v7825_v18 = vpop.f32.mrf.mxu2 }
 0x4bd   : > { %v7827_v52 = vpop.f32.mrf.mxu2 }
 0x4c5   : > { %v2711_v22 = vpop.f32.mrf.mxu2 }
 0x4c6   : > { %v2712_v35 = vadd.f32 %v6152_v34, %v2711_v22  ;;  %v5156_v22 = vor.u32 %v5747_v15, %v5153_v16  ;;  %v5196_v15 = vor.u32 %v5757_v57, %v5193_v4  ;;  %v5132_v16 = vor.u32 %v5741_v5, %v5129_v55  ;;  %v5097_v5 = vld [vmem:[#allocation21 + $0x8] sm:$0xf0]  ;;  %v5169_v55 = vld [vmem:[#allocation21 + $0x98] sm:$0xf0] }
 0x4c8   : > { %v2726_v41 = vadd.f32 %v2725_v7, %v2712_v35  ;;  %3177 = vmatpush.bf16.msra.mxu0 %v5156_v22  ;;  %v5256_v7 = vor.u32 %v5774_v29, %v5255_v27  ;;  %v5201_v35 = vld [vmem:[#allocation21 + $0xd8] sm:$0xf0]  ;;  %v2825_v27 = vld [vmem:[%s1343_s7] sm:$0xe]  ;;  %v5773_v29 = vld [vmem:[#allocation21 + $0x144] sm:$0xf] }
 0x4c9   : > { %v5185_v22 = vld [vmem:[#allocation21 + $0xb8] sm:$0xf0] }
 0x4ca   : > { %3167 = vmatpush.bf16.msrb.mxu2 %v5256_v7  ;;  %v5188_v7 = vor.u32 %v5755_v21, %v5185_v22  ;;  %v5732_v21 = vld [vmem:[#allocation19 + $0x18] sm:$0xff] }
 0x4cd   : > { %v2713_v33 = vpop.f32.mrf.mxu2 }
 0x4ce   : > { %v2714_v36 = vadd.f32 %v6152_v34, %v2713_v33  ;;  %v5729_v33 = vld [vmem:[#allocation19] sm:$0xff]  ;;  %v5759_v34 = vld [vmem:[#allocation21 + $0xd4] sm:$0xf] }
 0x4d0   : > { %v2728_v59 = vadd.f32 %v2727_v47, %v2714_v36  ;;  %v5159_v36 = vld [vmem:[#allocation21 + $0x80] sm:$0xf]  ;;  %v5772_v47 = vld [vmem:[#allocation21 + $0x134] sm:$0xf0] }
 0x4d1   : > { %v5160_v38 = vor.u32 %v5750_v37, %v5159_v36  ;;  %v5248_v10 = vor.u32 %v5772_v47, %v5247_v46  ;;  %v5730_v36 = vld [vmem:[#allocation19 + $0x8] sm:$0xff] }
 0x4d3   : > { %3158 = vmatpush.bf16.msrb.mxu1 %v5160_v38  ;;  %3168 = vmatpush.bf16.msrb.mxu2 %v5248_v10  ;;  %v5735_v10 = vld [vmem:[#allocation21 + $0x14] sm:$0xf] }
 0x4d5   : > { %v2739_v24 = vpop.f32.mrf.mxu2 }
 0x4d6   : > { %v2740_v58 = vadd.f32 %v2739_v24, %v2726_v41  ;;  %v5212_v24 = vor.u32 %v5761_v31, %v5209_v32  ;;  %v5145_v41 = vld [vmem:[#allocation21 + $0x68] sm:$0xf0]  ;;  %v5223_v31 = vld [vmem:[#allocation21 + $0x100] sm:$0xf]  ;;  %v5766_v32 = vld [vmem:[#allocation21 + $0x104] sm:$0xf0] }
 0x4d7   : > { %v5148_v43 = vor.u32 %v5745_v40, %v5145_v41  ;;  %3203 = vmatpush.bf16.msra.mxu1 %v5284_v49  ;;  %3169 = vmatpush.bf16.msrb.mxu2 %v5240_v6  ;;  %v5224_v37 = vor.u32 %v5766_v32, %v5223_v31  ;;  %v5249_v49 = vld [vmem:[#allocation21 + $0x138] sm:$0xf0]  ;;  %v5751_v6 = vld [vmem:[#allocation21 + $0x94] sm:$0xf] }
 0x4d8   : > { %v2744_v17 = vmax.f32 %v2740_v58, 0.0  ;;  %v5204_v58 = vor.u32 %v5759_v34, %v5201_v35  ;;  %v2840_v34 = vunpack.c.l.b16 %v2825_v27  ;;  %v5788_v27 = vld [vmem:[#allocation24 + $0x38] sm:$0xff]  ;;  %v5787_v31 = vld [vmem:[#allocation24 + $0x30] sm:$0xff] }
 0x4d9   : > { %3178 = vmatpush.bf16.msra.mxu0 %v5148_v43  ;;  %v5113_v43 = vld [vmem:[#allocation21 + $0x28] sm:$0xf0]  ;;  %v5795_v32 = vld [vmem:[#allocation24 + $0x70] sm:$0xff] }
 0x4da   : > { %v5116_v47 = vor.u32 %v5737_v42, %v5113_v43 }
 0x4dd   : > { %v2741_v0 = vpop.f32.mrf.mxu2 }
 0x4de   : > { %v2742_v9 = vadd.f32 %v2741_v0, %v2728_v59  ;;  %v5140_v59 = vor.u32 %v5743_v50, %v5137_v51  ;;  %v5276_v0 = vor.u32 %v5777_v23, %v5273_v62  ;;  %v5105_v50 = vld [vmem:[#allocation21 + $0x18] sm:$0xf0]  ;;  %v5252_v51 = vor.u32 %v5771_v44, %v5249_v49  ;;  %v5769_v62 = vld [vmem:[#allocation21 + $0x124] sm:$0xf] }
 0x4df   : > { %v5108_v4 = vor.u32 %v5735_v10, %v5105_v50  ;;  %v5782_v50 = vld [vmem:[#allocation24 + $0x8] sm:$0xff] }
 0x4e0   : > { %v2745_v53 = vmax.f32 %v2742_v9, 0.0  ;;  %v5775_v9 = vld [vmem:[#allocation21 + $0x154] sm:$0xf]  ;;  %3179 = vmatpush.bf16.msra.mxu0 %v5140_v59  ;;  %3204 = vmatpush.bf16.msra.mxu1 %v5276_v0  ;;  %v5177_v59 = vld [vmem:[#allocation21 + $0xa8] sm:$0xf0] }
 0x4e1   : > { %v5268_v20 = vor.u32 %v5775_v9, %v5265_v12  ;;  %v5241_v0 = vld [vmem:[#allocation21 + $0x128] sm:$0xf0]  ;;  %v5172_v9 = vor.u32 %v5751_v6, %v5169_v55  ;;  %v5767_v12 = vld [vmem:[#allocation21 + $0x114] sm:$0xf] }
 0x4e2   : > { %v2754_v45 = vpack.c.bf16 %v2745_v53, %v2744_v17  ;;  %v2824_v17 = vld [vmem:[%s1343_s7 + $0x4] sm:$0x1]  ;;  %v2828_v53 = vunpack.c.l.b16 %v7836_v54  ;;  %v5244_v39 = vor.u32 %v5769_v62, %v5241_v0  ;;  %v5820_v0 = vld [vmem:[#allocation24 + $0x138] sm:$0xff] }
 0x4e3   : > { %v2829_v48 = vunpack.c.l.b16 %v2824_v17  ;;  %v5819_v55 = vld [vmem:[#allocation24 + $0x130] sm:$0xff] }
 0x4e4   : > { %v2792_v25 = vand.u32 %v2790_v26, %v2754_v45  ;;  %v5121_v26 = vld [vmem:[#allocation21 + $0x38] sm:$0xf0]  ;;  %v5232_v45 = vor.u32 %v5768_v14, %v5231_v11  ;;  %3180 = vmatpush.bf16.msra.mxu0 %v5132_v16  ;;  %3205 = vmatpush.bf16.msra.mxu1 %v5268_v20  ;;  %v5749_v14 = vld [vmem:[#allocation21 + $0x84] sm:$0xf]  ;;  %v5100_v16 = vor.u32 %v5733_v3, %v5097_v5  ;;  %v5225_v20 = vld [vmem:[#allocation21 + $0x108] sm:$0xf0] }
 0x4e5   : > { %v2841_v46 = vpack.c.b16 %v2829_v48, %v2840_v34  ;;  %v5233_v11 = vld [vmem:[#allocation21 + $0x118] sm:$0xf0]  ;;  %v5811_v5 = vld [vmem:[#allocation24 + $0xf0] sm:$0xff] }
 0x4e6   : > { %2801 = vmatpush.bf16.msrb.mxu3 %v2792_v25  ;;  %v2830_v25 = vpack.c.b16 %v2829_v48, %v2828_v53  ;;  %3170 = vmatpush.bf16.msrb.mxu2 %v5232_v45  ;;  %v5236_v17 = vor.u32 %v5767_v12, %v5233_v11  ;;  %v7846_v45 = vpop.f32.mrf.mxu0  ;;  %v5828_v3 = vld [vmem:[#allocation24 + $0x178] sm:$0xff]  ;;  %v5802_v11 = vld [vmem:[#allocation24 + $0xa8] sm:$0xff] }
 0x4e7   : > { %v2842_v57 = vrot.slane %v2841_v46, 1  ;;  %v5783_v46 = vld [vmem:[#allocation24 + $0x10] sm:$0xff] }
 0x4e8   : > { %v2834_v35 = vshll.u32 %v2830_v25, 16  ;;  %v2832_v38 = vshrl.u32 %v2830_v25, 16 }
 0x4e9   : > { %5089 = vmatmul.msk.bf16.vlgmr.msrb.gmra.mxu3 %vm2775_vm4, %v5729_v33  ;;  %v5124_v33 = vor.u32 %v5739_v19, %v5121_v26  ;;  %v5765_v19 = vld [vmem:[#allocation21 + $0x104] sm:$0xf]  ;;  %v5731_v26 = vld [vmem:[#allocation19 + $0x10] sm:$0xff] }
 0x4ea   : > { %3190 = vmatpush.bf16.msra.mxu3 %v5220_v30  ;;  %v5257_v30 = vld [vmem:[#allocation21 + $0x148] sm:$0xf0]  ;;  %v2836_v40 = vrot.slane %v2834_v35, 1  ;;  %3171 = vmatpush.bf16.msrb.mxu2 %v5224_v37  ;;  %v5228_v48 = vor.u32 %v5765_v19, %v5225_v20  ;;  %v5793_v37 = vld [vmem:[#allocation24 + $0x60] sm:$0xff] }
 0x4eb   : > { %3181 = vmatpush.bf16.msra.mxu0 %v5124_v33  ;;  %v5786_v33 = vld [vmem:[#allocation24 + $0x28] sm:$0xff]  ;;  %v5817_v20 = vld [vmem:[#allocation24 + $0x120] sm:$0xff] }
 0x4ec   : > { %v2837_v41 = vor.u32 %v2836_v40, %v2832_v38  ;;  %v5784_v40 = vld [vmem:[#allocation24 + $0x18] sm:$0xff] }
 0x4ed   : > { %3172 = vmatmul.bf16.vlgmr.msrb.gmra.mxu2 %v2842_v57 }
 0x4ee   : > { %3191 = vmatpush.bf16.msra.mxu3 %v5212_v24  ;;  %v5260_v24 = vor.u32 %v5773_v29, %v5257_v30  ;;  %3159 = vmatmul.bf16.vlgmr.msrb.gmra.mxu1 %v2837_v41  ;;  %v5796_v29 = vld [vmem:[#allocation24 + $0x78] sm:$0xff]  ;;  %v3149_v25 = vpop.f32.mrf.mxu0 }
 0x4ef   : > { %3182 = vmatpush.bf16.msra.mxu0 %v5116_v47  ;;  %3680 = vmatpush.bf16.msra.mxu2 %v5788_v27  ;;  %v5791_v47 = vld [vmem:[#allocation24 + $0x50] sm:$0xff]  ;;  %v2892_v27 = vld [vmem:[#allocation22] sm:$0x3] }
 0x4f0   : > { %3206 = vmatpush.bf16.msra.mxu1 %v5260_v24  ;;  %v5807_v25 = vld [vmem:[#allocation24 + $0xd0] sm:$0xff] }
 0x4f2   : > { %3192 = vmatpush.bf16.msra.mxu3 %v5204_v58  ;;  %v5753_v58 = vld [vmem:[#allocation21 + $0xa4] sm:$0xf] }
 0x4f3   : > { %v5180_v23 = vor.u32 %v5753_v58, %v5177_v59  ;;  %3183 = vmatpush.bf16.msra.mxu0 %v5108_v4  ;;  %3681 = vmatpush.bf16.msra.mxu2 %v5787_v31  ;;  %v5804_v58 = vld [vmem:[#allocation24 + $0xb8] sm:$0xff]  ;;  %v5781_v4 = vld [vmem:[#allocation24] sm:$0xff] }
 0x4f4   : > { %3207 = vmatpush.bf16.msra.mxu1 %v5252_v51  ;;  %v5790_v51 = vld [vmem:[#allocation24 + $0x48] sm:$0xff]  ;;  %v5812_v59 = vld [vmem:[#allocation24 + $0xf8] sm:$0xff] }
 0x4f5   : > { %v5816_v31 = vld [vmem:[#allocation24 + $0x118] sm:$0xff] }
 0x4f6   : > { %3193 = vmatpush.bf16.msra.mxu3 %v5196_v15  ;;  %v5161_v15 = vld [vmem:[#allocation21 + $0x88] sm:$0xf0] }
 0x4f7   : > { %v5164_v53 = vor.u32 %v5749_v14, %v5161_v15  ;;  %3184 = vmatpush.bf16.msra.mxu0 %v5100_v16  ;;  %3682 = vmatpush.bf16.msra.mxu2 %v5786_v33  ;;  %v5810_v14 = vld [vmem:[#allocation24 + $0xe8] sm:$0xff]  ;;  %v2894_v33 = vperm.slane %v2892_v27, 0 }
 0x4f8   : > { %3208 = vmatpush.bf16.msra.mxu1 %v5244_v39  ;;  %v5803_v39 = vld [vmem:[#allocation24 + $0xb0] sm:$0xff]  ;;  %v5818_v15 = vld [vmem:[#allocation24 + $0x128] sm:$0xff] }
 0x4f9   : > { %5090 = vmatmul.msk.bf16.gmra.mxu3 %vm2775_vm4, %v5730_v36  ;;  %v5785_v36 = vld [vmem:[#allocation24 + $0x20] sm:$0xff]  ;;  %v5826_v16 = vld [vmem:[#allocation24 + $0x168] sm:$0xff] }
 0x4fa   : > { %3194 = vmatpush.bf16.msra.mxu3 %v5188_v7  ;;  %3185 = vmatmul.bf16.vlgmr.msra.gmra.mxu0 %v7836_v54  ;;  %v5794_v7 = vld [vmem:[#allocation24 + $0x68] sm:$0xff] }
 0x4fb   : > { %3693 = vmatpush.bf16.msrb.mxu0 %v5796_v29  ;;  %3683 = vmatpush.bf16.msra.mxu2 %v5785_v36  ;;  %v5799_v29 = vld [vmem:[#allocation24 + $0x90] sm:$0xff]  ;;  %v5798_v36 = vld [vmem:[#allocation24 + $0x88] sm:$0xff] }
 0x4fc   : > { %3209 = vmatpush.bf16.msra.mxu1 %v5236_v17  ;;  %v5801_v17 = vld [vmem:[#allocation24 + $0xa0] sm:$0xff] }
 0x4fe   : > { %3195 = vmatpush.bf16.msra.mxu3 %v5180_v23  ;;  %v5789_v23 = vld [vmem:[#allocation24 + $0x40] sm:$0xff] }
 0x4ff   : > { %3694 = vmatpush.bf16.msrb.mxu0 %v5795_v32  ;;  %3684 = vmatpush.bf16.msra.mxu2 %v5784_v40  ;;  %v5824_v32 = vld [vmem:[#allocation24 + $0x158] sm:$0xff]  ;;  %v3148_v40 = vadd.f32 %v7846_v45, %v2894_v33  ;;  %v5813_v45 = vld [vmem:[#allocation24 + $0x100] sm:$0xff] }
 0x500   : > { %3210 = vmatpush.bf16.msra.mxu1 %v5228_v48  ;;  %v5825_v48 = vld [vmem:[#allocation24 + $0x160] sm:$0xff] }
 0x502   : > { %3196 = vmatpush.bf16.msra.mxu3 %v5172_v9  ;;  %v5827_v9 = vld [vmem:[#allocation24 + $0x170] sm:$0xff] }
 0x503   : > { %3211 = vmatmul.bf16.vlgmr.msra.gmra.mxu1 %v2842_v57  ;;  %3695 = vmatpush.bf16.msrb.mxu0 %v5794_v7  ;;  %v5815_v7 = vld [vmem:[#allocation24 + $0x110] sm:$0xff] }
 0x504   : > { %3685 = vmatpush.bf16.msra.mxu2 %v5783_v46  ;;  %3719 = vmatpush.bf16.msrb.mxu1 %v5812_v59  ;;  %v5814_v46 = vld [vmem:[#allocation24 + $0x108] sm:$0xff] }
 0x506   : > { %3197 = vmatpush.bf16.msra.mxu3 %v5164_v53  ;;  %v5809_v53 = vld [vmem:[#allocation24 + $0xe0] sm:$0xff] }
 0x507   : > { %3696 = vmatpush.bf16.msrb.mxu0 %v5793_v37  ;;  %v5806_v37 = vld [vmem:[#allocation24 + $0xc8] sm:$0xff] }
 0x508   : > { %3686 = vmatpush.bf16.msra.mxu2 %v5782_v50  ;;  %3720 = vmatpush.bf16.msrb.mxu1 %v5811_v5 }
 0x509   : > { %5091 = vmatmul.msk.bf16.gmra.mxu3 %vm2775_vm4, %v5731_v26  ;;  %v5800_v26 = vld [vmem:[#allocation24 + $0x98] sm:$0xff] }
 0x50a   : > { %3706 = vmatpush.bf16.msrb.mxu3 %v5804_v58 }
 0x50c   : > { %3687 = vmatpush.bf16.msra.mxu2 %v5781_v4  ;;  %3721 = vmatpush.bf16.msrb.mxu1 %v5810_v14 }
 0x50e   : > { %3707 = vmatpush.bf16.msrb.mxu3 %v5803_v39 }
 0x510   : > { %3732 = vmatpush.bf16.msrb.mxu2 %v5820_v0  ;;  %3722 = vmatpush.bf16.msrb.mxu1 %v5809_v53 }
 0x512   : > { %3708 = vmatpush.bf16.msrb.mxu3 %v5802_v11 }
 0x514   : > { %3733 = vmatpush.bf16.msrb.mxu2 %v5819_v55  ;;  %v5844_v55 = vld [vmem:[#allocation30 + $0x14] sm:$0xf0] }
 0x516   : > { %3709 = vmatpush.bf16.msrb.mxu3 %v5801_v17 }
 0x518   : > { %3734 = vmatpush.bf16.msrb.mxu2 %v5818_v15 }
 0x519   : > { %5092 = vmatmul.msk.bf16.gmra.mxu3 %vm2775_vm4, %v5732_v21  ;;  %v5808_v21 = vld [vmem:[#allocation24 + $0xd8] sm:$0xff] }
 0x51a   : > { %3710 = vmatpush.bf16.msrb.mxu3 %v5800_v26  ;;  %3723 = vmatpush.bf16.msrb.mxu1 %v5808_v21  ;;  %v5841_v26 = vld [vmem:[#allocation30 + $0x4] sm:$0xf]  ;;  %v5533_v21 = vld [vmem:[#allocation30 + $0x8] sm:$0xf0] }
 0x51b   : > { %v5536_v1 = vor.u32 %v5841_v26, %v5533_v21  ;;  %v5855_v21 = vld [vmem:[#allocation33 + $0x50] sm:$0xff] }
 0x51c   : > { %3735 = vmatpush.bf16.msrb.mxu2 %v5817_v20  ;;  %v5531_v20 = vld [vmem:[#allocation30] sm:$0xf] }
 0x51e   : > { %3711 = vmatpush.bf16.msrb.mxu3 %v5799_v29  ;;  %3724 = vmatpush.bf16.msrb.mxu1 %v5807_v25 }
 0x520   : > { %3736 = vmatpush.bf16.msrb.mxu2 %v5816_v31 }
 0x522   : > { %3712 = vmatpush.bf16.msrb.mxu3 %v5798_v36  ;;  %3725 = vmatpush.bf16.msrb.mxu1 %v5806_v37 }
 0x524   : > { %3737 = vmatpush.bf16.msrb.mxu2 %v5815_v7 }
 0x528   : > { %3738 = vmatpush.bf16.msrb.mxu2 %v5814_v46 }
 0x529   : > { %3198 = vmatmul.bf16.vlgmr.msra.gmra.mxu3 %v2837_v41  ;;  %v5792_v41 = vld [vmem:[#allocation24 + $0x58] sm:$0xff] }
 0x52a   : > { %3697 = vmatpush.bf16.msrb.mxu0 %v5792_v41  ;;  %v2895_v41 = vperm.slane %v2892_v27, 1 }
 0x52c   : > { %3739 = vmatpush.bf16.msrb.mxu2 %v5813_v45  ;;  %v5851_v45 = vld [vmem:[#allocation33 + $0x30] sm:$0xff] }
 0x52e   : > { %3698 = vmatpush.bf16.msrb.mxu0 %v5791_v47  ;;  %v5822_v47 = vld [vmem:[#allocation24 + $0x148] sm:$0xff] }
 0x532   : > { %3699 = vmatpush.bf16.msrb.mxu0 %v5790_v51 }
 0x536   : > { %3700 = vmatpush.bf16.msrb.mxu0 %v5789_v23 }
 0x53a   : > { %3745 = vmatpush.bf16.msra.mxu0 %v5828_v3 }
 0x53e   : > { %3746 = vmatpush.bf16.msra.mxu0 %v5827_v9  ;;  %v5843_v9 = vld [vmem:[#allocation30 + $0x14] sm:$0xf] }
 0x542   : > { %3747 = vmatpush.bf16.msra.mxu0 %v5826_v16 }
 0x546   : > { %3748 = vmatpush.bf16.msra.mxu0 %v5825_v48  ;;  %v5842_v48 = vld [vmem:[#allocation30 + $0x4] sm:$0xf0] }
 0x547   : > { %v5532_v2 = vor.u32 %v5842_v48, %v5531_v20  ;;  %v5859_v20 = vld [vmem:[#allocation33 + $0x70] sm:$0xff]  ;;  %v5858_v48 = vld [vmem:[#allocation33 + $0x68] sm:$0xff] }
 0x54a   : > { %3749 = vmatpush.bf16.msra.mxu0 %v5824_v32 }
 0x56b   : > { %v7850_v54 = vpop.f32.mrf.mxu1 }
 0x56c   : > { %v7844_v22 = vpop.f32.mrf.mxu3 }
 0x570   : > { %v7852_v35 = vpop.f32.mrf.mxu2 }
 0x573   : > { %v3162_v24 = vpop.f32.mrf.mxu1 }
 0x574   : > { %v7848_v30 = vpop.f32.mrf.mxu3 }
 0x575   : > { %v6139_v58 = vpack.i.bf16 %v7848_v30, %v7844_v22  ;;  %v3246_v22 = vld [vmem:[#allocation4] sm:$0xff]  ;;  %v3249_v30 = vld [vmem:[#allocation4 + $0x8] sm:$0x11] }
 0x577   : > { %v7854_v38 = vpop.f32.mrf.mxu0 }
 0x578   : > { %v3175_v44 = vpop.f32.mrf.mxu2  ;;  %v3187_v50 = vadd.f32 %v7854_v38, %v2895_v41 }
 0x579   : > { %v5805_v44 = vld [vmem:[#allocation24 + $0xc0] sm:$0xff] }
 0x57a   : > { %3726 = vmatpush.bf16.msrb.mxu1 %v5805_v44 }
 0x57c   : > { %v2808_v34 = vpop.f32.mrf.mxu3 }
 0x57f   : > { %v3188_v10 = vpop.f32.mrf.mxu0 }
 0x580   : > { %v7857_v49 = vpop.f32.mrf.mxu1  ;;  %v3161_v10 = vadd.f32 %v7850_v54, %v3148_v40 }
 0x582   : > { %v3174_v59 = vadd.f32 %v7852_v35, %v3161_v10  ;;  %v5852_v10 = vld [vmem:[#allocation33 + $0x38] sm:$0xff] }
 0x584   : > { %v2810_v42 = vpop.f32.mrf.mxu3  ;;  %v3216_v54 = vmax.f32 %v3174_v59, 0.0  ;;  %v3929_v59 = vld [vmem:[%s1347_s10] sm:$0x3] }
 0x585   : > { %v6134_v43 = vpack.i.bf16 %v2810_v42, %v2808_v34  ;;  %v5823_v34 = vld [vmem:[#allocation24 + $0x150] sm:$0xff] }
 0x586   : > { %3750 = vmatpush.bf16.msra.mxu0 %v5823_v34 }
 0x587   : > { %6135 = vrot.lane.b32.xlu1 %v6134_v43, %s6976_s6  ;;  %v5797_v43 = vld [vmem:[#allocation24 + $0x80] sm:$0xff] }
 0x588   : > { %v3214_v62 = vpop.f32.mrf.mxu1  ;;  %3713 = vmatpush.bf16.msrb.mxu3 %v5797_v43 }
 0x58a   : > { %3751 = vmatpush.bf16.msra.mxu0 %v5822_v47 }
 0x58c   : > { %v2813_v57 = vpop.f32.mrf.mxu3 }
 0x594   : > { %v2815_v6 = vpop.f32.mrf.mxu3 }
 0x595   : > { %v6129_v12 = vpack.i.bf16 %v2815_v6, %v2813_v57  ;;  %v5821_v57 = vld [vmem:[#allocation24 + $0x140] sm:$0xff] }
 0x596   : > { %3752 = vmatpush.bf16.msra.mxu0 %v5821_v57  ;;  %v5850_v57 = vld [vmem:[#allocation33 + $0x28] sm:$0xff] }
 0x597   : > { %6130 = vrot.lane.b32.xlu0 %v6129_v12, %s6976_s6  ;;  %v5541_v12 = vld [vmem:[#allocation30 + $0x18] sm:$0xf0] }
 0x598   : > { %v5544_v17 = vor.u32 %v5843_v9, %v5541_v12 }
 0x59c   : > { %v2818_v19 = vpop.f32.mrf.mxu3 }
 0x5a4   : > { %v2820_v24 = vpop.f32.mrf.mxu3 }
 0x5a5   : > { %v6124_v42 = vpack.i.bf16 %v2820_v24, %v2818_v19 }
 0x5a7   : > { %6125 = vrot.lane.b32.xlu2 %v6124_v42, %s6976_s6 }
 0x5ac   : > { %v3199_v51 = vpop.f32.mrf.mxu3 }
 0x5ad   : > { %v3200_v4 = vadd.f32 %v3199_v51, %v3187_v50 }
 0x5af   : > { %v3213_v23 = vadd.f32 %v7857_v49, %v3200_v4  ;;  %6140 = vrot.lane.b32.xlu2 %v6139_v58, %s6976_s6  ;;  %v5539_v49 = vld [vmem:[#allocation30 + $0x10] sm:$0xf]  ;;  %v5849_v58 = vld [vmem:[#allocation33 + $0x20] sm:$0xff]  ;;  %v5848_v4 = vld [vmem:[#allocation33 + $0x18] sm:$0xff] }
 0x5b0   : > { %v5540_v56 = vor.u32 %v5844_v55, %v5539_v49 }
 0x5b1   : > { %v3217_v38 = vmax.f32 %v3213_v23, 0.0  ;;  %v5847_v23 = vld [vmem:[#allocation33 + $0x10] sm:$0xff] }
 0x5b3   : > { %v3232_v62 = vpack.c.bf16 %v3217_v38, %v3216_v54  ;;  %v5846_v54 = vld [vmem:[#allocation33 + $0x8] sm:$0xff]  ;;  %v5845_v38 = vld [vmem:[#allocation33] sm:$0xff] }
 0x5b4   : > { %v3201_v0 = vpop.f32.mrf.mxu3 }
 0x5b5   : > { %v3234_v3 = vshrl.u32 %v3232_v62, 16  ;;  %v3237_v5 = vshll.u32 %v3232_v62, 16 }
 0x5b7   : > { %v3236_v39 = vrot.slane %v3234_v3, 7 }
 0x5b9   : > { %v3239_v35 = vor.u32 %v3237_v5, %v3236_v39  ;;  %v3240_v6 = vrot.slane %v3236_v39, 4 }
 0x5bb   : > { %v3247_v11 = vsel %vm3245_vm12, %v3239_v35, %v3246_v22  ;;  %v3250_v14 = vsel %vm3221_vm11, %v3240_v6, %v3249_v30 }
 0x5bc   : > { %3248 = vst [vmem:[#allocation4] sm:$0xff] %v3247_v11  ;;  %v3256_v15 = vunpack.c.l.b16 %v3247_v11  ;;  %v3257_v16 = vunpack.c.h.b16 %v3247_v11 }
 0x5bd   : > { %3251 = vst [vmem:[#allocation4 + $0x8] sm:$0x11] %v3250_v14 }
 0x5be   : > { %v3258_v53 = vpack.c.b16 %v3256_v15, %v3256_v15  ;;  %v3259_v19 = vpack.c.b16 %v3257_v16, %v3257_v16 }
 0x5c0   : > { %3688 = vmatmul.bf16.vlgmr.msra.gmra.mxu2 %v3258_v53  ;;  %3701 = vmatmul.bf16.vlgmr.msrb.gmra.mxu0 %v3259_v19 }
 0x5c1   : > { %3969 = vmatpush.bf16.msra.mxu2 %v5540_v56  ;;  %3982 = vmatpush.bf16.msrb.mxu0 %v5544_v17 }
 0x5c3   : > { %v3254_v27 = vld [vmem:[#allocation4] sm:$0xee] }
 0x5c4   : > { %v3253_v29 = vld [vmem:[#allocation4 + $0x8] sm:$0x11]  ;;  %v3284_v32 = vunpack.c.l.b16 %v3254_v27  ;;  %v3285_v33 = vunpack.c.h.b16 %v3254_v27  ;;  %v6153_v27 = vld [vmem:[#allocation25] ss:$0 sm:$0xff] }
 0x5c5   : > { %v3263_v25 = vunpack.c.l.b16 %v3253_v29  ;;  %v3264_v31 = vunpack.c.h.b16 %v3253_v29  ;;  %3970 = vmatpush.bf16.msra.mxu2 %v5532_v2  ;;  %3983 = vmatpush.bf16.msrb.mxu0 %v5536_v1  ;;  %v5854_v2 = vld [vmem:[#allocation33 + $0x48] sm:$0xff] }
 0x5c7   : > { %v3265_v7 = vpack.c.b16 %v3263_v25, %v3256_v15  ;;  %v3266_v34 = vpack.c.b16 %v3264_v31, %v3257_v16  ;;  %v3286_v37 = vpack.c.b16 %v3263_v25, %v3284_v32  ;;  %v3287_v40 = vpack.c.b16 %v3264_v31, %v3285_v33 }
 0x5c9   : > { %v3270_v24 = vshll.u32 %v3265_v7, 16  ;;  %v3277_v36 = vshll.u32 %v3266_v34, 16  ;;  %v3268_v41 = vshrl.u32 %v3265_v7, 16  ;;  %v3275_v43 = vshrl.u32 %v3266_v34, 16 }
 0x5ca   : > { %v3288_v50 = vrot.slane %v3286_v37, 1  ;;  %v3289_v51 = vrot.slane %v3287_v40, 1 }
 0x5cb   : > { %v3272_v42 = vrot.slane %v3270_v24, 1  ;;  %v3279_v44 = vrot.slane %v3277_v36, 1 }
 0x5cd   : > { %v3273_v46 = vor.u32 %v3272_v42, %v3268_v41  ;;  %v3280_v47 = vor.u32 %v3279_v44, %v3275_v43  ;;  %v3934_v42 = vld [vmem:[#allocation31] sm:$0x3] }
 0x5cf   : > { %3714 = vmatmul.bf16.vlgmr.msrb.gmra.mxu3 %v3273_v46  ;;  %3727 = vmatmul.bf16.vlgmr.msrb.gmra.mxu1 %v3280_v47  ;;  %v3937_v46 = vperm.slane %v3934_v42, 1 }
 0x5d0   : > { %3740 = vmatmul.bf16.vlgmr.msrb.gmra.mxu2 %v3288_v50  ;;  %3753 = vmatmul.bf16.vlgmr.msra.gmra.mxu0 %v3289_v51 }
 0x5d1   : > { %4125 = vmatpush.bf16.msrb.mxu2 %v5852_v10 }
 0x5d5   : > { %4126 = vmatpush.bf16.msrb.mxu2 %v5851_v45 }
 0x5d9   : > { %4127 = vmatpush.bf16.msrb.mxu2 %v5850_v57 }
 0x5dd   : > { %4128 = vmatpush.bf16.msrb.mxu2 %v5849_v58  ;;  %v5829_v58 = vld [vmem:[#allocation27] sm:$0xff] }
 0x5e0   : > { %5545 = vmatmul.msk.bf16.vlgmr.msra.gmra.mxu2 %vm1954_vm14, %v3929_v59  ;;  %5546 = vmatmul.msk.bf16.vlgmr.msrb.gmra.mxu0 %vm1954_vm14, %v3929_v59  ;;  %v3936_v59 = vperm.slane %v3934_v42, 0 }
 0x5e1   : > { %4129 = vmatpush.bf16.msrb.mxu2 %v5848_v4 }
 0x5e5   : > { %4130 = vmatpush.bf16.msrb.mxu2 %v5847_v23 }
 0x5e9   : > { %4131 = vmatpush.bf16.msrb.mxu2 %v5846_v54 }
 0x5ed   : > { %4132 = vmatpush.bf16.msrb.mxu2 %v5845_v38 }
 0x5f9   : > { %v6136_v30 = vpop.permute.xlu1 %6135 }
 0x5fa   : > { %v6138_v6 = vunpack.i.h.bf16 %v6136_v30  ;;  %v6137_v49 = vunpack.i.l.bf16 %v6136_v30  ;;  %v5840_v30 = vld [vmem:[#allocation28 + $0x38] sm:$0xff] }
 0x5fb   : > { %3900 = vmatpush.bf16.msra.mxu1 %v5840_v30 }
 0x5fc   : > { %v4271_v56 = vsel %vm1972_vm15, %v7819_v8, %v6138_v6  ;;  %v5856_v8 = vld [vmem:[#allocation33 + $0x58] sm:$0xff]  ;;  %v5839_v6 = vld [vmem:[#allocation28 + $0x30] sm:$0xff] }
 0x5ff   : > { %3901 = vmatpush.bf16.msra.mxu1 %v5839_v6 }
 0x601   : > { %v6126_v62 = vpop.permute.xlu2 %6125 }
 0x602   : > { %v6128_v0 = vunpack.i.h.bf16 %v6126_v62  ;;  %v6127_v3 = vunpack.i.l.bf16 %v6126_v62 }
 0x604   : > { %v4275_v39 = vsel %vm1972_vm15, %v7827_v52, %v6128_v0  ;;  %v4274_v5 = vsel %vm1972_vm15, %v7825_v18, %v6127_v3  ;;  %v4270_v18 = vsel %vm1972_vm15, %v7817_v28, %v6137_v49  ;;  %v5857_v28 = vld [vmem:[#allocation33 + $0x60] sm:$0xff]  ;;  %v5866_v49 = vld [vmem:[#allocation36 + $0x28] sm:$0xff] }
 0x605   : > { %v4279_v22 = vpack.c.bf16 %v4275_v39, %v4274_v5  ;;  %v4277_v17 = vpack.c.bf16 %v4271_v56, %v4270_v18  ;;  %v5830_v5 = vld [vmem:[#allocation27 + $0x8] sm:$0xff]  ;;  %v5835_v18 = vld [vmem:[#allocation28 + $0x10] sm:$0xff] }
 0x606   : > { %v5834_v56 = vld [vmem:[#allocation28 + $0x8] sm:$0xff] }
 0x607   : > { %4292 = vmatpush.bf16.msra.mxu2 %v4279_v22  ;;  %v5868_v22 = vld [vmem:[#allocation36 + $0x38] sm:$0xff] }
 0x609   : > { %v6131_v35 = vpop.permute.xlu0 %6130  ;;  %v6141_v12 = vpop.permute.xlu2 %6140 }
 0x60a   : > { %v6133_v55 = vunpack.i.h.bf16 %v6131_v35  ;;  %v6132_v9 = vunpack.i.l.bf16 %v6131_v35  ;;  %v6143_v52 = vunpack.i.h.bf16 %v6141_v12  ;;  %v6142_v16 = vunpack.i.l.bf16 %v6141_v12  ;;  %v5867_v35 = vld [vmem:[#allocation36 + $0x30] sm:$0xff]  ;;  %v5837_v12 = vld [vmem:[#allocation28 + $0x20] sm:$0xff] }
 0x60c   : > { %v4272_v11 = vsel %vm1972_vm15, %v7821_v13, %v6132_v9  ;;  %v4273_v14 = vsel %vm1972_vm15, %v7823_v61, %v6133_v55  ;;  %v4268_v53 = vsel %vm1972_vm15, %v7813_v60, %v6142_v16  ;;  %v4269_v13 = vsel %vm1972_vm15, %v7815_v63, %v6143_v52  ;;  %v5860_v61 = vld [vmem:[#allocation33 + $0x78] sm:$0xff]  ;;  %v5853_v63 = vld [vmem:[#allocation33 + $0x40] sm:$0xff] }
 0x60d   : > { %v4278_v15 = vpack.c.bf16 %v4273_v14, %v4272_v11  ;;  %v4276_v19 = vpack.c.bf16 %v4269_v13, %v4268_v53  ;;  %4138 = vmatpush.bf16.msra.mxu0 %v5860_v61  ;;  %v5838_v55 = vld [vmem:[#allocation28 + $0x28] sm:$0xff]  ;;  %v5831_v11 = vld [vmem:[#allocation27 + $0x10] sm:$0xff]  ;;  %v5864_v14 = vld [vmem:[#allocation36 + $0x18] sm:$0xff] }
 0x60e   : > { %v5865_v9 = vld [vmem:[#allocation36 + $0x20] sm:$0xff]  ;;  %3902 = vmatpush.bf16.msra.mxu1 %v5838_v55  ;;  %v5836_v52 = vld [vmem:[#allocation28 + $0x18] sm:$0xff]  ;;  %v5862_v53 = vld [vmem:[#allocation36 + $0x8] sm:$0xff] }
 0x60f   : > { %4293 = vmatpush.bf16.msra.mxu2 %v4278_v15  ;;  %v5832_v15 = vld [vmem:[#allocation27 + $0x18] sm:$0xff]  ;;  %v5861_v13 = vld [vmem:[#allocation36] sm:$0xff] }
 0x610   : > { %v5863_v16 = vld [vmem:[#allocation36 + $0x10] sm:$0xff] }
 0x611   : > { %4139 = vmatpush.bf16.msra.mxu0 %v5859_v20 }
 0x612   : > { %3903 = vmatpush.bf16.msra.mxu1 %v5837_v12 }
 0x613   : > { %4294 = vmatpush.bf16.msra.mxu2 %v4277_v17  ;;  %v5833_v17 = vld [vmem:[#allocation28] sm:$0xff] }
 0x615   : > { %4140 = vmatpush.bf16.msra.mxu0 %v5858_v48  ;;  %v6154_v48 = vld [vmem:[#allocation34] ss:$0 sm:$0xff] }
 0x616   : > { %3904 = vmatpush.bf16.msra.mxu1 %v5836_v52 }
 0x617   : > { %4295 = vmatpush.bf16.msra.mxu2 %v4276_v19 }
 0x619   : > { %4141 = vmatpush.bf16.msra.mxu0 %v5857_v28 }
 0x61a   : > { %3905 = vmatpush.bf16.msra.mxu1 %v5835_v18 }
 0x61d   : > { %4142 = vmatpush.bf16.msra.mxu0 %v5856_v8 }
 0x61e   : > { %3906 = vmatpush.bf16.msra.mxu1 %v5834_v56 }
 0x621   : > { %4143 = vmatpush.bf16.msra.mxu0 %v5855_v21 }
 0x622   : > { %3907 = vmatpush.bf16.msra.mxu1 %v5833_v17 }
 0x625   : > { %4144 = vmatpush.bf16.msra.mxu0 %v5854_v2 }
 0x629   : > { %4145 = vmatpush.bf16.msra.mxu0 %v5853_v63 }
 0x63d   : > { %v3702_v26 = vpop.f32.mrf.mxu0 }
 0x643   : > { %v3689_v60 = vpop.f32.mrf.mxu2 }
 0x644   : > { %v3690_v31 = vadd.f32 %v6153_v27, %v3689_v60 }
 0x645   : > { %v3704_v1 = vpop.f32.mrf.mxu0 }
 0x646   : > { %v3703_v33 = vadd.f32 %v3702_v26, %v3690_v31  ;;  %v5869_v31 = vld [vmem:[#allocation39] sm:$0xff] }
 0x64b   : > { %v3691_v29 = vpop.f32.mrf.mxu2 }
 0x64c   : > { %v3728_v25 = vpop.f32.mrf.mxu1 }
 0x64d   : > { %v3754_v32 = vpop.f32.mrf.mxu0 }
 0x652   : > { %v3715_v7 = vpop.f32.mrf.mxu3 }
 0x653   : > { %v3716_v34 = vadd.f32 %v3715_v7, %v3703_v33  ;;  %v3741_v24 = vpop.f32.mrf.mxu2 }
 0x654   : > { %v3730_v36 = vpop.f32.mrf.mxu1 }
 0x655   : > { %v3729_v37 = vadd.f32 %v3728_v25, %v3716_v34  ;;  %v3756_v40 = vpop.f32.mrf.mxu0 }
 0x656   : > { %v6155_v40 = vld [vmem:[#allocation37] ss:$0 sm:$0xff] }
 0x657   : > { %v3742_v41 = vadd.f32 %v3741_v24, %v3729_v37 }
 0x659   : > { %v3755_v43 = vadd.f32 %v3754_v32, %v3742_v41 }
 0x65a   : > { %v3717_v44 = vpop.f32.mrf.mxu3 }
 0x65b   : > { %v3758_v47 = vmax.f32 %v3755_v43, 0.0  ;;  %v3743_v10 = vpop.f32.mrf.mxu2 }
 0x65d   : > { %v3767_v50 = vpack.c.bf16 %v3758_v47, %v3758_v47  ;;  %v3985_v51 = vpop.f32.mrf.mxu0  ;;  %v5871_v47 = vld [vmem:[#allocation42] sm:$0xff] }
 0x65e   : > { %v3986_v45 = vadd.f32 %v3985_v51, %v3937_v46 }
 0x65f   : > { %v3801_v57 = vsel %vm1440_vm6, %v3767_v50, 0  ;;  %vm4342_vm6 = vcmask 1041408  }
 0x660   : > { %3810 = vmatpush.bf16.msra.mxu3 %v3801_v57  ;;  %v3990_v4 = vmax.f32 %v3986_v45, 0.0 }
 0x662   : > { %v3992_v23 = vpack.c.bf16 %v3990_v4, %v3990_v4 }
 0x663   : > { %v3972_v54 = vpop.f32.mrf.mxu2  ;;  %5493 = vmatmul.msk.bf16.vlgmr.msra.gmra.mxu3 %vm1415_vm13, %v5829_v58 }
 0x664   : > { %v3973_v38 = vadd.f32 %v3972_v54, %v3936_v59  ;;  %4146 = vmatmul.bf16.vlgmr.msra.gmra.mxu0 %v3992_v23  ;;  %4221 = vmatpush.bf16.msrb.mxu3 %v5868_v22 }
 0x665   : > { %v3987_v62 = vpop.f32.mrf.mxu0 }
 0x666   : > { %v3989_v0 = vmax.f32 %v3973_v38, 0.0  ;;  %v5870_v62 = vld [vmem:[#allocation40] sm:$0xff] }
 0x668   : > { %v3991_v3 = vpack.c.bf16 %v3989_v0, %v3989_v0  ;;  %4222 = vmatpush.bf16.msrb.mxu3 %v5867_v35 }
 0x66a   : > { %4133 = vmatmul.bf16.vlgmr.msrb.gmra.mxu2 %v3991_v3 }
 0x66b   : > { %v3974_v39 = vpop.f32.mrf.mxu2 }
 0x66c   : > { %4223 = vmatpush.bf16.msrb.mxu3 %v5866_v49 }
 0x670   : > { %4224 = vmatpush.bf16.msrb.mxu3 %v5865_v9 }
 0x673   : > { %5494 = vmatmul.msk.bf16.gmra.mxu3 %vm1415_vm13, %v5830_v5 }
 0x674   : > { %4225 = vmatpush.bf16.msrb.mxu3 %v5864_v14 }
 0x678   : > { %4226 = vmatpush.bf16.msrb.mxu3 %v5863_v16 }
 0x67a   : > { %5647 = vmatmul.msk.bf16.vlgmr.msra.gmra.mxu2 %vm1972_vm15, %v5869_v31 }
 0x67c   : > { %4227 = vmatpush.bf16.msrb.mxu3 %v5862_v53 }
 0x680   : > { %4228 = vmatpush.bf16.msrb.mxu3 %v5861_v13 }
 0x683   : > { %5495 = vmatmul.msk.bf16.gmra.mxu3 %vm1415_vm13, %v5831_v11 }
 0x693   : > { %5496 = vmatmul.msk.bf16.gmra.mxu3 %vm1415_vm13, %v5832_v15 }
 0x6e1   : > { %v4147_v19 = vpop.f32.mrf.mxu0 }
 0x6e6   : > { %v3812_v61 = vpop.f32.mrf.mxu3 }
 0x6e9   : > { %v4149_v20 = vpop.f32.mrf.mxu0 }
 0x6ed   : > { %v4134_v28 = vpop.f32.mrf.mxu2 }
 0x6ee   : > { %v4135_v8 = vadd.f32 %v6154_v48, %v4134_v28  ;;  %v3814_v26 = vpop.f32.mrf.mxu3 }
 0x6ef   : > { %v3832_v21 = vpack.c.bf16 %v3814_v26, %v3812_v61 }
 0x6f0   : > { %v4148_v60 = vadd.f32 %v4147_v19, %v4135_v8 }
 0x6f1   : > { %3908 = vmatmul.bf16.vlgmr.msra.gmra.mxu1 %v3832_v21 }
 0x6f2   : > { %v4151_v2 = vmax.f32 %v4148_v60, 0.0 }
 0x6f4   : > { %v4152_v1 = vpack.c.bf16 %v4151_v2, %v4151_v2 }
 0x6f5   : > { %v4136_v63 = vpop.f32.mrf.mxu2 }
 0x6f6   : > { %4229 = vmatmul.bf16.vlgmr.msrb.gmra.mxu3 %v4152_v1  ;;  %v3817_v27 = vpop.f32.mrf.mxu3 }
 0x6fd   : > { %v4297_v0 = vpop.f32.mrf.mxu2 }
 0x6fe   : > { %v3819_v29 = vpop.f32.mrf.mxu3 }
 0x6ff   : > { %v3833_v25 = vpack.c.bf16 %v3819_v29, %v3817_v27 }
 0x701   : > { %3913 = vmatmul.bf16.gmra.mxu1 %v3833_v25 }
 0x705   : > { %v4299_v3 = vpop.f32.mrf.mxu2 }
 0x706   : > { %v3822_v32 = vpop.f32.mrf.mxu3 }
 0x70e   : > { %v3824_v33 = vpop.f32.mrf.mxu3 }
 0x70f   : > { %v3834_v7 = vpack.c.bf16 %v3824_v33, %v3822_v32 }
 0x711   : > { %3918 = vmatmul.bf16.gmra.mxu1 %v3834_v7 }
 0x716   : > { %v3827_v34 = vpop.f32.mrf.mxu3 }
 0x71e   : > { %v3829_v24 = vpop.f32.mrf.mxu3 }
 0x71f   : > { %v3835_v36 = vpack.c.bf16 %v3829_v24, %v3827_v34 }
 0x721   : > { %3923 = vmatmul.bf16.gmra.mxu1 %v3835_v36 }
 0x76e   : > { %v3909_v37 = vpop.f32.mrf.mxu1 }
 0x776   : > { %v3911_v41 = vpop.f32.mrf.mxu1 }
 0x777   : > { %v4304_v38 = vpack.c.bf16 %v3911_v41, %v3909_v37 }
 0x779   : > { %v4230_v42 = vpop.f32.mrf.mxu3 }
 0x77a   : > { %v4231_v43 = vadd.f32 %v6155_v40, %v4230_v42 }
 0x77c   : > { %v4332_v44 = vpack.c.bf16 %v4231_v43, %v4231_v43 }
 0x77e   : > { %v4344_v46 = vsel %vm4342_vm6, %v4332_v44, 0  ;;  %v3914_v10 = vpop.f32.mrf.mxu1 }
 0x77f   : > { %4353 = vmatpush.bf16.msrb.mxu2 %v4344_v46 }
 0x781   : > { %v4232_v50 = vpop.f32.mrf.mxu3 }
 0x782   : > { %5657 = vmatmul.msk.bf16.vlgmr.msrb.gmra.mxu2 %vm4338_vm7, %v5871_v47 }
 0x786   : > { %v3916_v51 = vpop.f32.mrf.mxu1 }
 0x787   : > { %v4305_v54 = vpack.c.bf16 %v3916_v51, %v3914_v10 }
 0x78e   : > { %v3919_v45 = vpop.f32.mrf.mxu1 }
 0x796   : > { %v3921_v57 = vpop.f32.mrf.mxu1 }
 0x797   : > { %v4306_v23 = vpack.c.bf16 %v3921_v57, %v3919_v45 }
 0x79e   : > { %v3924_v58 = vpop.f32.mrf.mxu1 }
 0x7a6   : > { %v3926_v59 = vpop.f32.mrf.mxu1 }
 0x7a7   : > { %v4307_v4 = vpack.c.bf16 %v3926_v59, %v3924_v58 }
 0x7a9   : > { %4320 = vmatpush.bf16.msrb.mxu0 %v4307_v4 }
 0x7ad   : > { %4321 = vmatpush.bf16.msrb.mxu0 %v4306_v23 }
 0x7b1   : > { %4322 = vmatpush.bf16.msrb.mxu0 %v4305_v54 }
 0x7b5   : > { %4323 = vmatpush.bf16.msrb.mxu0 %v4304_v38 }
 0x7b8   : > { %5652 = vmatmul.msk.bf16.vlgmr.msrb.gmra.mxu0 %vm1972_vm15, %v5870_v62 }
 0x805   : > { %v4355_v39 = vpop.f32.mrf.mxu2 }
 0x80d   : > { %v4357_v5 = vpop.f32.mrf.mxu2 }
 0x80e   : > { %v6144_v22 = vpack.i.bf16 %v4357_v5, %v4355_v39 }
 0x810   : > { %6145 = vrot.lane.b32.xlu0 %v6144_v22, %s6976_s6 }
 0x835   : > { %v4325_v30 = vpop.f32.mrf.mxu0 }
 0x83d   : > { %v4327_v55 = vpop.f32.mrf.mxu0 }
 0x882   : > { %v6146_v35 = vpop.permute.xlu0 %6145 }
 0x883   : > { %v6148_v6 = vunpack.i.h.bf16 %v6146_v35  ;;  %v6147_v49 = vunpack.i.l.bf16 %v6146_v35 }
 0x885   : > { %v4368_v9 = vsel %vm1972_vm15, %v4325_v30, %v6147_v49  ;;  %v4369_v12 = vsel %vm1972_vm15, %v4327_v55, %v6148_v6 }
 0x886   : > { %v4370_v11 = vpack.c.bf16 %v4368_v9, %v4297_v0  ;;  %v4371_v14 = vpack.c.bf16 %v4369_v12, %v4299_v3 }
 0x888   : > { %4372 = vst [vmem:[%s1352_s15] sm:$0xff] %v4370_v11 }
 0x889   : > { %4373 = vst [vmem:[%s1352_s15 + $0x8] sm:$0xff] %v4371_v14 }
 0x88a PF: > { %s7993_s8 = sld [smem:[#allocation75_spill]] }
 0x890   : > { %s82_s7 = sadd.s32 1, %s7993_s8  }
 0x891   : > { %p79_p3 = scmp.ge.s32.totalorder %s82_s7, 4  }
 0x893   :  { %81 = sbr.rel (!%p79_p3) target bundleno = 63 (0x3f), region = 305 }
 0x898   :  { %4395 = vsyncpa [#allocation6], 1 }
 0x899   :  { %4397 = vsyncpa [#allocation6 + $0x1], 1 }
 0x89a   :  { %4398 = vsyncpa [#allocation8], 1 }
 0x89b   :  { %4399 = vsyncpa [#allocation11], 1 }
 0x89c   :  { %4400 = vsyncpa [#allocation14], 1 }
 0x89d   :  { %4401 = vsyncpa [#allocation17], 1 }
 0x89e   :  { %4402 = vsyncpa [#allocation20], 1 }
 0x89f   :  { %4403 = vsyncpa [#allocation23], 1 }
 0x8a0   :  { %4404 = vsyncpa [#allocation26], 1 }
 0x8a1   :  { %4405 = vsyncpa [#allocation29], 1 }
 0x8a2   :  { %4406 = vsyncpa [#allocation32], 1 }
 0x8a3   :  { %4407 = vsyncpa [#allocation35], 1 }
 0x8a4   :  { %4408 = vsyncpa [#allocation38], 1 }
 0x8a5   :  { %4409 = vsyncpa [#allocation41], 1 }

</bundles_post_ra>
